<compile_context>
chip_gen: v7x
topology: tpu7x:2x2x1
jax: 0.10.0
libtpu: 0.0.40
codegen_flags: <defaults>
</compile_context>

<pallas_src>
import numpy as np
import jax
import jax.numpy as jnp
from jax import lax
from jax.experimental import pallas as pl
from jax.experimental.pallas import tpu as pltpu

PI = float(np.pi)
B_SUB = 8      # waveforms packed per sublane group (full vreg occupancy)
HALO = 128     # halo lanes appended to each time tile (must be >= L-1)


# ----------------------------- parameter glue ------------------------------
def hanning_filters(len_firs: int, wc: jnp.ndarray, bw: jnp.ndarray) -> jnp.ndarray:
    """JAX port of Hanning(len_FIRs, wc, bw). wc, bw: (num, 1) -> (num, L)."""
    L = len_firs
    deltaW = 6.2 * PI / L
    n = jnp.linspace(0.0, L - 1, L, dtype=jnp.float32)[None, :]          # (1, L)
    wn = 0.5 * (1.0 - jnp.cos(2.0 * PI * n / (L - 1)))                   # (1, L)
    lamdan = (2.0 * n - L + 1.0) / 4.0 - 0.0001                          # (1, L)
    hdn = (jnp.sin(lamdan * (2.0 * wc + bw + deltaW))
           - jnp.sin(lamdan * (2.0 * wc - bw - deltaW))) / (2.0 * lamdan * PI)
    return (hdn * wn).astype(jnp.float32)                                # (num, L)


def init_fir_params(num_firs: int):
    """Deterministic parameter init matching FIRFiltering.__init__."""
    wc = jnp.linspace(0.0, PI, num_firs + 2, dtype=jnp.float32)[1:-1][:, None]  # (num,1)
    bw = 0.01 * PI * jnp.ones((num_firs, 1), dtype=jnp.float32)                  # (num,1)
    return wc, bw


# ------------------------------ Pallas kernel -------------------------------
def fir_tap_kernel(filt_ref, x0_ref, xh_ref, out_ref, xw_ref):
    """Tap-accumulation FIR cross-correlation on one (B_SUB, t_tile) tile.

    filt_ref : SMEM (num, L) f32            filter bank, read as scalars
    x0_ref   : VMEM (B_SUB, t_tile)         current input tile
    xh_ref   : VMEM (B_SUB, HALO)           next-128-lane halo strip
    out_ref  : VMEM (1, num, B_SUB, t_tile) output block (batch sublane-minor)
    xw_ref   : VMEM (B_SUB, t_tile + HALO)  scratch: halo'd window
    """
    num, L = filt_ref.shape
    b_sub, t_tile = x0_ref.shape
    halo = xh_ref.shape[-1]

    # Lane chunk: bounds live accumulator vregs regardless of t_tile.
    chunk = 256 if (t_tile % 256 == 0) else 128
    n_chunks = t_tile // chunk
    # Keep (filters-per-group * chunk/128) accumulator vregs <= 16.
    fgroup = max(1, min(num, (16 * 128) // chunk))

    # Assemble the halo'd window once (cheap: ~(t_tile+halo)/128 loads/stores).
    xw_ref[:, :t_tile] = x0_ref[...]
    xw_ref[:, t_tile:] = xh_ref[...]

    def chunk_body(c, carry):
        base = pl.multiple_of(c * chunk, chunk)
        # Aligned multi-vreg load of this chunk + its halo; the per-tap shifted
        # views below are static lane slices of this value (XLU lane shifts,
        # not VMEM copies).
        xwin = xw_ref[:, pl.ds(base, chunk + halo)]                      # (B_SUB, chunk+halo)
        for f0 in range(0, num, fgroup):
            fg = min(fgroup, num - f0)
            accs = [jnp.zeros((b_sub, chunk), jnp.float32) for _ in range(fg)]
            for k in range(L):                   # taps (static unroll, L small)
                xs = xwin[:, k:k + chunk]        # shifted window
                for j in range(fg):              # scalar-coefficient VPU FMA
                    accs[j] = accs[j] + filt_ref[f0 + j, k] * xs
            for j in range(fg):                  # contiguous full-vreg stores
                out_ref[0, f0 + j, :, pl.ds(base, chunk)] = accs[j].astype(out_ref.dtype)
        return carry

    lax.fori_loop(0, n_chunks, chunk_body, 0, unroll=False)


# ------------------------------- wrapper ------------------------------------
def _pick_t_tile(T_out: int, nb: int) -> int:
    """Big tiles amortize per-step overhead; shrink only to keep the grid fed."""
    t = 1024
    while t > 256 and nb * (-(-T_out // t)) < 8:
        t //= 2
    return t


def fir_filtering(waveforms: jnp.ndarray, filters: jnp.ndarray, *, t_tile: int | None = None) -> jnp.ndarray:
    """waveforms: (B, 1, T); filters: (num, L) -> (B, num, T_out), matching
    F.conv1d(padding=(L-1)//2) semantics (T_out == T for odd L, T-1 for even L).
    """
    B, C, T = waveforms.shape
    assert C == 1, "FIRFiltering uses in_channels=1 filters (groups=1)"
    num, L = filters.shape
    # TODO(synk): filters longer than HALO+1 taps need a wider halo block.
    assert L - 1 <= HALO, "filter length must satisfy L-1 <= 128"

    pad = (L - 1) // 2
    T_out = T + 2 * pad - L + 1                  # F.conv1d output length

    B_pad = (-(-B // B_SUB)) * B_SUB
    nb = B_pad // B_SUB
    if t_tile is None:
        t_tile = _pick_t_tile(T_out, nb)
    assert t_tile % 128 == 0, "t_tile must be lane-dense (multiple of 128)"

    nt = -(-T_out // t_tile)
    T_out_pad = nt * t_tile
    T_in = T_out_pad + HALO                      # the last tile's halo stays in-bounds

    x = waveforms[:, 0, :].astype(jnp.float32)   # (B, T)
    # Single layout op: conv zero-padding + batch/tile alignment in one pass.
    xin = jnp.pad(x, ((0, B_pad - B), (pad, T_in - T - pad)))            # (B_pad, T_in)
    filt = filters.astype(jnp.float32)

    # Explicit VMEM budget from the working set (double-buffered blocks + scratch).
    blk_bytes = 4 * (B_SUB * t_tile + B_SUB * HALO + num * B_SUB * t_tile)
    scratch_bytes = 4 * B_SUB * (t_tile + HALO)
    vmem_limit = int(min(max(4 * (2 * blk_bytes + scratch_bytes) + (4 << 20), 16 << 20), 64 << 20))

    out = pl.pallas_call(
        fir_tap_kernel,
        out_shape=jax.ShapeDtypeStruct((nb, num, B_SUB, T_out_pad), jnp.float32),
        grid_spec=pltpu.PrefetchScalarGridSpec(
            num_scalar_prefetch=0,
            grid=(nb, nt),
            in_specs=[
                # filter taps: whole (num, L) table in SMEM, read as scalars
                pl.BlockSpec(memory_space=pltpu.MemorySpace.SMEM),
                # current input tile
                pl.BlockSpec((B_SUB, t_tile), lambda bt, tt: (bt, tt)),
                # 128-lane halo strip immediately following the current tile
                pl.BlockSpec((B_SUB, HALO),
                             lambda bt, tt: (bt, (tt + 1) * (t_tile // HALO))),
            ],
            out_specs=pl.BlockSpec((1, num, B_SUB, t_tile),
                                   lambda bt, tt: (bt, 0, 0, tt)),
            scratch_shapes=[pltpu.VMEM((B_SUB, t_tile + HALO), jnp.float32)],
        ),
        compiler_params=pltpu.CompilerParams(
            dimension_semantics=("parallel", "parallel"),
            vmem_limit_bytes=vmem_limit,
        ),
    )(filt, xin, xin)

    # Undo the sublane-minor output layout with one cheap host-side transpose.
    out = jnp.transpose(out, (0, 2, 1, 3)).reshape(B_pad, num, T_out_pad)
    return out[:B, :, :T_out].astype(waveforms.dtype)


# ---------------------------------- main ------------------------------------
if __name__ == "__main__":
    # Small but representative shapes for the module's forward.
    B, T = 2, 700
    num_firs, len_firs = 8, 33   # odd L -> 'same' output length

    key = jax.random.PRNGKey(0)
    waveforms = jax.random.normal(key, (B, 1, T), dtype=jnp.float32)

    wc, bw = init_fir_params(num_firs)
    filters = hanning_filters(len_firs, wc, bw)                          # (num, L)

    # Reference: numpy cross-correlation, matching F.conv1d semantics.
    pad = (len_firs - 1) // 2
    xp = np.pad(np.asarray(waveforms)[:, 0, :], ((0, 0), (pad, pad)))
    fl = np.asarray(filters)
    T_out = xp.shape[1] - len_firs + 1
    ref = np.zeros((B, num_firs, T_out), dtype=np.float32)
    for b in range(B):
        for f in range(num_firs):
            ref[b, f] = np.correlate(xp[b], fl[f], mode="valid")

    # Run with the auto-picked tile, and once more with an explicit bigger tile
    # to also exercise the multi-chunk inner loop + cross-tile halo path.
    yout = jax.block_until_ready(fir_filtering(waveforms, filters))
    assert yout.shape == (B, num_firs, T_out), yout.shape
    np.testing.assert_allclose(np.asarray(yout), ref, rtol=1e-5, atol=1e-4)

    yout2 = jax.block_until_ready(fir_filtering(waveforms, filters, t_tile=512))
    np.testing.assert_allclose(np.asarray(yout2), ref, rtol=1e-5, atol=1e-4)

    print("KERNEL_OK")
</pallas_src>

<mosaic_0001>
module attributes {stable_mosaic.version = 11 : i64} {
  func.func @fir_tap_kernel(%arg0: i32, %arg1: i32, %arg2: memref<8x33xf32, #tpu.memory_space<smem>>, %arg3: memref<8x256xf32, #tpu.memory_space<vmem>>, %arg4: memref<8x128xf32, #tpu.memory_space<vmem>>, %arg5: memref<1x8x8x256xf32, #tpu.memory_space<vmem>>, %arg6: memref<8x384xf32, #tpu.memory_space<vmem>>) attributes {dimension_semantics = [#tpu.dimension_semantics<parallel>, #tpu.dimension_semantics<parallel>], iteration_bounds = array<i64: 1, 3>, scalar_prefetch = 0 : i64, scratch_operands = 1 : i64, tpu.core_type = #tpu.core_type<tc>, window_params = [{transform_indices = @transform_0, window_bounds = array<i64: 8, 33>}, {transform_indices = @transform_1, window_bounds = array<i64: 8, 256>}, {transform_indices = @transform_2, window_bounds = array<i64: 8, 128>}, {transform_indices = @transform_3, window_bounds = array<i64: 1, 8, 8, 256>}]} {
    %c0 = arith.constant 0 : index
    %c0_0 = arith.constant 0 : index
    %0 = vector.load %arg3[%c0, %c0_0] : memref<8x256xf32, #tpu.memory_space<vmem>>, vector<8x256xf32>
    %c0_1 = arith.constant 0 : index
    %c0_2 = arith.constant 0 : index
    %1 = vector.load %arg6[%c0_1, %c0_2] : memref<8x384xf32, #tpu.memory_space<vmem>>, vector<8x256xf32>
    tpu.vector_store %arg6[%c0_1, %c0_2], %0 {strides = array<i32>} : memref<8x384xf32, #tpu.memory_space<vmem>>, vector<8x256xf32>,
    %c0_3 = arith.constant 0 : index
    %c0_4 = arith.constant 0 : index
    %2 = vector.load %arg4[%c0_3, %c0_4] : memref<8x128xf32, #tpu.memory_space<vmem>>, vector<8x128xf32>
    %c0_5 = arith.constant 0 : index
    %c256 = arith.constant 256 : index
    %3 = vector.load %arg6[%c0_5, %c256] : memref<8x384xf32, #tpu.memory_space<vmem>>, vector<8x128xf32>
    tpu.vector_store %arg6[%c0_5, %c256], %2 {strides = array<i32>} : memref<8x384xf32, #tpu.memory_space<vmem>>, vector<8x128xf32>,
    %c0_i32 = arith.constant 0 : i32
    %c256_i32 = arith.constant 256 : i32
    %4 = arith.muli %c0_i32, %c256_i32 : i32
    %5 = tpu.assume_multiple %4, 256 : i32
    %c0_6 = arith.constant 0 : index
    %6 = arith.index_cast %5 : i32 to index
    %7 = vector.load %arg6[%c0_6, %6] : memref<8x384xf32, #tpu.memory_space<vmem>>, vector<8x384xf32>
    %cst = arith.constant 0.000000e+00 : f32
    %8 = vector.broadcast %cst : f32 to vector<8x256xf32>
    %cst_7 = arith.constant 0.000000e+00 : f32
    %9 = vector.broadcast %cst_7 : f32 to vector<8x256xf32>
    %cst_8 = arith.constant 0.000000e+00 : f32
    %10 = vector.broadcast %cst_8 : f32 to vector<8x256xf32>
    %cst_9 = arith.constant 0.000000e+00 : f32
    %11 = vector.broadcast %cst_9 : f32 to vector<8x256xf32>
    %cst_10 = arith.constant 0.000000e+00 : f32
    %12 = vector.broadcast %cst_10 : f32 to vector<8x256xf32>
    %cst_11 = arith.constant 0.000000e+00 : f32
    %13 = vector.broadcast %cst_11 : f32 to vector<8x256xf32>
    %cst_12 = arith.constant 0.000000e+00 : f32
    %14 = vector.broadcast %cst_12 : f32 to vector<8x256xf32>
    %cst_13 = arith.constant 0.000000e+00 : f32
    %15 = vector.broadcast %cst_13 : f32 to vector<8x256xf32>
    %16 = vector.extract_strided_slice %7 {offsets = [0, 0], sizes = [8, 256], strides = [1, 1]} : vector<8x384xf32> to vector<8x256xf32>
    %c0_14 = arith.constant 0 : index
    %c0_15 = arith.constant 0 : index
    %17 = memref.load %arg2[%c0_14, %c0_15] : memref<8x33xf32, #tpu.memory_space<smem>>
    %18 = vector.broadcast %17 : f32 to vector<8x256xf32>
    %19 = arith.mulf %18, %16 : vector<8x256xf32>
    %20 = arith.addf %8, %19 : vector<8x256xf32>
    %c1 = arith.constant 1 : index
    %c0_16 = arith.constant 0 : index
    %21 = memref.load %arg2[%c1, %c0_16] : memref<8x33xf32, #tpu.memory_space<smem>>
    %22 = vector.broadcast %21 : f32 to vector<8x256xf32>
    %23 = arith.mulf %22, %16 : vector<8x256xf32>
    %24 = arith.addf %9, %23 : vector<8x256xf32>
    %c2 = arith.constant 2 : index
    %c0_17 = arith.constant 0 : index
    %25 = memref.load %arg2[%c2, %c0_17] : memref<8x33xf32, #tpu.memory_space<smem>>
    %26 = vector.broadcast %25 : f32 to vector<8x256xf32>
    %27 = arith.mulf %26, %16 : vector<8x256xf32>
    %28 = arith.addf %10, %27 : vector<8x256xf32>
    %c3 = arith.constant 3 : index
    %c0_18 = arith.constant 0 : index
    %29 = memref.load %arg2[%c3, %c0_18] : memref<8x33xf32, #tpu.memory_space<smem>>
    %30 = vector.broadcast %29 : f32 to vector<8x256xf32>
    %31 = arith.mulf %30, %16 : vector<8x256xf32>
    %32 = arith.addf %11, %31 : vector<8x256xf32>
    %c4 = arith.constant 4 : index
    %c0_19 = arith.constant 0 : index
    %33 = memref.load %arg2[%c4, %c0_19] : memref<8x33xf32, #tpu.memory_space<smem>>
    %34 = vector.broadcast %33 : f32 to vector<8x256xf32>
    %35 = arith.mulf %34, %16 : vector<8x256xf32>
    %36 = arith.addf %12, %35 : vector<8x256xf32>
    %c5 = arith.constant 5 : index
    %c0_20 = arith.constant 0 : index
    %37 = memref.load %arg2[%c5, %c0_20] : memref<8x33xf32, #tpu.memory_space<smem>>
    %38 = vector.broadcast %37 : f32 to vector<8x256xf32>
    %39 = arith.mulf %38, %16 : vector<8x256xf32>
    %40 = arith.addf %13, %39 : vector<8x256xf32>
    %c6 = arith.constant 6 : index
    %c0_21 = arith.constant 0 : index
    %41 = memref.load %arg2[%c6, %c0_21] : memref<8x33xf32, #tpu.memory_space<smem>>
    %42 = vector.broadcast %41 : f32 to vector<8x256xf32>
    %43 = arith.mulf %42, %16 : vector<8x256xf32>
    %44 = arith.addf %14, %43 : vector<8x256xf32>
    %c7 = arith.constant 7 : index
    %c0_22 = arith.constant 0 : index
    %45 = memref.load %arg2[%c7, %c0_22] : memref<8x33xf32, #tpu.memory_space<smem>>
    %46 = vector.broadcast %45 : f32 to vector<8x256xf32>
    %47 = arith.mulf %46, %16 : vector<8x256xf32>
    %48 = arith.addf %15, %47 : vector<8x256xf32>
    %49 = vector.extract_strided_slice %7 {offsets = [0, 1], sizes = [8, 256], strides = [1, 1]} : vector<8x384xf32> to vector<8x256xf32>
    %c0_23 = arith.constant 0 : index
    %c1_24 = arith.constant 1 : index
    %50 = memref.load %arg2[%c0_23, %c1_24] : memref<8x33xf32, #tpu.memory_space<smem>>
    %51 = vector.broadcast %50 : f32 to vector<8x256xf32>
    %52 = arith.mulf %51, %49 : vector<8x256xf32>
    %53 = arith.addf %20, %52 : vector<8x256xf32>
    %c1_25 = arith.constant 1 : index
    %c1_26 = arith.constant 1 : index
    %54 = memref.load %arg2[%c1_25, %c1_26] : memref<8x33xf32, #tpu.memory_space<smem>>
    %55 = vector.broadcast %54 : f32 to vector<8x256xf32>
    %56 = arith.mulf %55, %49 : vector<8x256xf32>
    %57 = arith.addf %24, %56 : vector<8x256xf32>
    %c2_27 = arith.constant 2 : index
    %c1_28 = arith.constant 1 : index
    %58 = memref.load %arg2[%c2_27, %c1_28] : memref<8x33xf32, #tpu.memory_space<smem>>
    %59 = vector.broadcast %58 : f32 to vector<8x256xf32>
    %60 = arith.mulf %59, %49 : vector<8x256xf32>
    %61 = arith.addf %28, %60 : vector<8x256xf32>
    %c3_29 = arith.constant 3 : index
    %c1_30 = arith.constant 1 : index
    %62 = memref.load %arg2[%c3_29, %c1_30] : memref<8x33xf32, #tpu.memory_space<smem>>
    %63 = vector.broadcast %62 : f32 to vector<8x256xf32>
    %64 = arith.mulf %63, %49 : vector<8x256xf32>
    %65 = arith.addf %32, %64 : vector<8x256xf32>
    %c4_31 = arith.constant 4 : index
    %c1_32 = arith.constant 1 : index
    %66 = memref.load %arg2[%c4_31, %c1_32] : memref<8x33xf32, #tpu.memory_space<smem>>
    %67 = vector.broadcast %66 : f32 to vector<8x256xf32>
    %68 = arith.mulf %67, %49 : vector<8x256xf32>
    %69 = arith.addf %36, %68 : vector<8x256xf32>
    %c5_33 = arith.constant 5 : index
    %c1_34 = arith.constant 1 : index
    %70 = memref.load %arg2[%c5_33, %c1_34] : memref<8x33xf32, #tpu.memory_space<smem>>
    %71 = vector.broadcast %70 : f32 to vector<8x256xf32>
    %72 = arith.mulf %71, %49 : vector<8x256xf32>
    %73 = arith.addf %40, %72 : vector<8x256xf32>
    %c6_35 = arith.constant 6 : index
    %c1_36 = arith.constant 1 : index
    %74 = memref.load %arg2[%c6_35, %c1_36] : memref<8x33xf32, #tpu.memory_space<smem>>
    %75 = vector.broadcast %74 : f32 to vector<8x256xf32>
    %76 = arith.mulf %75, %49 : vector<8x256xf32>
    %77 = arith.addf %44, %76 : vector<8x256xf32>
    %c7_37 = arith.constant 7 : index
    %c1_38 = arith.constant 1 : index
    %78 = memref.load %arg2[%c7_37, %c1_38] : memref<8x33xf32, #tpu.memory_space<smem>>
    %79 = vector.broadcast %78 : f32 to vector<8x256xf32>
    %80 = arith.mulf %79, %49 : vector<8x256xf32>
    %81 = arith.addf %48, %80 : vector<8x256xf32>
    %82 = vector.extract_strided_slice %7 {offsets = [0, 2], sizes = [8, 256], strides = [1, 1]} : vector<8x384xf32> to vector<8x256xf32>
    %c0_39 = arith.constant 0 : index
    %c2_40 = arith.constant 2 : index
    %83 = memref.load %arg2[%c0_39, %c2_40] : memref<8x33xf32, #tpu.memory_space<smem>>
    %84 = vector.broadcast %83 : f32 to vector<8x256xf32>
    %85 = arith.mulf %84, %82 : vector<8x256xf32>
    %86 = arith.addf %53, %85 : vector<8x256xf32>
    %c1_41 = arith.constant 1 : index
    %c2_42 = arith.constant 2 : index
    %87 = memref.load %arg2[%c1_41, %c2_42] : memref<8x33xf32, #tpu.memory_space<smem>>
    %88 = vector.broadcast %87 : f32 to vector<8x256xf32>
    %89 = arith.mulf %88, %82 : vector<8x256xf32>
    %90 = arith.addf %57, %89 : vector<8x256xf32>
    %c2_43 = arith.constant 2 : index
    %c2_44 = arith.constant 2 : index
    %91 = memref.load %arg2[%c2_43, %c2_44] : memref<8x33xf32, #tpu.memory_space<smem>>
    %92 = vector.broadcast %91 : f32 to vector<8x256xf32>
    %93 = arith.mulf %92, %82 : vector<8x256xf32>
    %94 = arith.addf %61, %93 : vector<8x256xf32>
    %c3_45 = arith.constant 3 : index
    %c2_46 = arith.constant 2 : index
    %95 = memref.load %arg2[%c3_45, %c2_46] : memref<8x33xf32, #tpu.memory_space<smem>>
    %96 = vector.broadcast %95 : f32 to vector<8x256xf32>
    %97 = arith.mulf %96, %82 : vector<8x256xf32>
    %98 = arith.addf %65, %97 : vector<8x256xf32>
    %c4_47 = arith.constant 4 : index
    %c2_48 = arith.constant 2 : index
    %99 = memref.load %arg2[%c4_47, %c2_48] : memref<8x33xf32, #tpu.memory_space<smem>>
    %100 = vector.broadcast %99 : f32 to vector<8x256xf32>
    %101 = arith.mulf %100, %82 : vector<8x256xf32>
    %102 = arith.addf %69, %101 : vector<8x256xf32>
    %c5_49 = arith.constant 5 : index
    %c2_50 = arith.constant 2 : index
    %103 = memref.load %arg2[%c5_49, %c2_50] : memref<8x33xf32, #tpu.memory_space<smem>>
    %104 = vector.broadcast %103 : f32 to vector<8x256xf32>
    %105 = arith.mulf %104, %82 : vector<8x256xf32>
    %106 = arith.addf %73, %105 : vector<8x256xf32>
    %c6_51 = arith.constant 6 : index
    %c2_52 = arith.constant 2 : index
    %107 = memref.load %arg2[%c6_51, %c2_52] : memref<8x33xf32, #tpu.memory_space<smem>>
    %108 = vector.broadcast %107 : f32 to vector<8x256xf32>
    %109 = arith.mulf %108, %82 : vector<8x256xf32>
    %110 = arith.addf %77, %109 : vector<8x256xf32>
    %c7_53 = arith.constant 7 : index
    %c2_54 = arith.constant 2 : index
    %111 = memref.load %arg2[%c7_53, %c2_54] : memref<8x33xf32, #tpu.memory_space<smem>>
    %112 = vector.broadcast %111 : f32 to vector<8x256xf32>
    %113 = arith.mulf %112, %82 : vector<8x256xf32>
    %114 = arith.addf %81, %113 : vector<8x256xf32>
    %115 = vector.extract_strided_slice %7 {offsets = [0, 3], sizes = [8, 256], strides = [1, 1]} : vector<8x384xf32> to vector<8x256xf32>
    %c0_55 = arith.constant 0 : index
    %c3_56 = arith.constant 3 : index
    %116 = memref.load %arg2[%c0_55, %c3_56] : memref<8x33xf32, #tpu.memory_space<smem>>
    %117 = vector.broadcast %116 : f32 to vector<8x256xf32>
    %118 = arith.mulf %117, %115 : vector<8x256xf32>
    %119 = arith.addf %86, %118 : vector<8x256xf32>
    %c1_57 = arith.constant 1 : index
    %c3_58 = arith.constant 3 : index
    %120 = memref.load %arg2[%c1_57, %c3_58] : memref<8x33xf32, #tpu.memory_space<smem>>
    %121 = vector.broadcast %120 : f32 to vector<8x256xf32>
    %122 = arith.mulf %121, %115 : vector<8x256xf32>
    %123 = arith.addf %90, %122 : vector<8x256xf32>
    %c2_59 = arith.constant 2 : index
    %c3_60 = arith.constant 3 : index
    %124 = memref.load %arg2[%c2_59, %c3_60] : memref<8x33xf32, #tpu.memory_space<smem>>
    %125 = vector.broadcast %124 : f32 to vector<8x256xf32>
    %126 = arith.mulf %125, %115 : vector<8x256xf32>
    %127 = arith.addf %94, %126 : vector<8x256xf32>
    %c3_61 = arith.constant 3 : index
    %c3_62 = arith.constant 3 : index
    %128 = memref.load %arg2[%c3_61, %c3_62] : memref<8x33xf32, #tpu.memory_space<smem>>
    %129 = vector.broadcast %128 : f32 to vector<8x256xf32>
    %130 = arith.mulf %129, %115 : vector<8x256xf32>
    %131 = arith.addf %98, %130 : vector<8x256xf32>
    %c4_63 = arith.constant 4 : index
    %c3_64 = arith.constant 3 : index
    %132 = memref.load %arg2[%c4_63, %c3_64] : memref<8x33xf32, #tpu.memory_space<smem>>
    %133 = vector.broadcast %132 : f32 to vector<8x256xf32>
    %134 = arith.mulf %133, %115 : vector<8x256xf32>
    %135 = arith.addf %102, %134 : vector<8x256xf32>
    %c5_65 = arith.constant 5 : index
    %c3_66 = arith.constant 3 : index
    %136 = memref.load %arg2[%c5_65, %c3_66] : memref<8x33xf32, #tpu.memory_space<smem>>
    %137 = vector.broadcast %136 : f32 to vector<8x256xf32>
    %138 = arith.mulf %137, %115 : vector<8x256xf32>
    %139 = arith.addf %106, %138 : vector<8x256xf32>
    %c6_67 = arith.constant 6 : index
    %c3_68 = arith.constant 3 : index
    %140 = memref.load %arg2[%c6_67, %c3_68] : memref<8x33xf32, #tpu.memory_space<smem>>
    %141 = vector.broadcast %140 : f32 to vector<8x256xf32>
    %142 = arith.mulf %141, %115 : vector<8x256xf32>
    %143 = arith.addf %110, %142 : vector<8x256xf32>
    %c7_69 = arith.constant 7 : index
    %c3_70 = arith.constant 3 : index
    %144 = memref.load %arg2[%c7_69, %c3_70] : memref<8x33xf32, #tpu.memory_space<smem>>
    %145 = vector.broadcast %144 : f32 to vector<8x256xf32>
    %146 = arith.mulf %145, %115 : vector<8x256xf32>
    %147 = arith.addf %114, %146 : vector<8x256xf32>
    %148 = vector.extract_strided_slice %7 {offsets = [0, 4], sizes = [8, 256], strides = [1, 1]} : vector<8x384xf32> to vector<8x256xf32>
    %c0_71 = arith.constant 0 : index
    %c4_72 = arith.constant 4 : index
    %149 = memref.load %arg2[%c0_71, %c4_72] : memref<8x33xf32, #tpu.memory_space<smem>>
    %150 = vector.broadcast %149 : f32 to vector<8x256xf32>
    %151 = arith.mulf %150, %148 : vector<8x256xf32>
    %152 = arith.addf %119, %151 : vector<8x256xf32>
    %c1_73 = arith.constant 1 : index
    %c4_74 = arith.constant 4 : index
    %153 = memref.load %arg2[%c1_73, %c4_74] : memref<8x33xf32, #tpu.memory_space<smem>>
    %154 = vector.broadcast %153 : f32 to vector<8x256xf32>
    %155 = arith.mulf %154, %148 : vector<8x256xf32>
    %156 = arith.addf %123, %155 : vector<8x256xf32>
    %c2_75 = arith.constant 2 : index
    %c4_76 = arith.constant 4 : index
    %157 = memref.load %arg2[%c2_75, %c4_76] : memref<8x33xf32, #tpu.memory_space<smem>>
    %158 = vector.broadcast %157 : f32 to vector<8x256xf32>
    %159 = arith.mulf %158, %148 : vector<8x256xf32>
    %160 = arith.addf %127, %159 : vector<8x256xf32>
    %c3_77 = arith.constant 3 : index
    %c4_78 = arith.constant 4 : index
    %161 = memref.load %arg2[%c3_77, %c4_78] : memref<8x33xf32, #tpu.memory_space<smem>>
    %162 = vector.broadcast %161 : f32 to vector<8x256xf32>
    %163 = arith.mulf %162, %148 : vector<8x256xf32>
    %164 = arith.addf %131, %163 : vector<8x256xf32>
    %c4_79 = arith.constant 4 : index
    %c4_80 = arith.constant 4 : index
    %165 = memref.load %arg2[%c4_79, %c4_80] : memref<8x33xf32, #tpu.memory_space<smem>>
    %166 = vector.broadcast %165 : f32 to vector<8x256xf32>
    %167 = arith.mulf %166, %148 : vector<8x256xf32>
    %168 = arith.addf %135, %167 : vector<8x256xf32>
    %c5_81 = arith.constant 5 : index
    %c4_82 = arith.constant 4 : index
    %169 = memref.load %arg2[%c5_81, %c4_82] : memref<8x33xf32, #tpu.memory_space<smem>>
    %170 = vector.broadcast %169 : f32 to vector<8x256xf32>
    %171 = arith.mulf %170, %148 : vector<8x256xf32>
    %172 = arith.addf %139, %171 : vector<8x256xf32>
    %c6_83 = arith.constant 6 : index
    %c4_84 = arith.constant 4 : index
    %173 = memref.load %arg2[%c6_83, %c4_84] : memref<8x33xf32, #tpu.memory_space<smem>>
    %174 = vector.broadcast %173 : f32 to vector<8x256xf32>
    %175 = arith.mulf %174, %148 : vector<8x256xf32>
    %176 = arith.addf %143, %175 : vector<8x256xf32>
    %c7_85 = arith.constant 7 : index
    %c4_86 = arith.constant 4 : index
    %177 = memref.load %arg2[%c7_85, %c4_86] : memref<8x33xf32, #tpu.memory_space<smem>>
    %178 = vector.broadcast %177 : f32 to vector<8x256xf32>
    %179 = arith.mulf %178, %148 : vector<8x256xf32>
    %180 = arith.addf %147, %179 : vector<8x256xf32>
    %181 = vector.extract_strided_slice %7 {offsets = [0, 5], sizes = [8, 256], strides = [1, 1]} : vector<8x384xf32> to vector<8x256xf32>
    %c0_87 = arith.constant 0 : index
    %c5_88 = arith.constant 5 : index
    %182 = memref.load %arg2[%c0_87, %c5_88] : memref<8x33xf32, #tpu.memory_space<smem>>
    %183 = vector.broadcast %182 : f32 to vector<8x256xf32>
    %184 = arith.mulf %183, %181 : vector<8x256xf32>
    %185 = arith.addf %152, %184 : vector<8x256xf32>
    %c1_89 = arith.constant 1 : index
    %c5_90 = arith.constant 5 : index
    %186 = memref.load %arg2[%c1_89, %c5_90] : memref<8x33xf32, #tpu.memory_space<smem>>
    %187 = vector.broadcast %186 : f32 to vector<8x256xf32>
    %188 = arith.mulf %187, %181 : vector<8x256xf32>
    %189 = arith.addf %156, %188 : vector<8x256xf32>
    %c2_91 = arith.constant 2 : index
    %c5_92 = arith.constant 5 : index
    %190 = memref.load %arg2[%c2_91, %c5_92] : memref<8x33xf32, #tpu.memory_space<smem>>
    %191 = vector.broadcast %190 : f32 to vector<8x256xf32>
    %192 = arith.mulf %191, %181 : vector<8x256xf32>
    %193 = arith.addf %160, %192 : vector<8x256xf32>
    %c3_93 = arith.constant 3 : index
    %c5_94 = arith.constant 5 : index
    %194 = memref.load %arg2[%c3_93, %c5_94] : memref<8x33xf32, #tpu.memory_space<smem>>
    %195 = vector.broadcast %194 : f32 to vector<8x256xf32>
    %196 = arith.mulf %195, %181 : vector<8x256xf32>
    %197 = arith.addf %164, %196 : vector<8x256xf32>
    %c4_95 = arith.constant 4 : index
    %c5_96 = arith.constant 5 : index
    %198 = memref.load %arg2[%c4_95, %c5_96] : memref<8x33xf32, #tpu.memory_space<smem>>
    %199 = vector.broadcast %198 : f32 to vector<8x256xf32>
    %200 = arith.mulf %199, %181 : vector<8x256xf32>
    %201 = arith.addf %168, %200 : vector<8x256xf32>
    %c5_97 = arith.constant 5 : index
    %c5_98 = arith.constant 5 : index
    %202 = memref.load %arg2[%c5_97, %c5_98] : memref<8x33xf32, #tpu.memory_space<smem>>
    %203 = vector.broadcast %202 : f32 to vector<8x256xf32>
    %204 = arith.mulf %203, %181 : vector<8x256xf32>
    %205 = arith.addf %172, %204 : vector<8x256xf32>
    %c6_99 = arith.constant 6 : index
    %c5_100 = arith.constant 5 : index
    %206 = memref.load %arg2[%c6_99, %c5_100] : memref<8x33xf32, #tpu.memory_space<smem>>
    %207 = vector.broadcast %206 : f32 to vector<8x256xf32>
    %208 = arith.mulf %207, %181 : vector<8x256xf32>
    %209 = arith.addf %176, %208 : vector<8x256xf32>
    %c7_101 = arith.constant 7 : index
    %c5_102 = arith.constant 5 : index
    %210 = memref.load %arg2[%c7_101, %c5_102] : memref<8x33xf32, #tpu.memory_space<smem>>
    %211 = vector.broadcast %210 : f32 to vector<8x256xf32>
    %212 = arith.mulf %211, %181 : vector<8x256xf32>
    %213 = arith.addf %180, %212 : vector<8x256xf32>
    %214 = vector.extract_strided_slice %7 {offsets = [0, 6], sizes = [8, 256], strides = [1, 1]} : vector<8x384xf32> to vector<8x256xf32>
    %c0_103 = arith.constant 0 : index
    %c6_104 = arith.constant 6 : index
    %215 = memref.load %arg2[%c0_103, %c6_104] : memref<8x33xf32, #tpu.memory_space<smem>>
    %216 = vector.broadcast %215 : f32 to vector<8x256xf32>
    %217 = arith.mulf %216, %214 : vector<8x256xf32>
    %218 = arith.addf %185, %217 : vector<8x256xf32>
    %c1_105 = arith.constant 1 : index
    %c6_106 = arith.constant 6 : index
    %219 = memref.load %arg2[%c1_105, %c6_106] : memref<8x33xf32, #tpu.memory_space<smem>>
    %220 = vector.broadcast %219 : f32 to vector<8x256xf32>
    %221 = arith.mulf %220, %214 : vector<8x256xf32>
    %222 = arith.addf %189, %221 : vector<8x256xf32>
    %c2_107 = arith.constant 2 : index
    %c6_108 = arith.constant 6 : index
    %223 = memref.load %arg2[%c2_107, %c6_108] : memref<8x33xf32, #tpu.memory_space<smem>>
    %224 = vector.broadcast %223 : f32 to vector<8x256xf32>
    %225 = arith.mulf %224, %214 : vector<8x256xf32>
    %226 = arith.addf %193, %225 : vector<8x256xf32>
    %c3_109 = arith.constant 3 : index
    %c6_110 = arith.constant 6 : index
    %227 = memref.load %arg2[%c3_109, %c6_110] : memref<8x33xf32, #tpu.memory_space<smem>>
    %228 = vector.broadcast %227 : f32 to vector<8x256xf32>
    %229 = arith.mulf %228, %214 : vector<8x256xf32>
    %230 = arith.addf %197, %229 : vector<8x256xf32>
    %c4_111 = arith.constant 4 : index
    %c6_112 = arith.constant 6 : index
    %231 = memref.load %arg2[%c4_111, %c6_112] : memref<8x33xf32, #tpu.memory_space<smem>>
    %232 = vector.broadcast %231 : f32 to vector<8x256xf32>
    %233 = arith.mulf %232, %214 : vector<8x256xf32>
    %234 = arith.addf %201, %233 : vector<8x256xf32>
    %c5_113 = arith.constant 5 : index
    %c6_114 = arith.constant 6 : index
    %235 = memref.load %arg2[%c5_113, %c6_114] : memref<8x33xf32, #tpu.memory_space<smem>>
    %236 = vector.broadcast %235 : f32 to vector<8x256xf32>
    %237 = arith.mulf %236, %214 : vector<8x256xf32>
    %238 = arith.addf %205, %237 : vector<8x256xf32>
    %c6_115 = arith.constant 6 : index
    %c6_116 = arith.constant 6 : index
    %239 = memref.load %arg2[%c6_115, %c6_116] : memref<8x33xf32, #tpu.memory_space<smem>>
    %240 = vector.broadcast %239 : f32 to vector<8x256xf32>
    %241 = arith.mulf %240, %214 : vector<8x256xf32>
    %242 = arith.addf %209, %241 : vector<8x256xf32>
    %c7_117 = arith.constant 7 : index
    %c6_118 = arith.constant 6 : index
    %243 = memref.load %arg2[%c7_117, %c6_118] : memref<8x33xf32, #tpu.memory_space<smem>>
    %244 = vector.broadcast %243 : f32 to vector<8x256xf32>
    %245 = arith.mulf %244, %214 : vector<8x256xf32>
    %246 = arith.addf %213, %245 : vector<8x256xf32>
    %247 = vector.extract_strided_slice %7 {offsets = [0, 7], sizes = [8, 256], strides = [1, 1]} : vector<8x384xf32> to vector<8x256xf32>
    %c0_119 = arith.constant 0 : index
    %c7_120 = arith.constant 7 : index
    %248 = memref.load %arg2[%c0_119, %c7_120] : memref<8x33xf32, #tpu.memory_space<smem>>
    %249 = vector.broadcast %248 : f32 to vector<8x256xf32>
    %250 = arith.mulf %249, %247 : vector<8x256xf32>
    %251 = arith.addf %218, %250 : vector<8x256xf32>
    %c1_121 = arith.constant 1 : index
    %c7_122 = arith.constant 7 : index
    %252 = memref.load %arg2[%c1_121, %c7_122] : memref<8x33xf32, #tpu.memory_space<smem>>
    %253 = vector.broadcast %252 : f32 to vector<8x256xf32>
    %254 = arith.mulf %253, %247 : vector<8x256xf32>
    %255 = arith.addf %222, %254 : vector<8x256xf32>
    %c2_123 = arith.constant 2 : index
    %c7_124 = arith.constant 7 : index
    %256 = memref.load %arg2[%c2_123, %c7_124] : memref<8x33xf32, #tpu.memory_space<smem>>
    %257 = vector.broadcast %256 : f32 to vector<8x256xf32>
    %258 = arith.mulf %257, %247 : vector<8x256xf32>
    %259 = arith.addf %226, %258 : vector<8x256xf32>
    %c3_125 = arith.constant 3 : index
    %c7_126 = arith.constant 7 : index
    %260 = memref.load %arg2[%c3_125, %c7_126] : memref<8x33xf32, #tpu.memory_space<smem>>
    %261 = vector.broadcast %260 : f32 to vector<8x256xf32>
    %262 = arith.mulf %261, %247 : vector<8x256xf32>
    %263 = arith.addf %230, %262 : vector<8x256xf32>
    %c4_127 = arith.constant 4 : index
    %c7_128 = arith.constant 7 : index
    %264 = memref.load %arg2[%c4_127, %c7_128] : memref<8x33xf32, #tpu.memory_space<smem>>
    %265 = vector.broadcast %264 : f32 to vector<8x256xf32>
    %266 = arith.mulf %265, %247 : vector<8x256xf32>
    %267 = arith.addf %234, %266 : vector<8x256xf32>
    %c5_129 = arith.constant 5 : index
    %c7_130 = arith.constant 7 : index
    %268 = memref.load %arg2[%c5_129, %c7_130] : memref<8x33xf32, #tpu.memory_space<smem>>
    %269 = vector.broadcast %268 : f32 to vector<8x256xf32>
    %270 = arith.mulf %269, %247 : vector<8x256xf32>
    %271 = arith.addf %238, %270 : vector<8x256xf32>
    %c6_131 = arith.constant 6 : index
    %c7_132 = arith.constant 7 : index
    %272 = memref.load %arg2[%c6_131, %c7_132] : memref<8x33xf32, #tpu.memory_space<smem>>
    %273 = vector.broadcast %272 : f32 to vector<8x256xf32>
    %274 = arith.mulf %273, %247 : vector<8x256xf32>
    %275 = arith.addf %242, %274 : vector<8x256xf32>
    %c7_133 = arith.constant 7 : index
    %c7_134 = arith.constant 7 : index
    %276 = memref.load %arg2[%c7_133, %c7_134] : memref<8x33xf32, #tpu.memory_space<smem>>
    %277 = vector.broadcast %276 : f32 to vector<8x256xf32>
    %278 = arith.mulf %277, %247 : vector<8x256xf32>
    %279 = arith.addf %246, %278 : vector<8x256xf32>
    %280 = vector.extract_strided_slice %7 {offsets = [0, 8], sizes = [8, 256], strides = [1, 1]} : vector<8x384xf32> to vector<8x256xf32>
    %c0_135 = arith.constant 0 : index
    %c8 = arith.constant 8 : index
    %281 = memref.load %arg2[%c0_135, %c8] : memref<8x33xf32, #tpu.memory_space<smem>>
    %282 = vector.broadcast %281 : f32 to vector<8x256xf32>
    %283 = arith.mulf %282, %280 : vector<8x256xf32>
    %284 = arith.addf %251, %283 : vector<8x256xf32>
    %c1_136 = arith.constant 1 : index
    %c8_137 = arith.constant 8 : index
    %285 = memref.load %arg2[%c1_136, %c8_137] : memref<8x33xf32, #tpu.memory_space<smem>>
    %286 = vector.broadcast %285 : f32 to vector<8x256xf32>
    %287 = arith.mulf %286, %280 : vector<8x256xf32>
    %288 = arith.addf %255, %287 : vector<8x256xf32>
    %c2_138 = arith.constant 2 : index
    %c8_139 = arith.constant 8 : index
    %289 = memref.load %arg2[%c2_138, %c8_139] : memref<8x33xf32, #tpu.memory_space<smem>>
    %290 = vector.broadcast %289 : f32 to vector<8x256xf32>
    %291 = arith.mulf %290, %280 : vector<8x256xf32>
    %292 = arith.addf %259, %291 : vector<8x256xf32>
    %c3_140 = arith.constant 3 : index
    %c8_141 = arith.constant 8 : index
    %293 = memref.load %arg2[%c3_140, %c8_141] : memref<8x33xf32, #tpu.memory_space<smem>>
    %294 = vector.broadcast %293 : f32 to vector<8x256xf32>
    %295 = arith.mulf %294, %280 : vector<8x256xf32>
    %296 = arith.addf %263, %295 : vector<8x256xf32>
    %c4_142 = arith.constant 4 : index
    %c8_143 = arith.constant 8 : index
    %297 = memref.load %arg2[%c4_142, %c8_143] : memref<8x33xf32, #tpu.memory_space<smem>>
    %298 = vector.broadcast %297 : f32 to vector<8x256xf32>
    %299 = arith.mulf %298, %280 : vector<8x256xf32>
    %300 = arith.addf %267, %299 : vector<8x256xf32>
    %c5_144 = arith.constant 5 : index
    %c8_145 = arith.constant 8 : index
    %301 = memref.load %arg2[%c5_144, %c8_145] : memref<8x33xf32, #tpu.memory_space<smem>>
    %302 = vector.broadcast %301 : f32 to vector<8x256xf32>
    %303 = arith.mulf %302, %280 : vector<8x256xf32>
    %304 = arith.addf %271, %303 : vector<8x256xf32>
    %c6_146 = arith.constant 6 : index
    %c8_147 = arith.constant 8 : index
    %305 = memref.load %arg2[%c6_146, %c8_147] : memref<8x33xf32, #tpu.memory_space<smem>>
    %306 = vector.broadcast %305 : f32 to vector<8x256xf32>
    %307 = arith.mulf %306, %280 : vector<8x256xf32>
    %308 = arith.addf %275, %307 : vector<8x256xf32>
    %c7_148 = arith.constant 7 : index
    %c8_149 = arith.constant 8 : index
    %309 = memref.load %arg2[%c7_148, %c8_149] : memref<8x33xf32, #tpu.memory_space<smem>>
    %310 = vector.broadcast %309 : f32 to vector<8x256xf32>
    %311 = arith.mulf %310, %280 : vector<8x256xf32>
    %312 = arith.addf %279, %311 : vector<8x256xf32>
    %313 = vector.extract_strided_slice %7 {offsets = [0, 9], sizes = [8, 256], strides = [1, 1]} : vector<8x384xf32> to vector<8x256xf32>
    %c0_150 = arith.constant 0 : index
    %c9 = arith.constant 9 : index
    %314 = memref.load %arg2[%c0_150, %c9] : memref<8x33xf32, #tpu.memory_space<smem>>
    %315 = vector.broadcast %314 : f32 to vector<8x256xf32>
    %316 = arith.mulf %315, %313 : vector<8x256xf32>
    %317 = arith.addf %284, %316 : vector<8x256xf32>
    %c1_151 = arith.constant 1 : index
    %c9_152 = arith.constant 9 : index
    %318 = memref.load %arg2[%c1_151, %c9_152] : memref<8x33xf32, #tpu.memory_space<smem>>
    %319 = vector.broadcast %318 : f32 to vector<8x256xf32>
    %320 = arith.mulf %319, %313 : vector<8x256xf32>
    %321 = arith.addf %288, %320 : vector<8x256xf32>
    %c2_153 = arith.constant 2 : index
    %c9_154 = arith.constant 9 : index
    %322 = memref.load %arg2[%c2_153, %c9_154] : memref<8x33xf32, #tpu.memory_space<smem>>
    %323 = vector.broadcast %322 : f32 to vector<8x256xf32>
    %324 = arith.mulf %323, %313 : vector<8x256xf32>
    %325 = arith.addf %292, %324 : vector<8x256xf32>
    %c3_155 = arith.constant 3 : index
    %c9_156 = arith.constant 9 : index
    %326 = memref.load %arg2[%c3_155, %c9_156] : memref<8x33xf32, #tpu.memory_space<smem>>
    %327 = vector.broadcast %326 : f32 to vector<8x256xf32>
    %328 = arith.mulf %327, %313 : vector<8x256xf32>
    %329 = arith.addf %296, %328 : vector<8x256xf32>
    %c4_157 = arith.constant 4 : index
    %c9_158 = arith.constant 9 : index
    %330 = memref.load %arg2[%c4_157, %c9_158] : memref<8x33xf32, #tpu.memory_space<smem>>
    %331 = vector.broadcast %330 : f32 to vector<8x256xf32>
    %332 = arith.mulf %331, %313 : vector<8x256xf32>
    %333 = arith.addf %300, %332 : vector<8x256xf32>
    %c5_159 = arith.constant 5 : index
    %c9_160 = arith.constant 9 : index
    %334 = memref.load %arg2[%c5_159, %c9_160] : memref<8x33xf32, #tpu.memory_space<smem>>
    %335 = vector.broadcast %334 : f32 to vector<8x256xf32>
    %336 = arith.mulf %335, %313 : vector<8x256xf32>
    %337 = arith.addf %304, %336 : vector<8x256xf32>
    %c6_161 = arith.constant 6 : index
    %c9_162 = arith.constant 9 : index
    %338 = memref.load %arg2[%c6_161, %c9_162] : memref<8x33xf32, #tpu.memory_space<smem>>
    %339 = vector.broadcast %338 : f32 to vector<8x256xf32>
    %340 = arith.mulf %339, %313 : vector<8x256xf32>
    %341 = arith.addf %308, %340 : vector<8x256xf32>
    %c7_163 = arith.constant 7 : index
    %c9_164 = arith.constant 9 : index
    %342 = memref.load %arg2[%c7_163, %c9_164] : memref<8x33xf32, #tpu.memory_space<smem>>
    %343 = vector.broadcast %342 : f32 to vector<8x256xf32>
    %344 = arith.mulf %343, %313 : vector<8x256xf32>
    %345 = arith.addf %312, %344 : vector<8x256xf32>
    %346 = vector.extract_strided_slice %7 {offsets = [0, 10], sizes = [8, 256], strides = [1, 1]} : vector<8x384xf32> to vector<8x256xf32>
    %c0_165 = arith.constant 0 : index
    %c10 = arith.constant 10 : index
    %347 = memref.load %arg2[%c0_165, %c10] : memref<8x33xf32, #tpu.memory_space<smem>>
    %348 = vector.broadcast %347 : f32 to vector<8x256xf32>
    %349 = arith.mulf %348, %346 : vector<8x256xf32>
    %350 = arith.addf %317, %349 : vector<8x256xf32>
    %c1_166 = arith.constant 1 : index
    %c10_167 = arith.constant 10 : index
    %351 = memref.load %arg2[%c1_166, %c10_167] : memref<8x33xf32, #tpu.memory_space<smem>>
    %352 = vector.broadcast %351 : f32 to vector<8x256xf32>
    %353 = arith.mulf %352, %346 : vector<8x256xf32>
    %354 = arith.addf %321, %353 : vector<8x256xf32>
    %c2_168 = arith.constant 2 : index
    %c10_169 = arith.constant 10 : index
    %355 = memref.load %arg2[%c2_168, %c10_169] : memref<8x33xf32, #tpu.memory_space<smem>>
    %356 = vector.broadcast %355 : f32 to vector<8x256xf32>
    %357 = arith.mulf %356, %346 : vector<8x256xf32>
    %358 = arith.addf %325, %357 : vector<8x256xf32>
    %c3_170 = arith.constant 3 : index
    %c10_171 = arith.constant 10 : index
    %359 = memref.load %arg2[%c3_170, %c10_171] : memref<8x33xf32, #tpu.memory_space<smem>>
    %360 = vector.broadcast %359 : f32 to vector<8x256xf32>
    %361 = arith.mulf %360, %346 : vector<8x256xf32>
    %362 = arith.addf %329, %361 : vector<8x256xf32>
    %c4_172 = arith.constant 4 : index
    %c10_173 = arith.constant 10 : index
    %363 = memref.load %arg2[%c4_172, %c10_173] : memref<8x33xf32, #tpu.memory_space<smem>>
    %364 = vector.broadcast %363 : f32 to vector<8x256xf32>
    %365 = arith.mulf %364, %346 : vector<8x256xf32>
    %366 = arith.addf %333, %365 : vector<8x256xf32>
    %c5_174 = arith.constant 5 : index
    %c10_175 = arith.constant 10 : index
    %367 = memref.load %arg2[%c5_174, %c10_175] : memref<8x33xf32, #tpu.memory_space<smem>>
    %368 = vector.broadcast %367 : f32 to vector<8x256xf32>
    %369 = arith.mulf %368, %346 : vector<8x256xf32>
    %370 = arith.addf %337, %369 : vector<8x256xf32>
    %c6_176 = arith.constant 6 : index
    %c10_177 = arith.constant 10 : index
    %371 = memref.load %arg2[%c6_176, %c10_177] : memref<8x33xf32, #tpu.memory_space<smem>>
    %372 = vector.broadcast %371 : f32 to vector<8x256xf32>
    %373 = arith.mulf %372, %346 : vector<8x256xf32>
    %374 = arith.addf %341, %373 : vector<8x256xf32>
    %c7_178 = arith.constant 7 : index
    %c10_179 = arith.constant 10 : index
    %375 = memref.load %arg2[%c7_178, %c10_179] : memref<8x33xf32, #tpu.memory_space<smem>>
    %376 = vector.broadcast %375 : f32 to vector<8x256xf32>
    %377 = arith.mulf %376, %346 : vector<8x256xf32>
    %378 = arith.addf %345, %377 : vector<8x256xf32>
    %379 = vector.extract_strided_slice %7 {offsets = [0, 11], sizes = [8, 256], strides = [1, 1]} : vector<8x384xf32> to vector<8x256xf32>
    %c0_180 = arith.constant 0 : index
    %c11 = arith.constant 11 : index
    %380 = memref.load %arg2[%c0_180, %c11] : memref<8x33xf32, #tpu.memory_space<smem>>
    %381 = vector.broadcast %380 : f32 to vector<8x256xf32>
    %382 = arith.mulf %381, %379 : vector<8x256xf32>
    %383 = arith.addf %350, %382 : vector<8x256xf32>
    %c1_181 = arith.constant 1 : index
    %c11_182 = arith.constant 11 : index
    %384 = memref.load %arg2[%c1_181, %c11_182] : memref<8x33xf32, #tpu.memory_space<smem>>
    %385 = vector.broadcast %384 : f32 to vector<8x256xf32>
    %386 = arith.mulf %385, %379 : vector<8x256xf32>
    %387 = arith.addf %354, %386 : vector<8x256xf32>
    %c2_183 = arith.constant 2 : index
    %c11_184 = arith.constant 11 : index
    %388 = memref.load %arg2[%c2_183, %c11_184] : memref<8x33xf32, #tpu.memory_space<smem>>
    %389 = vector.broadcast %388 : f32 to vector<8x256xf32>
    %390 = arith.mulf %389, %379 : vector<8x256xf32>
    %391 = arith.addf %358, %390 : vector<8x256xf32>
    %c3_185 = arith.constant 3 : index
    %c11_186 = arith.constant 11 : index
    %392 = memref.load %arg2[%c3_185, %c11_186] : memref<8x33xf32, #tpu.memory_space<smem>>
    %393 = vector.broadcast %392 : f32 to vector<8x256xf32>
    %394 = arith.mulf %393, %379 : vector<8x256xf32>
    %395 = arith.addf %362, %394 : vector<8x256xf32>
    %c4_187 = arith.constant 4 : index
    %c11_188 = arith.constant 11 : index
    %396 = memref.load %arg2[%c4_187, %c11_188] : memref<8x33xf32, #tpu.memory_space<smem>>
    %397 = vector.broadcast %396 : f32 to vector<8x256xf32>
    %398 = arith.mulf %397, %379 : vector<8x256xf32>
    %399 = arith.addf %366, %398 : vector<8x256xf32>
    %c5_189 = arith.constant 5 : index
    %c11_190 = arith.constant 11 : index
    %400 = memref.load %arg2[%c5_189, %c11_190] : memref<8x33xf32, #tpu.memory_space<smem>>
    %401 = vector.broadcast %400 : f32 to vector<8x256xf32>
    %402 = arith.mulf %401, %379 : vector<8x256xf32>
    %403 = arith.addf %370, %402 : vector<8x256xf32>
    %c6_191 = arith.constant 6 : index
    %c11_192 = arith.constant 11 : index
    %404 = memref.load %arg2[%c6_191, %c11_192] : memref<8x33xf32, #tpu.memory_space<smem>>
    %405 = vector.broadcast %404 : f32 to vector<8x256xf32>
    %406 = arith.mulf %405, %379 : vector<8x256xf32>
    %407 = arith.addf %374, %406 : vector<8x256xf32>
    %c7_193 = arith.constant 7 : index
    %c11_194 = arith.constant 11 : index
    %408 = memref.load %arg2[%c7_193, %c11_194] : memref<8x33xf32, #tpu.memory_space<smem>>
    %409 = vector.broadcast %408 : f32 to vector<8x256xf32>
    %410 = arith.mulf %409, %379 : vector<8x256xf32>
    %411 = arith.addf %378, %410 : vector<8x256xf32>
    %412 = vector.extract_strided_slice %7 {offsets = [0, 12], sizes = [8, 256], strides = [1, 1]} : vector<8x384xf32> to vector<8x256xf32>
    %c0_195 = arith.constant 0 : index
    %c12 = arith.constant 12 : index
    %413 = memref.load %arg2[%c0_195, %c12] : memref<8x33xf32, #tpu.memory_space<smem>>
    %414 = vector.broadcast %413 : f32 to vector<8x256xf32>
    %415 = arith.mulf %414, %412 : vector<8x256xf32>
    %416 = arith.addf %383, %415 : vector<8x256xf32>
    %c1_196 = arith.constant 1 : index
    %c12_197 = arith.constant 12 : index
    %417 = memref.load %arg2[%c1_196, %c12_197] : memref<8x33xf32, #tpu.memory_space<smem>>
    %418 = vector.broadcast %417 : f32 to vector<8x256xf32>
    %419 = arith.mulf %418, %412 : vector<8x256xf32>
    %420 = arith.addf %387, %419 : vector<8x256xf32>
    %c2_198 = arith.constant 2 : index
    %c12_199 = arith.constant 12 : index
    %421 = memref.load %arg2[%c2_198, %c12_199] : memref<8x33xf32, #tpu.memory_space<smem>>
    %422 = vector.broadcast %421 : f32 to vector<8x256xf32>
    %423 = arith.mulf %422, %412 : vector<8x256xf32>
    %424 = arith.addf %391, %423 : vector<8x256xf32>
    %c3_200 = arith.constant 3 : index
    %c12_201 = arith.constant 12 : index
    %425 = memref.load %arg2[%c3_200, %c12_201] : memref<8x33xf32, #tpu.memory_space<smem>>
    %426 = vector.broadcast %425 : f32 to vector<8x256xf32>
    %427 = arith.mulf %426, %412 : vector<8x256xf32>
    %428 = arith.addf %395, %427 : vector<8x256xf32>
    %c4_202 = arith.constant 4 : index
    %c12_203 = arith.constant 12 : index
    %429 = memref.load %arg2[%c4_202, %c12_203] : memref<8x33xf32, #tpu.memory_space<smem>>
    %430 = vector.broadcast %429 : f32 to vector<8x256xf32>
    %431 = arith.mulf %430, %412 : vector<8x256xf32>
    %432 = arith.addf %399, %431 : vector<8x256xf32>
    %c5_204 = arith.constant 5 : index
    %c12_205 = arith.constant 12 : index
    %433 = memref.load %arg2[%c5_204, %c12_205] : memref<8x33xf32, #tpu.memory_space<smem>>
    %434 = vector.broadcast %433 : f32 to vector<8x256xf32>
    %435 = arith.mulf %434, %412 : vector<8x256xf32>
    %436 = arith.addf %403, %435 : vector<8x256xf32>
    %c6_206 = arith.constant 6 : index
    %c12_207 = arith.constant 12 : index
    %437 = memref.load %arg2[%c6_206, %c12_207] : memref<8x33xf32, #tpu.memory_space<smem>>
    %438 = vector.broadcast %437 : f32 to vector<8x256xf32>
    %439 = arith.mulf %438, %412 : vector<8x256xf32>
    %440 = arith.addf %407, %439 : vector<8x256xf32>
    %c7_208 = arith.constant 7 : index
    %c12_209 = arith.constant 12 : index
    %441 = memref.load %arg2[%c7_208, %c12_209] : memref<8x33xf32, #tpu.memory_space<smem>>
    %442 = vector.broadcast %441 : f32 to vector<8x256xf32>
    %443 = arith.mulf %442, %412 : vector<8x256xf32>
    %444 = arith.addf %411, %443 : vector<8x256xf32>
    %445 = vector.extract_strided_slice %7 {offsets = [0, 13], sizes = [8, 256], strides = [1, 1]} : vector<8x384xf32> to vector<8x256xf32>
    %c0_210 = arith.constant 0 : index
    %c13 = arith.constant 13 : index
    %446 = memref.load %arg2[%c0_210, %c13] : memref<8x33xf32, #tpu.memory_space<smem>>
    %447 = vector.broadcast %446 : f32 to vector<8x256xf32>
    %448 = arith.mulf %447, %445 : vector<8x256xf32>
    %449 = arith.addf %416, %448 : vector<8x256xf32>
    %c1_211 = arith.constant 1 : index
    %c13_212 = arith.constant 13 : index
    %450 = memref.load %arg2[%c1_211, %c13_212] : memref<8x33xf32, #tpu.memory_space<smem>>
    %451 = vector.broadcast %450 : f32 to vector<8x256xf32>
    %452 = arith.mulf %451, %445 : vector<8x256xf32>
    %453 = arith.addf %420, %452 : vector<8x256xf32>
    %c2_213 = arith.constant 2 : index
    %c13_214 = arith.constant 13 : index
    %454 = memref.load %arg2[%c2_213, %c13_214] : memref<8x33xf32, #tpu.memory_space<smem>>
    %455 = vector.broadcast %454 : f32 to vector<8x256xf32>
    %456 = arith.mulf %455, %445 : vector<8x256xf32>
    %457 = arith.addf %424, %456 : vector<8x256xf32>
    %c3_215 = arith.constant 3 : index
    %c13_216 = arith.constant 13 : index
    %458 = memref.load %arg2[%c3_215, %c13_216] : memref<8x33xf32, #tpu.memory_space<smem>>
    %459 = vector.broadcast %458 : f32 to vector<8x256xf32>
    %460 = arith.mulf %459, %445 : vector<8x256xf32>
    %461 = arith.addf %428, %460 : vector<8x256xf32>
    %c4_217 = arith.constant 4 : index
    %c13_218 = arith.constant 13 : index
    %462 = memref.load %arg2[%c4_217, %c13_218] : memref<8x33xf32, #tpu.memory_space<smem>>
    %463 = vector.broadcast %462 : f32 to vector<8x256xf32>
    %464 = arith.mulf %463, %445 : vector<8x256xf32>
    %465 = arith.addf %432, %464 : vector<8x256xf32>
    %c5_219 = arith.constant 5 : index
    %c13_220 = arith.constant 13 : index
    %466 = memref.load %arg2[%c5_219, %c13_220] : memref<8x33xf32, #tpu.memory_space<smem>>
    %467 = vector.broadcast %466 : f32 to vector<8x256xf32>
    %468 = arith.mulf %467, %445 : vector<8x256xf32>
    %469 = arith.addf %436, %468 : vector<8x256xf32>
    %c6_221 = arith.constant 6 : index
    %c13_222 = arith.constant 13 : index
    %470 = memref.load %arg2[%c6_221, %c13_222] : memref<8x33xf32, #tpu.memory_space<smem>>
    %471 = vector.broadcast %470 : f32 to vector<8x256xf32>
    %472 = arith.mulf %471, %445 : vector<8x256xf32>
    %473 = arith.addf %440, %472 : vector<8x256xf32>
    %c7_223 = arith.constant 7 : index
    %c13_224 = arith.constant 13 : index
    %474 = memref.load %arg2[%c7_223, %c13_224] : memref<8x33xf32, #tpu.memory_space<smem>>
    %475 = vector.broadcast %474 : f32 to vector<8x256xf32>
    %476 = arith.mulf %475, %445 : vector<8x256xf32>
    %477 = arith.addf %444, %476 : vector<8x256xf32>
    %478 = vector.extract_strided_slice %7 {offsets = [0, 14], sizes = [8, 256], strides = [1, 1]} : vector<8x384xf32> to vector<8x256xf32>
    %c0_225 = arith.constant 0 : index
    %c14 = arith.constant 14 : index
    %479 = memref.load %arg2[%c0_225, %c14] : memref<8x33xf32, #tpu.memory_space<smem>>
    %480 = vector.broadcast %479 : f32 to vector<8x256xf32>
    %481 = arith.mulf %480, %478 : vector<8x256xf32>
    %482 = arith.addf %449, %481 : vector<8x256xf32>
    %c1_226 = arith.constant 1 : index
    %c14_227 = arith.constant 14 : index
    %483 = memref.load %arg2[%c1_226, %c14_227] : memref<8x33xf32, #tpu.memory_space<smem>>
    %484 = vector.broadcast %483 : f32 to vector<8x256xf32>
    %485 = arith.mulf %484, %478 : vector<8x256xf32>
    %486 = arith.addf %453, %485 : vector<8x256xf32>
    %c2_228 = arith.constant 2 : index
    %c14_229 = arith.constant 14 : index
    %487 = memref.load %arg2[%c2_228, %c14_229] : memref<8x33xf32, #tpu.memory_space<smem>>
    %488 = vector.broadcast %487 : f32 to vector<8x256xf32>
    %489 = arith.mulf %488, %478 : vector<8x256xf32>
    %490 = arith.addf %457, %489 : vector<8x256xf32>
    %c3_230 = arith.constant 3 : index
    %c14_231 = arith.constant 14 : index
    %491 = memref.load %arg2[%c3_230, %c14_231] : memref<8x33xf32, #tpu.memory_space<smem>>
    %492 = vector.broadcast %491 : f32 to vector<8x256xf32>
    %493 = arith.mulf %492, %478 : vector<8x256xf32>
    %494 = arith.addf %461, %493 : vector<8x256xf32>
    %c4_232 = arith.constant 4 : index
    %c14_233 = arith.constant 14 : index
    %495 = memref.load %arg2[%c4_232, %c14_233] : memref<8x33xf32, #tpu.memory_space<smem>>
    %496 = vector.broadcast %495 : f32 to vector<8x256xf32>
    %497 = arith.mulf %496, %478 : vector<8x256xf32>
    %498 = arith.addf %465, %497 : vector<8x256xf32>
    %c5_234 = arith.constant 5 : index
    %c14_235 = arith.constant 14 : index
    %499 = memref.load %arg2[%c5_234, %c14_235] : memref<8x33xf32, #tpu.memory_space<smem>>
    %500 = vector.broadcast %499 : f32 to vector<8x256xf32>
    %501 = arith.mulf %500, %478 : vector<8x256xf32>
    %502 = arith.addf %469, %501 : vector<8x256xf32>
    %c6_236 = arith.constant 6 : index
    %c14_237 = arith.constant 14 : index
    %503 = memref.load %arg2[%c6_236, %c14_237] : memref<8x33xf32, #tpu.memory_space<smem>>
    %504 = vector.broadcast %503 : f32 to vector<8x256xf32>
    %505 = arith.mulf %504, %478 : vector<8x256xf32>
    %506 = arith.addf %473, %505 : vector<8x256xf32>
    %c7_238 = arith.constant 7 : index
    %c14_239 = arith.constant 14 : index
    %507 = memref.load %arg2[%c7_238, %c14_239] : memref<8x33xf32, #tpu.memory_space<smem>>
    %508 = vector.broadcast %507 : f32 to vector<8x256xf32>
    %509 = arith.mulf %508, %478 : vector<8x256xf32>
    %510 = arith.addf %477, %509 : vector<8x256xf32>
    %511 = vector.extract_strided_slice %7 {offsets = [0, 15], sizes = [8, 256], strides = [1, 1]} : vector<8x384xf32> to vector<8x256xf32>
    %c0_240 = arith.constant 0 : index
    %c15 = arith.constant 15 : index
    %512 = memref.load %arg2[%c0_240, %c15] : memref<8x33xf32, #tpu.memory_space<smem>>
    %513 = vector.broadcast %512 : f32 to vector<8x256xf32>
    %514 = arith.mulf %513, %511 : vector<8x256xf32>
    %515 = arith.addf %482, %514 : vector<8x256xf32>
    %c1_241 = arith.constant 1 : index
    %c15_242 = arith.constant 15 : index
    %516 = memref.load %arg2[%c1_241, %c15_242] : memref<8x33xf32, #tpu.memory_space<smem>>
    %517 = vector.broadcast %516 : f32 to vector<8x256xf32>
    %518 = arith.mulf %517, %511 : vector<8x256xf32>
    %519 = arith.addf %486, %518 : vector<8x256xf32>
    %c2_243 = arith.constant 2 : index
    %c15_244 = arith.constant 15 : index
    %520 = memref.load %arg2[%c2_243, %c15_244] : memref<8x33xf32, #tpu.memory_space<smem>>
    %521 = vector.broadcast %520 : f32 to vector<8x256xf32>
    %522 = arith.mulf %521, %511 : vector<8x256xf32>
    %523 = arith.addf %490, %522 : vector<8x256xf32>
    %c3_245 = arith.constant 3 : index
    %c15_246 = arith.constant 15 : index
    %524 = memref.load %arg2[%c3_245, %c15_246] : memref<8x33xf32, #tpu.memory_space<smem>>
    %525 = vector.broadcast %524 : f32 to vector<8x256xf32>
    %526 = arith.mulf %525, %511 : vector<8x256xf32>
    %527 = arith.addf %494, %526 : vector<8x256xf32>
    %c4_247 = arith.constant 4 : index
    %c15_248 = arith.constant 15 : index
    %528 = memref.load %arg2[%c4_247, %c15_248] : memref<8x33xf32, #tpu.memory_space<smem>>
    %529 = vector.broadcast %528 : f32 to vector<8x256xf32>
    %530 = arith.mulf %529, %511 : vector<8x256xf32>
    %531 = arith.addf %498, %530 : vector<8x256xf32>
    %c5_249 = arith.constant 5 : index
    %c15_250 = arith.constant 15 : index
    %532 = memref.load %arg2[%c5_249, %c15_250] : memref<8x33xf32, #tpu.memory_space<smem>>
    %533 = vector.broadcast %532 : f32 to vector<8x256xf32>
    %534 = arith.mulf %533, %511 : vector<8x256xf32>
    %535 = arith.addf %502, %534 : vector<8x256xf32>
    %c6_251 = arith.constant 6 : index
    %c15_252 = arith.constant 15 : index
    %536 = memref.load %arg2[%c6_251, %c15_252] : memref<8x33xf32, #tpu.memory_space<smem>>
    %537 = vector.broadcast %536 : f32 to vector<8x256xf32>
    %538 = arith.mulf %537, %511 : vector<8x256xf32>
    %539 = arith.addf %506, %538 : vector<8x256xf32>
    %c7_253 = arith.constant 7 : index
    %c15_254 = arith.constant 15 : index
    %540 = memref.load %arg2[%c7_253, %c15_254] : memref<8x33xf32, #tpu.memory_space<smem>>
    %541 = vector.broadcast %540 : f32 to vector<8x256xf32>
    %542 = arith.mulf %541, %511 : vector<8x256xf32>
    %543 = arith.addf %510, %542 : vector<8x256xf32>
    %544 = vector.extract_strided_slice %7 {offsets = [0, 16], sizes = [8, 256], strides = [1, 1]} : vector<8x384xf32> to vector<8x256xf32>
    %c0_255 = arith.constant 0 : index
    %c16 = arith.constant 16 : index
    %545 = memref.load %arg2[%c0_255, %c16] : memref<8x33xf32, #tpu.memory_space<smem>>
    %546 = vector.broadcast %545 : f32 to vector<8x256xf32>
    %547 = arith.mulf %546, %544 : vector<8x256xf32>
    %548 = arith.addf %515, %547 : vector<8x256xf32>
    %c1_256 = arith.constant 1 : index
    %c16_257 = arith.constant 16 : index
    %549 = memref.load %arg2[%c1_256, %c16_257] : memref<8x33xf32, #tpu.memory_space<smem>>
    %550 = vector.broadcast %549 : f32 to vector<8x256xf32>
    %551 = arith.mulf %550, %544 : vector<8x256xf32>
    %552 = arith.addf %519, %551 : vector<8x256xf32>
    %c2_258 = arith.constant 2 : index
    %c16_259 = arith.constant 16 : index
    %553 = memref.load %arg2[%c2_258, %c16_259] : memref<8x33xf32, #tpu.memory_space<smem>>
    %554 = vector.broadcast %553 : f32 to vector<8x256xf32>
    %555 = arith.mulf %554, %544 : vector<8x256xf32>
    %556 = arith.addf %523, %555 : vector<8x256xf32>
    %c3_260 = arith.constant 3 : index
    %c16_261 = arith.constant 16 : index
    %557 = memref.load %arg2[%c3_260, %c16_261] : memref<8x33xf32, #tpu.memory_space<smem>>
    %558 = vector.broadcast %557 : f32 to vector<8x256xf32>
    %559 = arith.mulf %558, %544 : vector<8x256xf32>
    %560 = arith.addf %527, %559 : vector<8x256xf32>
    %c4_262 = arith.constant 4 : index
    %c16_263 = arith.constant 16 : index
    %561 = memref.load %arg2[%c4_262, %c16_263] : memref<8x33xf32, #tpu.memory_space<smem>>
    %562 = vector.broadcast %561 : f32 to vector<8x256xf32>
    %563 = arith.mulf %562, %544 : vector<8x256xf32>
    %564 = arith.addf %531, %563 : vector<8x256xf32>
    %c5_264 = arith.constant 5 : index
    %c16_265 = arith.constant 16 : index
    %565 = memref.load %arg2[%c5_264, %c16_265] : memref<8x33xf32, #tpu.memory_space<smem>>
    %566 = vector.broadcast %565 : f32 to vector<8x256xf32>
    %567 = arith.mulf %566, %544 : vector<8x256xf32>
    %568 = arith.addf %535, %567 : vector<8x256xf32>
    %c6_266 = arith.constant 6 : index
    %c16_267 = arith.constant 16 : index
    %569 = memref.load %arg2[%c6_266, %c16_267] : memref<8x33xf32, #tpu.memory_space<smem>>
    %570 = vector.broadcast %569 : f32 to vector<8x256xf32>
    %571 = arith.mulf %570, %544 : vector<8x256xf32>
    %572 = arith.addf %539, %571 : vector<8x256xf32>
    %c7_268 = arith.constant 7 : index
    %c16_269 = arith.constant 16 : index
    %573 = memref.load %arg2[%c7_268, %c16_269] : memref<8x33xf32, #tpu.memory_space<smem>>
    %574 = vector.broadcast %573 : f32 to vector<8x256xf32>
    %575 = arith.mulf %574, %544 : vector<8x256xf32>
    %576 = arith.addf %543, %575 : vector<8x256xf32>
    %577 = vector.extract_strided_slice %7 {offsets = [0, 17], sizes = [8, 256], strides = [1, 1]} : vector<8x384xf32> to vector<8x256xf32>
    %c0_270 = arith.constant 0 : index
    %c17 = arith.constant 17 : index
    %578 = memref.load %arg2[%c0_270, %c17] : memref<8x33xf32, #tpu.memory_space<smem>>
    %579 = vector.broadcast %578 : f32 to vector<8x256xf32>
    %580 = arith.mulf %579, %577 : vector<8x256xf32>
    %581 = arith.addf %548, %580 : vector<8x256xf32>
    %c1_271 = arith.constant 1 : index
    %c17_272 = arith.constant 17 : index
    %582 = memref.load %arg2[%c1_271, %c17_272] : memref<8x33xf32, #tpu.memory_space<smem>>
    %583 = vector.broadcast %582 : f32 to vector<8x256xf32>
    %584 = arith.mulf %583, %577 : vector<8x256xf32>
    %585 = arith.addf %552, %584 : vector<8x256xf32>
    %c2_273 = arith.constant 2 : index
    %c17_274 = arith.constant 17 : index
    %586 = memref.load %arg2[%c2_273, %c17_274] : memref<8x33xf32, #tpu.memory_space<smem>>
    %587 = vector.broadcast %586 : f32 to vector<8x256xf32>
    %588 = arith.mulf %587, %577 : vector<8x256xf32>
    %589 = arith.addf %556, %588 : vector<8x256xf32>
    %c3_275 = arith.constant 3 : index
    %c17_276 = arith.constant 17 : index
    %590 = memref.load %arg2[%c3_275, %c17_276] : memref<8x33xf32, #tpu.memory_space<smem>>
    %591 = vector.broadcast %590 : f32 to vector<8x256xf32>
    %592 = arith.mulf %591, %577 : vector<8x256xf32>
    %593 = arith.addf %560, %592 : vector<8x256xf32>
    %c4_277 = arith.constant 4 : index
    %c17_278 = arith.constant 17 : index
    %594 = memref.load %arg2[%c4_277, %c17_278] : memref<8x33xf32, #tpu.memory_space<smem>>
    %595 = vector.broadcast %594 : f32 to vector<8x256xf32>
    %596 = arith.mulf %595, %577 : vector<8x256xf32>
    %597 = arith.addf %564, %596 : vector<8x256xf32>
    %c5_279 = arith.constant 5 : index
    %c17_280 = arith.constant 17 : index
    %598 = memref.load %arg2[%c5_279, %c17_280] : memref<8x33xf32, #tpu.memory_space<smem>>
    %599 = vector.broadcast %598 : f32 to vector<8x256xf32>
    %600 = arith.mulf %599, %577 : vector<8x256xf32>
    %601 = arith.addf %568, %600 : vector<8x256xf32>
    %c6_281 = arith.constant 6 : index
    %c17_282 = arith.constant 17 : index
    %602 = memref.load %arg2[%c6_281, %c17_282] : memref<8x33xf32, #tpu.memory_space<smem>>
    %603 = vector.broadcast %602 : f32 to vector<8x256xf32>
    %604 = arith.mulf %603, %577 : vector<8x256xf32>
    %605 = arith.addf %572, %604 : vector<8x256xf32>
    %c7_283 = arith.constant 7 : index
    %c17_284 = arith.constant 17 : index
    %606 = memref.load %arg2[%c7_283, %c17_284] : memref<8x33xf32, #tpu.memory_space<smem>>
    %607 = vector.broadcast %606 : f32 to vector<8x256xf32>
    %608 = arith.mulf %607, %577 : vector<8x256xf32>
    %609 = arith.addf %576, %608 : vector<8x256xf32>
    %610 = vector.extract_strided_slice %7 {offsets = [0, 18], sizes = [8, 256], strides = [1, 1]} : vector<8x384xf32> to vector<8x256xf32>
    %c0_285 = arith.constant 0 : index
    %c18 = arith.constant 18 : index
    %611 = memref.load %arg2[%c0_285, %c18] : memref<8x33xf32, #tpu.memory_space<smem>>
    %612 = vector.broadcast %611 : f32 to vector<8x256xf32>
    %613 = arith.mulf %612, %610 : vector<8x256xf32>
    %614 = arith.addf %581, %613 : vector<8x256xf32>
    %c1_286 = arith.constant 1 : index
    %c18_287 = arith.constant 18 : index
    %615 = memref.load %arg2[%c1_286, %c18_287] : memref<8x33xf32, #tpu.memory_space<smem>>
    %616 = vector.broadcast %615 : f32 to vector<8x256xf32>
    %617 = arith.mulf %616, %610 : vector<8x256xf32>
    %618 = arith.addf %585, %617 : vector<8x256xf32>
    %c2_288 = arith.constant 2 : index
    %c18_289 = arith.constant 18 : index
    %619 = memref.load %arg2[%c2_288, %c18_289] : memref<8x33xf32, #tpu.memory_space<smem>>
    %620 = vector.broadcast %619 : f32 to vector<8x256xf32>
    %621 = arith.mulf %620, %610 : vector<8x256xf32>
    %622 = arith.addf %589, %621 : vector<8x256xf32>
    %c3_290 = arith.constant 3 : index
    %c18_291 = arith.constant 18 : index
    %623 = memref.load %arg2[%c3_290, %c18_291] : memref<8x33xf32, #tpu.memory_space<smem>>
    %624 = vector.broadcast %623 : f32 to vector<8x256xf32>
    %625 = arith.mulf %624, %610 : vector<8x256xf32>
    %626 = arith.addf %593, %625 : vector<8x256xf32>
    %c4_292 = arith.constant 4 : index
    %c18_293 = arith.constant 18 : index
    %627 = memref.load %arg2[%c4_292, %c18_293] : memref<8x33xf32, #tpu.memory_space<smem>>
    %628 = vector.broadcast %627 : f32 to vector<8x256xf32>
    %629 = arith.mulf %628, %610 : vector<8x256xf32>
    %630 = arith.addf %597, %629 : vector<8x256xf32>
    %c5_294 = arith.constant 5 : index
    %c18_295 = arith.constant 18 : index
    %631 = memref.load %arg2[%c5_294, %c18_295] : memref<8x33xf32, #tpu.memory_space<smem>>
    %632 = vector.broadcast %631 : f32 to vector<8x256xf32>
    %633 = arith.mulf %632, %610 : vector<8x256xf32>
    %634 = arith.addf %601, %633 : vector<8x256xf32>
    %c6_296 = arith.constant 6 : index
    %c18_297 = arith.constant 18 : index
    %635 = memref.load %arg2[%c6_296, %c18_297] : memref<8x33xf32, #tpu.memory_space<smem>>
    %636 = vector.broadcast %635 : f32 to vector<8x256xf32>
    %637 = arith.mulf %636, %610 : vector<8x256xf32>
    %638 = arith.addf %605, %637 : vector<8x256xf32>
    %c7_298 = arith.constant 7 : index
    %c18_299 = arith.constant 18 : index
    %639 = memref.load %arg2[%c7_298, %c18_299] : memref<8x33xf32, #tpu.memory_space<smem>>
    %640 = vector.broadcast %639 : f32 to vector<8x256xf32>
    %641 = arith.mulf %640, %610 : vector<8x256xf32>
    %642 = arith.addf %609, %641 : vector<8x256xf32>
    %643 = vector.extract_strided_slice %7 {offsets = [0, 19], sizes = [8, 256], strides = [1, 1]} : vector<8x384xf32> to vector<8x256xf32>
    %c0_300 = arith.constant 0 : index
    %c19 = arith.constant 19 : index
    %644 = memref.load %arg2[%c0_300, %c19] : memref<8x33xf32, #tpu.memory_space<smem>>
    %645 = vector.broadcast %644 : f32 to vector<8x256xf32>
    %646 = arith.mulf %645, %643 : vector<8x256xf32>
    %647 = arith.addf %614, %646 : vector<8x256xf32>
    %c1_301 = arith.constant 1 : index
    %c19_302 = arith.constant 19 : index
    %648 = memref.load %arg2[%c1_301, %c19_302] : memref<8x33xf32, #tpu.memory_space<smem>>
    %649 = vector.broadcast %648 : f32 to vector<8x256xf32>
    %650 = arith.mulf %649, %643 : vector<8x256xf32>
    %651 = arith.addf %618, %650 : vector<8x256xf32>
    %c2_303 = arith.constant 2 : index
    %c19_304 = arith.constant 19 : index
    %652 = memref.load %arg2[%c2_303, %c19_304] : memref<8x33xf32, #tpu.memory_space<smem>>
    %653 = vector.broadcast %652 : f32 to vector<8x256xf32>
    %654 = arith.mulf %653, %643 : vector<8x256xf32>
    %655 = arith.addf %622, %654 : vector<8x256xf32>
    %c3_305 = arith.constant 3 : index
    %c19_306 = arith.constant 19 : index
    %656 = memref.load %arg2[%c3_305, %c19_306] : memref<8x33xf32, #tpu.memory_space<smem>>
    %657 = vector.broadcast %656 : f32 to vector<8x256xf32>
    %658 = arith.mulf %657, %643 : vector<8x256xf32>
    %659 = arith.addf %626, %658 : vector<8x256xf32>
    %c4_307 = arith.constant 4 : index
    %c19_308 = arith.constant 19 : index
    %660 = memref.load %arg2[%c4_307, %c19_308] : memref<8x33xf32, #tpu.memory_space<smem>>
    %661 = vector.broadcast %660 : f32 to vector<8x256xf32>
    %662 = arith.mulf %661, %643 : vector<8x256xf32>
    %663 = arith.addf %630, %662 : vector<8x256xf32>
    %c5_309 = arith.constant 5 : index
    %c19_310 = arith.constant 19 : index
    %664 = memref.load %arg2[%c5_309, %c19_310] : memref<8x33xf32, #tpu.memory_space<smem>>
    %665 = vector.broadcast %664 : f32 to vector<8x256xf32>
    %666 = arith.mulf %665, %643 : vector<8x256xf32>
    %667 = arith.addf %634, %666 : vector<8x256xf32>
    %c6_311 = arith.constant 6 : index
    %c19_312 = arith.constant 19 : index
    %668 = memref.load %arg2[%c6_311, %c19_312] : memref<8x33xf32, #tpu.memory_space<smem>>
    %669 = vector.broadcast %668 : f32 to vector<8x256xf32>
    %670 = arith.mulf %669, %643 : vector<8x256xf32>
    %671 = arith.addf %638, %670 : vector<8x256xf32>
    %c7_313 = arith.constant 7 : index
    %c19_314 = arith.constant 19 : index
    %672 = memref.load %arg2[%c7_313, %c19_314] : memref<8x33xf32, #tpu.memory_space<smem>>
    %673 = vector.broadcast %672 : f32 to vector<8x256xf32>
    %674 = arith.mulf %673, %643 : vector<8x256xf32>
    %675 = arith.addf %642, %674 : vector<8x256xf32>
    %676 = vector.extract_strided_slice %7 {offsets = [0, 20], sizes = [8, 256], strides = [1, 1]} : vector<8x384xf32> to vector<8x256xf32>
    %c0_315 = arith.constant 0 : index
    %c20 = arith.constant 20 : index
    %677 = memref.load %arg2[%c0_315, %c20] : memref<8x33xf32, #tpu.memory_space<smem>>
    %678 = vector.broadcast %677 : f32 to vector<8x256xf32>
    %679 = arith.mulf %678, %676 : vector<8x256xf32>
    %680 = arith.addf %647, %679 : vector<8x256xf32>
    %c1_316 = arith.constant 1 : index
    %c20_317 = arith.constant 20 : index
    %681 = memref.load %arg2[%c1_316, %c20_317] : memref<8x33xf32, #tpu.memory_space<smem>>
    %682 = vector.broadcast %681 : f32 to vector<8x256xf32>
    %683 = arith.mulf %682, %676 : vector<8x256xf32>
    %684 = arith.addf %651, %683 : vector<8x256xf32>
    %c2_318 = arith.constant 2 : index
    %c20_319 = arith.constant 20 : index
    %685 = memref.load %arg2[%c2_318, %c20_319] : memref<8x33xf32, #tpu.memory_space<smem>>
    %686 = vector.broadcast %685 : f32 to vector<8x256xf32>
    %687 = arith.mulf %686, %676 : vector<8x256xf32>
    %688 = arith.addf %655, %687 : vector<8x256xf32>
    %c3_320 = arith.constant 3 : index
    %c20_321 = arith.constant 20 : index
    %689 = memref.load %arg2[%c3_320, %c20_321] : memref<8x33xf32, #tpu.memory_space<smem>>
    %690 = vector.broadcast %689 : f32 to vector<8x256xf32>
    %691 = arith.mulf %690, %676 : vector<8x256xf32>
    %692 = arith.addf %659, %691 : vector<8x256xf32>
    %c4_322 = arith.constant 4 : index
    %c20_323 = arith.constant 20 : index
    %693 = memref.load %arg2[%c4_322, %c20_323] : memref<8x33xf32, #tpu.memory_space<smem>>
    %694 = vector.broadcast %693 : f32 to vector<8x256xf32>
    %695 = arith.mulf %694, %676 : vector<8x256xf32>
    %696 = arith.addf %663, %695 : vector<8x256xf32>
    %c5_324 = arith.constant 5 : index
    %c20_325 = arith.constant 20 : index
    %697 = memref.load %arg2[%c5_324, %c20_325] : memref<8x33xf32, #tpu.memory_space<smem>>
    %698 = vector.broadcast %697 : f32 to vector<8x256xf32>
    %699 = arith.mulf %698, %676 : vector<8x256xf32>
    %700 = arith.addf %667, %699 : vector<8x256xf32>
    %c6_326 = arith.constant 6 : index
    %c20_327 = arith.constant 20 : index
    %701 = memref.load %arg2[%c6_326, %c20_327] : memref<8x33xf32, #tpu.memory_space<smem>>
    %702 = vector.broadcast %701 : f32 to vector<8x256xf32>
    %703 = arith.mulf %702, %676 : vector<8x256xf32>
    %704 = arith.addf %671, %703 : vector<8x256xf32>
    %c7_328 = arith.constant 7 : index
    %c20_329 = arith.constant 20 : index
    %705 = memref.load %arg2[%c7_328, %c20_329] : memref<8x33xf32, #tpu.memory_space<smem>>
    %706 = vector.broadcast %705 : f32 to vector<8x256xf32>
    %707 = arith.mulf %706, %676 : vector<8x256xf32>
    %708 = arith.addf %675, %707 : vector<8x256xf32>
    %709 = vector.extract_strided_slice %7 {offsets = [0, 21], sizes = [8, 256], strides = [1, 1]} : vector<8x384xf32> to vector<8x256xf32>
    %c0_330 = arith.constant 0 : index
    %c21 = arith.constant 21 : index
    %710 = memref.load %arg2[%c0_330, %c21] : memref<8x33xf32, #tpu.memory_space<smem>>
    %711 = vector.broadcast %710 : f32 to vector<8x256xf32>
    %712 = arith.mulf %711, %709 : vector<8x256xf32>
    %713 = arith.addf %680, %712 : vector<8x256xf32>
    %c1_331 = arith.constant 1 : index
    %c21_332 = arith.constant 21 : index
    %714 = memref.load %arg2[%c1_331, %c21_332] : memref<8x33xf32, #tpu.memory_space<smem>>
    %715 = vector.broadcast %714 : f32 to vector<8x256xf32>
    %716 = arith.mulf %715, %709 : vector<8x256xf32>
    %717 = arith.addf %684, %716 : vector<8x256xf32>
    %c2_333 = arith.constant 2 : index
    %c21_334 = arith.constant 21 : index
    %718 = memref.load %arg2[%c2_333, %c21_334] : memref<8x33xf32, #tpu.memory_space<smem>>
    %719 = vector.broadcast %718 : f32 to vector<8x256xf32>
    %720 = arith.mulf %719, %709 : vector<8x256xf32>
    %721 = arith.addf %688, %720 : vector<8x256xf32>
    %c3_335 = arith.constant 3 : index
    %c21_336 = arith.constant 21 : index
    %722 = memref.load %arg2[%c3_335, %c21_336] : memref<8x33xf32, #tpu.memory_space<smem>>
    %723 = vector.broadcast %722 : f32 to vector<8x256xf32>
    %724 = arith.mulf %723, %709 : vector<8x256xf32>
    %725 = arith.addf %692, %724 : vector<8x256xf32>
    %c4_337 = arith.constant 4 : index
    %c21_338 = arith.constant 21 : index
    %726 = memref.load %arg2[%c4_337, %c21_338] : memref<8x33xf32, #tpu.memory_space<smem>>
    %727 = vector.broadcast %726 : f32 to vector<8x256xf32>
    %728 = arith.mulf %727, %709 : vector<8x256xf32>
    %729 = arith.addf %696, %728 : vector<8x256xf32>
    %c5_339 = arith.constant 5 : index
    %c21_340 = arith.constant 21 : index
    %730 = memref.load %arg2[%c5_339, %c21_340] : memref<8x33xf32, #tpu.memory_space<smem>>
    %731 = vector.broadcast %730 : f32 to vector<8x256xf32>
    %732 = arith.mulf %731, %709 : vector<8x256xf32>
    %733 = arith.addf %700, %732 : vector<8x256xf32>
    %c6_341 = arith.constant 6 : index
    %c21_342 = arith.constant 21 : index
    %734 = memref.load %arg2[%c6_341, %c21_342] : memref<8x33xf32, #tpu.memory_space<smem>>
    %735 = vector.broadcast %734 : f32 to vector<8x256xf32>
    %736 = arith.mulf %735, %709 : vector<8x256xf32>
    %737 = arith.addf %704, %736 : vector<8x256xf32>
    %c7_343 = arith.constant 7 : index
    %c21_344 = arith.constant 21 : index
    %738 = memref.load %arg2[%c7_343, %c21_344] : memref<8x33xf32, #tpu.memory_space<smem>>
    %739 = vector.broadcast %738 : f32 to vector<8x256xf32>
    %740 = arith.mulf %739, %709 : vector<8x256xf32>
    %741 = arith.addf %708, %740 : vector<8x256xf32>
    %742 = vector.extract_strided_slice %7 {offsets = [0, 22], sizes = [8, 256], strides = [1, 1]} : vector<8x384xf32> to vector<8x256xf32>
    %c0_345 = arith.constant 0 : index
    %c22 = arith.constant 22 : index
    %743 = memref.load %arg2[%c0_345, %c22] : memref<8x33xf32, #tpu.memory_space<smem>>
    %744 = vector.broadcast %743 : f32 to vector<8x256xf32>
    %745 = arith.mulf %744, %742 : vector<8x256xf32>
    %746 = arith.addf %713, %745 : vector<8x256xf32>
    %c1_346 = arith.constant 1 : index
    %c22_347 = arith.constant 22 : index
    %747 = memref.load %arg2[%c1_346, %c22_347] : memref<8x33xf32, #tpu.memory_space<smem>>
    %748 = vector.broadcast %747 : f32 to vector<8x256xf32>
    %749 = arith.mulf %748, %742 : vector<8x256xf32>
    %750 = arith.addf %717, %749 : vector<8x256xf32>
    %c2_348 = arith.constant 2 : index
    %c22_349 = arith.constant 22 : index
    %751 = memref.load %arg2[%c2_348, %c22_349] : memref<8x33xf32, #tpu.memory_space<smem>>
    %752 = vector.broadcast %751 : f32 to vector<8x256xf32>
    %753 = arith.mulf %752, %742 : vector<8x256xf32>
    %754 = arith.addf %721, %753 : vector<8x256xf32>
    %c3_350 = arith.constant 3 : index
    %c22_351 = arith.constant 22 : index
    %755 = memref.load %arg2[%c3_350, %c22_351] : memref<8x33xf32, #tpu.memory_space<smem>>
    %756 = vector.broadcast %755 : f32 to vector<8x256xf32>
    %757 = arith.mulf %756, %742 : vector<8x256xf32>
    %758 = arith.addf %725, %757 : vector<8x256xf32>
    %c4_352 = arith.constant 4 : index
    %c22_353 = arith.constant 22 : index
    %759 = memref.load %arg2[%c4_352, %c22_353] : memref<8x33xf32, #tpu.memory_space<smem>>
    %760 = vector.broadcast %759 : f32 to vector<8x256xf32>
    %761 = arith.mulf %760, %742 : vector<8x256xf32>
    %762 = arith.addf %729, %761 : vector<8x256xf32>
    %c5_354 = arith.constant 5 : index
    %c22_355 = arith.constant 22 : index
    %763 = memref.load %arg2[%c5_354, %c22_355] : memref<8x33xf32, #tpu.memory_space<smem>>
    %764 = vector.broadcast %763 : f32 to vector<8x256xf32>
    %765 = arith.mulf %764, %742 : vector<8x256xf32>
    %766 = arith.addf %733, %765 : vector<8x256xf32>
    %c6_356 = arith.constant 6 : index
    %c22_357 = arith.constant 22 : index
    %767 = memref.load %arg2[%c6_356, %c22_357] : memref<8x33xf32, #tpu.memory_space<smem>>
    %768 = vector.broadcast %767 : f32 to vector<8x256xf32>
    %769 = arith.mulf %768, %742 : vector<8x256xf32>
    %770 = arith.addf %737, %769 : vector<8x256xf32>
    %c7_358 = arith.constant 7 : index
    %c22_359 = arith.constant 22 : index
    %771 = memref.load %arg2[%c7_358, %c22_359] : memref<8x33xf32, #tpu.memory_space<smem>>
    %772 = vector.broadcast %771 : f32 to vector<8x256xf32>
    %773 = arith.mulf %772, %742 : vector<8x256xf32>
    %774 = arith.addf %741, %773 : vector<8x256xf32>
    %775 = vector.extract_strided_slice %7 {offsets = [0, 23], sizes = [8, 256], strides = [1, 1]} : vector<8x384xf32> to vector<8x256xf32>
    %c0_360 = arith.constant 0 : index
    %c23 = arith.constant 23 : index
    %776 = memref.load %arg2[%c0_360, %c23] : memref<8x33xf32, #tpu.memory_space<smem>>
    %777 = vector.broadcast %776 : f32 to vector<8x256xf32>
    %778 = arith.mulf %777, %775 : vector<8x256xf32>
    %779 = arith.addf %746, %778 : vector<8x256xf32>
    %c1_361 = arith.constant 1 : index
    %c23_362 = arith.constant 23 : index
    %780 = memref.load %arg2[%c1_361, %c23_362] : memref<8x33xf32, #tpu.memory_space<smem>>
    %781 = vector.broadcast %780 : f32 to vector<8x256xf32>
    %782 = arith.mulf %781, %775 : vector<8x256xf32>
    %783 = arith.addf %750, %782 : vector<8x256xf32>
    %c2_363 = arith.constant 2 : index
    %c23_364 = arith.constant 23 : index
    %784 = memref.load %arg2[%c2_363, %c23_364] : memref<8x33xf32, #tpu.memory_space<smem>>
    %785 = vector.broadcast %784 : f32 to vector<8x256xf32>
    %786 = arith.mulf %785, %775 : vector<8x256xf32>
    %787 = arith.addf %754, %786 : vector<8x256xf32>
    %c3_365 = arith.constant 3 : index
    %c23_366 = arith.constant 23 : index
    %788 = memref.load %arg2[%c3_365, %c23_366] : memref<8x33xf32, #tpu.memory_space<smem>>
    %789 = vector.broadcast %788 : f32 to vector<8x256xf32>
    %790 = arith.mulf %789, %775 : vector<8x256xf32>
    %791 = arith.addf %758, %790 : vector<8x256xf32>
    %c4_367 = arith.constant 4 : index
    %c23_368 = arith.constant 23 : index
    %792 = memref.load %arg2[%c4_367, %c23_368] : memref<8x33xf32, #tpu.memory_space<smem>>
    %793 = vector.broadcast %792 : f32 to vector<8x256xf32>
    %794 = arith.mulf %793, %775 : vector<8x256xf32>
    %795 = arith.addf %762, %794 : vector<8x256xf32>
    %c5_369 = arith.constant 5 : index
    %c23_370 = arith.constant 23 : index
    %796 = memref.load %arg2[%c5_369, %c23_370] : memref<8x33xf32, #tpu.memory_space<smem>>
    %797 = vector.broadcast %796 : f32 to vector<8x256xf32>
    %798 = arith.mulf %797, %775 : vector<8x256xf32>
    %799 = arith.addf %766, %798 : vector<8x256xf32>
    %c6_371 = arith.constant 6 : index
    %c23_372 = arith.constant 23 : index
    %800 = memref.load %arg2[%c6_371, %c23_372] : memref<8x33xf32, #tpu.memory_space<smem>>
    %801 = vector.broadcast %800 : f32 to vector<8x256xf32>
    %802 = arith.mulf %801, %775 : vector<8x256xf32>
    %803 = arith.addf %770, %802 : vector<8x256xf32>
    %c7_373 = arith.constant 7 : index
    %c23_374 = arith.constant 23 : index
    %804 = memref.load %arg2[%c7_373, %c23_374] : memref<8x33xf32, #tpu.memory_space<smem>>
    %805 = vector.broadcast %804 : f32 to vector<8x256xf32>
    %806 = arith.mulf %805, %775 : vector<8x256xf32>
    %807 = arith.addf %774, %806 : vector<8x256xf32>
    %808 = vector.extract_strided_slice %7 {offsets = [0, 24], sizes = [8, 256], strides = [1, 1]} : vector<8x384xf32> to vector<8x256xf32>
    %c0_375 = arith.constant 0 : index
    %c24 = arith.constant 24 : index
    %809 = memref.load %arg2[%c0_375, %c24] : memref<8x33xf32, #tpu.memory_space<smem>>
    %810 = vector.broadcast %809 : f32 to vector<8x256xf32>
    %811 = arith.mulf %810, %808 : vector<8x256xf32>
    %812 = arith.addf %779, %811 : vector<8x256xf32>
    %c1_376 = arith.constant 1 : index
    %c24_377 = arith.constant 24 : index
    %813 = memref.load %arg2[%c1_376, %c24_377] : memref<8x33xf32, #tpu.memory_space<smem>>
    %814 = vector.broadcast %813 : f32 to vector<8x256xf32>
    %815 = arith.mulf %814, %808 : vector<8x256xf32>
    %816 = arith.addf %783, %815 : vector<8x256xf32>
    %c2_378 = arith.constant 2 : index
    %c24_379 = arith.constant 24 : index
    %817 = memref.load %arg2[%c2_378, %c24_379] : memref<8x33xf32, #tpu.memory_space<smem>>
    %818 = vector.broadcast %817 : f32 to vector<8x256xf32>
    %819 = arith.mulf %818, %808 : vector<8x256xf32>
    %820 = arith.addf %787, %819 : vector<8x256xf32>
    %c3_380 = arith.constant 3 : index
    %c24_381 = arith.constant 24 : index
    %821 = memref.load %arg2[%c3_380, %c24_381] : memref<8x33xf32, #tpu.memory_space<smem>>
    %822 = vector.broadcast %821 : f32 to vector<8x256xf32>
    %823 = arith.mulf %822, %808 : vector<8x256xf32>
    %824 = arith.addf %791, %823 : vector<8x256xf32>
    %c4_382 = arith.constant 4 : index
    %c24_383 = arith.constant 24 : index
    %825 = memref.load %arg2[%c4_382, %c24_383] : memref<8x33xf32, #tpu.memory_space<smem>>
    %826 = vector.broadcast %825 : f32 to vector<8x256xf32>
    %827 = arith.mulf %826, %808 : vector<8x256xf32>
    %828 = arith.addf %795, %827 : vector<8x256xf32>
    %c5_384 = arith.constant 5 : index
    %c24_385 = arith.constant 24 : index
    %829 = memref.load %arg2[%c5_384, %c24_385] : memref<8x33xf32, #tpu.memory_space<smem>>
    %830 = vector.broadcast %829 : f32 to vector<8x256xf32>
    %831 = arith.mulf %830, %808 : vector<8x256xf32>
    %832 = arith.addf %799, %831 : vector<8x256xf32>
    %c6_386 = arith.constant 6 : index
    %c24_387 = arith.constant 24 : index
    %833 = memref.load %arg2[%c6_386, %c24_387] : memref<8x33xf32, #tpu.memory_space<smem>>
    %834 = vector.broadcast %833 : f32 to vector<8x256xf32>
    %835 = arith.mulf %834, %808 : vector<8x256xf32>
    %836 = arith.addf %803, %835 : vector<8x256xf32>
    %c7_388 = arith.constant 7 : index
    %c24_389 = arith.constant 24 : index
    %837 = memref.load %arg2[%c7_388, %c24_389] : memref<8x33xf32, #tpu.memory_space<smem>>
    %838 = vector.broadcast %837 : f32 to vector<8x256xf32>
    %839 = arith.mulf %838, %808 : vector<8x256xf32>
    %840 = arith.addf %807, %839 : vector<8x256xf32>
    %841 = vector.extract_strided_slice %7 {offsets = [0, 25], sizes = [8, 256], strides = [1, 1]} : vector<8x384xf32> to vector<8x256xf32>
    %c0_390 = arith.constant 0 : index
    %c25 = arith.constant 25 : index
    %842 = memref.load %arg2[%c0_390, %c25] : memref<8x33xf32, #tpu.memory_space<smem>>
    %843 = vector.broadcast %842 : f32 to vector<8x256xf32>
    %844 = arith.mulf %843, %841 : vector<8x256xf32>
    %845 = arith.addf %812, %844 : vector<8x256xf32>
    %c1_391 = arith.constant 1 : index
    %c25_392 = arith.constant 25 : index
    %846 = memref.load %arg2[%c1_391, %c25_392] : memref<8x33xf32, #tpu.memory_space<smem>>
    %847 = vector.broadcast %846 : f32 to vector<8x256xf32>
    %848 = arith.mulf %847, %841 : vector<8x256xf32>
    %849 = arith.addf %816, %848 : vector<8x256xf32>
    %c2_393 = arith.constant 2 : index
    %c25_394 = arith.constant 25 : index
    %850 = memref.load %arg2[%c2_393, %c25_394] : memref<8x33xf32, #tpu.memory_space<smem>>
    %851 = vector.broadcast %850 : f32 to vector<8x256xf32>
    %852 = arith.mulf %851, %841 : vector<8x256xf32>
    %853 = arith.addf %820, %852 : vector<8x256xf32>
    %c3_395 = arith.constant 3 : index
    %c25_396 = arith.constant 25 : index
    %854 = memref.load %arg2[%c3_395, %c25_396] : memref<8x33xf32, #tpu.memory_space<smem>>
    %855 = vector.broadcast %854 : f32 to vector<8x256xf32>
    %856 = arith.mulf %855, %841 : vector<8x256xf32>
    %857 = arith.addf %824, %856 : vector<8x256xf32>
    %c4_397 = arith.constant 4 : index
    %c25_398 = arith.constant 25 : index
    %858 = memref.load %arg2[%c4_397, %c25_398] : memref<8x33xf32, #tpu.memory_space<smem>>
    %859 = vector.broadcast %858 : f32 to vector<8x256xf32>
    %860 = arith.mulf %859, %841 : vector<8x256xf32>
    %861 = arith.addf %828, %860 : vector<8x256xf32>
    %c5_399 = arith.constant 5 : index
    %c25_400 = arith.constant 25 : index
    %862 = memref.load %arg2[%c5_399, %c25_400] : memref<8x33xf32, #tpu.memory_space<smem>>
    %863 = vector.broadcast %862 : f32 to vector<8x256xf32>
    %864 = arith.mulf %863, %841 : vector<8x256xf32>
    %865 = arith.addf %832, %864 : vector<8x256xf32>
    %c6_401 = arith.constant 6 : index
    %c25_402 = arith.constant 25 : index
    %866 = memref.load %arg2[%c6_401, %c25_402] : memref<8x33xf32, #tpu.memory_space<smem>>
    %867 = vector.broadcast %866 : f32 to vector<8x256xf32>
    %868 = arith.mulf %867, %841 : vector<8x256xf32>
    %869 = arith.addf %836, %868 : vector<8x256xf32>
    %c7_403 = arith.constant 7 : index
    %c25_404 = arith.constant 25 : index
    %870 = memref.load %arg2[%c7_403, %c25_404] : memref<8x33xf32, #tpu.memory_space<smem>>
    %871 = vector.broadcast %870 : f32 to vector<8x256xf32>
    %872 = arith.mulf %871, %841 : vector<8x256xf32>
    %873 = arith.addf %840, %872 : vector<8x256xf32>
    %874 = vector.extract_strided_slice %7 {offsets = [0, 26], sizes = [8, 256], strides = [1, 1]} : vector<8x384xf32> to vector<8x256xf32>
    %c0_405 = arith.constant 0 : index
    %c26 = arith.constant 26 : index
    %875 = memref.load %arg2[%c0_405, %c26] : memref<8x33xf32, #tpu.memory_space<smem>>
    %876 = vector.broadcast %875 : f32 to vector<8x256xf32>
    %877 = arith.mulf %876, %874 : vector<8x256xf32>
    %878 = arith.addf %845, %877 : vector<8x256xf32>
    %c1_406 = arith.constant 1 : index
    %c26_407 = arith.constant 26 : index
    %879 = memref.load %arg2[%c1_406, %c26_407] : memref<8x33xf32, #tpu.memory_space<smem>>
    %880 = vector.broadcast %879 : f32 to vector<8x256xf32>
    %881 = arith.mulf %880, %874 : vector<8x256xf32>
    %882 = arith.addf %849, %881 : vector<8x256xf32>
    %c2_408 = arith.constant 2 : index
    %c26_409 = arith.constant 26 : index
    %883 = memref.load %arg2[%c2_408, %c26_409] : memref<8x33xf32, #tpu.memory_space<smem>>
    %884 = vector.broadcast %883 : f32 to vector<8x256xf32>
    %885 = arith.mulf %884, %874 : vector<8x256xf32>
    %886 = arith.addf %853, %885 : vector<8x256xf32>
    %c3_410 = arith.constant 3 : index
    %c26_411 = arith.constant 26 : index
    %887 = memref.load %arg2[%c3_410, %c26_411] : memref<8x33xf32, #tpu.memory_space<smem>>
    %888 = vector.broadcast %887 : f32 to vector<8x256xf32>
    %889 = arith.mulf %888, %874 : vector<8x256xf32>
    %890 = arith.addf %857, %889 : vector<8x256xf32>
    %c4_412 = arith.constant 4 : index
    %c26_413 = arith.constant 26 : index
    %891 = memref.load %arg2[%c4_412, %c26_413] : memref<8x33xf32, #tpu.memory_space<smem>>
    %892 = vector.broadcast %891 : f32 to vector<8x256xf32>
    %893 = arith.mulf %892, %874 : vector<8x256xf32>
    %894 = arith.addf %861, %893 : vector<8x256xf32>
    %c5_414 = arith.constant 5 : index
    %c26_415 = arith.constant 26 : index
    %895 = memref.load %arg2[%c5_414, %c26_415] : memref<8x33xf32, #tpu.memory_space<smem>>
    %896 = vector.broadcast %895 : f32 to vector<8x256xf32>
    %897 = arith.mulf %896, %874 : vector<8x256xf32>
    %898 = arith.addf %865, %897 : vector<8x256xf32>
    %c6_416 = arith.constant 6 : index
    %c26_417 = arith.constant 26 : index
    %899 = memref.load %arg2[%c6_416, %c26_417] : memref<8x33xf32, #tpu.memory_space<smem>>
    %900 = vector.broadcast %899 : f32 to vector<8x256xf32>
    %901 = arith.mulf %900, %874 : vector<8x256xf32>
    %902 = arith.addf %869, %901 : vector<8x256xf32>
    %c7_418 = arith.constant 7 : index
    %c26_419 = arith.constant 26 : index
    %903 = memref.load %arg2[%c7_418, %c26_419] : memref<8x33xf32, #tpu.memory_space<smem>>
    %904 = vector.broadcast %903 : f32 to vector<8x256xf32>
    %905 = arith.mulf %904, %874 : vector<8x256xf32>
    %906 = arith.addf %873, %905 : vector<8x256xf32>
    %907 = vector.extract_strided_slice %7 {offsets = [0, 27], sizes = [8, 256], strides = [1, 1]} : vector<8x384xf32> to vector<8x256xf32>
    %c0_420 = arith.constant 0 : index
    %c27 = arith.constant 27 : index
    %908 = memref.load %arg2[%c0_420, %c27] : memref<8x33xf32, #tpu.memory_space<smem>>
    %909 = vector.broadcast %908 : f32 to vector<8x256xf32>
    %910 = arith.mulf %909, %907 : vector<8x256xf32>
    %911 = arith.addf %878, %910 : vector<8x256xf32>
    %c1_421 = arith.constant 1 : index
    %c27_422 = arith.constant 27 : index
    %912 = memref.load %arg2[%c1_421, %c27_422] : memref<8x33xf32, #tpu.memory_space<smem>>
    %913 = vector.broadcast %912 : f32 to vector<8x256xf32>
    %914 = arith.mulf %913, %907 : vector<8x256xf32>
    %915 = arith.addf %882, %914 : vector<8x256xf32>
    %c2_423 = arith.constant 2 : index
    %c27_424 = arith.constant 27 : index
    %916 = memref.load %arg2[%c2_423, %c27_424] : memref<8x33xf32, #tpu.memory_space<smem>>
    %917 = vector.broadcast %916 : f32 to vector<8x256xf32>
    %918 = arith.mulf %917, %907 : vector<8x256xf32>
    %919 = arith.addf %886, %918 : vector<8x256xf32>
    %c3_425 = arith.constant 3 : index
    %c27_426 = arith.constant 27 : index
    %920 = memref.load %arg2[%c3_425, %c27_426] : memref<8x33xf32, #tpu.memory_space<smem>>
    %921 = vector.broadcast %920 : f32 to vector<8x256xf32>
    %922 = arith.mulf %921, %907 : vector<8x256xf32>
    %923 = arith.addf %890, %922 : vector<8x256xf32>
    %c4_427 = arith.constant 4 : index
    %c27_428 = arith.constant 27 : index
    %924 = memref.load %arg2[%c4_427, %c27_428] : memref<8x33xf32, #tpu.memory_space<smem>>
    %925 = vector.broadcast %924 : f32 to vector<8x256xf32>
    %926 = arith.mulf %925, %907 : vector<8x256xf32>
    %927 = arith.addf %894, %926 : vector<8x256xf32>
    %c5_429 = arith.constant 5 : index
    %c27_430 = arith.constant 27 : index
    %928 = memref.load %arg2[%c5_429, %c27_430] : memref<8x33xf32, #tpu.memory_space<smem>>
    %929 = vector.broadcast %928 : f32 to vector<8x256xf32>
    %930 = arith.mulf %929, %907 : vector<8x256xf32>
    %931 = arith.addf %898, %930 : vector<8x256xf32>
    %c6_431 = arith.constant 6 : index
    %c27_432 = arith.constant 27 : index
    %932 = memref.load %arg2[%c6_431, %c27_432] : memref<8x33xf32, #tpu.memory_space<smem>>
    %933 = vector.broadcast %932 : f32 to vector<8x256xf32>
    %934 = arith.mulf %933, %907 : vector<8x256xf32>
    %935 = arith.addf %902, %934 : vector<8x256xf32>
    %c7_433 = arith.constant 7 : index
    %c27_434 = arith.constant 27 : index
    %936 = memref.load %arg2[%c7_433, %c27_434] : memref<8x33xf32, #tpu.memory_space<smem>>
    %937 = vector.broadcast %936 : f32 to vector<8x256xf32>
    %938 = arith.mulf %937, %907 : vector<8x256xf32>
    %939 = arith.addf %906, %938 : vector<8x256xf32>
    %940 = vector.extract_strided_slice %7 {offsets = [0, 28], sizes = [8, 256], strides = [1, 1]} : vector<8x384xf32> to vector<8x256xf32>
    %c0_435 = arith.constant 0 : index
    %c28 = arith.constant 28 : index
    %941 = memref.load %arg2[%c0_435, %c28] : memref<8x33xf32, #tpu.memory_space<smem>>
    %942 = vector.broadcast %941 : f32 to vector<8x256xf32>
    %943 = arith.mulf %942, %940 : vector<8x256xf32>
    %944 = arith.addf %911, %943 : vector<8x256xf32>
    %c1_436 = arith.constant 1 : index
    %c28_437 = arith.constant 28 : index
    %945 = memref.load %arg2[%c1_436, %c28_437] : memref<8x33xf32, #tpu.memory_space<smem>>
    %946 = vector.broadcast %945 : f32 to vector<8x256xf32>
    %947 = arith.mulf %946, %940 : vector<8x256xf32>
    %948 = arith.addf %915, %947 : vector<8x256xf32>
    %c2_438 = arith.constant 2 : index
    %c28_439 = arith.constant 28 : index
    %949 = memref.load %arg2[%c2_438, %c28_439] : memref<8x33xf32, #tpu.memory_space<smem>>
    %950 = vector.broadcast %949 : f32 to vector<8x256xf32>
    %951 = arith.mulf %950, %940 : vector<8x256xf32>
    %952 = arith.addf %919, %951 : vector<8x256xf32>
    %c3_440 = arith.constant 3 : index
    %c28_441 = arith.constant 28 : index
    %953 = memref.load %arg2[%c3_440, %c28_441] : memref<8x33xf32, #tpu.memory_space<smem>>
    %954 = vector.broadcast %953 : f32 to vector<8x256xf32>
    %955 = arith.mulf %954, %940 : vector<8x256xf32>
    %956 = arith.addf %923, %955 : vector<8x256xf32>
    %c4_442 = arith.constant 4 : index
    %c28_443 = arith.constant 28 : index
    %957 = memref.load %arg2[%c4_442, %c28_443] : memref<8x33xf32, #tpu.memory_space<smem>>
    %958 = vector.broadcast %957 : f32 to vector<8x256xf32>
    %959 = arith.mulf %958, %940 : vector<8x256xf32>
    %960 = arith.addf %927, %959 : vector<8x256xf32>
    %c5_444 = arith.constant 5 : index
    %c28_445 = arith.constant 28 : index
    %961 = memref.load %arg2[%c5_444, %c28_445] : memref<8x33xf32, #tpu.memory_space<smem>>
    %962 = vector.broadcast %961 : f32 to vector<8x256xf32>
    %963 = arith.mulf %962, %940 : vector<8x256xf32>
    %964 = arith.addf %931, %963 : vector<8x256xf32>
    %c6_446 = arith.constant 6 : index
    %c28_447 = arith.constant 28 : index
    %965 = memref.load %arg2[%c6_446, %c28_447] : memref<8x33xf32, #tpu.memory_space<smem>>
    %966 = vector.broadcast %965 : f32 to vector<8x256xf32>
    %967 = arith.mulf %966, %940 : vector<8x256xf32>
    %968 = arith.addf %935, %967 : vector<8x256xf32>
    %c7_448 = arith.constant 7 : index
    %c28_449 = arith.constant 28 : index
    %969 = memref.load %arg2[%c7_448, %c28_449] : memref<8x33xf32, #tpu.memory_space<smem>>
    %970 = vector.broadcast %969 : f32 to vector<8x256xf32>
    %971 = arith.mulf %970, %940 : vector<8x256xf32>
    %972 = arith.addf %939, %971 : vector<8x256xf32>
    %973 = vector.extract_strided_slice %7 {offsets = [0, 29], sizes = [8, 256], strides = [1, 1]} : vector<8x384xf32> to vector<8x256xf32>
    %c0_450 = arith.constant 0 : index
    %c29 = arith.constant 29 : index
    %974 = memref.load %arg2[%c0_450, %c29] : memref<8x33xf32, #tpu.memory_space<smem>>
    %975 = vector.broadcast %974 : f32 to vector<8x256xf32>
    %976 = arith.mulf %975, %973 : vector<8x256xf32>
    %977 = arith.addf %944, %976 : vector<8x256xf32>
    %c1_451 = arith.constant 1 : index
    %c29_452 = arith.constant 29 : index
    %978 = memref.load %arg2[%c1_451, %c29_452] : memref<8x33xf32, #tpu.memory_space<smem>>
    %979 = vector.broadcast %978 : f32 to vector<8x256xf32>
    %980 = arith.mulf %979, %973 : vector<8x256xf32>
    %981 = arith.addf %948, %980 : vector<8x256xf32>
    %c2_453 = arith.constant 2 : index
    %c29_454 = arith.constant 29 : index
    %982 = memref.load %arg2[%c2_453, %c29_454] : memref<8x33xf32, #tpu.memory_space<smem>>
    %983 = vector.broadcast %982 : f32 to vector<8x256xf32>
    %984 = arith.mulf %983, %973 : vector<8x256xf32>
    %985 = arith.addf %952, %984 : vector<8x256xf32>
    %c3_455 = arith.constant 3 : index
    %c29_456 = arith.constant 29 : index
    %986 = memref.load %arg2[%c3_455, %c29_456] : memref<8x33xf32, #tpu.memory_space<smem>>
    %987 = vector.broadcast %986 : f32 to vector<8x256xf32>
    %988 = arith.mulf %987, %973 : vector<8x256xf32>
    %989 = arith.addf %956, %988 : vector<8x256xf32>
    %c4_457 = arith.constant 4 : index
    %c29_458 = arith.constant 29 : index
    %990 = memref.load %arg2[%c4_457, %c29_458] : memref<8x33xf32, #tpu.memory_space<smem>>
    %991 = vector.broadcast %990 : f32 to vector<8x256xf32>
    %992 = arith.mulf %991, %973 : vector<8x256xf32>
    %993 = arith.addf %960, %992 : vector<8x256xf32>
    %c5_459 = arith.constant 5 : index
    %c29_460 = arith.constant 29 : index
    %994 = memref.load %arg2[%c5_459, %c29_460] : memref<8x33xf32, #tpu.memory_space<smem>>
    %995 = vector.broadcast %994 : f32 to vector<8x256xf32>
    %996 = arith.mulf %995, %973 : vector<8x256xf32>
    %997 = arith.addf %964, %996 : vector<8x256xf32>
    %c6_461 = arith.constant 6 : index
    %c29_462 = arith.constant 29 : index
    %998 = memref.load %arg2[%c6_461, %c29_462] : memref<8x33xf32, #tpu.memory_space<smem>>
    %999 = vector.broadcast %998 : f32 to vector<8x256xf32>
    %1000 = arith.mulf %999, %973 : vector<8x256xf32>
    %1001 = arith.addf %968, %1000 : vector<8x256xf32>
    %c7_463 = arith.constant 7 : index
    %c29_464 = arith.constant 29 : index
    %1002 = memref.load %arg2[%c7_463, %c29_464] : memref<8x33xf32, #tpu.memory_space<smem>>
    %1003 = vector.broadcast %1002 : f32 to vector<8x256xf32>
    %1004 = arith.mulf %1003, %973 : vector<8x256xf32>
    %1005 = arith.addf %972, %1004 : vector<8x256xf32>
    %1006 = vector.extract_strided_slice %7 {offsets = [0, 30], sizes = [8, 256], strides = [1, 1]} : vector<8x384xf32> to vector<8x256xf32>
    %c0_465 = arith.constant 0 : index
    %c30 = arith.constant 30 : index
    %1007 = memref.load %arg2[%c0_465, %c30] : memref<8x33xf32, #tpu.memory_space<smem>>
    %1008 = vector.broadcast %1007 : f32 to vector<8x256xf32>
    %1009 = arith.mulf %1008, %1006 : vector<8x256xf32>
    %1010 = arith.addf %977, %1009 : vector<8x256xf32>
    %c1_466 = arith.constant 1 : index
    %c30_467 = arith.constant 30 : index
    %1011 = memref.load %arg2[%c1_466, %c30_467] : memref<8x33xf32, #tpu.memory_space<smem>>
    %1012 = vector.broadcast %1011 : f32 to vector<8x256xf32>
    %1013 = arith.mulf %1012, %1006 : vector<8x256xf32>
    %1014 = arith.addf %981, %1013 : vector<8x256xf32>
    %c2_468 = arith.constant 2 : index
    %c30_469 = arith.constant 30 : index
    %1015 = memref.load %arg2[%c2_468, %c30_469] : memref<8x33xf32, #tpu.memory_space<smem>>
    %1016 = vector.broadcast %1015 : f32 to vector<8x256xf32>
    %1017 = arith.mulf %1016, %1006 : vector<8x256xf32>
    %1018 = arith.addf %985, %1017 : vector<8x256xf32>
    %c3_470 = arith.constant 3 : index
    %c30_471 = arith.constant 30 : index
    %1019 = memref.load %arg2[%c3_470, %c30_471] : memref<8x33xf32, #tpu.memory_space<smem>>
    %1020 = vector.broadcast %1019 : f32 to vector<8x256xf32>
    %1021 = arith.mulf %1020, %1006 : vector<8x256xf32>
    %1022 = arith.addf %989, %1021 : vector<8x256xf32>
    %c4_472 = arith.constant 4 : index
    %c30_473 = arith.constant 30 : index
    %1023 = memref.load %arg2[%c4_472, %c30_473] : memref<8x33xf32, #tpu.memory_space<smem>>
    %1024 = vector.broadcast %1023 : f32 to vector<8x256xf32>
    %1025 = arith.mulf %1024, %1006 : vector<8x256xf32>
    %1026 = arith.addf %993, %1025 : vector<8x256xf32>
    %c5_474 = arith.constant 5 : index
    %c30_475 = arith.constant 30 : index
    %1027 = memref.load %arg2[%c5_474, %c30_475] : memref<8x33xf32, #tpu.memory_space<smem>>
    %1028 = vector.broadcast %1027 : f32 to vector<8x256xf32>
    %1029 = arith.mulf %1028, %1006 : vector<8x256xf32>
    %1030 = arith.addf %997, %1029 : vector<8x256xf32>
    %c6_476 = arith.constant 6 : index
    %c30_477 = arith.constant 30 : index
    %1031 = memref.load %arg2[%c6_476, %c30_477] : memref<8x33xf32, #tpu.memory_space<smem>>
    %1032 = vector.broadcast %1031 : f32 to vector<8x256xf32>
    %1033 = arith.mulf %1032, %1006 : vector<8x256xf32>
    %1034 = arith.addf %1001, %1033 : vector<8x256xf32>
    %c7_478 = arith.constant 7 : index
    %c30_479 = arith.constant 30 : index
    %1035 = memref.load %arg2[%c7_478, %c30_479] : memref<8x33xf32, #tpu.memory_space<smem>>
    %1036 = vector.broadcast %1035 : f32 to vector<8x256xf32>
    %1037 = arith.mulf %1036, %1006 : vector<8x256xf32>
    %1038 = arith.addf %1005, %1037 : vector<8x256xf32>
    %1039 = vector.extract_strided_slice %7 {offsets = [0, 31], sizes = [8, 256], strides = [1, 1]} : vector<8x384xf32> to vector<8x256xf32>
    %c0_480 = arith.constant 0 : index
    %c31 = arith.constant 31 : index
    %1040 = memref.load %arg2[%c0_480, %c31] : memref<8x33xf32, #tpu.memory_space<smem>>
    %1041 = vector.broadcast %1040 : f32 to vector<8x256xf32>
    %1042 = arith.mulf %1041, %1039 : vector<8x256xf32>
    %1043 = arith.addf %1010, %1042 : vector<8x256xf32>
    %c1_481 = arith.constant 1 : index
    %c31_482 = arith.constant 31 : index
    %1044 = memref.load %arg2[%c1_481, %c31_482] : memref<8x33xf32, #tpu.memory_space<smem>>
    %1045 = vector.broadcast %1044 : f32 to vector<8x256xf32>
    %1046 = arith.mulf %1045, %1039 : vector<8x256xf32>
    %1047 = arith.addf %1014, %1046 : vector<8x256xf32>
    %c2_483 = arith.constant 2 : index
    %c31_484 = arith.constant 31 : index
    %1048 = memref.load %arg2[%c2_483, %c31_484] : memref<8x33xf32, #tpu.memory_space<smem>>
    %1049 = vector.broadcast %1048 : f32 to vector<8x256xf32>
    %1050 = arith.mulf %1049, %1039 : vector<8x256xf32>
    %1051 = arith.addf %1018, %1050 : vector<8x256xf32>
    %c3_485 = arith.constant 3 : index
    %c31_486 = arith.constant 31 : index
    %1052 = memref.load %arg2[%c3_485, %c31_486] : memref<8x33xf32, #tpu.memory_space<smem>>
    %1053 = vector.broadcast %1052 : f32 to vector<8x256xf32>
    %1054 = arith.mulf %1053, %1039 : vector<8x256xf32>
    %1055 = arith.addf %1022, %1054 : vector<8x256xf32>
    %c4_487 = arith.constant 4 : index
    %c31_488 = arith.constant 31 : index
    %1056 = memref.load %arg2[%c4_487, %c31_488] : memref<8x33xf32, #tpu.memory_space<smem>>
    %1057 = vector.broadcast %1056 : f32 to vector<8x256xf32>
    %1058 = arith.mulf %1057, %1039 : vector<8x256xf32>
    %1059 = arith.addf %1026, %1058 : vector<8x256xf32>
    %c5_489 = arith.constant 5 : index
    %c31_490 = arith.constant 31 : index
    %1060 = memref.load %arg2[%c5_489, %c31_490] : memref<8x33xf32, #tpu.memory_space<smem>>
    %1061 = vector.broadcast %1060 : f32 to vector<8x256xf32>
    %1062 = arith.mulf %1061, %1039 : vector<8x256xf32>
    %1063 = arith.addf %1030, %1062 : vector<8x256xf32>
    %c6_491 = arith.constant 6 : index
    %c31_492 = arith.constant 31 : index
    %1064 = memref.load %arg2[%c6_491, %c31_492] : memref<8x33xf32, #tpu.memory_space<smem>>
    %1065 = vector.broadcast %1064 : f32 to vector<8x256xf32>
    %1066 = arith.mulf %1065, %1039 : vector<8x256xf32>
    %1067 = arith.addf %1034, %1066 : vector<8x256xf32>
    %c7_493 = arith.constant 7 : index
    %c31_494 = arith.constant 31 : index
    %1068 = memref.load %arg2[%c7_493, %c31_494] : memref<8x33xf32, #tpu.memory_space<smem>>
    %1069 = vector.broadcast %1068 : f32 to vector<8x256xf32>
    %1070 = arith.mulf %1069, %1039 : vector<8x256xf32>
    %1071 = arith.addf %1038, %1070 : vector<8x256xf32>
    %1072 = vector.extract_strided_slice %7 {offsets = [0, 32], sizes = [8, 256], strides = [1, 1]} : vector<8x384xf32> to vector<8x256xf32>
    %c0_495 = arith.constant 0 : index
    %c32 = arith.constant 32 : index
    %1073 = memref.load %arg2[%c0_495, %c32] : memref<8x33xf32, #tpu.memory_space<smem>>
    %1074 = vector.broadcast %1073 : f32 to vector<8x256xf32>
    %1075 = arith.mulf %1074, %1072 : vector<8x256xf32>
    %1076 = arith.addf %1043, %1075 : vector<8x256xf32>
    %c1_496 = arith.constant 1 : index
    %c32_497 = arith.constant 32 : index
    %1077 = memref.load %arg2[%c1_496, %c32_497] : memref<8x33xf32, #tpu.memory_space<smem>>
    %1078 = vector.broadcast %1077 : f32 to vector<8x256xf32>
    %1079 = arith.mulf %1078, %1072 : vector<8x256xf32>
    %1080 = arith.addf %1047, %1079 : vector<8x256xf32>
    %c2_498 = arith.constant 2 : index
    %c32_499 = arith.constant 32 : index
    %1081 = memref.load %arg2[%c2_498, %c32_499] : memref<8x33xf32, #tpu.memory_space<smem>>
    %1082 = vector.broadcast %1081 : f32 to vector<8x256xf32>
    %1083 = arith.mulf %1082, %1072 : vector<8x256xf32>
    %1084 = arith.addf %1051, %1083 : vector<8x256xf32>
    %c3_500 = arith.constant 3 : index
    %c32_501 = arith.constant 32 : index
    %1085 = memref.load %arg2[%c3_500, %c32_501] : memref<8x33xf32, #tpu.memory_space<smem>>
    %1086 = vector.broadcast %1085 : f32 to vector<8x256xf32>
    %1087 = arith.mulf %1086, %1072 : vector<8x256xf32>
    %1088 = arith.addf %1055, %1087 : vector<8x256xf32>
    %c4_502 = arith.constant 4 : index
    %c32_503 = arith.constant 32 : index
    %1089 = memref.load %arg2[%c4_502, %c32_503] : memref<8x33xf32, #tpu.memory_space<smem>>
    %1090 = vector.broadcast %1089 : f32 to vector<8x256xf32>
    %1091 = arith.mulf %1090, %1072 : vector<8x256xf32>
    %1092 = arith.addf %1059, %1091 : vector<8x256xf32>
    %c5_504 = arith.constant 5 : index
    %c32_505 = arith.constant 32 : index
    %1093 = memref.load %arg2[%c5_504, %c32_505] : memref<8x33xf32, #tpu.memory_space<smem>>
    %1094 = vector.broadcast %1093 : f32 to vector<8x256xf32>
    %1095 = arith.mulf %1094, %1072 : vector<8x256xf32>
    %1096 = arith.addf %1063, %1095 : vector<8x256xf32>
    %c6_506 = arith.constant 6 : index
    %c32_507 = arith.constant 32 : index
    %1097 = memref.load %arg2[%c6_506, %c32_507] : memref<8x33xf32, #tpu.memory_space<smem>>
    %1098 = vector.broadcast %1097 : f32 to vector<8x256xf32>
    %1099 = arith.mulf %1098, %1072 : vector<8x256xf32>
    %1100 = arith.addf %1067, %1099 : vector<8x256xf32>
    %c7_508 = arith.constant 7 : index
    %c32_509 = arith.constant 32 : index
    %1101 = memref.load %arg2[%c7_508, %c32_509] : memref<8x33xf32, #tpu.memory_space<smem>>
    %1102 = vector.broadcast %1101 : f32 to vector<8x256xf32>
    %1103 = arith.mulf %1102, %1072 : vector<8x256xf32>
    %1104 = arith.addf %1071, %1103 : vector<8x256xf32>
    %c0_510 = arith.constant 0 : index
    %c0_511 = arith.constant 0 : index
    %c0_512 = arith.constant 0 : index
    %1105 = arith.index_cast %5 : i32 to index
    %1106 = vector.load %arg5[%c0_510, %c0_511, %c0_512, %1105] : memref<1x8x8x256xf32, #tpu.memory_space<vmem>>, vector<1x1x8x256xf32>
    %1107 = vector.shape_cast %1106 : vector<1x1x8x256xf32> to vector<8x256xf32>
    %1108 = vector.shape_cast %1076 : vector<8x256xf32> to vector<1x1x8x256xf32>
    tpu.vector_store %arg5[%c0_510, %c0_511, %c0_512, %1105], %1108 {strides = array<i32>} : memref<1x8x8x256xf32, #tpu.memory_space<vmem>>, vector<1x1x8x256xf32>,
    %c0_513 = arith.constant 0 : index
    %c1_514 = arith.constant 1 : index
    %c0_515 = arith.constant 0 : index
    %1109 = arith.index_cast %5 : i32 to index
    %1110 = vector.load %arg5[%c0_513, %c1_514, %c0_515, %1109] : memref<1x8x8x256xf32, #tpu.memory_space<vmem>>, vector<1x1x8x256xf32>
    %1111 = vector.shape_cast %1110 : vector<1x1x8x256xf32> to vector<8x256xf32>
    %1112 = vector.shape_cast %1080 : vector<8x256xf32> to vector<1x1x8x256xf32>
    tpu.vector_store %arg5[%c0_513, %c1_514, %c0_515, %1109], %1112 {strides = array<i32>} : memref<1x8x8x256xf32, #tpu.memory_space<vmem>>, vector<1x1x8x256xf32>,
    %c0_516 = arith.constant 0 : index
    %c2_517 = arith.constant 2 : index
    %c0_518 = arith.constant 0 : index
    %1113 = arith.index_cast %5 : i32 to index
    %1114 = vector.load %arg5[%c0_516, %c2_517, %c0_518, %1113] : memref<1x8x8x256xf32, #tpu.memory_space<vmem>>, vector<1x1x8x256xf32>
    %1115 = vector.shape_cast %1114 : vector<1x1x8x256xf32> to vector<8x256xf32>
    %1116 = vector.shape_cast %1084 : vector<8x256xf32> to vector<1x1x8x256xf32>
    tpu.vector_store %arg5[%c0_516, %c2_517, %c0_518, %1113], %1116 {strides = array<i32>} : memref<1x8x8x256xf32, #tpu.memory_space<vmem>>, vector<1x1x8x256xf32>,
    %c0_519 = arith.constant 0 : index
    %c3_520 = arith.constant 3 : index
    %c0_521 = arith.constant 0 : index
    %1117 = arith.index_cast %5 : i32 to index
    %1118 = vector.load %arg5[%c0_519, %c3_520, %c0_521, %1117] : memref<1x8x8x256xf32, #tpu.memory_space<vmem>>, vector<1x1x8x256xf32>
    %1119 = vector.shape_cast %1118 : vector<1x1x8x256xf32> to vector<8x256xf32>
    %1120 = vector.shape_cast %1088 : vector<8x256xf32> to vector<1x1x8x256xf32>
    tpu.vector_store %arg5[%c0_519, %c3_520, %c0_521, %1117], %1120 {strides = array<i32>} : memref<1x8x8x256xf32, #tpu.memory_space<vmem>>, vector<1x1x8x256xf32>,
    %c0_522 = arith.constant 0 : index
    %c4_523 = arith.constant 4 : index
    %c0_524 = arith.constant 0 : index
    %1121 = arith.index_cast %5 : i32 to index
    %1122 = vector.load %arg5[%c0_522, %c4_523, %c0_524, %1121] : memref<1x8x8x256xf32, #tpu.memory_space<vmem>>, vector<1x1x8x256xf32>
    %1123 = vector.shape_cast %1122 : vector<1x1x8x256xf32> to vector<8x256xf32>
    %1124 = vector.shape_cast %1092 : vector<8x256xf32> to vector<1x1x8x256xf32>
    tpu.vector_store %arg5[%c0_522, %c4_523, %c0_524, %1121], %1124 {strides = array<i32>} : memref<1x8x8x256xf32, #tpu.memory_space<vmem>>, vector<1x1x8x256xf32>,
    %c0_525 = arith.constant 0 : index
    %c5_526 = arith.constant 5 : index
    %c0_527 = arith.constant 0 : index
    %1125 = arith.index_cast %5 : i32 to index
    %1126 = vector.load %arg5[%c0_525, %c5_526, %c0_527, %1125] : memref<1x8x8x256xf32, #tpu.memory_space<vmem>>, vector<1x1x8x256xf32>
    %1127 = vector.shape_cast %1126 : vector<1x1x8x256xf32> to vector<8x256xf32>
    %1128 = vector.shape_cast %1096 : vector<8x256xf32> to vector<1x1x8x256xf32>
    tpu.vector_store %arg5[%c0_525, %c5_526, %c0_527, %1125], %1128 {strides = array<i32>} : memref<1x8x8x256xf32, #tpu.memory_space<vmem>>, vector<1x1x8x256xf32>,
    %c0_528 = arith.constant 0 : index
    %c6_529 = arith.constant 6 : index
    %c0_530 = arith.constant 0 : index
    %1129 = arith.index_cast %5 : i32 to index
    %1130 = vector.load %arg5[%c0_528, %c6_529, %c0_530, %1129] : memref<1x8x8x256xf32, #tpu.memory_space<vmem>>, vector<1x1x8x256xf32>
    %1131 = vector.shape_cast %1130 : vector<1x1x8x256xf32> to vector<8x256xf32>
    %1132 = vector.shape_cast %1100 : vector<8x256xf32> to vector<1x1x8x256xf32>
    tpu.vector_store %arg5[%c0_528, %c6_529, %c0_530, %1129], %1132 {strides = array<i32>} : memref<1x8x8x256xf32, #tpu.memory_space<vmem>>, vector<1x1x8x256xf32>,
    %c0_531 = arith.constant 0 : index
    %c7_532 = arith.constant 7 : index
    %c0_533 = arith.constant 0 : index
    %1133 = arith.index_cast %5 : i32 to index
    %1134 = vector.load %arg5[%c0_531, %c7_532, %c0_533, %1133] : memref<1x8x8x256xf32, #tpu.memory_space<vmem>>, vector<1x1x8x256xf32>
    %1135 = vector.shape_cast %1134 : vector<1x1x8x256xf32> to vector<8x256xf32>
    %1136 = vector.shape_cast %1104 : vector<8x256xf32> to vector<1x1x8x256xf32>
    tpu.vector_store %arg5[%c0_531, %c7_532, %c0_533, %1133], %1136 {strides = array<i32>} : memref<1x8x8x256xf32, #tpu.memory_space<vmem>>, vector<1x1x8x256xf32>,
    %c1_i32 = arith.constant 1 : i32
    return
  }
  func.func @transform_0(%arg0: i32, %arg1: i32) -> (i32, i32) {
    %c0_i32 = arith.constant 0 : i32
    %c0_i32_0 = arith.constant 0 : i32
    %c0_i32_1 = arith.constant 0 : i32
    return %c0_i32, %c0_i32_0 : i32, i32
  }
  func.func @transform_1(%arg0: i32, %arg1: i32) -> (i32, i32) {
    %c0_i32 = arith.constant 0 : i32
    return %arg0, %arg1 : i32, i32
  }
  func.func @transform_2(%arg0: i32, %arg1: i32) -> (i32, i32) {
    %c1_i32 = arith.constant 1 : i32
    %0 = arith.addi %arg1, %c1_i32 : i32
    %c2_i32 = arith.constant 2 : i32
    %1 = arith.muli %0, %c2_i32 : i32
    %c0_i32 = arith.constant 0 : i32
    return %arg0, %1 : i32, i32
  }
  func.func @transform_3(%arg0: i32, %arg1: i32) -> (i32, i32, i32, i32) {
    %c0_i32 = arith.constant 0 : i32
    %c0_i32_0 = arith.constant 0 : i32
    %c0_i32_1 = arith.constant 0 : i32
    return %arg0, %c0_i32, %c0_i32_0, %arg1 : i32, i32, i32, i32
  }
}

</mosaic_0001>

<bundles_post_ra>
// kernel: tpu_custom_call.1
= control target key start
LH: loop header
LB: loop body
LE: loop exit
PB: predicated region body
PF: predicated region fallthrough
CT: control target
= control target key end

     0   :  { %s11381_s0 = inlined_call_operand.hbm [shape: f32[8,33], index: 0, kind: input, shape index: {}]   ;;  %s11382_s1 = inlined_call_operand.hbm [shape: f32[8,896], index: 1, kind: input, shape index: {}]   ;;  %s11383_s2 = inlined_call_operand.hbm [shape: f32[8,896], index: 2, kind: input, shape index: {}]   ;;  %s11384_s3 = inlined_call_operand.hbm [shape: f32[1,8,8,768], index: 3, kind: output, shape index: {}]  }
   0x1   :  { %11599 = sst [smem:[#allocation547_spill]] %s11381_s0 }
   0x2   :  { %8 = vsyncpa [#allocation6], 0 }
   0x3   :  { %9 = vsyncpa [#allocation4], 0 }
   0x4   :  { %11 = vsyncpa [#allocation4 + $0x1], 0 }
   0x5   :  { %12 = vsyncpa [#allocation9], 0 }
   0x6   :  { %14 = vsyncpa [#allocation9 + $0x1], 0 }
   0x7   :  { %15 = vsyncpa [#allocation5], 0 }
   0x8   :  { %17 = vsyncpa [#allocation5 + $0x1], 0  ;;  %s6380_s12 = smov 0   ;;  %s6382_s13 = smov 0  }
   0x9   :  { %s6384_s14 = smov 0   ;;  %s6386_s15 = smov 0  }
   0xa   :  { %s6388_s16 = smov 0   ;;  %s6390_s17 = smov 0  }
   0xb   :  { %s6392_s18 = smov 0   ;;  %s6394_s19 = smov 0  }
   0xc   :  { %s6396_s20 = smov 0  }
   0xd LB: > { %11600 = sst [smem:[#allocation15_spill]] %s6299_s15  ;;  %s5673_s21 = sadd.s32 4294967295, %s6319_s20   ;;  %s6319_s20 = sphi %s6396_s20, %s23_s20   ;;  %s6315_s19 = sphi %s6394_s19, %s12877_s19   ;;  %s6311_s18 = sphi %s6392_s18, %s12876_s18   ;;  %s6307_s17 = sphi %s6390_s17, %s12875_s17   ;;  %s6303_s16 = sphi %s6388_s16, %s12874_s16   ;;  %s6299_s15 = sphi %s6386_s15, %s12873_s15   ;;  %s6295_s14 = sphi %s6384_s14, %s12872_s14   ;;  %s6291_s13 = sphi %s6382_s13, %s12871_s13   ;;  %s6287_s12 = sphi %s6380_s12, %s12870_s12  }
   0xe   : > { %s5674_s22 = sadd.s32 4294967294, %s6319_s20   ;;  %s32_s23 = sadd.s32 1, %s6315_s19 }
   0xf   : > { %s65_s24 = sadd.s32 1, %s6307_s17  ;;  %p33_p0 = scmp.ge.s32.totalorder %s32_s23, 3 }
  0x10   : > { %p72_p1 = scmp.ne.s32.totalorder %s6307_s17, %s6303_s16  ;;  %p73_p2 = scmp.eq.s32.totalorder %s6319_s20, 0 }
  0x11   : > { %p11385_p3 = scmp.ne.s32.totalorder %s6303_s16, %s6299_s15  ;;  %s12879_s23 = smov (%p33_p0, %s32_s23), 0 }
  0x12   : > { %11601 = sst [smem:[#allocation16_spill]] %s12879_s23  ;;  %p6441_p4 = por %p73_p2, %p72_p1 }
  0x13   : > { %p6445_p5 = scmp.eq.s32.totalorder %s5673_s21, 0  ;;  %s61_s27 = ssub.s32 %s6315_s19, %s12879_s23 }
  0x14   : > { %s5977_s28 = sshll.u32 %s6315_s19, 1  ;;  %p63_p6 = scmp.eq.s32.totalorder %s61_s27, 0 }
  0x15   : > { %s11603_s26 = scalar_select %p6445_p5, 1, 0 }
  0x16   : > { %p6457_p7 = por %p6445_p5, %p11385_p3  ;;  %s5978_s30 = sadd.s32 2, %s5977_s28 }
  0x17   : > { %s5979_s4 = sshll.u32 %s12879_s23, 1  ;;  %s97_s7 = sadd.s32 1, %s6295_s14 }
  0x18   : > { %s11604_s29 = scalar_select %p6457_p7, 1, 0 }
  0x19   : > { %s6463_s5 = scalar_select %p63_p6, %s6307_s17, %s65_s24  }
  0x1a   : > { %s5980_s6 = sadd.s32 2, %s5979_s4  ;;  %p104_p8 = scmp.ne.s32.totalorder %s6295_s14, %s6291_s13 }
  0x1b   : > { %11605 = sst [smem:[#allocation17_spill]] %s6463_s5  ;;  %s93_s8 = ssub.s32 %s5978_s30, %s5980_s6 }
  0x1c   : > { %p95_p9 = scmp.eq.s32.totalorder %s93_s8, 0  ;;  %p110_p10 = scmp.ne.s32.totalorder %s6291_s13, %s6287_s12 }
  0x1d   : > { %p6472_p11 = por %p104_p8, %p73_p2  ;;  %p136_p12 = scmp.eq.s32.totalorder %s5673_s21, 2 }
  0x1e   : > { %s6477_s10 = scalar_select %p95_p9, %s6295_s14, %s97_s7  }
  0x1f   : > { %p6481_p13 = por %p110_p10, %p6445_p5  ;;  %p6488_p0 = por %p136_p12, %p72_p1 }
  0x20   : > { %11607 = sst [smem:[#allocation18_spill]] %s6477_s10  ;;  %p142_p6 = scmp.eq.s32.totalorder %s5674_s22, 2 }
  0x21   : > { %s11608_s11 = scalar_select %p6481_p13, 1, 0 }
  0x22   : > { %s11609_s24 = scalar_select %p6488_p0, 1, 0 }
  0x23   : > { %p5677_p3 = scmp.ge.s32.totalorder %s6319_s20, 1  ;;  %p149_p7 = scmp.lt.s32.totalorder %s6319_s20, 4 }
  0x24   : > { %p11610_p2 = scmp.ne.s32.totalorder %s6303_s16, %s6299_s15  ;;  %s11614_s0 = sld [smem:[#allocation547_spill]] }
  0x25   : > { %p6501_p9 = pnand %p5677_p3, %p149_p7 }
  0x26   : > { %p6497_p8 = por %p142_p6, %p11610_p2 }
  0x27   : > { %s11613_s21 = scalar_select %p6501_p9, 1, 0 }
  0x28   : > { %s11611_s12 = scalar_select %p6497_p8, 1, 0 }
  0x29   : > { %p5993_p10 = pneg %p6501_p9 }
  0x2a   : > { %11612 = sst [smem:[#allocation19_spill]] %s11611_s12  ;;  %s6133_s22 = scalar_lea.hbm %s11614_s0, 128 }
  0x2b   : > { %p5994_p1 = pnand %p5993_p10, %p6445_p5  ;;  %p6134_p12 = scmp.ne.s32.totalorder %s11614_s0, %s6133_s22 }
  0x2c   : > { %p6140_p3 = scmp.lt.u32.totalorder %s6133_s22, %s11614_s0 }
  0x2d   : > { %p6135_p6 = pneg %p5994_p1 }
  0x2f   : > { %p6136_p2 = pnand %p6135_p6, %p6134_p12 }
  0x31   : > { %p6137_p8 = pneg %p6136_p2 }
  0x33   : > { %p6142_p7 = pnand %p6140_p3, %p6137_p8 }
  0x35   : > { %6145 = shalt.err (!%p6142_p7)
}
  0x36   : > { %s6321_s8 = smov [#allocation3]   ;;  %p5679_p10 = scmp.ge.s32.totalorder %s6319_s20, 3 }
  0x37   : > { %5996 = dma.hbm_to_smem (!%p5994_p1), %s11614_s0, 128, %s6321_s8, [#allocation6]  }
  0x38   : > { %167 = sbr.rel (%p5679_p10) target bundleno = 116 (0x74), region = 20 }
  0x3f   : > { %170 = sbr.rel (!%p6441_p4) target bundleno = 90 (0x5a), region = 24  ;;  %s171_s27 = sand.u32 (%p6441_p4), 1, %s6307_s17  }
  0x40   : > { %s5680_s28 = sshll.u32 (%p6441_p4), %s171_s27, 4  ;;  %s172_s30 = scalar_lea.sflag (%p6441_p4), [#allocation4], %s171_s27 }
  0x41   : > { %s175_s4 = scalar_lea.vmem (%p6441_p4), [#allocation7], %s5680_s28  ;;  %s5981_s22 = sshll.u32 (%p6441_p4), %s6315_s19, 8 }
  0x42   : > { %s188_s10 = scalar_lea.hbm (%p6441_p4), %s11382_s1, %s5981_s22  ;;  %s191_s12 = sshll.u32 (%p6441_p4), %s175_s4, 4  ;;  %s192_s12 = int_to_ptr.vmem [resolvable:$true] %s191_s12 }
  0x43   : > { %s6146_s23 = scalar_lea.hbm (%p6441_p4), %s188_s10, 256  ;;  %s6150_s25 = scalar_lea.hbm (%p6441_p4), %s11382_s1, 896 }
  0x44   : > { %p6147_p8 = scmp.ne.s32.totalorder (%p6441_p4), %s188_s10, %s6146_s23  ;;  %p6151_p4 = scmp.lt.u32.totalorder (%p6441_p4), %s188_s10, %s11382_s1 }
  0x46   : > { %p6152_p1 = scmp.lt.u32.totalorder %s6150_s25, %s6146_s23  ;;  %p6154_p6 = scmp.lt.u32.totalorder %s6146_s23, %s188_s10 }
  0x48   : > { %p6153_p12 = por %p6152_p1, %p6151_p4 }
  0x4a   : > { %p6155_p2 = por %p6154_p6, %p6153_p12 }
  0x4c   : > { %p6156_p3 = pnand %p6155_p2, %p6147_p8 }
  0x4e   : > { %6159 = shalt.err (!%p6156_p3)
}
  0x4f   : > { %s6160_s27 = scalar_lea.vmem %s192_s12, 256  ;;  %s6322_s28 = smov [#allocation7]  }
  0x50   : > { %p6161_p7 = scmp.ne.s32.totalorder %s192_s12, %s6160_s27  ;;  %s6164_s4 = sshll.u32 %s6322_s28, 4  ;;  %s6165_s4 = int_to_ptr.vmem [resolvable:$false] %s6164_s4 }
  0x51   : > { %s6166_s22 = scalar_lea.vmem %s6165_s4, 512  ;;  %p6167_p10 = scmp.lt.s32.totalorder %s192_s12, %s6165_s4 }
  0x52   : > { %p6168_p0 = scmp.lt.s32.totalorder %s6166_s22, %s6160_s27 }
  0x54   : > { %p6169_p13 = por %p6168_p0, %p6167_p10 }
  0x56   : > { %p6170_p5 = pnand %p6169_p13, %p6161_p7 }
  0x58   : > { %6173 = shalt.err (!%p6170_p5)
}
  0x59   : > { %194 = dma.hbm_to_vmem [thread:$0]  %s188_s10, 256, %s192_s12, %s172_s30  }
  0x5a PF: > { %s198_s0 = sand.u32 1, %s6295_s14   ;;  %s5982_s15 = sshll.u32 %s6315_s19, 8 }
  0x5b   : > { %s5687_s6 = sshll.u32 %s198_s0, 3  ;;  %s5588_s5 = scalar_lea.hbm %s11383_s2, %s5982_s15 }
  0x5c   : > { %s6540_s8 = scalar_lea.hbm %s5588_s5, 256  ;;  %s202_s25 = scalar_lea.vmem [#allocation8], %s5687_s6 }
  0x5d   : > { %s213_s27 = sshll.u32 %s202_s25, 4  ;;  %s199_s10 = scalar_lea.sflag [#allocation9], %s198_s0  ;;  %s214_s27 = int_to_ptr.vmem [resolvable:$true] %s213_s27 }
  0x5e   : > { %s6202_s12 = scalar_lea.hbm %s5588_s5, 384  ;;  %s6178_s4 = scalar_lea.hbm %s11383_s2, 896 }
  0x5f   : > { %p6175_p5 = scmp.ne.s32.totalorder %s6540_s8, %s6202_s12  ;;  %p6179_p8 = scmp.lt.u32.totalorder %s6540_s8, %s11383_s2 }
  0x60   : > { %p6180_p4 = scmp.lt.u32.totalorder %s6178_s4, %s6202_s12  ;;  %p6182_p12 = scmp.lt.u32.totalorder %s6202_s12, %s6540_s8 }
  0x61   : > { %p6176_p13 = pnand %p6175_p5, %p6472_p11 }
  0x62   : > { %p6181_p1 = por %p6180_p4, %p6179_p8 }
  0x63   : > { %p6177_p0 = pneg %p6176_p13 }
  0x64   : > { %p6183_p6 = por %p6182_p12, %p6181_p1 }
  0x66   : > { %p6184_p2 = pnand %p6183_p6, %p6177_p0 }
  0x68   : > { %6187 = shalt.err (!%p6184_p2)
}
  0x69   : > { %s6188_s0 = scalar_lea.vmem %s214_s27, 128  ;;  %s6323_s6 = smov [#allocation8]  }
  0x6a   : > { %p6189_p3 = scmp.ne.s32.totalorder %s214_s27, %s6188_s0  ;;  %s6192_s7 = sshll.u32 %s6323_s6, 4  ;;  %s6193_s7 = int_to_ptr.vmem [resolvable:$false] %s6192_s7 }
  0x6b   : > { %s6194_s23 = scalar_lea.vmem %s6193_s7, 256  ;;  %p6195_p5 = scmp.lt.s32.totalorder %s214_s27, %s6193_s7 }
  0x6c   : > { %p6190_p7 = pnand %p6189_p3, %p6472_p11  ;;  %p6196_p13 = scmp.lt.s32.totalorder %s6194_s23, %s6188_s0 }
  0x6e   : > { %p6191_p10 = pneg %p6190_p7  ;;  %p6197_p9 = por %p6196_p13, %p6195_p5 }
  0x70   : > { %p6198_p4 = pnand %p6197_p9, %p6191_p10 }
  0x72   : > { %6201 = shalt.err (!%p6198_p4)
}
  0x73   : > { %5986 = dma.hbm_to_vmem [thread:$0]  (%p6472_p11), %s6540_s8, 128, %s214_s27, %s199_s10  }
  0x74 PF: > { %p11615_p0 = scmp.ne.s32.totalorder %s11613_s21, 0 }
  0x76   : > { %222 = sbr.rel (%p11615_p0) target bundleno = 1813 (0x715), region = 32 }
  0x7d   : > { %p11616_p8 = scmp.ne.s32.totalorder %s11603_s26, 0 }
  0x7f   : > { %6268 = dma.done.wait (%p11616_p8), [#allocation6], 128  }
  0x80   : > { %6270 = vsyncadd (%p11616_p8), [#allocation6], 4294967168  ;;  %s6565_s5 = sand.u32 1, %s6303_s16   ;;  %p11617_p11 = scmp.ne.s32.totalorder %s11604_s29, 0 }
  0x81   : > { %s5692_s25 = sshll.u32 %s6565_s5, 4  ;;  %s229_s9 = scalar_lea.sflag [#allocation4], %s6565_s5 }
  0x82   : > { %s6569_s12 = scalar_lea.vmem [#allocation7], %s5692_s25 }
  0x83   : > { %6272 = dma.done.wait (%p11617_p11), %s229_s9, 256  }
  0x84   : > { %6274 = vsyncadd (%p11617_p11), %s229_s9, 4294967040  ;;  %s237_s21 = sand.u32 1, %s6291_s13   ;;  %p11618_p9 = scmp.ne.s32.totalorder %s11608_s11, 0 }
  0x85   : > { %s5693_s26 = sshll.u32 %s237_s21, 3  ;;  %s238_s8 = scalar_lea.sflag [#allocation9], %s237_s21 }
  0x86   : > { %s6576_s27 = scalar_lea.vmem [#allocation8], %s5693_s26 }
  0x87   : > { %6276 = dma.done.wait (%p11618_p9), %s238_s8, 128  }
  0x88   : > { %6278 = vsyncadd (%p11618_p9), %s238_s8, 4294967168 }
  0x89   : > { %246 = sfence }
  0x8a   : > { %s5702_s10 = sld [smem:[#allocation3 + $0x1]]  ;;  %v6583_v0 = vld [vmem:[%s6576_s27] sm:$0xff]  ;;  %v6589_v3 = vld [vmem:[%s6569_s12 + $0x8] sm:$0xff]  ;;  %s6324_s11 = smov 127   ;;  %vm349_vm0 = vcmask 1039360   ;;  %vm510_vm1 = vcmask 1031168  }
  0x8b   : > { %s5703_s30 = sld [smem:[#allocation3 + $0x81]]  ;;  %v6586_v1 = vld [vmem:[%s6569_s12] sm:$0xff]  ;;  %s5710_s6 = sld [smem:[#allocation3 + $0x2]]  ;;  %vm671_vm2 = vcmask 1022976   ;;  %vm832_vm3 = vcmask 1014784   ;;  %vm993_vm4 = vcmask 1006592  }
  0x8c   : > { %s5704_s29 = sld [smem:[#allocation3 + $0x101]]  ;;  %s5711_s7 = sld [smem:[#allocation3 + $0x82]]  ;;  %vm1154_vm5 = vcmask 998400   ;;  %vm1315_vm6 = vcmask 990208   ;;  %vm1476_vm7 = vcmask 982016   ;;  %vm1637_vm8 = vcmask 973824  }
  0x8d   : > { %s5705_s28 = sld [smem:[#allocation3 + $0x181]]  ;;  %s5712_s23 = sld [smem:[#allocation3 + $0x102]]  ;;  %vm1798_vm9 = vcmask 965632   ;;  %vm1959_vm10 = vcmask 957440   ;;  %vm2120_vm11 = vcmask 949248   ;;  %vm2281_vm12 = vcmask 941056  }
  0x8e   : > { %s5706_s4 = sld [smem:[#allocation3 + $0x201]]  ;;  %s6325_s25 = smov 126   ;;  %vm2442_vm13 = vcmask 932864   ;;  %vm2603_vm14 = vcmask 924672   ;;  %vm2764_vm15 = vcmask 916480  }
  0x8f   : > { %s5707_s22 = sld [smem:[#allocation3 + $0x281]]  ;;  %s5713_s9 = sld [smem:[#allocation3 + $0x182]] }
  0x90   : > { %v336_v2 = vstv %s5702_s10  ;;  %s5708_s15 = sld [smem:[#allocation3 + $0x301]]  ;;  %s5714_s21 = sld [smem:[#allocation3 + $0x202]] }
  0x91   : > { %v339_v4 = vmul.f32 %v336_v2, %v6583_v0  ;;  %v337_v5 = vmul.f32 %v336_v2, %v6586_v1  ;;  %v357_v6 = vstv %s5703_s30  ;;  %v338_v8 = vmul.f32 %v336_v2, %v6589_v3  ;;  %s5709_s0 = sld [smem:[#allocation3 + $0x381]]  ;;  %s5715_s26 = sld [smem:[#allocation3 + $0x282]] }
  0x92   : > { %v358_v7 = vmul.f32 %v357_v6, %v6586_v1  ;;  %v360_v9 = vmul.f32 %v357_v6, %v6583_v0  ;;  %v359_v10 = vmul.f32 %v357_v6, %v6589_v3  ;;  %v377_v11 = vstv %s5704_s29  ;;  %s5716_s8 = sld [smem:[#allocation3 + $0x302]]  ;;  %s5718_s30 = sld [smem:[#allocation3 + $0x3]] }
  0x93   : > { %347 = vrot.lane.b32.xlu1 %v339_v4, %s6324_s11  ;;  %343 = vrot.lane.b32.xlu0 %v337_v5, %s6324_s11  ;;  %v379_v12 = vmul.f32 %v377_v11, %v6589_v3  ;;  %v378_v13 = vmul.f32 %v377_v11, %v6586_v1  ;;  %v397_v14 = vstv %s5705_s28  ;;  %v380_v16 = vmul.f32 %v377_v11, %v6583_v0  ;;  %s5717_s10 = sld [smem:[#allocation3 + $0x382]]  ;;  %s5719_s29 = sld [smem:[#allocation3 + $0x83]] }
  0x94   : > { %v398_v15 = vmul.f32 %v397_v14, %v6586_v1  ;;  %v400_v17 = vmul.f32 %v397_v14, %v6583_v0  ;;  %v399_v18 = vmul.f32 %v397_v14, %v6589_v3  ;;  %v417_v19 = vstv %s5706_s4  ;;  %s6326_s28 = smov 125   ;;  %s5721_s4 = sld [smem:[#allocation3 + $0x183]] }
  0x95   : > { %v419_v20 = vmul.f32 %v417_v19, %v6589_v3  ;;  %v418_v21 = vmul.f32 %v417_v19, %v6586_v1  ;;  %v437_v22 = vstv %s5707_s22  ;;  %v420_v24 = vmul.f32 %v417_v19, %v6583_v0  ;;  %s5722_s22 = sld [smem:[#allocation3 + $0x203]]  ;;  %p12863_p12 = scmp.ne.s32.totalorder %s11609_s24, 0 }
  0x96   : > { %v438_v23 = vmul.f32 %v437_v22, %v6586_v1  ;;  %v440_v25 = vmul.f32 %v437_v22, %v6583_v0  ;;  %v439_v26 = vmul.f32 %v437_v22, %v6589_v3  ;;  %v457_v27 = vstv %s5708_s15  ;;  %s5723_s15 = sld [smem:[#allocation3 + $0x283]] }
  0x97   : > { %364 = vrot.lane.b32.xlu1 %v358_v7, %s6324_s11  ;;  %345 = vrot.lane.b32.xlu0 %v338_v8, %s6324_s11  ;;  %v459_v28 = vmul.f32 %v457_v27, %v6589_v3  ;;  %v458_v29 = vmul.f32 %v457_v27, %v6586_v1  ;;  %v477_v30 = vstv %s5709_s0  ;;  %v460_v32 = vmul.f32 %v457_v27, %v6583_v0  ;;  %s5724_s0 = sld [smem:[#allocation3 + $0x303]] }
  0x98   : > { %v478_v31 = vmul.f32 %v477_v30, %v6586_v1  ;;  %v480_v33 = vmul.f32 %v477_v30, %v6583_v0  ;;  %v479_v34 = vmul.f32 %v477_v30, %v6589_v3  ;;  %v497_v35 = vstv %s5710_s6  ;;  %s5725_s6 = sld [smem:[#allocation3 + $0x383]] }
  0x99   : > { %v499_v36 = vmul.f32 %v497_v35, %v6589_v3  ;;  %v498_v37 = vmul.f32 %v497_v35, %v6586_v1  ;;  %v518_v38 = vstv %s5711_s7  ;;  %v500_v40 = vmul.f32 %v497_v35, %v6583_v0  ;;  %s5726_s7 = sld [smem:[#allocation3 + $0x4]] }
  0x9a   : > { %v519_v39 = vmul.f32 %v518_v38, %v6586_v1  ;;  %v521_v41 = vmul.f32 %v518_v38, %v6583_v0  ;;  %v520_v42 = vmul.f32 %v518_v38, %v6589_v3  ;;  %v538_v43 = vstv %s5712_s23  ;;  %s5727_s23 = sld [smem:[#allocation3 + $0x84]] }
  0x9b   : > { %368 = vrot.lane.b32.xlu1 %v360_v9, %s6324_s11  ;;  %366 = vrot.lane.b32.xlu0 %v359_v10, %s6324_s11  ;;  %v540_v44 = vmul.f32 %v538_v43, %v6589_v3  ;;  %v539_v45 = vmul.f32 %v538_v43, %v6586_v1  ;;  %v558_v46 = vstv %s5713_s9  ;;  %v541_v48 = vmul.f32 %v538_v43, %v6583_v0  ;;  %s6327_s9 = smov 124  }
  0x9c   : > { %v559_v47 = vmul.f32 %v558_v46, %v6586_v1  ;;  %v561_v49 = vmul.f32 %v558_v46, %v6583_v0  ;;  %v560_v50 = vmul.f32 %v558_v46, %v6589_v3  ;;  %v578_v51 = vstv %s5714_s21  ;;  %s5729_s21 = sld [smem:[#allocation3 + $0x184]] }
  0x9d   : > { %v580_v52 = vmul.f32 %v578_v51, %v6589_v3  ;;  %v579_v53 = vmul.f32 %v578_v51, %v6586_v1  ;;  %v598_v54 = vstv %s5715_s26  ;;  %v581_v56 = vmul.f32 %v578_v51, %v6583_v0  ;;  %s5730_s26 = sld [smem:[#allocation3 + $0x204]] }
  0x9e   : > { %v599_v55 = vmul.f32 %v598_v54, %v6586_v1  ;;  %v601_v57 = vmul.f32 %v598_v54, %v6583_v0  ;;  %v600_v58 = vmul.f32 %v598_v54, %v6589_v3  ;;  %v618_v59 = vstv %s5716_s8  ;;  %s5731_s8 = sld [smem:[#allocation3 + $0x284]] }
  0x9f   : > { %386 = vrot.lane.b32.xlu1 %v379_v12, %s6324_s11  ;;  %384 = vrot.lane.b32.xlu0 %v378_v13, %s6324_s11  ;;  %v620_v60 = vmul.f32 %v618_v59, %v6589_v3  ;;  %v619_v61 = vmul.f32 %v618_v59, %v6586_v1  ;;  %v638_v62 = vstv %s5717_s10  ;;  %v621_v2 = vmul.f32 %v618_v59, %v6583_v0  ;;  %s5732_s10 = sld [smem:[#allocation3 + $0x304]] }
  0xa0   : > { %v639_v63 = vmul.f32 %v638_v62, %v6586_v1  ;;  %v641_v4 = vmul.f32 %v638_v62, %v6583_v0  ;;  %v640_v5 = vmul.f32 %v638_v62, %v6589_v3  ;;  %v658_v6 = vstv %s5718_s30  ;;  %s5733_s30 = sld [smem:[#allocation3 + $0x384]] }
  0xa1   : > { %v660_v7 = vmul.f32 %v658_v6, %v6589_v3  ;;  %v659_v8 = vmul.f32 %v658_v6, %v6586_v1  ;;  %v679_v9 = vstv %s5719_s29  ;;  %v661_v11 = vmul.f32 %v658_v6, %v6583_v0  ;;  %s5734_s29 = sld [smem:[#allocation3 + $0x5]] }
  0xa2   : > { %v680_v10 = vmul.f32 %v679_v9, %v6586_v1  ;;  %v682_v12 = vmul.f32 %v679_v9, %v6583_v0  ;;  %v681_v13 = vmul.f32 %v679_v9, %v6589_v3  ;;  %v739_v22 = vstv %s5722_s22  ;;  %s5737_s22 = sld [smem:[#allocation3 + $0x185]] }
  0xa3   : > { %404 = vrot.lane.b32.xlu1 %v398_v15, %s6324_s11  ;;  %388 = vrot.lane.b32.xlu0 %v380_v16, %s6324_s11  ;;  %v759_v27 = vstv %s5723_s15  ;;  %s5738_s15 = sld [smem:[#allocation3 + $0x205]] }
  0xa4   : > { %v760_v30 = vmul.f32 %v759_v27, %v6586_v1  ;;  %v761_v35 = vmul.f32 %v759_v27, %v6589_v3 }
  0xa7   : > { %408 = vrot.lane.b32.xlu1 %v400_v17, %s6324_s11  ;;  %406 = vrot.lane.b32.xlu0 %v399_v18, %s6324_s11  ;;  %v719_v17 = vstv %s5721_s4  ;;  %s6328_s4 = smov 123  }
  0xa8   : > { %v720_v18 = vmul.f32 %v719_v17, %v6586_v1 }
  0xab   : > { %426 = vrot.lane.b32.xlu1 %v419_v20, %s6324_s11  ;;  %424 = vrot.lane.b32.xlu0 %v418_v21, %s6324_s11  ;;  %v722_v20 = vmul.f32 %v719_v17, %v6583_v0  ;;  %v721_v21 = vmul.f32 %v719_v17, %v6589_v3  ;;  %v900_v17 = vstv %s5730_s26  ;;  %s5745_s26 = sld [smem:[#allocation3 + $0x186]] }
  0xaf   : > { %444 = vrot.lane.b32.xlu1 %v438_v23, %s6324_s11  ;;  %428 = vrot.lane.b32.xlu0 %v420_v24, %s6324_s11 }
  0xb3   : > { %448 = vrot.lane.b32.xlu1 %v440_v25, %s6324_s11  ;;  %446 = vrot.lane.b32.xlu0 %v439_v26, %s6324_s11  ;;  %v741_v25 = vmul.f32 %v739_v22, %v6589_v3  ;;  %v740_v26 = vmul.f32 %v739_v22, %v6586_v1 }
  0xb7   : > { %466 = vrot.lane.b32.xlu1 %v459_v28, %s6324_s11  ;;  %464 = vrot.lane.b32.xlu0 %v458_v29, %s6324_s11 }
  0xbb   : > { %484 = vrot.lane.b32.xlu1 %v478_v31, %s6324_s11  ;;  %468 = vrot.lane.b32.xlu0 %v460_v32, %s6324_s11  ;;  %v742_v31 = vmul.f32 %v739_v22, %v6583_v0  ;;  %v920_v22 = vstv %s5731_s8  ;;  %s5746_s8 = sld [smem:[#allocation3 + $0x206]] }
  0xbf   : > { %488 = vrot.lane.b32.xlu1 %v480_v33, %s6324_s11  ;;  %486 = vrot.lane.b32.xlu0 %v479_v34, %s6324_s11  ;;  %s5720_s11 = sld [smem:[#allocation3 + $0x103]]  ;;  %v762_v34 = vmul.f32 %v759_v27, %v6583_v0  ;;  %v921_v27 = vmul.f32 %v920_v22, %v6586_v1 }
  0xc3   : > { %506 = vrot.lane.b32.xlu1 %v499_v36, %s6325_s25  ;;  %504 = vrot.lane.b32.xlu0 %v498_v37, %s6325_s25  ;;  %v779_v36 = vstv %s5724_s0  ;;  %s5739_s0 = sld [smem:[#allocation3 + $0x285]] }
  0xc5   : > { %v699_v14 = vstv %s5720_s11  ;;  %s5735_s11 = sld [smem:[#allocation3 + $0x85]] }
  0xc6   : > { %v701_v15 = vmul.f32 %v699_v14, %v6589_v3  ;;  %v700_v16 = vmul.f32 %v699_v14, %v6586_v1  ;;  %v702_v19 = vmul.f32 %v699_v14, %v6583_v0 }
  0xc7   : > { %525 = vrot.lane.b32.xlu1 %v519_v39, %s6325_s25  ;;  %508 = vrot.lane.b32.xlu0 %v500_v40, %s6325_s25  ;;  %v781_v39 = vmul.f32 %v779_v36, %v6589_v3  ;;  %v780_v40 = vmul.f32 %v779_v36, %v6586_v1 }
  0xcb   : > { %529 = vrot.lane.b32.xlu1 %v521_v41, %s6325_s25  ;;  %527 = vrot.lane.b32.xlu0 %v520_v42, %s6325_s25  ;;  %v799_v41 = vstv %s5725_s6  ;;  %s5740_s6 = sld [smem:[#allocation3 + $0x305]] }
  0xcf   : > { %547 = vrot.lane.b32.xlu1 %v540_v44, %s6325_s25  ;;  %545 = vrot.lane.b32.xlu0 %v539_v45, %s6325_s25  ;;  %v800_v44 = vmul.f32 %v799_v41, %v6586_v1  ;;  %v782_v45 = vmul.f32 %v779_v36, %v6583_v0  ;;  %v922_v36 = vmul.f32 %v920_v22, %v6589_v3 }
  0xd3   : > { %565 = vrot.lane.b32.xlu1 %v559_v47, %s6325_s25  ;;  %549 = vrot.lane.b32.xlu0 %v541_v48, %s6325_s25  ;;  %v802_v48 = vmul.f32 %v799_v41, %v6583_v0 }
  0xd7   : > { %569 = vrot.lane.b32.xlu1 %v561_v49, %s6325_s25  ;;  %567 = vrot.lane.b32.xlu0 %v560_v50, %s6325_s25  ;;  %v801_v49 = vmul.f32 %v799_v41, %v6589_v3  ;;  %v819_v50 = vstv %s5726_s7  ;;  %s5741_s7 = sld [smem:[#allocation3 + $0x385]] }
  0xd8   : > { %v820_v54 = vmul.f32 %v819_v50, %v6586_v1  ;;  %v822_v59 = vmul.f32 %v819_v50, %v6583_v0 }
  0xdb   : > { %587 = vrot.lane.b32.xlu1 %v580_v52, %s6325_s25  ;;  %585 = vrot.lane.b32.xlu0 %v579_v53, %s6325_s25  ;;  %v821_v53 = vmul.f32 %v819_v50, %v6589_v3 }
  0xdf   : > { %605 = vrot.lane.b32.xlu1 %v599_v55, %s6325_s25  ;;  %589 = vrot.lane.b32.xlu0 %v581_v56, %s6325_s25  ;;  %v840_v55 = vstv %s5727_s23  ;;  %s5742_s23 = sld [smem:[#allocation3 + $0x6]] }
  0xe0   : > { %v843_v62 = vmul.f32 %v840_v55, %v6583_v0 }
  0xe3   : > { %609 = vrot.lane.b32.xlu1 %v601_v57, %s6325_s25  ;;  %607 = vrot.lane.b32.xlu0 %v600_v58, %s6325_s25  ;;  %v841_v58 = vmul.f32 %v840_v55, %v6586_v1 }
  0xe7   : > { %627 = vrot.lane.b32.xlu1 %v620_v60, %s6325_s25  ;;  %625 = vrot.lane.b32.xlu0 %v619_v61, %s6325_s25 }
  0xeb   : > { %645 = vrot.lane.b32.xlu1 %v639_v63, %s6325_s25  ;;  %629 = vrot.lane.b32.xlu0 %v621_v2, %s6325_s25  ;;  %v842_v63 = vmul.f32 %v840_v55, %v6589_v3 }
  0xef   : > { %649 = vrot.lane.b32.xlu1 %v641_v4, %s6325_s25  ;;  %647 = vrot.lane.b32.xlu0 %v640_v5, %s6325_s25  ;;  %s5728_s25 = sld [smem:[#allocation3 + $0x104]] }
  0xf3   : > { %667 = vrot.lane.b32.xlu1 %v660_v7, %s6326_s28  ;;  %665 = vrot.lane.b32.xlu0 %v659_v8, %s6326_s28  ;;  %v880_v8 = vstv %s5729_s21  ;;  %s6329_s21 = smov 122  }
  0xf5   : > { %v860_v2 = vstv %s5728_s25  ;;  %s5743_s25 = sld [smem:[#allocation3 + $0x86]] }
  0xf6   : > { %v862_v6 = vmul.f32 %v860_v2, %v6589_v3  ;;  %v861_v7 = vmul.f32 %v860_v2, %v6586_v1 }
  0xf7   : > { %686 = vrot.lane.b32.xlu1 %v680_v10, %s6326_s28  ;;  %669 = vrot.lane.b32.xlu0 %v661_v11, %s6326_s28  ;;  %v881_v11 = vmul.f32 %v880_v8, %v6586_v1 }
  0xfb   : > { %690 = vrot.lane.b32.xlu1 %v682_v12, %s6326_s28  ;;  %688 = vrot.lane.b32.xlu0 %v681_v13, %s6326_s28  ;;  %v863_v12 = vmul.f32 %v860_v2, %v6583_v0 }
  0xff   : > { %708 = vrot.lane.b32.xlu1 %v701_v15, %s6326_s28  ;;  %706 = vrot.lane.b32.xlu0 %v700_v16, %s6326_s28  ;;  %v883_v15 = vmul.f32 %v880_v8, %v6583_v0  ;;  %v882_v16 = vmul.f32 %v880_v8, %v6589_v3 }
 0x103   : > { %726 = vrot.lane.b32.xlu1 %v720_v18, %s6326_s28  ;;  %710 = vrot.lane.b32.xlu0 %v702_v19, %s6326_s28 }
 0x105   : > { %v6709_v23 = vpop.permute.xlu1 %347  ;;  %v6711_v24 = vpop.permute.xlu0 %343 }
 0x107   : > { %730 = vrot.lane.b32.xlu1 %v722_v20, %s6326_s28  ;;  %728 = vrot.lane.b32.xlu0 %v721_v21, %s6326_s28  ;;  %v902_v20 = vmul.f32 %v900_v17, %v6589_v3  ;;  %v901_v21 = vmul.f32 %v900_v17, %v6586_v1 }
 0x109   : > { %v6717_v28 = vpop.permute.xlu1 %364  ;;  %v6719_v29 = vpop.permute.xlu0 %345 }
 0x10b   : > { %748 = vrot.lane.b32.xlu1 %v741_v25, %s6326_s28  ;;  %746 = vrot.lane.b32.xlu0 %v740_v26, %s6326_s28 }
 0x10d   : > { %v6725_v32 = vpop.permute.xlu1 %368  ;;  %v6727_v33 = vpop.permute.xlu0 %366 }
 0x10f   : > { %766 = vrot.lane.b32.xlu1 %v760_v30, %s6326_s28  ;;  %750 = vrot.lane.b32.xlu0 %v742_v31, %s6326_s28  ;;  %v903_v30 = vmul.f32 %v900_v17, %v6583_v0 }
 0x111   : > { %v6733_v37 = vpop.permute.xlu1 %386  ;;  %v6735_v38 = vpop.permute.xlu0 %384 }
 0x113   : > { %770 = vrot.lane.b32.xlu1 %v762_v34, %s6326_s28  ;;  %768 = vrot.lane.b32.xlu0 %v761_v35, %s6326_s28  ;;  %v923_v35 = vmul.f32 %v920_v22, %v6583_v0 }
 0x115   : > { %v6741_v42 = vpop.permute.xlu1 %404  ;;  %v6743_v43 = vpop.permute.xlu0 %388 }
 0x117   : > { %788 = vrot.lane.b32.xlu1 %v781_v39, %s6326_s28  ;;  %786 = vrot.lane.b32.xlu0 %v780_v40, %s6326_s28  ;;  %v940_v39 = vstv %s5732_s10  ;;  %s5747_s10 = sld [smem:[#allocation3 + $0x286]] }
 0x119   : > { %v6749_v46 = vpop.permute.xlu1 %408  ;;  %v6751_v47 = vpop.permute.xlu0 %406 }
 0x11b   : > { %806 = vrot.lane.b32.xlu1 %v800_v44, %s6326_s28  ;;  %790 = vrot.lane.b32.xlu0 %v782_v45, %s6326_s28  ;;  %v942_v44 = vmul.f32 %v940_v39, %v6589_v3  ;;  %v941_v45 = vmul.f32 %v940_v39, %v6586_v1 }
 0x11d   : > { %v6757_v51 = vpop.permute.xlu1 %426  ;;  %v6759_v52 = vpop.permute.xlu0 %424 }
 0x11f   : > { %810 = vrot.lane.b32.xlu1 %v802_v48, %s6326_s28  ;;  %808 = vrot.lane.b32.xlu0 %v801_v49, %s6326_s28  ;;  %v960_v48 = vstv %s5733_s30  ;;  %s5736_s28 = sld [smem:[#allocation3 + $0x105]]  ;;  %s5748_s30 = sld [smem:[#allocation3 + $0x306]] }
 0x121   : > { %v6765_v56 = vpop.permute.xlu1 %444  ;;  %v6767_v57 = vpop.permute.xlu0 %428 }
 0x123   : > { %828 = vrot.lane.b32.xlu1 %v821_v53, %s6327_s9  ;;  %826 = vrot.lane.b32.xlu0 %v820_v54, %s6327_s9  ;;  %v961_v53 = vmul.f32 %v960_v48, %v6586_v1  ;;  %v943_v54 = vmul.f32 %v940_v39, %v6583_v0 }
 0x125   : > { %v6773_v60 = vpop.permute.xlu1 %448  ;;  %v6775_v61 = vpop.permute.xlu0 %446 }
 0x127   : > { %847 = vrot.lane.b32.xlu1 %v841_v58, %s6327_s9  ;;  %830 = vrot.lane.b32.xlu0 %v822_v59, %s6327_s9  ;;  %v963_v59 = vmul.f32 %v960_v48, %v6583_v0 }
 0x129   : > { %v6781_v4 = vpop.permute.xlu1 %466  ;;  %v6783_v5 = vpop.permute.xlu0 %464 }
 0x12b   : > { %851 = vrot.lane.b32.xlu1 %v843_v62, %s6327_s9  ;;  %849 = vrot.lane.b32.xlu0 %v842_v63, %s6327_s9  ;;  %v962_v62 = vmul.f32 %v960_v48, %v6589_v3  ;;  %v980_v63 = vstv %s5734_s29  ;;  %s5749_s29 = sld [smem:[#allocation3 + $0x386]] }
 0x12c   : > { %v981_v8 = vmul.f32 %v980_v63, %v6586_v1  ;;  %v983_v17 = vmul.f32 %v980_v63, %v6583_v0 }
 0x12d   : > { %v6789_v9 = vpop.permute.xlu1 %484  ;;  %v6791_v10 = vpop.permute.xlu0 %468 }
 0x12f   : > { %869 = vrot.lane.b32.xlu1 %v862_v6, %s6327_s9  ;;  %867 = vrot.lane.b32.xlu0 %v861_v7, %s6327_s9  ;;  %v982_v7 = vmul.f32 %v980_v63, %v6589_v3 }
 0x131   : > { %v6797_v13 = vpop.permute.xlu1 %488  ;;  %v6799_v14 = vpop.permute.xlu0 %486 }
 0x133   : > { %887 = vrot.lane.b32.xlu1 %v881_v11, %s6327_s9  ;;  %871 = vrot.lane.b32.xlu0 %v863_v12, %s6327_s9  ;;  %v1001_v11 = vstv %s5735_s11  ;;  %s5750_s11 = sld [smem:[#allocation3 + $0x7]] }
 0x134   : > { %v1004_v22 = vmul.f32 %v1001_v11, %v6583_v0 }
 0x135   : > { %v6805_v18 = vpop.permute.xlu1 %506  ;;  %v6807_v19 = vpop.permute.xlu0 %504 }
 0x137   : > { %891 = vrot.lane.b32.xlu1 %v883_v15, %s6327_s9  ;;  %889 = vrot.lane.b32.xlu0 %v882_v16, %s6327_s9  ;;  %v1002_v16 = vmul.f32 %v1001_v11, %v6586_v1 }
 0x139   : > { %v6813_v25 = vpop.permute.xlu1 %525  ;;  %v6815_v26 = vpop.permute.xlu0 %508 }
 0x13b   : > { %909 = vrot.lane.b32.xlu1 %v902_v20, %s6327_s9  ;;  %907 = vrot.lane.b32.xlu0 %v901_v21, %s6327_s9 }
 0x13d   : > { %v6821_v31 = vpop.permute.xlu1 %529  ;;  %v6823_v34 = vpop.permute.xlu0 %527 }
 0x13f   : > { %927 = vrot.lane.b32.xlu1 %v921_v27, %s6327_s9  ;;  %911 = vrot.lane.b32.xlu0 %v903_v30, %s6327_s9  ;;  %v1003_v27 = vmul.f32 %v1001_v11, %v6589_v3  ;;  %v1021_v30 = vstv %s5736_s28  ;;  %v1061_v11 = vstv %s5738_s15  ;;  %s5751_s28 = sld [smem:[#allocation3 + $0x87]] }
 0x140   : > { %v1023_v39 = vmul.f32 %v1021_v30, %v6589_v3  ;;  %s5753_s15 = sld [smem:[#allocation3 + $0x187]] }
 0x141   : > { %v6829_v40 = vpop.permute.xlu1 %547  ;;  %v6831_v41 = vpop.permute.xlu0 %545 }
 0x143   : > { %931 = vrot.lane.b32.xlu1 %v923_v35, %s6327_s9  ;;  %929 = vrot.lane.b32.xlu0 %v922_v36, %s6327_s9 }
 0x145   : > { %v6837_v49 = vpop.permute.xlu1 %565  ;;  %v6839_v50 = vpop.permute.xlu0 %549 }
 0x147   : > { %949 = vrot.lane.b32.xlu1 %v942_v44, %s6327_s9  ;;  %947 = vrot.lane.b32.xlu0 %v941_v45, %s6327_s9  ;;  %v1022_v44 = vmul.f32 %v1021_v30, %v6586_v1  ;;  %v1041_v45 = vstv %s5737_s22  ;;  %s6330_s22 = smov 121  }
 0x149   : > { %v6845_v55 = vpop.permute.xlu1 %569  ;;  %v6847_v58 = vpop.permute.xlu0 %567 }
 0x14a   : > { %11619 = vst [vmem:[#allocation20_spill] sm:$0xff] %v6845_v55 }
 0x14b   : > { %967 = vrot.lane.b32.xlu1 %v961_v53, %s6327_s9  ;;  %951 = vrot.lane.b32.xlu0 %v943_v54, %s6327_s9  ;;  %v1042_v54 = vmul.f32 %v1041_v45, %v6586_v1 }
 0x14d   : > { %v6853_v2 = vpop.permute.xlu1 %587  ;;  %v6855_v6 = vpop.permute.xlu0 %585 }
 0x14e   : > { %11620 = vst [vmem:[#allocation21_spill] sm:$0xff] %v6853_v2  ;;  %11621 = vst [vmem:[#allocation22_spill] sm:$0xff] %v6855_v6 }
 0x14f   : > { %971 = vrot.lane.b32.xlu1 %v963_v59, %s6327_s9  ;;  %969 = vrot.lane.b32.xlu0 %v962_v62, %s6327_s9  ;;  %v1024_v59 = vmul.f32 %v1021_v30, %v6583_v0  ;;  %v1081_v30 = vstv %s5739_s0  ;;  %s5744_s9 = sld [smem:[#allocation3 + $0x106]]  ;;  %s5754_s0 = sld [smem:[#allocation3 + $0x207]] }
 0x151   : > { %v6861_v12 = vpop.permute.xlu1 %605  ;;  %v6863_v15 = vpop.permute.xlu0 %589 }
 0x152   : > { %11622 = vst [vmem:[#allocation23_spill] sm:$0xff] %v6861_v12  ;;  %11623 = vst [vmem:[#allocation24_spill] sm:$0xff] %v6863_v15 }
 0x153   : > { %989 = vrot.lane.b32.xlu1 %v982_v7, %s6328_s4  ;;  %987 = vrot.lane.b32.xlu0 %v981_v8, %s6328_s4  ;;  %v1044_v7 = vmul.f32 %v1041_v45, %v6583_v0  ;;  %v1043_v8 = vmul.f32 %v1041_v45, %v6589_v3  ;;  %v1082_v45 = vmul.f32 %v1081_v30, %v6586_v1 }
 0x155   : > { %v6869_v20 = vpop.permute.xlu1 %609  ;;  %v6871_v21 = vpop.permute.xlu0 %607 }
 0x156   : > { %11624 = vst [vmem:[#allocation25_spill] sm:$0xff] %v6869_v20  ;;  %11625 = vst [vmem:[#allocation26_spill] sm:$0xff] %v6871_v21 }
 0x157   : > { %1008 = vrot.lane.b32.xlu1 %v1002_v16, %s6328_s4  ;;  %991 = vrot.lane.b32.xlu0 %v983_v17, %s6328_s4 }
 0x159   : > { %v6877_v35 = vpop.permute.xlu1 %627  ;;  %v6879_v36 = vpop.permute.xlu0 %625 }
 0x15a   : > { %11626 = vst [vmem:[#allocation27_spill] sm:$0xff] %v6877_v35  ;;  %11627 = vst [vmem:[#allocation28_spill] sm:$0xff] %v6879_v36 }
 0x15b   : > { %1012 = vrot.lane.b32.xlu1 %v1004_v22, %s6328_s4  ;;  %1010 = vrot.lane.b32.xlu0 %v1003_v27, %s6328_s4  ;;  %v1063_v22 = vmul.f32 %v1061_v11, %v6589_v3  ;;  %v1062_v27 = vmul.f32 %v1061_v11, %v6586_v1 }
 0x15d   : > { %v6885_v48 = vpop.permute.xlu1 %645  ;;  %v6887_v53 = vpop.permute.xlu0 %629 }
 0x15e   : > { %11628 = vst [vmem:[#allocation29_spill] sm:$0xff] %v6885_v48  ;;  %11629 = vst [vmem:[#allocation30_spill] sm:$0xff] %v6887_v53 }
 0x15f   : > { %1030 = vrot.lane.b32.xlu1 %v1023_v39, %s6328_s4  ;;  %1028 = vrot.lane.b32.xlu0 %v1022_v44, %s6328_s4 }
 0x161   : > { %v6893_v62 = vpop.permute.xlu1 %649  ;;  %v6895_v63 = vpop.permute.xlu0 %647 }
 0x162   : > { %11630 = vst [vmem:[#allocation31_spill] sm:$0xff] %v6893_v62  ;;  %11631 = vst [vmem:[#allocation32_spill] sm:$0xff] %v6895_v63 }
 0x163   : > { %1048 = vrot.lane.b32.xlu1 %v1042_v54, %s6328_s4  ;;  %1032 = vrot.lane.b32.xlu0 %v1024_v59, %s6328_s4  ;;  %v1064_v54 = vmul.f32 %v1061_v11, %v6583_v0 }
 0x165   : > { %v6901_v16 = vpop.permute.xlu1 %667  ;;  %v6903_v17 = vpop.permute.xlu0 %665 }
 0x166   : > { %11632 = vst [vmem:[#allocation33_spill] sm:$0xff] %v6901_v16  ;;  %11633 = vst [vmem:[#allocation34_spill] sm:$0xff] %v6903_v17 }
 0x167   : > { %1052 = vrot.lane.b32.xlu1 %v1044_v7, %s6328_s4  ;;  %1050 = vrot.lane.b32.xlu0 %v1043_v8, %s6328_s4  ;;  %v1084_v8 = vmul.f32 %v1081_v30, %v6583_v0 }
 0x169   : > { %v6909_v39 = vpop.permute.xlu1 %686  ;;  %v6911_v44 = vpop.permute.xlu0 %669 }
 0x16a   : > { %11634 = vst [vmem:[#allocation35_spill] sm:$0xff] %v6909_v39  ;;  %11635 = vst [vmem:[#allocation36_spill] sm:$0xff] %v6911_v44  ;;  %v1083_v39 = vmul.f32 %v1081_v30, %v6589_v3 }
 0x16b   : > { %1070 = vrot.lane.b32.xlu1 %v1063_v22, %s6328_s4  ;;  %1068 = vrot.lane.b32.xlu0 %v1062_v27, %s6328_s4  ;;  %v1101_v22 = vstv %s5740_s6  ;;  %s5755_s6 = sld [smem:[#allocation3 + $0x287]] }
 0x16c   : > { %v1103_v11 = vmul.f32 %v1101_v22, %v6589_v3 }
 0x16d   : > { %v6917_v59 = vpop.permute.xlu1 %690  ;;  %v6919_v7 = vpop.permute.xlu0 %688 }
 0x16e   : > { %11636 = vst [vmem:[#allocation37_spill] sm:$0xff] %v6917_v59  ;;  %11637 = vst [vmem:[#allocation38_spill] sm:$0xff] %v6919_v7  ;;  %v1102_v59 = vmul.f32 %v1101_v22, %v6586_v1 }
 0x16f   : > { %1088 = vrot.lane.b32.xlu1 %v1082_v45, %s6328_s4  ;;  %1072 = vrot.lane.b32.xlu0 %v1064_v54, %s6328_s4  ;;  %v1121_v45 = vstv %s5741_s7  ;;  %s5756_s7 = sld [smem:[#allocation3 + $0x307]] }
 0x170   : > { %v1122_v30 = vmul.f32 %v1121_v45, %v6586_v1 }
 0x171   : > { %v6925_v44 = vpop.permute.xlu1 %708  ;;  %v6927_v27 = vpop.permute.xlu0 %706 }
 0x172   : > { %11638 = vst [vmem:[#allocation39_spill] sm:$0xff] %v6925_v44  ;;  %11639 = vst [vmem:[#allocation40_spill] sm:$0xff] %v6927_v27 }
 0x173   : > { %1092 = vrot.lane.b32.xlu1 %v1084_v8, %s6328_s4  ;;  %1090 = vrot.lane.b32.xlu0 %v1083_v39, %s6328_s4  ;;  %v1104_v8 = vmul.f32 %v1101_v22, %v6583_v0 }
 0x175   : > { %v6933_v54 = vpop.permute.xlu1 %726  ;;  %v6935_v7 = vpop.permute.xlu0 %710 }
 0x176   : > { %11640 = vst [vmem:[#allocation41_spill] sm:$0xff] %v6933_v54  ;;  %11641 = vst [vmem:[#allocation42_spill] sm:$0xff] %v6935_v7  ;;  %v1124_v54 = vmul.f32 %v1121_v45, %v6583_v0  ;;  %v1123_v7 = vmul.f32 %v1121_v45, %v6589_v3 }
 0x177   : > { %1110 = vrot.lane.b32.xlu1 %v1103_v11, %s6328_s4  ;;  %1108 = vrot.lane.b32.xlu0 %v1102_v59, %s6328_s4  ;;  %v1141_v11 = vstv %s5742_s23  ;;  %s5757_s23 = sld [smem:[#allocation3 + $0x387]] }
 0x178   : > { %v1143_v22 = vmul.f32 %v1141_v11, %v6589_v3 }
 0x179   : > { %v6941_v39 = vpop.permute.xlu1 %730  ;;  %v6943_v27 = vpop.permute.xlu0 %728 }
 0x17a   : > { %11642 = vst [vmem:[#allocation43_spill] sm:$0xff] %v6941_v39  ;;  %11643 = vst [vmem:[#allocation44_spill] sm:$0xff] %v6943_v27  ;;  %v1142_v39 = vmul.f32 %v1141_v11, %v6586_v1 }
 0x17b   : > { %1128 = vrot.lane.b32.xlu1 %v1122_v30, %s6328_s4  ;;  %1112 = vrot.lane.b32.xlu0 %v1104_v8, %s6328_s4  ;;  %v1162_v30 = vstv %s5743_s25  ;;  %s5758_s25 = sld [smem:[#allocation3 + $0x8]] }
 0x17c   : > { %v1163_v45 = vmul.f32 %v1162_v30, %v6586_v1 }
 0x17d   : > { %v6949_v44 = vpop.permute.xlu1 %748  ;;  %v6951_v59 = vpop.permute.xlu0 %746 }
 0x17e   : > { %11644 = vst [vmem:[#allocation45_spill] sm:$0xff] %v6949_v44  ;;  %11645 = vst [vmem:[#allocation46_spill] sm:$0xff] %v6951_v59 }
 0x17f   : > { %1132 = vrot.lane.b32.xlu1 %v1124_v54, %s6328_s4  ;;  %1130 = vrot.lane.b32.xlu0 %v1123_v7, %s6328_s4  ;;  %v1144_v54 = vmul.f32 %v1141_v11, %v6583_v0  ;;  %s5752_s4 = sld [smem:[#allocation3 + $0x107]] }
 0x181   : > { %v6957_v8 = vpop.permute.xlu1 %766  ;;  %v6959_v27 = vpop.permute.xlu0 %750 }
 0x182   : > { %11646 = vst [vmem:[#allocation47_spill] sm:$0xff] %v6957_v8  ;;  %11647 = vst [vmem:[#allocation48_spill] sm:$0xff] %v6959_v27  ;;  %v1165_v8 = vmul.f32 %v1162_v30, %v6583_v0  ;;  %v1164_v27 = vmul.f32 %v1162_v30, %v6589_v3 }
 0x183   : > { %1150 = vrot.lane.b32.xlu1 %v1143_v22, %s6329_s21  ;;  %1148 = vrot.lane.b32.xlu0 %v1142_v39, %s6329_s21  ;;  %v1182_v22 = vstv %s5744_s9  ;;  %s5759_s9 = sld [smem:[#allocation3 + $0x88]] }
 0x184   : > { %v1184_v11 = vmul.f32 %v1182_v22, %v6589_v3 }
 0x185   : > { %v6965_v7 = vpop.permute.xlu1 %770  ;;  %v6967_v59 = vpop.permute.xlu0 %768 }
 0x186   : > { %11648 = vst [vmem:[#allocation49_spill] sm:$0xff] %v6965_v7  ;;  %11649 = vst [vmem:[#allocation50_spill] sm:$0xff] %v6967_v59  ;;  %v1183_v7 = vmul.f32 %v1182_v22, %v6586_v1 }
 0x187   : > { %1169 = vrot.lane.b32.xlu1 %v1163_v45, %s6329_s21  ;;  %1152 = vrot.lane.b32.xlu0 %v1144_v54, %s6329_s21  ;;  %v1202_v45 = vstv %s5745_s26  ;;  %s6331_s26 = smov 120  }
 0x188   : > { %v1203_v30 = vmul.f32 %v1202_v45, %v6586_v1 }
 0x189   : > { %v6973_v44 = vpop.permute.xlu1 %788  ;;  %v6975_v39 = vpop.permute.xlu0 %786 }
 0x18a   : > { %11650 = vst [vmem:[#allocation51_spill] sm:$0xff] %v6973_v44  ;;  %11651 = vst [vmem:[#allocation52_spill] sm:$0xff] %v6975_v39 }
 0x18b   : > { %1173 = vrot.lane.b32.xlu1 %v1165_v8, %s6329_s21  ;;  %1171 = vrot.lane.b32.xlu0 %v1164_v27, %s6329_s21  ;;  %v1185_v8 = vmul.f32 %v1182_v22, %v6583_v0 }
 0x18d   : > { %v6981_v54 = vpop.permute.xlu1 %806  ;;  %v6983_v59 = vpop.permute.xlu0 %790 }
 0x18e   : > { %11652 = vst [vmem:[#allocation53_spill] sm:$0xff] %v6981_v54  ;;  %11653 = vst [vmem:[#allocation54_spill] sm:$0xff] %v6983_v59  ;;  %v1205_v54 = vmul.f32 %v1202_v45, %v6583_v0  ;;  %v1204_v59 = vmul.f32 %v1202_v45, %v6589_v3 }
 0x18f   : > { %1191 = vrot.lane.b32.xlu1 %v1184_v11, %s6329_s21  ;;  %1189 = vrot.lane.b32.xlu0 %v1183_v7, %s6329_s21  ;;  %v1222_v11 = vstv %s5746_s8  ;;  %s5761_s8 = sld [smem:[#allocation3 + $0x188]] }
 0x190   : > { %v1224_v22 = vmul.f32 %v1222_v11, %v6589_v3 }
 0x191   : > { %v6989_v27 = vpop.permute.xlu1 %810  ;;  %v6991_v39 = vpop.permute.xlu0 %808 }
 0x192   : > { %11654 = vst [vmem:[#allocation55_spill] sm:$0xff] %v6989_v27  ;;  %11655 = vst [vmem:[#allocation56_spill] sm:$0xff] %v6991_v39  ;;  %v1223_v27 = vmul.f32 %v1222_v11, %v6586_v1 }
 0x193   : > { %1209 = vrot.lane.b32.xlu1 %v1203_v30, %s6329_s21  ;;  %1193 = vrot.lane.b32.xlu0 %v1185_v8, %s6329_s21  ;;  %v1242_v30 = vstv %s5747_s10  ;;  %s5762_s10 = sld [smem:[#allocation3 + $0x208]] }
 0x194   : > { %v1243_v45 = vmul.f32 %v1242_v30, %v6586_v1 }
 0x195   : > { %v6997_v44 = vpop.permute.xlu1 %828  ;;  %v6999_v7 = vpop.permute.xlu0 %826 }
 0x196   : > { %11656 = vst [vmem:[#allocation57_spill] sm:$0xff] %v6997_v44  ;;  %11657 = vst [vmem:[#allocation58_spill] sm:$0xff] %v6999_v7 }
 0x197   : > { %1213 = vrot.lane.b32.xlu1 %v1205_v54, %s6329_s21  ;;  %1211 = vrot.lane.b32.xlu0 %v1204_v59, %s6329_s21  ;;  %v1225_v54 = vmul.f32 %v1222_v11, %v6583_v0 }
 0x199   : > { %v7005_v8 = vpop.permute.xlu1 %847  ;;  %v7007_v39 = vpop.permute.xlu0 %830 }
 0x19a   : > { %11658 = vst [vmem:[#allocation59_spill] sm:$0xff] %v7005_v8  ;;  %11659 = vst [vmem:[#allocation60_spill] sm:$0xff] %v7007_v39  ;;  %v1245_v8 = vmul.f32 %v1242_v30, %v6583_v0  ;;  %v1244_v39 = vmul.f32 %v1242_v30, %v6589_v3 }
 0x19b   : > { %1231 = vrot.lane.b32.xlu1 %v1224_v22, %s6329_s21  ;;  %1229 = vrot.lane.b32.xlu0 %v1223_v27, %s6329_s21  ;;  %v1262_v22 = vstv %s5748_s30  ;;  %s5763_s30 = sld [smem:[#allocation3 + $0x288]] }
 0x19c   : > { %v1264_v11 = vmul.f32 %v1262_v22, %v6589_v3 }
 0x19d   : > { %v7013_v59 = vpop.permute.xlu1 %851  ;;  %v7015_v7 = vpop.permute.xlu0 %849 }
 0x19e   : > { %11660 = vst [vmem:[#allocation61_spill] sm:$0xff] %v7013_v59  ;;  %11661 = vst [vmem:[#allocation62_spill] sm:$0xff] %v7015_v7  ;;  %v1263_v59 = vmul.f32 %v1262_v22, %v6586_v1 }
 0x19f   : > { %1249 = vrot.lane.b32.xlu1 %v1243_v45, %s6329_s21  ;;  %1233 = vrot.lane.b32.xlu0 %v1225_v54, %s6329_s21  ;;  %v1282_v45 = vstv %s5749_s29  ;;  %s5764_s29 = sld [smem:[#allocation3 + $0x308]] }
 0x1a0   : > { %v1283_v30 = vmul.f32 %v1282_v45, %v6586_v1 }
 0x1a1   : > { %v7021_v44 = vpop.permute.xlu1 %869  ;;  %v7023_v27 = vpop.permute.xlu0 %867 }
 0x1a2   : > { %11662 = vst [vmem:[#allocation63_spill] sm:$0xff] %v7021_v44  ;;  %11663 = vst [vmem:[#allocation64_spill] sm:$0xff] %v7023_v27 }
 0x1a3   : > { %1253 = vrot.lane.b32.xlu1 %v1245_v8, %s6329_s21  ;;  %1251 = vrot.lane.b32.xlu0 %v1244_v39, %s6329_s21  ;;  %v1265_v8 = vmul.f32 %v1262_v22, %v6583_v0 }
 0x1a5   : > { %v7029_v54 = vpop.permute.xlu1 %887  ;;  %v7031_v7 = vpop.permute.xlu0 %871 }
 0x1a6   : > { %11664 = vst [vmem:[#allocation65_spill] sm:$0xff] %v7029_v54  ;;  %11665 = vst [vmem:[#allocation66_spill] sm:$0xff] %v7031_v7  ;;  %v1285_v54 = vmul.f32 %v1282_v45, %v6583_v0  ;;  %v1284_v7 = vmul.f32 %v1282_v45, %v6589_v3 }
 0x1a7   : > { %1271 = vrot.lane.b32.xlu1 %v1264_v11, %s6329_s21  ;;  %1269 = vrot.lane.b32.xlu0 %v1263_v59, %s6329_s21  ;;  %v1302_v11 = vstv %s5750_s11  ;;  %s5765_s11 = sld [smem:[#allocation3 + $0x388]] }
 0x1a8   : > { %v1304_v22 = vmul.f32 %v1302_v11, %v6589_v3 }
 0x1a9   : > { %v7037_v39 = vpop.permute.xlu1 %891  ;;  %v7039_v27 = vpop.permute.xlu0 %889 }
 0x1aa   : > { %11666 = vst [vmem:[#allocation67_spill] sm:$0xff] %v7037_v39  ;;  %11667 = vst [vmem:[#allocation68_spill] sm:$0xff] %v7039_v27  ;;  %v1303_v39 = vmul.f32 %v1302_v11, %v6586_v1 }
 0x1ab   : > { %1289 = vrot.lane.b32.xlu1 %v1283_v30, %s6329_s21  ;;  %1273 = vrot.lane.b32.xlu0 %v1265_v8, %s6329_s21  ;;  %v1323_v30 = vstv %s5751_s28  ;;  %s5766_s28 = sld [smem:[#allocation3 + $0x9]] }
 0x1ac   : > { %v1324_v45 = vmul.f32 %v1323_v30, %v6586_v1 }
 0x1ad   : > { %v7045_v44 = vpop.permute.xlu1 %909  ;;  %v7047_v59 = vpop.permute.xlu0 %907 }
 0x1ae   : > { %11668 = vst [vmem:[#allocation69_spill] sm:$0xff] %v7045_v44  ;;  %11669 = vst [vmem:[#allocation70_spill] sm:$0xff] %v7047_v59 }
 0x1af   : > { %1293 = vrot.lane.b32.xlu1 %v1285_v54, %s6329_s21  ;;  %1291 = vrot.lane.b32.xlu0 %v1284_v7, %s6329_s21  ;;  %v1305_v54 = vmul.f32 %v1302_v11, %v6583_v0  ;;  %s5760_s21 = sld [smem:[#allocation3 + $0x108]] }
 0x1b1   : > { %v7053_v8 = vpop.permute.xlu1 %927  ;;  %v7055_v27 = vpop.permute.xlu0 %911 }
 0x1b2   : > { %11670 = vst [vmem:[#allocation71_spill] sm:$0xff] %v7053_v8  ;;  %11671 = vst [vmem:[#allocation72_spill] sm:$0xff] %v7055_v27  ;;  %v1326_v8 = vmul.f32 %v1323_v30, %v6583_v0  ;;  %v1343_v27 = vstv %s5752_s4  ;;  %s5767_s4 = sld [smem:[#allocation3 + $0x89]] }
 0x1b3   : > { %1311 = vrot.lane.b32.xlu1 %v1304_v22, %s6330_s22  ;;  %1309 = vrot.lane.b32.xlu0 %v1303_v39, %s6330_s22  ;;  %v1325_v22 = vmul.f32 %v1323_v30, %v6589_v3  ;;  %v1345_v11 = vmul.f32 %v1343_v27, %v6589_v3 }
 0x1b5   : > { %v7061_v7 = vpop.permute.xlu1 %931  ;;  %v7063_v59 = vpop.permute.xlu0 %929 }
 0x1b6   : > { %11672 = vst [vmem:[#allocation73_spill] sm:$0xff] %v7061_v7  ;;  %11673 = vst [vmem:[#allocation74_spill] sm:$0xff] %v7063_v59 }
 0x1b7   : > { %1330 = vrot.lane.b32.xlu1 %v1324_v45, %s6330_s22  ;;  %1313 = vrot.lane.b32.xlu0 %v1305_v54, %s6330_s22  ;;  %v1344_v45 = vmul.f32 %v1343_v27, %v6586_v1  ;;  %v1363_v54 = vstv %s5753_s15  ;;  %s6332_s15 = smov 119  }
 0x1b8   : > { %v1364_v30 = vmul.f32 %v1363_v54, %v6586_v1 }
 0x1b9   : > { %v7069_v39 = vpop.permute.xlu1 %949  ;;  %v7071_v44 = vpop.permute.xlu0 %947 }
 0x1ba   : > { %11674 = vst [vmem:[#allocation75_spill] sm:$0xff] %v7069_v39  ;;  %11675 = vst [vmem:[#allocation76_spill] sm:$0xff] %v7071_v44 }
 0x1bb   : > { %1334 = vrot.lane.b32.xlu1 %v1326_v8, %s6330_s22  ;;  %1332 = vrot.lane.b32.xlu0 %v1325_v22, %s6330_s22  ;;  %v7085_v8 = vld [vmem:[%s6576_s27] sm:$0xff] }
 0x1bc   : > { %v1346_v3 = vmul.f32 %v7085_v8, %v1343_v27 }
 0x1bd   : > { %v7077_v0 = vpop.permute.xlu1 %967  ;;  %v7079_v7 = vpop.permute.xlu0 %951 }
 0x1be   : > { %11676 = vst [vmem:[#allocation77_spill] sm:$0xff] %v7077_v0  ;;  %11677 = vst [vmem:[#allocation78_spill] sm:$0xff] %v7079_v7  ;;  %v7096_v0 = vld [vmem:[%s6569_s12 + $0x8] sm:$0xff] }
 0x1bf   : > { %1352 = vrot.lane.b32.xlu1 %v1345_v11, %s6330_s22  ;;  %1350 = vrot.lane.b32.xlu0 %v1344_v45, %s6330_s22  ;;  %v1366_v11 = vmul.f32 %v7085_v8, %v1363_v54  ;;  %v1365_v1 = vmul.f32 %v7096_v0, %v1363_v54  ;;  %v1383_v45 = vstv %s5754_s0  ;;  %s5769_s0 = sld [smem:[#allocation3 + $0x189]] }
 0x1c0   : > { %v1385_v27 = vmul.f32 %v7096_v0, %v1383_v45 }
 0x1c1   : > { %v7088_v22 = vpop.permute.xlu1 %971  ;;  %v7090_v44 = vpop.permute.xlu0 %969 }
 0x1c2   : > { %11678 = vst [vmem:[#allocation79_spill] sm:$0xff] %v7088_v22  ;;  %11679 = vst [vmem:[#allocation80_spill] sm:$0xff] %v7090_v44  ;;  %v1403_v22 = vstv %s5755_s6  ;;  %s5770_s6 = sld [smem:[#allocation3 + $0x209]] }
 0x1c3   : > { %1370 = vrot.lane.b32.xlu1 %v1364_v30, %s6330_s22  ;;  %1354 = vrot.lane.b32.xlu0 %v1346_v3, %s6330_s22  ;;  %v7107_v30 = vld [vmem:[%s6569_s12] sm:$0xff] }
 0x1c4   : > { %v1384_v3 = vmul.f32 %v7107_v30, %v1383_v45 }
 0x1c5   : > { %v7099_v7 = vpop.permute.xlu1 %989  ;;  %v7101_v39 = vpop.permute.xlu0 %987 }
 0x1c6   : > { %11680 = vst [vmem:[#allocation81_spill] sm:$0xff] %v7099_v7  ;;  %11681 = vst [vmem:[#allocation82_spill] sm:$0xff] %v7101_v39 }
 0x1c7   : > { %1374 = vrot.lane.b32.xlu1 %v1366_v11, %s6330_s22  ;;  %1372 = vrot.lane.b32.xlu0 %v1365_v1, %s6330_s22  ;;  %v1404_v11 = vmul.f32 %v7107_v30, %v1403_v22  ;;  %v1386_v1 = vmul.f32 %v7085_v8, %v1383_v45 }
 0x1c9   : > { %v7110_v44 = vpop.permute.xlu1 %1008  ;;  %v7112_v54 = vpop.permute.xlu0 %991 }
 0x1ca   : > { %11682 = vst [vmem:[#allocation83_spill] sm:$0xff] %v7110_v44  ;;  %11683 = vst [vmem:[#allocation84_spill] sm:$0xff] %v7112_v54  ;;  %v1406_v44 = vmul.f32 %v7085_v8, %v1403_v22  ;;  %v1405_v54 = vmul.f32 %v7096_v0, %v1403_v22 }
 0x1cb   : > { %1392 = vrot.lane.b32.xlu1 %v1385_v27, %s6330_s22  ;;  %1390 = vrot.lane.b32.xlu0 %v1384_v3, %s6330_s22  ;;  %v1423_v27 = vstv %s5756_s7  ;;  %s5771_s7 = sld [smem:[#allocation3 + $0x289]] }
 0x1cc   : > { %v1425_v45 = vmul.f32 %v7096_v0, %v1423_v27 }
 0x1cd   : > { %v7118_v39 = vpop.permute.xlu1 %1012  ;;  %v7120_v7 = vpop.permute.xlu0 %1010 }
 0x1ce   : > { %11684 = vst [vmem:[#allocation85_spill] sm:$0xff] %v7118_v39  ;;  %11685 = vst [vmem:[#allocation86_spill] sm:$0xff] %v7120_v7  ;;  %v1424_v39 = vmul.f32 %v7107_v30, %v1423_v27 }
 0x1cf   : > { %1410 = vrot.lane.b32.xlu1 %v1404_v11, %s6330_s22  ;;  %1394 = vrot.lane.b32.xlu0 %v1386_v1, %s6330_s22  ;;  %v1443_v11 = vstv %s5757_s23  ;;  %s5772_s23 = sld [smem:[#allocation3 + $0x309]] }
 0x1d0   : > { %v1444_v22 = vmul.f32 %v7107_v30, %v1443_v11 }
 0x1d1   : > { %v7126_v59 = vpop.permute.xlu1 %1030  ;;  %v7128_v3 = vpop.permute.xlu0 %1028 }
 0x1d2   : > { %11686 = vst [vmem:[#allocation87_spill] sm:$0xff] %v7126_v59  ;;  %11687 = vst [vmem:[#allocation88_spill] sm:$0xff] %v7128_v3 }
 0x1d3   : > { %1414 = vrot.lane.b32.xlu1 %v1406_v44, %s6330_s22  ;;  %1412 = vrot.lane.b32.xlu0 %v1405_v54, %s6330_s22  ;;  %v1426_v44 = vmul.f32 %v7085_v8, %v1423_v27 }
 0x1d5   : > { %v7134_v1 = vpop.permute.xlu1 %1048  ;;  %v7136_v7 = vpop.permute.xlu0 %1032 }
 0x1d6   : > { %11688 = vst [vmem:[#allocation89_spill] sm:$0xff] %v7134_v1  ;;  %11689 = vst [vmem:[#allocation90_spill] sm:$0xff] %v7136_v7  ;;  %v1446_v1 = vmul.f32 %v7085_v8, %v1443_v11  ;;  %v1445_v7 = vmul.f32 %v7096_v0, %v1443_v11 }
 0x1d7   : > { %1432 = vrot.lane.b32.xlu1 %v1425_v45, %s6330_s22  ;;  %1430 = vrot.lane.b32.xlu0 %v1424_v39, %s6330_s22  ;;  %v1463_v45 = vstv %s5758_s25  ;;  %s5773_s25 = sld [smem:[#allocation3 + $0x389]] }
 0x1d8   : > { %v1465_v27 = vmul.f32 %v7096_v0, %v1463_v45 }
 0x1d9   : > { %v7142_v54 = vpop.permute.xlu1 %1052  ;;  %v7144_v3 = vpop.permute.xlu0 %1050 }
 0x1da   : > { %11690 = vst [vmem:[#allocation91_spill] sm:$0xff] %v7142_v54  ;;  %11691 = vst [vmem:[#allocation92_spill] sm:$0xff] %v7144_v3  ;;  %v1464_v54 = vmul.f32 %v7107_v30, %v1463_v45 }
 0x1db   : > { %1450 = vrot.lane.b32.xlu1 %v1444_v22, %s6330_s22  ;;  %1434 = vrot.lane.b32.xlu0 %v1426_v44, %s6330_s22  ;;  %v1484_v22 = vstv %s5759_s9  ;;  %s5774_s9 = sld [smem:[#allocation3 + $0xa]] }
 0x1dc   : > { %v1485_v11 = vmul.f32 %v7107_v30, %v1484_v22 }
 0x1dd   : > { %v7150_v59 = vpop.permute.xlu1 %1070  ;;  %v7152_v39 = vpop.permute.xlu0 %1068 }
 0x1de   : > { %11692 = vst [vmem:[#allocation93_spill] sm:$0xff] %v7150_v59  ;;  %11693 = vst [vmem:[#allocation94_spill] sm:$0xff] %v7152_v39 }
 0x1df   : > { %1454 = vrot.lane.b32.xlu1 %v1446_v1, %s6330_s22  ;;  %1452 = vrot.lane.b32.xlu0 %v1445_v7, %s6330_s22  ;;  %v1466_v1 = vmul.f32 %v7085_v8, %v1463_v45  ;;  %s5768_s22 = sld [smem:[#allocation3 + $0x109]] }
 0x1e1   : > { %v7158_v44 = vpop.permute.xlu1 %1088  ;;  %v7160_v3 = vpop.permute.xlu0 %1072 }
 0x1e2   : > { %11694 = vst [vmem:[#allocation95_spill] sm:$0xff] %v7158_v44  ;;  %11695 = vst [vmem:[#allocation96_spill] sm:$0xff] %v7160_v3  ;;  %v1487_v44 = vmul.f32 %v7085_v8, %v1484_v22  ;;  %v1486_v3 = vmul.f32 %v7096_v0, %v1484_v22 }
 0x1e3   : > { %1472 = vrot.lane.b32.xlu1 %v1465_v27, %s6331_s26  ;;  %1470 = vrot.lane.b32.xlu0 %v1464_v54, %s6331_s26  ;;  %v1504_v27 = vstv %s5760_s21  ;;  %s5775_s21 = sld [smem:[#allocation3 + $0x8a]] }
 0x1e4   : > { %v1506_v45 = vmul.f32 %v7096_v0, %v1504_v27 }
 0x1e5   : > { %v7166_v7 = vpop.permute.xlu1 %1092  ;;  %v7168_v39 = vpop.permute.xlu0 %1090 }
 0x1e6   : > { %11696 = vst [vmem:[#allocation97_spill] sm:$0xff] %v7166_v7  ;;  %11697 = vst [vmem:[#allocation98_spill] sm:$0xff] %v7168_v39  ;;  %v1505_v7 = vmul.f32 %v7107_v30, %v1504_v27 }
 0x1e7   : > { %1491 = vrot.lane.b32.xlu1 %v1485_v11, %s6331_s26  ;;  %1474 = vrot.lane.b32.xlu0 %v1466_v1, %s6331_s26  ;;  %v1524_v11 = vstv %s5761_s8  ;;  %s6333_s8 = smov 118  }
 0x1e8   : > { %v1525_v22 = vmul.f32 %v7107_v30, %v1524_v11 }
 0x1e9   : > { %v7174_v59 = vpop.permute.xlu1 %1110  ;;  %v7176_v54 = vpop.permute.xlu0 %1108 }
 0x1ea   : > { %11698 = vst [vmem:[#allocation99_spill] sm:$0xff] %v7174_v59  ;;  %11699 = vst [vmem:[#allocation100_spill] sm:$0xff] %v7176_v54 }
 0x1eb   : > { %1495 = vrot.lane.b32.xlu1 %v1487_v44, %s6331_s26  ;;  %1493 = vrot.lane.b32.xlu0 %v1486_v3, %s6331_s26  ;;  %v1507_v44 = vmul.f32 %v7085_v8, %v1504_v27 }
 0x1ed   : > { %v7182_v1 = vpop.permute.xlu1 %1128  ;;  %v7184_v39 = vpop.permute.xlu0 %1112 }
 0x1ee   : > { %11700 = vst [vmem:[#allocation101_spill] sm:$0xff] %v7182_v1  ;;  %11701 = vst [vmem:[#allocation102_spill] sm:$0xff] %v7184_v39  ;;  %v1527_v1 = vmul.f32 %v7085_v8, %v1524_v11  ;;  %v1526_v39 = vmul.f32 %v7096_v0, %v1524_v11 }
 0x1ef   : > { %1513 = vrot.lane.b32.xlu1 %v1506_v45, %s6331_s26  ;;  %1511 = vrot.lane.b32.xlu0 %v1505_v7, %s6331_s26  ;;  %v1544_v45 = vstv %s5762_s10  ;;  %s5777_s10 = sld [smem:[#allocation3 + $0x18a]] }
 0x1f0   : > { %v1546_v27 = vmul.f32 %v7096_v0, %v1544_v45 }
 0x1f1   : > { %v7190_v3 = vpop.permute.xlu1 %1132  ;;  %v7192_v54 = vpop.permute.xlu0 %1130 }
 0x1f2   : > { %11702 = vst [vmem:[#allocation103_spill] sm:$0xff] %v7190_v3  ;;  %11703 = vst [vmem:[#allocation104_spill] sm:$0xff] %v7192_v54  ;;  %v1545_v3 = vmul.f32 %v7107_v30, %v1544_v45 }
 0x1f3   : > { %1531 = vrot.lane.b32.xlu1 %v1525_v22, %s6331_s26  ;;  %1515 = vrot.lane.b32.xlu0 %v1507_v44, %s6331_s26  ;;  %v1564_v22 = vstv %s5763_s30  ;;  %s5778_s30 = sld [smem:[#allocation3 + $0x20a]] }
 0x1f4   : > { %v1565_v11 = vmul.f32 %v7107_v30, %v1564_v22 }
 0x1f5   : > { %v7198_v59 = vpop.permute.xlu1 %1150  ;;  %v7200_v7 = vpop.permute.xlu0 %1148 }
 0x1f6   : > { %11704 = vst [vmem:[#allocation105_spill] sm:$0xff] %v7198_v59  ;;  %11705 = vst [vmem:[#allocation106_spill] sm:$0xff] %v7200_v7 }
 0x1f7   : > { %1535 = vrot.lane.b32.xlu1 %v1527_v1, %s6331_s26  ;;  %1533 = vrot.lane.b32.xlu0 %v1526_v39, %s6331_s26  ;;  %v1547_v1 = vmul.f32 %v7085_v8, %v1544_v45 }
 0x1f9   : > { %v7206_v44 = vpop.permute.xlu1 %1169  ;;  %v7208_v54 = vpop.permute.xlu0 %1152 }
 0x1fa   : > { %11706 = vst [vmem:[#allocation107_spill] sm:$0xff] %v7206_v44  ;;  %11707 = vst [vmem:[#allocation108_spill] sm:$0xff] %v7208_v54  ;;  %v1567_v44 = vmul.f32 %v7085_v8, %v1564_v22  ;;  %v1566_v54 = vmul.f32 %v7096_v0, %v1564_v22 }
 0x1fb   : > { %1553 = vrot.lane.b32.xlu1 %v1546_v27, %s6331_s26  ;;  %1551 = vrot.lane.b32.xlu0 %v1545_v3, %s6331_s26  ;;  %v1584_v27 = vstv %s5764_s29  ;;  %s5779_s29 = sld [smem:[#allocation3 + $0x28a]] }
 0x1fc   : > { %v1586_v45 = vmul.f32 %v7096_v0, %v1584_v27 }
 0x1fd   : > { %v7214_v39 = vpop.permute.xlu1 %1173  ;;  %v7216_v7 = vpop.permute.xlu0 %1171 }
 0x1fe   : > { %11708 = vst [vmem:[#allocation109_spill] sm:$0xff] %v7214_v39  ;;  %11709 = vst [vmem:[#allocation110_spill] sm:$0xff] %v7216_v7  ;;  %v1585_v39 = vmul.f32 %v7107_v30, %v1584_v27 }
 0x1ff   : > { %1571 = vrot.lane.b32.xlu1 %v1565_v11, %s6331_s26  ;;  %1555 = vrot.lane.b32.xlu0 %v1547_v1, %s6331_s26  ;;  %v1604_v11 = vstv %s5765_s11  ;;  %s5780_s11 = sld [smem:[#allocation3 + $0x30a]] }
 0x200   : > { %v1605_v22 = vmul.f32 %v7107_v30, %v1604_v11 }
 0x201   : > { %v7222_v59 = vpop.permute.xlu1 %1191  ;;  %v7224_v3 = vpop.permute.xlu0 %1189 }
 0x202   : > { %11710 = vst [vmem:[#allocation111_spill] sm:$0xff] %v7222_v59  ;;  %11711 = vst [vmem:[#allocation112_spill] sm:$0xff] %v7224_v3 }
 0x203   : > { %1575 = vrot.lane.b32.xlu1 %v1567_v44, %s6331_s26  ;;  %1573 = vrot.lane.b32.xlu0 %v1566_v54, %s6331_s26  ;;  %v1587_v44 = vmul.f32 %v7085_v8, %v1584_v27 }
 0x205   : > { %v7230_v1 = vpop.permute.xlu1 %1209  ;;  %v7232_v7 = vpop.permute.xlu0 %1193 }
 0x206   : > { %11712 = vst [vmem:[#allocation113_spill] sm:$0xff] %v7230_v1  ;;  %11713 = vst [vmem:[#allocation114_spill] sm:$0xff] %v7232_v7  ;;  %v1607_v1 = vmul.f32 %v7085_v8, %v1604_v11  ;;  %v1606_v7 = vmul.f32 %v7096_v0, %v1604_v11 }
 0x207   : > { %1593 = vrot.lane.b32.xlu1 %v1586_v45, %s6331_s26  ;;  %1591 = vrot.lane.b32.xlu0 %v1585_v39, %s6331_s26  ;;  %v1624_v45 = vstv %s5766_s28  ;;  %s5781_s28 = sld [smem:[#allocation3 + $0x38a]] }
 0x208   : > { %v1626_v27 = vmul.f32 %v7096_v0, %v1624_v45 }
 0x209   : > { %v7238_v54 = vpop.permute.xlu1 %1213  ;;  %v7240_v3 = vpop.permute.xlu0 %1211 }
 0x20a   : > { %11714 = vst [vmem:[#allocation115_spill] sm:$0xff] %v7238_v54  ;;  %11715 = vst [vmem:[#allocation116_spill] sm:$0xff] %v7240_v3  ;;  %v1625_v54 = vmul.f32 %v7107_v30, %v1624_v45 }
 0x20b   : > { %1611 = vrot.lane.b32.xlu1 %v1605_v22, %s6331_s26  ;;  %1595 = vrot.lane.b32.xlu0 %v1587_v44, %s6331_s26  ;;  %v1645_v22 = vstv %s5767_s4  ;;  %s5782_s4 = sld [smem:[#allocation3 + $0xb]] }
 0x20c   : > { %v1646_v11 = vmul.f32 %v7107_v30, %v1645_v22 }
 0x20d   : > { %v7246_v59 = vpop.permute.xlu1 %1231  ;;  %v7248_v39 = vpop.permute.xlu0 %1229 }
 0x20e   : > { %11716 = vst [vmem:[#allocation117_spill] sm:$0xff] %v7246_v59  ;;  %11717 = vst [vmem:[#allocation118_spill] sm:$0xff] %v7248_v39 }
 0x20f   : > { %1615 = vrot.lane.b32.xlu1 %v1607_v1, %s6331_s26  ;;  %1613 = vrot.lane.b32.xlu0 %v1606_v7, %s6331_s26  ;;  %v1627_v1 = vmul.f32 %v7085_v8, %v1624_v45  ;;  %s5776_s26 = sld [smem:[#allocation3 + $0x10a]] }
 0x211   : > { %v7254_v44 = vpop.permute.xlu1 %1249  ;;  %v7256_v3 = vpop.permute.xlu0 %1233 }
 0x212   : > { %11718 = vst [vmem:[#allocation119_spill] sm:$0xff] %v7254_v44  ;;  %11719 = vst [vmem:[#allocation120_spill] sm:$0xff] %v7256_v3  ;;  %v1648_v44 = vmul.f32 %v7085_v8, %v1645_v22  ;;  %v1647_v3 = vmul.f32 %v7096_v0, %v1645_v22 }
 0x213   : > { %1633 = vrot.lane.b32.xlu1 %v1626_v27, %s6332_s15  ;;  %1631 = vrot.lane.b32.xlu0 %v1625_v54, %s6332_s15  ;;  %v1665_v27 = vstv %s5768_s22  ;;  %s5783_s22 = sld [smem:[#allocation3 + $0x8b]] }
 0x214   : > { %v1667_v45 = vmul.f32 %v7096_v0, %v1665_v27 }
 0x215   : > { %v7262_v7 = vpop.permute.xlu1 %1253  ;;  %v7264_v39 = vpop.permute.xlu0 %1251 }
 0x216   : > { %11720 = vst [vmem:[#allocation121_spill] sm:$0xff] %v7262_v7  ;;  %11721 = vst [vmem:[#allocation122_spill] sm:$0xff] %v7264_v39  ;;  %v1666_v7 = vmul.f32 %v7107_v30, %v1665_v27 }
 0x217   : > { %1652 = vrot.lane.b32.xlu1 %v1646_v11, %s6332_s15  ;;  %1635 = vrot.lane.b32.xlu0 %v1627_v1, %s6332_s15  ;;  %v1685_v11 = vstv %s5769_s0  ;;  %s6334_s0 = smov 117  }
 0x218   : > { %v1686_v22 = vmul.f32 %v7107_v30, %v1685_v11 }
 0x219   : > { %v7270_v59 = vpop.permute.xlu1 %1271  ;;  %v7272_v54 = vpop.permute.xlu0 %1269 }
 0x21a   : > { %11722 = vst [vmem:[#allocation123_spill] sm:$0xff] %v7270_v59  ;;  %11723 = vst [vmem:[#allocation124_spill] sm:$0xff] %v7272_v54 }
 0x21b   : > { %1656 = vrot.lane.b32.xlu1 %v1648_v44, %s6332_s15  ;;  %1654 = vrot.lane.b32.xlu0 %v1647_v3, %s6332_s15  ;;  %v1668_v44 = vmul.f32 %v7085_v8, %v1665_v27 }
 0x21d   : > { %v7278_v1 = vpop.permute.xlu1 %1289  ;;  %v7280_v39 = vpop.permute.xlu0 %1273 }
 0x21e   : > { %11724 = vst [vmem:[#allocation125_spill] sm:$0xff] %v7278_v1  ;;  %11725 = vst [vmem:[#allocation126_spill] sm:$0xff] %v7280_v39  ;;  %v1688_v1 = vmul.f32 %v7085_v8, %v1685_v11  ;;  %v1687_v39 = vmul.f32 %v7096_v0, %v1685_v11 }
 0x21f   : > { %1674 = vrot.lane.b32.xlu1 %v1667_v45, %s6332_s15  ;;  %1672 = vrot.lane.b32.xlu0 %v1666_v7, %s6332_s15  ;;  %v1705_v45 = vstv %s5770_s6  ;;  %s5785_s6 = sld [smem:[#allocation3 + $0x18b]] }
 0x220   : > { %v1707_v27 = vmul.f32 %v7096_v0, %v1705_v45 }
 0x221   : > { %v7286_v3 = vpop.permute.xlu1 %1293  ;;  %v7288_v54 = vpop.permute.xlu0 %1291 }
 0x222   : > { %11726 = vst [vmem:[#allocation127_spill] sm:$0xff] %v7286_v3  ;;  %11727 = vst [vmem:[#allocation128_spill] sm:$0xff] %v7288_v54  ;;  %v1706_v3 = vmul.f32 %v7107_v30, %v1705_v45 }
 0x223   : > { %1692 = vrot.lane.b32.xlu1 %v1686_v22, %s6332_s15  ;;  %1676 = vrot.lane.b32.xlu0 %v1668_v44, %s6332_s15  ;;  %v1725_v22 = vstv %s5771_s7  ;;  %s5786_s7 = sld [smem:[#allocation3 + $0x20b]] }
 0x224   : > { %v1726_v11 = vmul.f32 %v7107_v30, %v1725_v22 }
 0x225   : > { %v7294_v59 = vpop.permute.xlu1 %1311  ;;  %v7296_v7 = vpop.permute.xlu0 %1309 }
 0x226   : > { %11728 = vst [vmem:[#allocation129_spill] sm:$0xff] %v7294_v59  ;;  %11729 = vst [vmem:[#allocation130_spill] sm:$0xff] %v7296_v7 }
 0x227   : > { %1696 = vrot.lane.b32.xlu1 %v1688_v1, %s6332_s15  ;;  %1694 = vrot.lane.b32.xlu0 %v1687_v39, %s6332_s15  ;;  %v1708_v1 = vmul.f32 %v7085_v8, %v1705_v45 }
 0x229   : > { %v7302_v44 = vpop.permute.xlu1 %1330  ;;  %v7304_v54 = vpop.permute.xlu0 %1313 }
 0x22a   : > { %11730 = vst [vmem:[#allocation131_spill] sm:$0xff] %v7302_v44  ;;  %11731 = vst [vmem:[#allocation132_spill] sm:$0xff] %v7304_v54  ;;  %v1728_v44 = vmul.f32 %v7085_v8, %v1725_v22  ;;  %v1727_v54 = vmul.f32 %v7096_v0, %v1725_v22 }
 0x22b   : > { %1714 = vrot.lane.b32.xlu1 %v1707_v27, %s6332_s15  ;;  %1712 = vrot.lane.b32.xlu0 %v1706_v3, %s6332_s15  ;;  %v1745_v27 = vstv %s5772_s23  ;;  %s5787_s23 = sld [smem:[#allocation3 + $0x28b]] }
 0x22c   : > { %v1747_v45 = vmul.f32 %v7096_v0, %v1745_v27 }
 0x22d   : > { %v7310_v39 = vpop.permute.xlu1 %1334  ;;  %v7312_v7 = vpop.permute.xlu0 %1332 }
 0x22e   : > { %11732 = vst [vmem:[#allocation133_spill] sm:$0xff] %v7310_v39  ;;  %11733 = vst [vmem:[#allocation134_spill] sm:$0xff] %v7312_v7  ;;  %v1746_v39 = vmul.f32 %v7107_v30, %v1745_v27 }
 0x22f   : > { %1732 = vrot.lane.b32.xlu1 %v1726_v11, %s6332_s15  ;;  %1716 = vrot.lane.b32.xlu0 %v1708_v1, %s6332_s15  ;;  %v1765_v11 = vstv %s5773_s25  ;;  %s5788_s25 = sld [smem:[#allocation3 + $0x30b]] }
 0x230   : > { %v1766_v22 = vmul.f32 %v7107_v30, %v1765_v11 }
 0x231   : > { %v7318_v59 = vpop.permute.xlu1 %1352  ;;  %v7320_v3 = vpop.permute.xlu0 %1350 }
 0x232   : > { %11734 = vst [vmem:[#allocation135_spill] sm:$0xff] %v7318_v59  ;;  %11735 = vst [vmem:[#allocation136_spill] sm:$0xff] %v7320_v3 }
 0x233   : > { %1736 = vrot.lane.b32.xlu1 %v1728_v44, %s6332_s15  ;;  %1734 = vrot.lane.b32.xlu0 %v1727_v54, %s6332_s15  ;;  %v1748_v44 = vmul.f32 %v7085_v8, %v1745_v27 }
 0x235   : > { %v7326_v1 = vpop.permute.xlu1 %1370  ;;  %v7328_v7 = vpop.permute.xlu0 %1354 }
 0x236   : > { %11736 = vst [vmem:[#allocation137_spill] sm:$0xff] %v7326_v1  ;;  %11737 = vst [vmem:[#allocation138_spill] sm:$0xff] %v7328_v7  ;;  %v1768_v1 = vmul.f32 %v7085_v8, %v1765_v11  ;;  %v1767_v7 = vmul.f32 %v7096_v0, %v1765_v11 }
 0x237   : > { %1754 = vrot.lane.b32.xlu1 %v1747_v45, %s6332_s15  ;;  %1752 = vrot.lane.b32.xlu0 %v1746_v39, %s6332_s15  ;;  %v1785_v45 = vstv %s5774_s9  ;;  %s5789_s9 = sld [smem:[#allocation3 + $0x38b]] }
 0x238   : > { %v1787_v27 = vmul.f32 %v7096_v0, %v1785_v45 }
 0x239   : > { %v7334_v54 = vpop.permute.xlu1 %1374  ;;  %v7336_v3 = vpop.permute.xlu0 %1372 }
 0x23a   : > { %11738 = vst [vmem:[#allocation139_spill] sm:$0xff] %v7334_v54  ;;  %11739 = vst [vmem:[#allocation140_spill] sm:$0xff] %v7336_v3  ;;  %v1786_v54 = vmul.f32 %v7107_v30, %v1785_v45 }
 0x23b   : > { %1772 = vrot.lane.b32.xlu1 %v1766_v22, %s6332_s15  ;;  %1756 = vrot.lane.b32.xlu0 %v1748_v44, %s6332_s15  ;;  %v1806_v22 = vstv %s5775_s21  ;;  %s5790_s21 = sld [smem:[#allocation3 + $0xc]] }
 0x23c   : > { %v1807_v11 = vmul.f32 %v7107_v30, %v1806_v22 }
 0x23d   : > { %v7342_v59 = vpop.permute.xlu1 %1392  ;;  %v7344_v39 = vpop.permute.xlu0 %1390 }
 0x23e   : > { %11740 = vst [vmem:[#allocation141_spill] sm:$0xff] %v7342_v59  ;;  %11741 = vst [vmem:[#allocation142_spill] sm:$0xff] %v7344_v39 }
 0x23f   : > { %1776 = vrot.lane.b32.xlu1 %v1768_v1, %s6332_s15  ;;  %1774 = vrot.lane.b32.xlu0 %v1767_v7, %s6332_s15  ;;  %v1788_v1 = vmul.f32 %v7085_v8, %v1785_v45  ;;  %s5784_s15 = sld [smem:[#allocation3 + $0x10b]] }
 0x241   : > { %v7350_v44 = vpop.permute.xlu1 %1410  ;;  %v7352_v3 = vpop.permute.xlu0 %1394 }
 0x242   : > { %11742 = vst [vmem:[#allocation143_spill] sm:$0xff] %v7350_v44  ;;  %11743 = vst [vmem:[#allocation144_spill] sm:$0xff] %v7352_v3  ;;  %v1809_v44 = vmul.f32 %v7085_v8, %v1806_v22  ;;  %v1808_v3 = vmul.f32 %v7096_v0, %v1806_v22 }
 0x243   : > { %1794 = vrot.lane.b32.xlu1 %v1787_v27, %s6333_s8  ;;  %1792 = vrot.lane.b32.xlu0 %v1786_v54, %s6333_s8  ;;  %v1826_v27 = vstv %s5776_s26  ;;  %s5791_s26 = sld [smem:[#allocation3 + $0x8c]] }
 0x244   : > { %v1828_v45 = vmul.f32 %v7096_v0, %v1826_v27 }
 0x245   : > { %v7358_v7 = vpop.permute.xlu1 %1414  ;;  %v7360_v39 = vpop.permute.xlu0 %1412 }
 0x246   : > { %11744 = vst [vmem:[#allocation145_spill] sm:$0xff] %v7358_v7  ;;  %11745 = vst [vmem:[#allocation146_spill] sm:$0xff] %v7360_v39  ;;  %v1827_v7 = vmul.f32 %v7107_v30, %v1826_v27 }
 0x247   : > { %1813 = vrot.lane.b32.xlu1 %v1807_v11, %s6333_s8  ;;  %1796 = vrot.lane.b32.xlu0 %v1788_v1, %s6333_s8  ;;  %v1846_v11 = vstv %s5777_s10  ;;  %s6335_s10 = smov 116  }
 0x248   : > { %v1847_v22 = vmul.f32 %v7107_v30, %v1846_v11 }
 0x249   : > { %v7366_v59 = vpop.permute.xlu1 %1432  ;;  %v7368_v54 = vpop.permute.xlu0 %1430 }
 0x24a   : > { %11746 = vst [vmem:[#allocation147_spill] sm:$0xff] %v7366_v59  ;;  %11747 = vst [vmem:[#allocation148_spill] sm:$0xff] %v7368_v54 }
 0x24b   : > { %1817 = vrot.lane.b32.xlu1 %v1809_v44, %s6333_s8  ;;  %1815 = vrot.lane.b32.xlu0 %v1808_v3, %s6333_s8  ;;  %v1829_v44 = vmul.f32 %v7085_v8, %v1826_v27 }
 0x24d   : > { %v7374_v1 = vpop.permute.xlu1 %1450  ;;  %v7376_v39 = vpop.permute.xlu0 %1434 }
 0x24e   : > { %11748 = vst [vmem:[#allocation149_spill] sm:$0xff] %v7374_v1  ;;  %11749 = vst [vmem:[#allocation150_spill] sm:$0xff] %v7376_v39  ;;  %v1849_v1 = vmul.f32 %v7085_v8, %v1846_v11  ;;  %v1848_v39 = vmul.f32 %v7096_v0, %v1846_v11 }
 0x24f   : > { %1835 = vrot.lane.b32.xlu1 %v1828_v45, %s6333_s8  ;;  %1833 = vrot.lane.b32.xlu0 %v1827_v7, %s6333_s8  ;;  %v1866_v45 = vstv %s5778_s30  ;;  %s5793_s30 = sld [smem:[#allocation3 + $0x18c]] }
 0x250   : > { %v1868_v27 = vmul.f32 %v7096_v0, %v1866_v45 }
 0x251   : > { %v7382_v3 = vpop.permute.xlu1 %1454  ;;  %v7384_v54 = vpop.permute.xlu0 %1452 }
 0x252   : > { %11750 = vst [vmem:[#allocation151_spill] sm:$0xff] %v7382_v3  ;;  %11751 = vst [vmem:[#allocation152_spill] sm:$0xff] %v7384_v54  ;;  %v1867_v3 = vmul.f32 %v7107_v30, %v1866_v45 }
 0x253   : > { %1853 = vrot.lane.b32.xlu1 %v1847_v22, %s6333_s8  ;;  %1837 = vrot.lane.b32.xlu0 %v1829_v44, %s6333_s8  ;;  %v1886_v22 = vstv %s5779_s29  ;;  %s5794_s29 = sld [smem:[#allocation3 + $0x20c]] }
 0x254   : > { %v1887_v11 = vmul.f32 %v7107_v30, %v1886_v22 }
 0x255   : > { %v7390_v59 = vpop.permute.xlu1 %1472  ;;  %v7392_v7 = vpop.permute.xlu0 %1470 }
 0x256   : > { %11752 = vst [vmem:[#allocation153_spill] sm:$0xff] %v7390_v59  ;;  %11753 = vst [vmem:[#allocation154_spill] sm:$0xff] %v7392_v7 }
 0x257   : > { %1857 = vrot.lane.b32.xlu1 %v1849_v1, %s6333_s8  ;;  %1855 = vrot.lane.b32.xlu0 %v1848_v39, %s6333_s8  ;;  %v1869_v1 = vmul.f32 %v7085_v8, %v1866_v45 }
 0x259   : > { %v7398_v44 = vpop.permute.xlu1 %1491  ;;  %v7400_v54 = vpop.permute.xlu0 %1474 }
 0x25a   : > { %11754 = vst [vmem:[#allocation155_spill] sm:$0xff] %v7398_v44  ;;  %11755 = vst [vmem:[#allocation156_spill] sm:$0xff] %v7400_v54  ;;  %v1889_v44 = vmul.f32 %v7085_v8, %v1886_v22  ;;  %v1888_v54 = vmul.f32 %v7096_v0, %v1886_v22 }
 0x25b   : > { %1875 = vrot.lane.b32.xlu1 %v1868_v27, %s6333_s8  ;;  %1873 = vrot.lane.b32.xlu0 %v1867_v3, %s6333_s8  ;;  %v1906_v27 = vstv %s5780_s11  ;;  %s5795_s11 = sld [smem:[#allocation3 + $0x28c]] }
 0x25c   : > { %v1908_v45 = vmul.f32 %v7096_v0, %v1906_v27 }
 0x25d   : > { %v7406_v39 = vpop.permute.xlu1 %1495  ;;  %v7408_v7 = vpop.permute.xlu0 %1493 }
 0x25e   : > { %11756 = vst [vmem:[#allocation157_spill] sm:$0xff] %v7406_v39  ;;  %11757 = vst [vmem:[#allocation158_spill] sm:$0xff] %v7408_v7  ;;  %v1907_v39 = vmul.f32 %v7107_v30, %v1906_v27 }
 0x25f   : > { %1893 = vrot.lane.b32.xlu1 %v1887_v11, %s6333_s8  ;;  %1877 = vrot.lane.b32.xlu0 %v1869_v1, %s6333_s8  ;;  %v1926_v11 = vstv %s5781_s28  ;;  %s5796_s28 = sld [smem:[#allocation3 + $0x30c]] }
 0x260   : > { %v1927_v22 = vmul.f32 %v7107_v30, %v1926_v11 }
 0x261   : > { %v7414_v59 = vpop.permute.xlu1 %1513  ;;  %v7416_v3 = vpop.permute.xlu0 %1511 }
 0x262   : > { %11758 = vst [vmem:[#allocation159_spill] sm:$0xff] %v7414_v59  ;;  %11759 = vst [vmem:[#allocation160_spill] sm:$0xff] %v7416_v3 }
 0x263   : > { %1897 = vrot.lane.b32.xlu1 %v1889_v44, %s6333_s8  ;;  %1895 = vrot.lane.b32.xlu0 %v1888_v54, %s6333_s8  ;;  %v1909_v44 = vmul.f32 %v7085_v8, %v1906_v27 }
 0x265   : > { %v7422_v1 = vpop.permute.xlu1 %1531  ;;  %v7424_v7 = vpop.permute.xlu0 %1515 }
 0x266   : > { %11760 = vst [vmem:[#allocation161_spill] sm:$0xff] %v7422_v1  ;;  %11761 = vst [vmem:[#allocation162_spill] sm:$0xff] %v7424_v7  ;;  %v1929_v1 = vmul.f32 %v7085_v8, %v1926_v11  ;;  %v1928_v7 = vmul.f32 %v7096_v0, %v1926_v11 }
 0x267   : > { %1915 = vrot.lane.b32.xlu1 %v1908_v45, %s6333_s8  ;;  %1913 = vrot.lane.b32.xlu0 %v1907_v39, %s6333_s8  ;;  %v1946_v45 = vstv %s5782_s4  ;;  %s5797_s4 = sld [smem:[#allocation3 + $0x38c]] }
 0x268   : > { %v1948_v27 = vmul.f32 %v7096_v0, %v1946_v45 }
 0x269   : > { %v7430_v54 = vpop.permute.xlu1 %1535  ;;  %v7432_v3 = vpop.permute.xlu0 %1533 }
 0x26a   : > { %11762 = vst [vmem:[#allocation163_spill] sm:$0xff] %v7430_v54  ;;  %11763 = vst [vmem:[#allocation164_spill] sm:$0xff] %v7432_v3  ;;  %v1947_v54 = vmul.f32 %v7107_v30, %v1946_v45 }
 0x26b   : > { %1933 = vrot.lane.b32.xlu1 %v1927_v22, %s6333_s8  ;;  %1917 = vrot.lane.b32.xlu0 %v1909_v44, %s6333_s8  ;;  %v1967_v22 = vstv %s5783_s22  ;;  %s5798_s22 = sld [smem:[#allocation3 + $0xd]] }
 0x26c   : > { %v1968_v11 = vmul.f32 %v7107_v30, %v1967_v22 }
 0x26d   : > { %v7438_v59 = vpop.permute.xlu1 %1553  ;;  %v7440_v39 = vpop.permute.xlu0 %1551 }
 0x26e   : > { %11764 = vst [vmem:[#allocation165_spill] sm:$0xff] %v7438_v59  ;;  %11765 = vst [vmem:[#allocation166_spill] sm:$0xff] %v7440_v39 }
 0x26f   : > { %1937 = vrot.lane.b32.xlu1 %v1929_v1, %s6333_s8  ;;  %1935 = vrot.lane.b32.xlu0 %v1928_v7, %s6333_s8  ;;  %v1949_v1 = vmul.f32 %v7085_v8, %v1946_v45  ;;  %s5792_s8 = sld [smem:[#allocation3 + $0x10c]] }
 0x271   : > { %v7446_v44 = vpop.permute.xlu1 %1571  ;;  %v7448_v3 = vpop.permute.xlu0 %1555 }
 0x272   : > { %11766 = vst [vmem:[#allocation167_spill] sm:$0xff] %v7446_v44  ;;  %11767 = vst [vmem:[#allocation168_spill] sm:$0xff] %v7448_v3  ;;  %v1970_v44 = vmul.f32 %v7085_v8, %v1967_v22  ;;  %v1969_v3 = vmul.f32 %v7096_v0, %v1967_v22 }
 0x273   : > { %1955 = vrot.lane.b32.xlu1 %v1948_v27, %s6334_s0  ;;  %1953 = vrot.lane.b32.xlu0 %v1947_v54, %s6334_s0  ;;  %v1987_v27 = vstv %s5784_s15  ;;  %s5799_s15 = sld [smem:[#allocation3 + $0x8d]] }
 0x274   : > { %v1989_v45 = vmul.f32 %v7096_v0, %v1987_v27 }
 0x275   : > { %v7454_v7 = vpop.permute.xlu1 %1575  ;;  %v7456_v39 = vpop.permute.xlu0 %1573 }
 0x276   : > { %11768 = vst [vmem:[#allocation169_spill] sm:$0xff] %v7454_v7  ;;  %11769 = vst [vmem:[#allocation170_spill] sm:$0xff] %v7456_v39  ;;  %v1988_v7 = vmul.f32 %v7107_v30, %v1987_v27 }
 0x277   : > { %1974 = vrot.lane.b32.xlu1 %v1968_v11, %s6334_s0  ;;  %1957 = vrot.lane.b32.xlu0 %v1949_v1, %s6334_s0  ;;  %v2007_v11 = vstv %s5785_s6  ;;  %s6336_s6 = smov 115  }
 0x278   : > { %v2008_v22 = vmul.f32 %v7107_v30, %v2007_v11 }
 0x279   : > { %v7462_v59 = vpop.permute.xlu1 %1593  ;;  %v7464_v54 = vpop.permute.xlu0 %1591 }
 0x27a   : > { %11770 = vst [vmem:[#allocation171_spill] sm:$0xff] %v7462_v59  ;;  %11771 = vst [vmem:[#allocation172_spill] sm:$0xff] %v7464_v54 }
 0x27b   : > { %1978 = vrot.lane.b32.xlu1 %v1970_v44, %s6334_s0  ;;  %1976 = vrot.lane.b32.xlu0 %v1969_v3, %s6334_s0  ;;  %v1990_v44 = vmul.f32 %v7085_v8, %v1987_v27 }
 0x27d   : > { %v7470_v1 = vpop.permute.xlu1 %1611  ;;  %v7472_v39 = vpop.permute.xlu0 %1595 }
 0x27e   : > { %11772 = vst [vmem:[#allocation173_spill] sm:$0xff] %v7470_v1  ;;  %11773 = vst [vmem:[#allocation174_spill] sm:$0xff] %v7472_v39  ;;  %v2010_v1 = vmul.f32 %v7085_v8, %v2007_v11  ;;  %v2009_v39 = vmul.f32 %v7096_v0, %v2007_v11 }
 0x27f   : > { %1996 = vrot.lane.b32.xlu1 %v1989_v45, %s6334_s0  ;;  %1994 = vrot.lane.b32.xlu0 %v1988_v7, %s6334_s0  ;;  %v2027_v45 = vstv %s5786_s7  ;;  %s5801_s7 = sld [smem:[#allocation3 + $0x18d]] }
 0x280   : > { %v2029_v27 = vmul.f32 %v7096_v0, %v2027_v45 }
 0x281   : > { %v7478_v3 = vpop.permute.xlu1 %1615  ;;  %v7480_v54 = vpop.permute.xlu0 %1613 }
 0x282   : > { %11774 = vst [vmem:[#allocation175_spill] sm:$0xff] %v7478_v3  ;;  %11775 = vst [vmem:[#allocation176_spill] sm:$0xff] %v7480_v54  ;;  %v2028_v3 = vmul.f32 %v7107_v30, %v2027_v45 }
 0x283   : > { %2014 = vrot.lane.b32.xlu1 %v2008_v22, %s6334_s0  ;;  %1998 = vrot.lane.b32.xlu0 %v1990_v44, %s6334_s0  ;;  %v2047_v22 = vstv %s5787_s23  ;;  %s5802_s23 = sld [smem:[#allocation3 + $0x20d]] }
 0x284   : > { %v2048_v11 = vmul.f32 %v7107_v30, %v2047_v22 }
 0x285   : > { %v7486_v59 = vpop.permute.xlu1 %1633  ;;  %v7488_v7 = vpop.permute.xlu0 %1631 }
 0x286   : > { %11776 = vst [vmem:[#allocation177_spill] sm:$0xff] %v7486_v59  ;;  %11777 = vst [vmem:[#allocation178_spill] sm:$0xff] %v7488_v7 }
 0x287   : > { %2018 = vrot.lane.b32.xlu1 %v2010_v1, %s6334_s0  ;;  %2016 = vrot.lane.b32.xlu0 %v2009_v39, %s6334_s0  ;;  %v2030_v1 = vmul.f32 %v7085_v8, %v2027_v45 }
 0x289   : > { %v7494_v44 = vpop.permute.xlu1 %1652  ;;  %v7496_v54 = vpop.permute.xlu0 %1635 }
 0x28a   : > { %11778 = vst [vmem:[#allocation179_spill] sm:$0xff] %v7494_v44  ;;  %11779 = vst [vmem:[#allocation180_spill] sm:$0xff] %v7496_v54  ;;  %v2050_v44 = vmul.f32 %v7085_v8, %v2047_v22  ;;  %v2049_v54 = vmul.f32 %v7096_v0, %v2047_v22 }
 0x28b   : > { %2036 = vrot.lane.b32.xlu1 %v2029_v27, %s6334_s0  ;;  %2034 = vrot.lane.b32.xlu0 %v2028_v3, %s6334_s0  ;;  %v2067_v27 = vstv %s5788_s25  ;;  %s5803_s25 = sld [smem:[#allocation3 + $0x28d]] }
 0x28c   : > { %v2069_v45 = vmul.f32 %v7096_v0, %v2067_v27 }
 0x28d   : > { %v7502_v39 = vpop.permute.xlu1 %1656  ;;  %v7504_v7 = vpop.permute.xlu0 %1654 }
 0x28e   : > { %11780 = vst [vmem:[#allocation181_spill] sm:$0xff] %v7502_v39  ;;  %11781 = vst [vmem:[#allocation182_spill] sm:$0xff] %v7504_v7  ;;  %v2068_v39 = vmul.f32 %v7107_v30, %v2067_v27 }
 0x28f   : > { %2054 = vrot.lane.b32.xlu1 %v2048_v11, %s6334_s0  ;;  %2038 = vrot.lane.b32.xlu0 %v2030_v1, %s6334_s0  ;;  %v2087_v11 = vstv %s5789_s9  ;;  %s5804_s9 = sld [smem:[#allocation3 + $0x30d]] }
 0x290   : > { %v2088_v22 = vmul.f32 %v7107_v30, %v2087_v11 }
 0x291   : > { %v7510_v59 = vpop.permute.xlu1 %1674  ;;  %v7512_v3 = vpop.permute.xlu0 %1672 }
 0x292   : > { %11782 = vst [vmem:[#allocation183_spill] sm:$0xff] %v7510_v59  ;;  %11783 = vst [vmem:[#allocation184_spill] sm:$0xff] %v7512_v3 }
 0x293   : > { %2058 = vrot.lane.b32.xlu1 %v2050_v44, %s6334_s0  ;;  %2056 = vrot.lane.b32.xlu0 %v2049_v54, %s6334_s0  ;;  %v2070_v44 = vmul.f32 %v7085_v8, %v2067_v27 }
 0x295   : > { %v7518_v1 = vpop.permute.xlu1 %1692  ;;  %v7520_v7 = vpop.permute.xlu0 %1676 }
 0x296   : > { %11784 = vst [vmem:[#allocation185_spill] sm:$0xff] %v7518_v1  ;;  %11785 = vst [vmem:[#allocation186_spill] sm:$0xff] %v7520_v7  ;;  %v2090_v1 = vmul.f32 %v7085_v8, %v2087_v11  ;;  %v2089_v7 = vmul.f32 %v7096_v0, %v2087_v11 }
 0x297   : > { %2076 = vrot.lane.b32.xlu1 %v2069_v45, %s6334_s0  ;;  %2074 = vrot.lane.b32.xlu0 %v2068_v39, %s6334_s0  ;;  %v2107_v45 = vstv %s5790_s21  ;;  %s5805_s21 = sld [smem:[#allocation3 + $0x38d]] }
 0x298   : > { %v2109_v27 = vmul.f32 %v7096_v0, %v2107_v45 }
 0x299   : > { %v7526_v54 = vpop.permute.xlu1 %1696  ;;  %v7528_v3 = vpop.permute.xlu0 %1694 }
 0x29a   : > { %11786 = vst [vmem:[#allocation187_spill] sm:$0xff] %v7526_v54  ;;  %11787 = vst [vmem:[#allocation188_spill] sm:$0xff] %v7528_v3  ;;  %v2108_v54 = vmul.f32 %v7107_v30, %v2107_v45 }
 0x29b   : > { %2094 = vrot.lane.b32.xlu1 %v2088_v22, %s6334_s0  ;;  %2078 = vrot.lane.b32.xlu0 %v2070_v44, %s6334_s0  ;;  %v2128_v22 = vstv %s5791_s26  ;;  %s5806_s26 = sld [smem:[#allocation3 + $0xe]] }
 0x29c   : > { %v2129_v11 = vmul.f32 %v7107_v30, %v2128_v22 }
 0x29d   : > { %v7534_v59 = vpop.permute.xlu1 %1714  ;;  %v7536_v39 = vpop.permute.xlu0 %1712 }
 0x29e   : > { %11788 = vst [vmem:[#allocation189_spill] sm:$0xff] %v7534_v59  ;;  %11789 = vst [vmem:[#allocation190_spill] sm:$0xff] %v7536_v39 }
 0x29f   : > { %2098 = vrot.lane.b32.xlu1 %v2090_v1, %s6334_s0  ;;  %2096 = vrot.lane.b32.xlu0 %v2089_v7, %s6334_s0  ;;  %v2110_v1 = vmul.f32 %v7085_v8, %v2107_v45  ;;  %s5800_s0 = sld [smem:[#allocation3 + $0x10d]] }
 0x2a1   : > { %v7542_v44 = vpop.permute.xlu1 %1732  ;;  %v7544_v3 = vpop.permute.xlu0 %1716 }
 0x2a2   : > { %11790 = vst [vmem:[#allocation191_spill] sm:$0xff] %v7542_v44  ;;  %11791 = vst [vmem:[#allocation192_spill] sm:$0xff] %v7544_v3  ;;  %v2131_v44 = vmul.f32 %v7085_v8, %v2128_v22  ;;  %v2130_v3 = vmul.f32 %v7096_v0, %v2128_v22 }
 0x2a3   : > { %2116 = vrot.lane.b32.xlu1 %v2109_v27, %s6335_s10  ;;  %2114 = vrot.lane.b32.xlu0 %v2108_v54, %s6335_s10  ;;  %v2148_v27 = vstv %s5792_s8  ;;  %s5807_s8 = sld [smem:[#allocation3 + $0x8e]] }
 0x2a4   : > { %v2150_v45 = vmul.f32 %v7096_v0, %v2148_v27 }
 0x2a5   : > { %v7550_v7 = vpop.permute.xlu1 %1736  ;;  %v7552_v39 = vpop.permute.xlu0 %1734 }
 0x2a6   : > { %11792 = vst [vmem:[#allocation193_spill] sm:$0xff] %v7550_v7  ;;  %11793 = vst [vmem:[#allocation194_spill] sm:$0xff] %v7552_v39  ;;  %v2149_v7 = vmul.f32 %v7107_v30, %v2148_v27 }
 0x2a7   : > { %2135 = vrot.lane.b32.xlu1 %v2129_v11, %s6335_s10  ;;  %2118 = vrot.lane.b32.xlu0 %v2110_v1, %s6335_s10  ;;  %v2168_v11 = vstv %s5793_s30  ;;  %s6337_s30 = smov 114  }
 0x2a8   : > { %v2169_v22 = vmul.f32 %v7107_v30, %v2168_v11 }
 0x2a9   : > { %v7558_v59 = vpop.permute.xlu1 %1754  ;;  %v7560_v54 = vpop.permute.xlu0 %1752 }
 0x2aa   : > { %11794 = vst [vmem:[#allocation195_spill] sm:$0xff] %v7558_v59  ;;  %11795 = vst [vmem:[#allocation196_spill] sm:$0xff] %v7560_v54 }
 0x2ab   : > { %2139 = vrot.lane.b32.xlu1 %v2131_v44, %s6335_s10  ;;  %2137 = vrot.lane.b32.xlu0 %v2130_v3, %s6335_s10  ;;  %v2151_v44 = vmul.f32 %v7085_v8, %v2148_v27 }
 0x2ad   : > { %v7566_v1 = vpop.permute.xlu1 %1772  ;;  %v7568_v39 = vpop.permute.xlu0 %1756 }
 0x2ae   : > { %11796 = vst [vmem:[#allocation197_spill] sm:$0xff] %v7566_v1  ;;  %11797 = vst [vmem:[#allocation198_spill] sm:$0xff] %v7568_v39  ;;  %v2171_v1 = vmul.f32 %v7085_v8, %v2168_v11  ;;  %v2170_v39 = vmul.f32 %v7096_v0, %v2168_v11 }
 0x2af   : > { %2157 = vrot.lane.b32.xlu1 %v2150_v45, %s6335_s10  ;;  %2155 = vrot.lane.b32.xlu0 %v2149_v7, %s6335_s10  ;;  %v2188_v45 = vstv %s5794_s29  ;;  %s5809_s29 = sld [smem:[#allocation3 + $0x18e]] }
 0x2b0   : > { %v2190_v27 = vmul.f32 %v7096_v0, %v2188_v45 }
 0x2b1   : > { %v7574_v3 = vpop.permute.xlu1 %1776  ;;  %v7576_v54 = vpop.permute.xlu0 %1774 }
 0x2b2   : > { %11798 = vst [vmem:[#allocation199_spill] sm:$0xff] %v7574_v3  ;;  %11799 = vst [vmem:[#allocation200_spill] sm:$0xff] %v7576_v54  ;;  %v2189_v3 = vmul.f32 %v7107_v30, %v2188_v45 }
 0x2b3   : > { %2175 = vrot.lane.b32.xlu1 %v2169_v22, %s6335_s10  ;;  %2159 = vrot.lane.b32.xlu0 %v2151_v44, %s6335_s10  ;;  %v2208_v22 = vstv %s5795_s11  ;;  %s5810_s11 = sld [smem:[#allocation3 + $0x20e]] }
 0x2b4   : > { %v2209_v11 = vmul.f32 %v7107_v30, %v2208_v22 }
 0x2b5   : > { %v7582_v59 = vpop.permute.xlu1 %1794  ;;  %v7584_v7 = vpop.permute.xlu0 %1792 }
 0x2b6   : > { %11800 = vst [vmem:[#allocation201_spill] sm:$0xff] %v7582_v59  ;;  %11801 = vst [vmem:[#allocation202_spill] sm:$0xff] %v7584_v7 }
 0x2b7   : > { %2179 = vrot.lane.b32.xlu1 %v2171_v1, %s6335_s10  ;;  %2177 = vrot.lane.b32.xlu0 %v2170_v39, %s6335_s10  ;;  %v2191_v1 = vmul.f32 %v7085_v8, %v2188_v45 }
 0x2b9   : > { %v7590_v44 = vpop.permute.xlu1 %1813  ;;  %v7592_v54 = vpop.permute.xlu0 %1796 }
 0x2ba   : > { %11802 = vst [vmem:[#allocation203_spill] sm:$0xff] %v7590_v44  ;;  %11803 = vst [vmem:[#allocation204_spill] sm:$0xff] %v7592_v54  ;;  %v2211_v44 = vmul.f32 %v7085_v8, %v2208_v22  ;;  %v2210_v54 = vmul.f32 %v7096_v0, %v2208_v22 }
 0x2bb   : > { %2197 = vrot.lane.b32.xlu1 %v2190_v27, %s6335_s10  ;;  %2195 = vrot.lane.b32.xlu0 %v2189_v3, %s6335_s10  ;;  %v2228_v27 = vstv %s5796_s28  ;;  %s5811_s28 = sld [smem:[#allocation3 + $0x28e]] }
 0x2bc   : > { %v2230_v45 = vmul.f32 %v7096_v0, %v2228_v27 }
 0x2bd   : > { %v7598_v39 = vpop.permute.xlu1 %1817  ;;  %v7600_v7 = vpop.permute.xlu0 %1815 }
 0x2be   : > { %11804 = vst [vmem:[#allocation205_spill] sm:$0xff] %v7598_v39  ;;  %11805 = vst [vmem:[#allocation206_spill] sm:$0xff] %v7600_v7  ;;  %v2229_v39 = vmul.f32 %v7107_v30, %v2228_v27 }
 0x2bf   : > { %2215 = vrot.lane.b32.xlu1 %v2209_v11, %s6335_s10  ;;  %2199 = vrot.lane.b32.xlu0 %v2191_v1, %s6335_s10  ;;  %v2248_v11 = vstv %s5797_s4  ;;  %s5812_s4 = sld [smem:[#allocation3 + $0x30e]] }
 0x2c0   : > { %v2249_v22 = vmul.f32 %v7107_v30, %v2248_v11 }
 0x2c1   : > { %v7606_v59 = vpop.permute.xlu1 %1835  ;;  %v7608_v3 = vpop.permute.xlu0 %1833 }
 0x2c2   : > { %11806 = vst [vmem:[#allocation207_spill] sm:$0xff] %v7606_v59  ;;  %11807 = vst [vmem:[#allocation208_spill] sm:$0xff] %v7608_v3 }
 0x2c3   : > { %2219 = vrot.lane.b32.xlu1 %v2211_v44, %s6335_s10  ;;  %2217 = vrot.lane.b32.xlu0 %v2210_v54, %s6335_s10  ;;  %v2231_v44 = vmul.f32 %v7085_v8, %v2228_v27 }
 0x2c5   : > { %v7614_v1 = vpop.permute.xlu1 %1853  ;;  %v7616_v7 = vpop.permute.xlu0 %1837 }
 0x2c6   : > { %11808 = vst [vmem:[#allocation209_spill] sm:$0xff] %v7614_v1  ;;  %11809 = vst [vmem:[#allocation210_spill] sm:$0xff] %v7616_v7  ;;  %v2251_v1 = vmul.f32 %v7085_v8, %v2248_v11  ;;  %v2250_v7 = vmul.f32 %v7096_v0, %v2248_v11 }
 0x2c7   : > { %2237 = vrot.lane.b32.xlu1 %v2230_v45, %s6335_s10  ;;  %2235 = vrot.lane.b32.xlu0 %v2229_v39, %s6335_s10  ;;  %v2268_v45 = vstv %s5798_s22  ;;  %s5813_s22 = sld [smem:[#allocation3 + $0x38e]] }
 0x2c8   : > { %v2270_v27 = vmul.f32 %v7096_v0, %v2268_v45 }
 0x2c9   : > { %v7622_v54 = vpop.permute.xlu1 %1857  ;;  %v7624_v3 = vpop.permute.xlu0 %1855 }
 0x2ca   : > { %11810 = vst [vmem:[#allocation211_spill] sm:$0xff] %v7622_v54  ;;  %11811 = vst [vmem:[#allocation212_spill] sm:$0xff] %v7624_v3  ;;  %v2289_v54 = vstv %s5799_s15  ;;  %s5814_s15 = sld [smem:[#allocation3 + $0xf]] }
 0x2cb   : > { %2255 = vrot.lane.b32.xlu1 %v2249_v22, %s6335_s10  ;;  %2239 = vrot.lane.b32.xlu0 %v2231_v44, %s6335_s10  ;;  %v2269_v22 = vmul.f32 %v7107_v30, %v2268_v45  ;;  %v7646_v44 = vld [vmem:[%s6576_s27] sm:$0xff] }
 0x2cc   : > { %v2271_v0 = vmul.f32 %v7646_v44, %v2268_v45 }
 0x2cd   : > { %v7630_v39 = vpop.permute.xlu1 %1875  ;;  %v7632_v59 = vpop.permute.xlu0 %1873 }
 0x2ce   : > { %11812 = vst [vmem:[#allocation213_spill] sm:$0xff] %v7630_v39  ;;  %11813 = vst [vmem:[#allocation214_spill] sm:$0xff] %v7632_v59 }
 0x2cf   : > { %2259 = vrot.lane.b32.xlu1 %v2251_v1, %s6335_s10  ;;  %2257 = vrot.lane.b32.xlu0 %v2250_v7, %s6335_s10  ;;  %v2290_v1 = vmul.f32 %v7107_v30, %v2289_v54  ;;  %s5808_s10 = sld [smem:[#allocation3 + $0x10e]] }
 0x2d1   : > { %v7638_v8 = vpop.permute.xlu1 %1893  ;;  %v7640_v11 = vpop.permute.xlu0 %1877 }
 0x2d2   : > { %11814 = vst [vmem:[#allocation215_spill] sm:$0xff] %v7638_v8  ;;  %11815 = vst [vmem:[#allocation216_spill] sm:$0xff] %v7640_v11  ;;  %v7657_v8 = vld [vmem:[%s6569_s12 + $0x8] sm:$0xff] }
 0x2d3   : > { %2277 = vrot.lane.b32.xlu1 %v2270_v27, %s6336_s6  ;;  %2275 = vrot.lane.b32.xlu0 %v2269_v22, %s6336_s6  ;;  %v2292_v27 = vmul.f32 %v7646_v44, %v2289_v54  ;;  %v2291_v30 = vmul.f32 %v7657_v8, %v2289_v54  ;;  %v2309_v22 = vstv %s5800_s0  ;;  %s5815_s0 = sld [smem:[#allocation3 + $0x8f]] }
 0x2d4   : > { %v2311_v45 = vmul.f32 %v7657_v8, %v2309_v22 }
 0x2d5   : > { %v7649_v7 = vpop.permute.xlu1 %1897  ;;  %v7651_v59 = vpop.permute.xlu0 %1895 }
 0x2d6   : > { %11816 = vst [vmem:[#allocation217_spill] sm:$0xff] %v7649_v7  ;;  %11817 = vst [vmem:[#allocation218_spill] sm:$0xff] %v7651_v59  ;;  %v2329_v7 = vstv %s5801_s7  ;;  %s6338_s7 = smov 113  }
 0x2d7   : > { %2296 = vrot.lane.b32.xlu1 %v2290_v1, %s6336_s6  ;;  %2279 = vrot.lane.b32.xlu0 %v2271_v0, %s6336_s6  ;;  %v7668_v1 = vld [vmem:[%s6569_s12] sm:$0xff] }
 0x2d8   : > { %v2310_v0 = vmul.f32 %v7668_v1, %v2309_v22 }
 0x2d9   : > { %v7660_v11 = vpop.permute.xlu1 %1915  ;;  %v7662_v39 = vpop.permute.xlu0 %1913 }
 0x2da   : > { %11818 = vst [vmem:[#allocation219_spill] sm:$0xff] %v7660_v11  ;;  %11819 = vst [vmem:[#allocation220_spill] sm:$0xff] %v7662_v39 }
 0x2db   : > { %2300 = vrot.lane.b32.xlu1 %v2292_v27, %s6336_s6  ;;  %2298 = vrot.lane.b32.xlu0 %v2291_v30, %s6336_s6  ;;  %v2330_v27 = vmul.f32 %v7668_v1, %v2329_v7  ;;  %v2312_v30 = vmul.f32 %v7646_v44, %v2309_v22 }
 0x2dd   : > { %v7671_v59 = vpop.permute.xlu1 %1933  ;;  %v7673_v54 = vpop.permute.xlu0 %1917 }
 0x2de   : > { %11820 = vst [vmem:[#allocation221_spill] sm:$0xff] %v7671_v59  ;;  %11821 = vst [vmem:[#allocation222_spill] sm:$0xff] %v7673_v54  ;;  %v2332_v59 = vmul.f32 %v7646_v44, %v2329_v7  ;;  %v2331_v54 = vmul.f32 %v7657_v8, %v2329_v7 }
 0x2df   : > { %2318 = vrot.lane.b32.xlu1 %v2311_v45, %s6336_s6  ;;  %2316 = vrot.lane.b32.xlu0 %v2310_v0, %s6336_s6  ;;  %v2349_v45 = vstv %s5802_s23  ;;  %s5817_s23 = sld [smem:[#allocation3 + $0x18f]] }
 0x2e0   : > { %v2351_v22 = vmul.f32 %v7657_v8, %v2349_v45 }
 0x2e1   : > { %v7679_v39 = vpop.permute.xlu1 %1937  ;;  %v7681_v11 = vpop.permute.xlu0 %1935 }
 0x2e2   : > { %11822 = vst [vmem:[#allocation223_spill] sm:$0xff] %v7679_v39  ;;  %11823 = vst [vmem:[#allocation224_spill] sm:$0xff] %v7681_v11  ;;  %v2350_v39 = vmul.f32 %v7668_v1, %v2349_v45 }
 0x2e3   : > { %2336 = vrot.lane.b32.xlu1 %v2330_v27, %s6336_s6  ;;  %2320 = vrot.lane.b32.xlu0 %v2312_v30, %s6336_s6  ;;  %v2369_v27 = vstv %s5803_s25  ;;  %s5818_s25 = sld [smem:[#allocation3 + $0x20f]] }
 0x2e4   : > { %v2370_v7 = vmul.f32 %v7668_v1, %v2369_v27 }
 0x2e5   : > { %v7687_v3 = vpop.permute.xlu1 %1955  ;;  %v7689_v0 = vpop.permute.xlu0 %1953 }
 0x2e6   : > { %11824 = vst [vmem:[#allocation225_spill] sm:$0xff] %v7687_v3  ;;  %11825 = vst [vmem:[#allocation226_spill] sm:$0xff] %v7689_v0 }
 0x2e7   : > { %2340 = vrot.lane.b32.xlu1 %v2332_v59, %s6336_s6  ;;  %2338 = vrot.lane.b32.xlu0 %v2331_v54, %s6336_s6  ;;  %v2352_v59 = vmul.f32 %v7646_v44, %v2349_v45 }
 0x2e9   : > { %v7695_v30 = vpop.permute.xlu1 %1974  ;;  %v7697_v11 = vpop.permute.xlu0 %1957 }
 0x2ea   : > { %11826 = vst [vmem:[#allocation227_spill] sm:$0xff] %v7695_v30  ;;  %11827 = vst [vmem:[#allocation228_spill] sm:$0xff] %v7697_v11  ;;  %v2372_v30 = vmul.f32 %v7646_v44, %v2369_v27  ;;  %v2371_v11 = vmul.f32 %v7657_v8, %v2369_v27 }
 0x2eb   : > { %2358 = vrot.lane.b32.xlu1 %v2351_v22, %s6336_s6  ;;  %2356 = vrot.lane.b32.xlu0 %v2350_v39, %s6336_s6  ;;  %v2389_v22 = vstv %s5804_s9  ;;  %s5819_s9 = sld [smem:[#allocation3 + $0x28f]] }
 0x2ec   : > { %v2391_v45 = vmul.f32 %v7657_v8, %v2389_v22 }
 0x2ed   : > { %v7703_v54 = vpop.permute.xlu1 %1978  ;;  %v7705_v0 = vpop.permute.xlu0 %1976 }
 0x2ee   : > { %11828 = vst [vmem:[#allocation229_spill] sm:$0xff] %v7703_v54  ;;  %11829 = vst [vmem:[#allocation230_spill] sm:$0xff] %v7705_v0  ;;  %v2390_v54 = vmul.f32 %v7668_v1, %v2389_v22 }
 0x2ef   : > { %2376 = vrot.lane.b32.xlu1 %v2370_v7, %s6336_s6  ;;  %2360 = vrot.lane.b32.xlu0 %v2352_v59, %s6336_s6  ;;  %v2409_v7 = vstv %s5805_s21  ;;  %s5820_s21 = sld [smem:[#allocation3 + $0x30f]] }
 0x2f0   : > { %v2410_v27 = vmul.f32 %v7668_v1, %v2409_v7 }
 0x2f1   : > { %v7711_v3 = vpop.permute.xlu1 %1996  ;;  %v7713_v39 = vpop.permute.xlu0 %1994 }
 0x2f2   : > { %11830 = vst [vmem:[#allocation231_spill] sm:$0xff] %v7711_v3  ;;  %11831 = vst [vmem:[#allocation232_spill] sm:$0xff] %v7713_v39 }
 0x2f3   : > { %2380 = vrot.lane.b32.xlu1 %v2372_v30, %s6336_s6  ;;  %2378 = vrot.lane.b32.xlu0 %v2371_v11, %s6336_s6  ;;  %v2392_v30 = vmul.f32 %v7646_v44, %v2389_v22 }
 0x2f5   : > { %v7719_v59 = vpop.permute.xlu1 %2014  ;;  %v7721_v0 = vpop.permute.xlu0 %1998 }
 0x2f6   : > { %11832 = vst [vmem:[#allocation233_spill] sm:$0xff] %v7719_v59  ;;  %11833 = vst [vmem:[#allocation234_spill] sm:$0xff] %v7721_v0  ;;  %v2412_v59 = vmul.f32 %v7646_v44, %v2409_v7  ;;  %v2411_v0 = vmul.f32 %v7657_v8, %v2409_v7 }
 0x2f7   : > { %2398 = vrot.lane.b32.xlu1 %v2391_v45, %s6336_s6  ;;  %2396 = vrot.lane.b32.xlu0 %v2390_v54, %s6336_s6  ;;  %v2429_v45 = vstv %s5806_s26  ;;  %s5821_s26 = sld [smem:[#allocation3 + $0x38f]] }
 0x2f8   : > { %v2431_v22 = vmul.f32 %v7657_v8, %v2429_v45 }
 0x2f9   : > { %v7727_v11 = vpop.permute.xlu1 %2018  ;;  %v7729_v39 = vpop.permute.xlu0 %2016 }
 0x2fa   : > { %11834 = vst [vmem:[#allocation235_spill] sm:$0xff] %v7727_v11  ;;  %11835 = vst [vmem:[#allocation236_spill] sm:$0xff] %v7729_v39  ;;  %v2430_v11 = vmul.f32 %v7668_v1, %v2429_v45 }
 0x2fb   : > { %2416 = vrot.lane.b32.xlu1 %v2410_v27, %s6336_s6  ;;  %2400 = vrot.lane.b32.xlu0 %v2392_v30, %s6336_s6  ;;  %v2450_v27 = vstv %s5807_s8  ;;  %s5822_s8 = sld [smem:[#allocation3 + $0x10]] }
 0x2fc   : > { %v2451_v7 = vmul.f32 %v7668_v1, %v2450_v27 }
 0x2fd   : > { %v7735_v3 = vpop.permute.xlu1 %2036  ;;  %v7737_v54 = vpop.permute.xlu0 %2034 }
 0x2fe   : > { %11836 = vst [vmem:[#allocation237_spill] sm:$0xff] %v7735_v3  ;;  %11837 = vst [vmem:[#allocation238_spill] sm:$0xff] %v7737_v54 }
 0x2ff   : > { %2420 = vrot.lane.b32.xlu1 %v2412_v59, %s6336_s6  ;;  %2418 = vrot.lane.b32.xlu0 %v2411_v0, %s6336_s6  ;;  %v2432_v59 = vmul.f32 %v7646_v44, %v2429_v45  ;;  %s5816_s6 = sld [smem:[#allocation3 + $0x10f]] }
 0x301   : > { %v7743_v30 = vpop.permute.xlu1 %2054  ;;  %v7745_v39 = vpop.permute.xlu0 %2038 }
 0x302   : > { %11838 = vst [vmem:[#allocation239_spill] sm:$0xff] %v7743_v30  ;;  %11839 = vst [vmem:[#allocation240_spill] sm:$0xff] %v7745_v39  ;;  %v2453_v30 = vmul.f32 %v7646_v44, %v2450_v27  ;;  %v2452_v39 = vmul.f32 %v7657_v8, %v2450_v27 }
 0x303   : > { %2438 = vrot.lane.b32.xlu1 %v2431_v22, %s6337_s30  ;;  %2436 = vrot.lane.b32.xlu0 %v2430_v11, %s6337_s30  ;;  %v2470_v22 = vstv %s5808_s10  ;;  %s5823_s10 = sld [smem:[#allocation3 + $0x90]] }
 0x304   : > { %v2472_v45 = vmul.f32 %v7657_v8, %v2470_v22 }
 0x305   : > { %v7751_v0 = vpop.permute.xlu1 %2058  ;;  %v7753_v54 = vpop.permute.xlu0 %2056 }
 0x306   : > { %11840 = vst [vmem:[#allocation241_spill] sm:$0xff] %v7751_v0  ;;  %11841 = vst [vmem:[#allocation242_spill] sm:$0xff] %v7753_v54  ;;  %v2471_v0 = vmul.f32 %v7668_v1, %v2470_v22 }
 0x307   : > { %2457 = vrot.lane.b32.xlu1 %v2451_v7, %s6337_s30  ;;  %2440 = vrot.lane.b32.xlu0 %v2432_v59, %s6337_s30  ;;  %v2490_v7 = vstv %s5809_s29  ;;  %s6339_s29 = smov 112  }
 0x308   : > { %v2491_v27 = vmul.f32 %v7668_v1, %v2490_v7 }
 0x309   : > { %v7759_v3 = vpop.permute.xlu1 %2076  ;;  %v7761_v11 = vpop.permute.xlu0 %2074 }
 0x30a   : > { %11842 = vst [vmem:[#allocation243_spill] sm:$0xff] %v7759_v3  ;;  %11843 = vst [vmem:[#allocation244_spill] sm:$0xff] %v7761_v11 }
 0x30b   : > { %2461 = vrot.lane.b32.xlu1 %v2453_v30, %s6337_s30  ;;  %2459 = vrot.lane.b32.xlu0 %v2452_v39, %s6337_s30  ;;  %v2473_v30 = vmul.f32 %v7646_v44, %v2470_v22 }
 0x30d   : > { %v7767_v59 = vpop.permute.xlu1 %2094  ;;  %v7769_v54 = vpop.permute.xlu0 %2078 }
 0x30e   : > { %11844 = vst [vmem:[#allocation245_spill] sm:$0xff] %v7767_v59  ;;  %11845 = vst [vmem:[#allocation246_spill] sm:$0xff] %v7769_v54  ;;  %v2493_v59 = vmul.f32 %v7646_v44, %v2490_v7  ;;  %v2492_v54 = vmul.f32 %v7657_v8, %v2490_v7 }
 0x30f   : > { %2479 = vrot.lane.b32.xlu1 %v2472_v45, %s6337_s30  ;;  %2477 = vrot.lane.b32.xlu0 %v2471_v0, %s6337_s30  ;;  %v2510_v45 = vstv %s5810_s11  ;;  %s5825_s11 = sld [smem:[#allocation3 + $0x190]] }
 0x310   : > { %v2512_v22 = vmul.f32 %v7657_v8, %v2510_v45 }
 0x311   : > { %v7775_v39 = vpop.permute.xlu1 %2098  ;;  %v7777_v11 = vpop.permute.xlu0 %2096 }
 0x312   : > { %11846 = vst [vmem:[#allocation247_spill] sm:$0xff] %v7775_v39  ;;  %11847 = vst [vmem:[#allocation248_spill] sm:$0xff] %v7777_v11  ;;  %v2511_v39 = vmul.f32 %v7668_v1, %v2510_v45 }
 0x313   : > { %2497 = vrot.lane.b32.xlu1 %v2491_v27, %s6337_s30  ;;  %2481 = vrot.lane.b32.xlu0 %v2473_v30, %s6337_s30  ;;  %v2530_v27 = vstv %s5811_s28  ;;  %s5826_s28 = sld [smem:[#allocation3 + $0x210]] }
 0x314   : > { %v2531_v7 = vmul.f32 %v7668_v1, %v2530_v27 }
 0x315   : > { %v7783_v3 = vpop.permute.xlu1 %2116  ;;  %v7785_v0 = vpop.permute.xlu0 %2114 }
 0x316   : > { %11848 = vst [vmem:[#allocation249_spill] sm:$0xff] %v7783_v3  ;;  %11849 = vst [vmem:[#allocation250_spill] sm:$0xff] %v7785_v0 }
 0x317   : > { %2501 = vrot.lane.b32.xlu1 %v2493_v59, %s6337_s30  ;;  %2499 = vrot.lane.b32.xlu0 %v2492_v54, %s6337_s30  ;;  %v2513_v59 = vmul.f32 %v7646_v44, %v2510_v45 }
 0x319   : > { %v7791_v30 = vpop.permute.xlu1 %2135  ;;  %v7793_v11 = vpop.permute.xlu0 %2118 }
 0x31a   : > { %11850 = vst [vmem:[#allocation251_spill] sm:$0xff] %v7791_v30  ;;  %11851 = vst [vmem:[#allocation252_spill] sm:$0xff] %v7793_v11  ;;  %v2533_v30 = vmul.f32 %v7646_v44, %v2530_v27  ;;  %v2532_v11 = vmul.f32 %v7657_v8, %v2530_v27 }
 0x31b   : > { %2519 = vrot.lane.b32.xlu1 %v2512_v22, %s6337_s30  ;;  %2517 = vrot.lane.b32.xlu0 %v2511_v39, %s6337_s30  ;;  %v2550_v22 = vstv %s5812_s4  ;;  %s5827_s4 = sld [smem:[#allocation3 + $0x290]] }
 0x31c   : > { %v2552_v45 = vmul.f32 %v7657_v8, %v2550_v22 }
 0x31d   : > { %v7799_v54 = vpop.permute.xlu1 %2139  ;;  %v7801_v0 = vpop.permute.xlu0 %2137 }
 0x31e   : > { %11852 = vst [vmem:[#allocation253_spill] sm:$0xff] %v7799_v54  ;;  %11853 = vst [vmem:[#allocation254_spill] sm:$0xff] %v7801_v0  ;;  %v2551_v54 = vmul.f32 %v7668_v1, %v2550_v22 }
 0x31f   : > { %2537 = vrot.lane.b32.xlu1 %v2531_v7, %s6337_s30  ;;  %2521 = vrot.lane.b32.xlu0 %v2513_v59, %s6337_s30  ;;  %v2570_v7 = vstv %s5813_s22  ;;  %s5828_s22 = sld [smem:[#allocation3 + $0x310]] }
 0x320   : > { %v2571_v27 = vmul.f32 %v7668_v1, %v2570_v7 }
 0x321   : > { %v7807_v3 = vpop.permute.xlu1 %2157  ;;  %v7809_v39 = vpop.permute.xlu0 %2155 }
 0x322   : > { %11854 = vst [vmem:[#allocation255_spill] sm:$0xff] %v7807_v3  ;;  %11855 = vst [vmem:[#allocation256_spill] sm:$0xff] %v7809_v39 }
 0x323   : > { %2541 = vrot.lane.b32.xlu1 %v2533_v30, %s6337_s30  ;;  %2539 = vrot.lane.b32.xlu0 %v2532_v11, %s6337_s30  ;;  %v2553_v30 = vmul.f32 %v7646_v44, %v2550_v22 }
 0x325   : > { %v7815_v59 = vpop.permute.xlu1 %2175  ;;  %v7817_v0 = vpop.permute.xlu0 %2159 }
 0x326   : > { %11856 = vst [vmem:[#allocation257_spill] sm:$0xff] %v7815_v59  ;;  %11857 = vst [vmem:[#allocation258_spill] sm:$0xff] %v7817_v0  ;;  %v2573_v59 = vmul.f32 %v7646_v44, %v2570_v7  ;;  %v2572_v0 = vmul.f32 %v7657_v8, %v2570_v7 }
 0x327   : > { %2559 = vrot.lane.b32.xlu1 %v2552_v45, %s6337_s30  ;;  %2557 = vrot.lane.b32.xlu0 %v2551_v54, %s6337_s30  ;;  %v2590_v45 = vstv %s5814_s15  ;;  %s5829_s15 = sld [smem:[#allocation3 + $0x390]] }
 0x328   : > { %v2592_v22 = vmul.f32 %v7657_v8, %v2590_v45 }
 0x329   : > { %v7823_v11 = vpop.permute.xlu1 %2179  ;;  %v7825_v39 = vpop.permute.xlu0 %2177 }
 0x32a   : > { %11858 = vst [vmem:[#allocation259_spill] sm:$0xff] %v7823_v11  ;;  %11859 = vst [vmem:[#allocation260_spill] sm:$0xff] %v7825_v39  ;;  %v2591_v11 = vmul.f32 %v7668_v1, %v2590_v45 }
 0x32b   : > { %2577 = vrot.lane.b32.xlu1 %v2571_v27, %s6337_s30  ;;  %2561 = vrot.lane.b32.xlu0 %v2553_v30, %s6337_s30  ;;  %v2611_v27 = vstv %s5815_s0  ;;  %s5830_s0 = sld [smem:[#allocation3 + $0x11]] }
 0x32c   : > { %v2612_v7 = vmul.f32 %v7668_v1, %v2611_v27 }
 0x32d   : > { %v7831_v3 = vpop.permute.xlu1 %2197  ;;  %v7833_v54 = vpop.permute.xlu0 %2195 }
 0x32e   : > { %11860 = vst [vmem:[#allocation261_spill] sm:$0xff] %v7831_v3  ;;  %11861 = vst [vmem:[#allocation262_spill] sm:$0xff] %v7833_v54 }
 0x32f   : > { %2581 = vrot.lane.b32.xlu1 %v2573_v59, %s6337_s30  ;;  %2579 = vrot.lane.b32.xlu0 %v2572_v0, %s6337_s30  ;;  %v2593_v59 = vmul.f32 %v7646_v44, %v2590_v45  ;;  %s5824_s30 = sld [smem:[#allocation3 + $0x110]] }
 0x331   : > { %v7839_v30 = vpop.permute.xlu1 %2215  ;;  %v7841_v39 = vpop.permute.xlu0 %2199 }
 0x332   : > { %11862 = vst [vmem:[#allocation263_spill] sm:$0xff] %v7839_v30  ;;  %11863 = vst [vmem:[#allocation264_spill] sm:$0xff] %v7841_v39  ;;  %v2614_v30 = vmul.f32 %v7646_v44, %v2611_v27  ;;  %v2613_v39 = vmul.f32 %v7657_v8, %v2611_v27 }
 0x333   : > { %2599 = vrot.lane.b32.xlu1 %v2592_v22, %s6338_s7  ;;  %2597 = vrot.lane.b32.xlu0 %v2591_v11, %s6338_s7  ;;  %v2631_v22 = vstv %s5816_s6  ;;  %s5831_s6 = sld [smem:[#allocation3 + $0x91]] }
 0x334   : > { %v2633_v45 = vmul.f32 %v7657_v8, %v2631_v22 }
 0x335   : > { %v7847_v0 = vpop.permute.xlu1 %2219  ;;  %v7849_v54 = vpop.permute.xlu0 %2217 }
 0x336   : > { %11864 = vst [vmem:[#allocation265_spill] sm:$0xff] %v7847_v0  ;;  %11865 = vst [vmem:[#allocation266_spill] sm:$0xff] %v7849_v54  ;;  %v2632_v0 = vmul.f32 %v7668_v1, %v2631_v22 }
 0x337   : > { %2618 = vrot.lane.b32.xlu1 %v2612_v7, %s6338_s7  ;;  %2601 = vrot.lane.b32.xlu0 %v2593_v59, %s6338_s7  ;;  %v2651_v7 = vstv %s5817_s23  ;;  %s6340_s23 = smov 111  }
 0x338   : > { %v2652_v27 = vmul.f32 %v7668_v1, %v2651_v7 }
 0x339   : > { %v7855_v3 = vpop.permute.xlu1 %2237  ;;  %v7857_v11 = vpop.permute.xlu0 %2235 }
 0x33a   : > { %11866 = vst [vmem:[#allocation267_spill] sm:$0xff] %v7855_v3  ;;  %11867 = vst [vmem:[#allocation268_spill] sm:$0xff] %v7857_v11 }
 0x33b   : > { %2622 = vrot.lane.b32.xlu1 %v2614_v30, %s6338_s7  ;;  %2620 = vrot.lane.b32.xlu0 %v2613_v39, %s6338_s7  ;;  %v2634_v30 = vmul.f32 %v7646_v44, %v2631_v22 }
 0x33d   : > { %v7863_v59 = vpop.permute.xlu1 %2255  ;;  %v7865_v54 = vpop.permute.xlu0 %2239 }
 0x33e   : > { %11868 = vst [vmem:[#allocation269_spill] sm:$0xff] %v7863_v59  ;;  %11869 = vst [vmem:[#allocation270_spill] sm:$0xff] %v7865_v54  ;;  %v2654_v59 = vmul.f32 %v7646_v44, %v2651_v7  ;;  %v2653_v54 = vmul.f32 %v7657_v8, %v2651_v7 }
 0x33f   : > { %2640 = vrot.lane.b32.xlu1 %v2633_v45, %s6338_s7  ;;  %2638 = vrot.lane.b32.xlu0 %v2632_v0, %s6338_s7  ;;  %v2671_v45 = vstv %s5818_s25  ;;  %s5833_s25 = sld [smem:[#allocation3 + $0x191]] }
 0x340   : > { %v2673_v22 = vmul.f32 %v7657_v8, %v2671_v45 }
 0x341   : > { %v7871_v39 = vpop.permute.xlu1 %2259  ;;  %v7873_v11 = vpop.permute.xlu0 %2257 }
 0x342   : > { %11870 = vst [vmem:[#allocation271_spill] sm:$0xff] %v7871_v39  ;;  %11871 = vst [vmem:[#allocation272_spill] sm:$0xff] %v7873_v11  ;;  %v2672_v39 = vmul.f32 %v7668_v1, %v2671_v45 }
 0x343   : > { %2658 = vrot.lane.b32.xlu1 %v2652_v27, %s6338_s7  ;;  %2642 = vrot.lane.b32.xlu0 %v2634_v30, %s6338_s7  ;;  %v2691_v27 = vstv %s5819_s9  ;;  %s5834_s9 = sld [smem:[#allocation3 + $0x211]] }
 0x344   : > { %v2692_v7 = vmul.f32 %v7668_v1, %v2691_v27 }
 0x345   : > { %v7879_v3 = vpop.permute.xlu1 %2277  ;;  %v7881_v0 = vpop.permute.xlu0 %2275 }
 0x346   : > { %11872 = vst [vmem:[#allocation273_spill] sm:$0xff] %v7879_v3  ;;  %11873 = vst [vmem:[#allocation274_spill] sm:$0xff] %v7881_v0 }
 0x347   : > { %2662 = vrot.lane.b32.xlu1 %v2654_v59, %s6338_s7  ;;  %2660 = vrot.lane.b32.xlu0 %v2653_v54, %s6338_s7  ;;  %v2674_v59 = vmul.f32 %v7646_v44, %v2671_v45 }
 0x349   : > { %v7887_v30 = vpop.permute.xlu1 %2296  ;;  %v7889_v11 = vpop.permute.xlu0 %2279 }
 0x34a   : > { %11874 = vst [vmem:[#allocation275_spill] sm:$0xff] %v7887_v30  ;;  %11875 = vst [vmem:[#allocation276_spill] sm:$0xff] %v7889_v11  ;;  %v2694_v30 = vmul.f32 %v7646_v44, %v2691_v27  ;;  %v2693_v11 = vmul.f32 %v7657_v8, %v2691_v27 }
 0x34b   : > { %2680 = vrot.lane.b32.xlu1 %v2673_v22, %s6338_s7  ;;  %2678 = vrot.lane.b32.xlu0 %v2672_v39, %s6338_s7  ;;  %v2711_v22 = vstv %s5820_s21  ;;  %s5835_s21 = sld [smem:[#allocation3 + $0x291]] }
 0x34c   : > { %v2713_v45 = vmul.f32 %v7657_v8, %v2711_v22 }
 0x34d   : > { %v7895_v54 = vpop.permute.xlu1 %2300  ;;  %v7897_v0 = vpop.permute.xlu0 %2298 }
 0x34e   : > { %11876 = vst [vmem:[#allocation277_spill] sm:$0xff] %v7895_v54  ;;  %11877 = vst [vmem:[#allocation278_spill] sm:$0xff] %v7897_v0  ;;  %v2712_v54 = vmul.f32 %v7668_v1, %v2711_v22 }
 0x34f   : > { %2698 = vrot.lane.b32.xlu1 %v2692_v7, %s6338_s7  ;;  %2682 = vrot.lane.b32.xlu0 %v2674_v59, %s6338_s7  ;;  %v2731_v7 = vstv %s5821_s26  ;;  %s5836_s26 = sld [smem:[#allocation3 + $0x311]] }
 0x350   : > { %v2732_v27 = vmul.f32 %v7668_v1, %v2731_v7 }
 0x351   : > { %v7903_v3 = vpop.permute.xlu1 %2318  ;;  %v7905_v39 = vpop.permute.xlu0 %2316 }
 0x352   : > { %11878 = vst [vmem:[#allocation279_spill] sm:$0xff] %v7903_v3  ;;  %11879 = vst [vmem:[#allocation280_spill] sm:$0xff] %v7905_v39 }
 0x353   : > { %2702 = vrot.lane.b32.xlu1 %v2694_v30, %s6338_s7  ;;  %2700 = vrot.lane.b32.xlu0 %v2693_v11, %s6338_s7  ;;  %v2714_v30 = vmul.f32 %v7646_v44, %v2711_v22 }
 0x355   : > { %v7911_v59 = vpop.permute.xlu1 %2336  ;;  %v7913_v0 = vpop.permute.xlu0 %2320 }
 0x356   : > { %11880 = vst [vmem:[#allocation281_spill] sm:$0xff] %v7911_v59  ;;  %11881 = vst [vmem:[#allocation282_spill] sm:$0xff] %v7913_v0  ;;  %v2734_v59 = vmul.f32 %v7646_v44, %v2731_v7  ;;  %v2733_v0 = vmul.f32 %v7657_v8, %v2731_v7 }
 0x357   : > { %2720 = vrot.lane.b32.xlu1 %v2713_v45, %s6338_s7  ;;  %2718 = vrot.lane.b32.xlu0 %v2712_v54, %s6338_s7  ;;  %v2751_v45 = vstv %s5822_s8  ;;  %s5837_s8 = sld [smem:[#allocation3 + $0x391]] }
 0x358   : > { %v2753_v22 = vmul.f32 %v7657_v8, %v2751_v45 }
 0x359   : > { %v7919_v11 = vpop.permute.xlu1 %2340  ;;  %v7921_v39 = vpop.permute.xlu0 %2338 }
 0x35a   : > { %11882 = vst [vmem:[#allocation283_spill] sm:$0xff] %v7919_v11  ;;  %11883 = vst [vmem:[#allocation284_spill] sm:$0xff] %v7921_v39  ;;  %v2752_v11 = vmul.f32 %v7668_v1, %v2751_v45 }
 0x35b   : > { %2738 = vrot.lane.b32.xlu1 %v2732_v27, %s6338_s7  ;;  %2722 = vrot.lane.b32.xlu0 %v2714_v30, %s6338_s7  ;;  %v2772_v27 = vstv %s5823_s10  ;;  %s5838_s10 = sld [smem:[#allocation3 + $0x12]] }
 0x35c   : > { %v2773_v7 = vmul.f32 %v7668_v1, %v2772_v27 }
 0x35d   : > { %v7927_v3 = vpop.permute.xlu1 %2358  ;;  %v7929_v54 = vpop.permute.xlu0 %2356 }
 0x35e   : > { %11884 = vst [vmem:[#allocation285_spill] sm:$0xff] %v7927_v3  ;;  %11885 = vst [vmem:[#allocation286_spill] sm:$0xff] %v7929_v54 }
 0x35f   : > { %2742 = vrot.lane.b32.xlu1 %v2734_v59, %s6338_s7  ;;  %2740 = vrot.lane.b32.xlu0 %v2733_v0, %s6338_s7  ;;  %v2754_v59 = vmul.f32 %v7646_v44, %v2751_v45  ;;  %s5832_s7 = sld [smem:[#allocation3 + $0x111]] }
 0x361   : > { %v7935_v30 = vpop.permute.xlu1 %2376  ;;  %v7937_v39 = vpop.permute.xlu0 %2360 }
 0x362   : > { %11886 = vst [vmem:[#allocation287_spill] sm:$0xff] %v7935_v30  ;;  %11887 = vst [vmem:[#allocation288_spill] sm:$0xff] %v7937_v39  ;;  %v2775_v30 = vmul.f32 %v7646_v44, %v2772_v27  ;;  %v2774_v39 = vmul.f32 %v7657_v8, %v2772_v27 }
 0x363   : > { %2760 = vrot.lane.b32.xlu1 %v2753_v22, %s6339_s29  ;;  %2758 = vrot.lane.b32.xlu0 %v2752_v11, %s6339_s29  ;;  %v2792_v22 = vstv %s5824_s30  ;;  %s5839_s30 = sld [smem:[#allocation3 + $0x92]] }
 0x364   : > { %v2794_v45 = vmul.f32 %v7657_v8, %v2792_v22 }
 0x365   : > { %v7943_v0 = vpop.permute.xlu1 %2380  ;;  %v7945_v54 = vpop.permute.xlu0 %2378 }
 0x366   : > { %11888 = vst [vmem:[#allocation289_spill] sm:$0xff] %v7943_v0  ;;  %11889 = vst [vmem:[#allocation290_spill] sm:$0xff] %v7945_v54  ;;  %v2793_v0 = vmul.f32 %v7668_v1, %v2792_v22 }
 0x367   : > { %2779 = vrot.lane.b32.xlu1 %v2773_v7, %s6339_s29  ;;  %2762 = vrot.lane.b32.xlu0 %v2754_v59, %s6339_s29  ;;  %v2812_v7 = vstv %s5825_s11  ;;  %s6341_s11 = smov 110  }
 0x368   : > { %v2813_v27 = vmul.f32 %v7668_v1, %v2812_v7 }
 0x369   : > { %v7951_v3 = vpop.permute.xlu1 %2398  ;;  %v7953_v11 = vpop.permute.xlu0 %2396 }
 0x36a   : > { %11890 = vst [vmem:[#allocation291_spill] sm:$0xff] %v7951_v3  ;;  %11891 = vst [vmem:[#allocation292_spill] sm:$0xff] %v7953_v11 }
 0x36b   : > { %2783 = vrot.lane.b32.xlu1 %v2775_v30, %s6339_s29  ;;  %2781 = vrot.lane.b32.xlu0 %v2774_v39, %s6339_s29  ;;  %v2795_v30 = vmul.f32 %v7646_v44, %v2792_v22 }
 0x36d   : > { %v7959_v59 = vpop.permute.xlu1 %2416  ;;  %v7961_v54 = vpop.permute.xlu0 %2400 }
 0x36e   : > { %11892 = vst [vmem:[#allocation293_spill] sm:$0xff] %v7959_v59  ;;  %11893 = vst [vmem:[#allocation294_spill] sm:$0xff] %v7961_v54  ;;  %v2815_v59 = vmul.f32 %v7646_v44, %v2812_v7  ;;  %v2814_v54 = vmul.f32 %v7657_v8, %v2812_v7 }
 0x36f   : > { %2801 = vrot.lane.b32.xlu1 %v2794_v45, %s6339_s29  ;;  %2799 = vrot.lane.b32.xlu0 %v2793_v0, %s6339_s29  ;;  %v2832_v45 = vstv %s5826_s28  ;;  %s5841_s28 = sld [smem:[#allocation3 + $0x192]] }
 0x370   : > { %v2834_v22 = vmul.f32 %v7657_v8, %v2832_v45 }
 0x371   : > { %v7967_v39 = vpop.permute.xlu1 %2420  ;;  %v7969_v11 = vpop.permute.xlu0 %2418 }
 0x372   : > { %11894 = vst [vmem:[#allocation295_spill] sm:$0xff] %v7967_v39  ;;  %11895 = vst [vmem:[#allocation296_spill] sm:$0xff] %v7969_v11  ;;  %v2833_v39 = vmul.f32 %v7668_v1, %v2832_v45 }
 0x373   : > { %2819 = vrot.lane.b32.xlu1 %v2813_v27, %s6339_s29  ;;  %2803 = vrot.lane.b32.xlu0 %v2795_v30, %s6339_s29  ;;  %v2852_v27 = vstv %s5827_s4  ;;  %s5842_s4 = sld [smem:[#allocation3 + $0x212]] }
 0x374   : > { %v2853_v7 = vmul.f32 %v7668_v1, %v2852_v27 }
 0x375   : > { %v7975_v3 = vpop.permute.xlu1 %2438  ;;  %v7977_v0 = vpop.permute.xlu0 %2436 }
 0x376   : > { %11896 = vst [vmem:[#allocation297_spill] sm:$0xff] %v7975_v3  ;;  %11897 = vst [vmem:[#allocation298_spill] sm:$0xff] %v7977_v0 }
 0x377   : > { %2823 = vrot.lane.b32.xlu1 %v2815_v59, %s6339_s29  ;;  %2821 = vrot.lane.b32.xlu0 %v2814_v54, %s6339_s29  ;;  %v2835_v59 = vmul.f32 %v7646_v44, %v2832_v45 }
 0x379   : > { %v7983_v30 = vpop.permute.xlu1 %2457  ;;  %v7985_v11 = vpop.permute.xlu0 %2440 }
 0x37a   : > { %11898 = vst [vmem:[#allocation299_spill] sm:$0xff] %v7983_v30  ;;  %11899 = vst [vmem:[#allocation300_spill] sm:$0xff] %v7985_v11  ;;  %v2855_v30 = vmul.f32 %v7646_v44, %v2852_v27  ;;  %v2854_v11 = vmul.f32 %v7657_v8, %v2852_v27 }
 0x37b   : > { %2841 = vrot.lane.b32.xlu1 %v2834_v22, %s6339_s29  ;;  %2839 = vrot.lane.b32.xlu0 %v2833_v39, %s6339_s29  ;;  %v2872_v22 = vstv %s5828_s22  ;;  %s5843_s22 = sld [smem:[#allocation3 + $0x292]] }
 0x37c   : > { %v2874_v45 = vmul.f32 %v7657_v8, %v2872_v22 }
 0x37d   : > { %v7991_v54 = vpop.permute.xlu1 %2461  ;;  %v7993_v0 = vpop.permute.xlu0 %2459 }
 0x37e   : > { %11900 = vst [vmem:[#allocation301_spill] sm:$0xff] %v7991_v54  ;;  %11901 = vst [vmem:[#allocation302_spill] sm:$0xff] %v7993_v0  ;;  %v2873_v54 = vmul.f32 %v7668_v1, %v2872_v22 }
 0x37f   : > { %2859 = vrot.lane.b32.xlu1 %v2853_v7, %s6339_s29  ;;  %2843 = vrot.lane.b32.xlu0 %v2835_v59, %s6339_s29  ;;  %v2892_v7 = vstv %s5829_s15  ;;  %s5844_s15 = sld [smem:[#allocation3 + $0x312]] }
 0x380   : > { %v2893_v27 = vmul.f32 %v7668_v1, %v2892_v7 }
 0x381   : > { %v7999_v3 = vpop.permute.xlu1 %2479  ;;  %v8001_v39 = vpop.permute.xlu0 %2477 }
 0x382   : > { %11902 = vst [vmem:[#allocation303_spill] sm:$0xff] %v7999_v3  ;;  %11903 = vst [vmem:[#allocation304_spill] sm:$0xff] %v8001_v39 }
 0x383   : > { %2863 = vrot.lane.b32.xlu1 %v2855_v30, %s6339_s29  ;;  %2861 = vrot.lane.b32.xlu0 %v2854_v11, %s6339_s29  ;;  %v2875_v30 = vmul.f32 %v7646_v44, %v2872_v22 }
 0x385   : > { %v8007_v59 = vpop.permute.xlu1 %2497  ;;  %v8009_v0 = vpop.permute.xlu0 %2481 }
 0x386   : > { %11904 = vst [vmem:[#allocation305_spill] sm:$0xff] %v8007_v59  ;;  %11905 = vst [vmem:[#allocation306_spill] sm:$0xff] %v8009_v0  ;;  %v2895_v59 = vmul.f32 %v7646_v44, %v2892_v7  ;;  %v2894_v0 = vmul.f32 %v7657_v8, %v2892_v7 }
 0x387   : > { %2881 = vrot.lane.b32.xlu1 %v2874_v45, %s6339_s29  ;;  %2879 = vrot.lane.b32.xlu0 %v2873_v54, %s6339_s29  ;;  %v2912_v45 = vstv %s5830_s0  ;;  %s5845_s0 = sld [smem:[#allocation3 + $0x392]] }
 0x388   : > { %v2914_v22 = vmul.f32 %v7657_v8, %v2912_v45 }
 0x389   : > { %v8015_v11 = vpop.permute.xlu1 %2501  ;;  %v8017_v39 = vpop.permute.xlu0 %2499 }
 0x38a   : > { %11906 = vst [vmem:[#allocation307_spill] sm:$0xff] %v8015_v11  ;;  %11907 = vst [vmem:[#allocation308_spill] sm:$0xff] %v8017_v39  ;;  %v2913_v11 = vmul.f32 %v7668_v1, %v2912_v45 }
 0x38b   : > { %2899 = vrot.lane.b32.xlu1 %v2893_v27, %s6339_s29  ;;  %2883 = vrot.lane.b32.xlu0 %v2875_v30, %s6339_s29  ;;  %v2933_v27 = vstv %s5831_s6  ;;  %s5846_s6 = sld [smem:[#allocation3 + $0x13]] }
 0x38c   : > { %v2934_v7 = vmul.f32 %v7668_v1, %v2933_v27 }
 0x38d   : > { %v8023_v3 = vpop.permute.xlu1 %2519  ;;  %v8025_v54 = vpop.permute.xlu0 %2517 }
 0x38e   : > { %11908 = vst [vmem:[#allocation309_spill] sm:$0xff] %v8023_v3  ;;  %11909 = vst [vmem:[#allocation310_spill] sm:$0xff] %v8025_v54 }
 0x38f   : > { %2903 = vrot.lane.b32.xlu1 %v2895_v59, %s6339_s29  ;;  %2901 = vrot.lane.b32.xlu0 %v2894_v0, %s6339_s29  ;;  %v2915_v59 = vmul.f32 %v7646_v44, %v2912_v45  ;;  %s5840_s29 = sld [smem:[#allocation3 + $0x112]] }
 0x391   : > { %v8031_v30 = vpop.permute.xlu1 %2537  ;;  %v8033_v39 = vpop.permute.xlu0 %2521 }
 0x392   : > { %11910 = vst [vmem:[#allocation311_spill] sm:$0xff] %v8031_v30  ;;  %11911 = vst [vmem:[#allocation312_spill] sm:$0xff] %v8033_v39  ;;  %v2936_v30 = vmul.f32 %v7646_v44, %v2933_v27  ;;  %v2935_v39 = vmul.f32 %v7657_v8, %v2933_v27 }
 0x393   : > { %2921 = vrot.lane.b32.xlu1 %v2914_v22, %s6340_s23  ;;  %2919 = vrot.lane.b32.xlu0 %v2913_v11, %s6340_s23  ;;  %v2953_v22 = vstv %s5832_s7  ;;  %s5847_s7 = sld [smem:[#allocation3 + $0x93]] }
 0x394   : > { %v2955_v45 = vmul.f32 %v7657_v8, %v2953_v22 }
 0x395   : > { %v8039_v0 = vpop.permute.xlu1 %2541  ;;  %v8041_v54 = vpop.permute.xlu0 %2539 }
 0x396   : > { %11912 = vst [vmem:[#allocation313_spill] sm:$0xff] %v8039_v0  ;;  %11913 = vst [vmem:[#allocation314_spill] sm:$0xff] %v8041_v54  ;;  %v2954_v0 = vmul.f32 %v7668_v1, %v2953_v22 }
 0x397   : > { %2940 = vrot.lane.b32.xlu1 %v2934_v7, %s6340_s23  ;;  %2923 = vrot.lane.b32.xlu0 %v2915_v59, %s6340_s23  ;;  %v2973_v7 = vstv %s5833_s25  ;;  %s6342_s25 = smov 109  }
 0x398   : > { %v2974_v27 = vmul.f32 %v7668_v1, %v2973_v7 }
 0x399   : > { %v8047_v3 = vpop.permute.xlu1 %2559  ;;  %v8049_v11 = vpop.permute.xlu0 %2557 }
 0x39a   : > { %11914 = vst [vmem:[#allocation315_spill] sm:$0xff] %v8047_v3  ;;  %11915 = vst [vmem:[#allocation316_spill] sm:$0xff] %v8049_v11 }
 0x39b   : > { %2944 = vrot.lane.b32.xlu1 %v2936_v30, %s6340_s23  ;;  %2942 = vrot.lane.b32.xlu0 %v2935_v39, %s6340_s23  ;;  %v2956_v30 = vmul.f32 %v7646_v44, %v2953_v22 }
 0x39d   : > { %v8055_v59 = vpop.permute.xlu1 %2577  ;;  %v8057_v54 = vpop.permute.xlu0 %2561 }
 0x39e   : > { %11916 = vst [vmem:[#allocation317_spill] sm:$0xff] %v8055_v59  ;;  %11917 = vst [vmem:[#allocation318_spill] sm:$0xff] %v8057_v54  ;;  %v2976_v59 = vmul.f32 %v7646_v44, %v2973_v7  ;;  %v2975_v54 = vmul.f32 %v7657_v8, %v2973_v7 }
 0x39f   : > { %2962 = vrot.lane.b32.xlu1 %v2955_v45, %s6340_s23  ;;  %2960 = vrot.lane.b32.xlu0 %v2954_v0, %s6340_s23  ;;  %v2993_v45 = vstv %s5834_s9  ;;  %s5849_s9 = sld [smem:[#allocation3 + $0x193]] }
 0x3a0   : > { %v2995_v22 = vmul.f32 %v7657_v8, %v2993_v45 }
 0x3a1   : > { %v8063_v39 = vpop.permute.xlu1 %2581  ;;  %v8065_v11 = vpop.permute.xlu0 %2579 }
 0x3a2   : > { %11918 = vst [vmem:[#allocation319_spill] sm:$0xff] %v8063_v39  ;;  %11919 = vst [vmem:[#allocation320_spill] sm:$0xff] %v8065_v11  ;;  %v2994_v39 = vmul.f32 %v7668_v1, %v2993_v45 }
 0x3a3   : > { %2980 = vrot.lane.b32.xlu1 %v2974_v27, %s6340_s23  ;;  %2964 = vrot.lane.b32.xlu0 %v2956_v30, %s6340_s23  ;;  %v3013_v27 = vstv %s5835_s21  ;;  %s5850_s21 = sld [smem:[#allocation3 + $0x213]] }
 0x3a4   : > { %v3014_v7 = vmul.f32 %v7668_v1, %v3013_v27 }
 0x3a5   : > { %v8071_v3 = vpop.permute.xlu1 %2599  ;;  %v8073_v0 = vpop.permute.xlu0 %2597 }
 0x3a6   : > { %11920 = vst [vmem:[#allocation321_spill] sm:$0xff] %v8071_v3  ;;  %11921 = vst [vmem:[#allocation322_spill] sm:$0xff] %v8073_v0 }
 0x3a7   : > { %2984 = vrot.lane.b32.xlu1 %v2976_v59, %s6340_s23  ;;  %2982 = vrot.lane.b32.xlu0 %v2975_v54, %s6340_s23  ;;  %v2996_v59 = vmul.f32 %v7646_v44, %v2993_v45 }
 0x3a9   : > { %v8079_v30 = vpop.permute.xlu1 %2618  ;;  %v8081_v11 = vpop.permute.xlu0 %2601 }
 0x3aa   : > { %11922 = vst [vmem:[#allocation323_spill] sm:$0xff] %v8079_v30  ;;  %11923 = vst [vmem:[#allocation324_spill] sm:$0xff] %v8081_v11  ;;  %v3016_v30 = vmul.f32 %v7646_v44, %v3013_v27  ;;  %v3015_v11 = vmul.f32 %v7657_v8, %v3013_v27 }
 0x3ab   : > { %3002 = vrot.lane.b32.xlu1 %v2995_v22, %s6340_s23  ;;  %3000 = vrot.lane.b32.xlu0 %v2994_v39, %s6340_s23  ;;  %v3033_v22 = vstv %s5836_s26  ;;  %s5851_s26 = sld [smem:[#allocation3 + $0x293]] }
 0x3ac   : > { %v3035_v45 = vmul.f32 %v7657_v8, %v3033_v22 }
 0x3ad   : > { %v8087_v54 = vpop.permute.xlu1 %2622  ;;  %v8089_v0 = vpop.permute.xlu0 %2620 }
 0x3ae   : > { %11924 = vst [vmem:[#allocation325_spill] sm:$0xff] %v8087_v54  ;;  %11925 = vst [vmem:[#allocation326_spill] sm:$0xff] %v8089_v0  ;;  %v3034_v54 = vmul.f32 %v7668_v1, %v3033_v22 }
 0x3af   : > { %3020 = vrot.lane.b32.xlu1 %v3014_v7, %s6340_s23  ;;  %3004 = vrot.lane.b32.xlu0 %v2996_v59, %s6340_s23  ;;  %v3053_v7 = vstv %s5837_s8  ;;  %s5852_s8 = sld [smem:[#allocation3 + $0x313]] }
 0x3b0   : > { %v3054_v27 = vmul.f32 %v7668_v1, %v3053_v7 }
 0x3b1   : > { %v8095_v3 = vpop.permute.xlu1 %2640  ;;  %v8097_v39 = vpop.permute.xlu0 %2638 }
 0x3b2   : > { %11926 = vst [vmem:[#allocation327_spill] sm:$0xff] %v8095_v3  ;;  %11927 = vst [vmem:[#allocation328_spill] sm:$0xff] %v8097_v39 }
 0x3b3   : > { %3024 = vrot.lane.b32.xlu1 %v3016_v30, %s6340_s23  ;;  %3022 = vrot.lane.b32.xlu0 %v3015_v11, %s6340_s23  ;;  %v3036_v30 = vmul.f32 %v7646_v44, %v3033_v22 }
 0x3b5   : > { %v8103_v59 = vpop.permute.xlu1 %2658  ;;  %v8105_v0 = vpop.permute.xlu0 %2642 }
 0x3b6   : > { %11928 = vst [vmem:[#allocation329_spill] sm:$0xff] %v8103_v59  ;;  %11929 = vst [vmem:[#allocation330_spill] sm:$0xff] %v8105_v0  ;;  %v3056_v59 = vmul.f32 %v7646_v44, %v3053_v7  ;;  %v3055_v0 = vmul.f32 %v7657_v8, %v3053_v7 }
 0x3b7   : > { %3042 = vrot.lane.b32.xlu1 %v3035_v45, %s6340_s23  ;;  %3040 = vrot.lane.b32.xlu0 %v3034_v54, %s6340_s23  ;;  %v3073_v45 = vstv %s5838_s10  ;;  %s5853_s10 = sld [smem:[#allocation3 + $0x393]] }
 0x3b8   : > { %v3075_v22 = vmul.f32 %v7657_v8, %v3073_v45 }
 0x3b9   : > { %v8111_v11 = vpop.permute.xlu1 %2662  ;;  %v8113_v39 = vpop.permute.xlu0 %2660 }
 0x3ba   : > { %11930 = vst [vmem:[#allocation331_spill] sm:$0xff] %v8111_v11  ;;  %11931 = vst [vmem:[#allocation332_spill] sm:$0xff] %v8113_v39  ;;  %v3074_v11 = vmul.f32 %v7668_v1, %v3073_v45 }
 0x3bb   : > { %3060 = vrot.lane.b32.xlu1 %v3054_v27, %s6340_s23  ;;  %3044 = vrot.lane.b32.xlu0 %v3036_v30, %s6340_s23  ;;  %v3094_v27 = vstv %s5839_s30  ;;  %s5854_s30 = sld [smem:[#allocation3 + $0x14]] }
 0x3bc   : > { %v3095_v7 = vmul.f32 %v7668_v1, %v3094_v27 }
 0x3bd   : > { %v8119_v3 = vpop.permute.xlu1 %2680  ;;  %v8121_v54 = vpop.permute.xlu0 %2678 }
 0x3be   : > { %11932 = vst [vmem:[#allocation333_spill] sm:$0xff] %v8119_v3  ;;  %11933 = vst [vmem:[#allocation334_spill] sm:$0xff] %v8121_v54 }
 0x3bf   : > { %3064 = vrot.lane.b32.xlu1 %v3056_v59, %s6340_s23  ;;  %3062 = vrot.lane.b32.xlu0 %v3055_v0, %s6340_s23  ;;  %v3076_v59 = vmul.f32 %v7646_v44, %v3073_v45  ;;  %s5848_s23 = sld [smem:[#allocation3 + $0x113]] }
 0x3c1   : > { %v8127_v30 = vpop.permute.xlu1 %2698  ;;  %v8129_v39 = vpop.permute.xlu0 %2682 }
 0x3c2   : > { %11934 = vst [vmem:[#allocation335_spill] sm:$0xff] %v8127_v30  ;;  %11935 = vst [vmem:[#allocation336_spill] sm:$0xff] %v8129_v39  ;;  %v3097_v30 = vmul.f32 %v7646_v44, %v3094_v27  ;;  %v3096_v39 = vmul.f32 %v7657_v8, %v3094_v27 }
 0x3c3   : > { %3082 = vrot.lane.b32.xlu1 %v3075_v22, %s6341_s11  ;;  %3080 = vrot.lane.b32.xlu0 %v3074_v11, %s6341_s11  ;;  %v3114_v22 = vstv %s5840_s29  ;;  %s5855_s29 = sld [smem:[#allocation3 + $0x94]] }
 0x3c4   : > { %v3116_v45 = vmul.f32 %v7657_v8, %v3114_v22 }
 0x3c5   : > { %v8135_v0 = vpop.permute.xlu1 %2702  ;;  %v8137_v54 = vpop.permute.xlu0 %2700 }
 0x3c6   : > { %11936 = vst [vmem:[#allocation337_spill] sm:$0xff] %v8135_v0  ;;  %11937 = vst [vmem:[#allocation338_spill] sm:$0xff] %v8137_v54  ;;  %v3115_v0 = vmul.f32 %v7668_v1, %v3114_v22 }
 0x3c7   : > { %3101 = vrot.lane.b32.xlu1 %v3095_v7, %s6341_s11  ;;  %3084 = vrot.lane.b32.xlu0 %v3076_v59, %s6341_s11  ;;  %v3134_v7 = vstv %s5841_s28  ;;  %s6343_s28 = smov 108  }
 0x3c8   : > { %v3135_v27 = vmul.f32 %v7668_v1, %v3134_v7 }
 0x3c9   : > { %v8143_v3 = vpop.permute.xlu1 %2720  ;;  %v8145_v11 = vpop.permute.xlu0 %2718 }
 0x3ca   : > { %11938 = vst [vmem:[#allocation339_spill] sm:$0xff] %v8143_v3  ;;  %11939 = vst [vmem:[#allocation340_spill] sm:$0xff] %v8145_v11 }
 0x3cb   : > { %3105 = vrot.lane.b32.xlu1 %v3097_v30, %s6341_s11  ;;  %3103 = vrot.lane.b32.xlu0 %v3096_v39, %s6341_s11  ;;  %v3117_v30 = vmul.f32 %v7646_v44, %v3114_v22 }
 0x3cd   : > { %v8151_v59 = vpop.permute.xlu1 %2738  ;;  %v8153_v54 = vpop.permute.xlu0 %2722 }
 0x3ce   : > { %11940 = vst [vmem:[#allocation341_spill] sm:$0xff] %v8151_v59  ;;  %11941 = vst [vmem:[#allocation342_spill] sm:$0xff] %v8153_v54  ;;  %v3137_v59 = vmul.f32 %v7646_v44, %v3134_v7  ;;  %v3136_v54 = vmul.f32 %v7657_v8, %v3134_v7 }
 0x3cf   : > { %3123 = vrot.lane.b32.xlu1 %v3116_v45, %s6341_s11  ;;  %3121 = vrot.lane.b32.xlu0 %v3115_v0, %s6341_s11  ;;  %v3154_v45 = vstv %s5842_s4  ;;  %s5857_s4 = sld [smem:[#allocation3 + $0x194]] }
 0x3d0   : > { %v3156_v22 = vmul.f32 %v7657_v8, %v3154_v45 }
 0x3d1   : > { %v8159_v39 = vpop.permute.xlu1 %2742  ;;  %v8161_v11 = vpop.permute.xlu0 %2740 }
 0x3d2   : > { %11942 = vst [vmem:[#allocation343_spill] sm:$0xff] %v8159_v39  ;;  %11943 = vst [vmem:[#allocation344_spill] sm:$0xff] %v8161_v11  ;;  %v3155_v39 = vmul.f32 %v7668_v1, %v3154_v45 }
 0x3d3   : > { %3141 = vrot.lane.b32.xlu1 %v3135_v27, %s6341_s11  ;;  %3125 = vrot.lane.b32.xlu0 %v3117_v30, %s6341_s11  ;;  %v3174_v27 = vstv %s5843_s22  ;;  %s5858_s22 = sld [smem:[#allocation3 + $0x214]] }
 0x3d4   : > { %v3175_v7 = vmul.f32 %v7668_v1, %v3174_v27 }
 0x3d5   : > { %v8167_v3 = vpop.permute.xlu1 %2760  ;;  %v8169_v0 = vpop.permute.xlu0 %2758 }
 0x3d6   : > { %11944 = vst [vmem:[#allocation345_spill] sm:$0xff] %v8167_v3  ;;  %11945 = vst [vmem:[#allocation346_spill] sm:$0xff] %v8169_v0 }
 0x3d7   : > { %3145 = vrot.lane.b32.xlu1 %v3137_v59, %s6341_s11  ;;  %3143 = vrot.lane.b32.xlu0 %v3136_v54, %s6341_s11  ;;  %v3157_v59 = vmul.f32 %v7646_v44, %v3154_v45 }
 0x3d9   : > { %v8175_v30 = vpop.permute.xlu1 %2779  ;;  %v8177_v11 = vpop.permute.xlu0 %2762 }
 0x3da   : > { %11946 = vst [vmem:[#allocation347_spill] sm:$0xff] %v8175_v30  ;;  %11947 = vst [vmem:[#allocation348_spill] sm:$0xff] %v8177_v11  ;;  %v3177_v30 = vmul.f32 %v7646_v44, %v3174_v27  ;;  %v3176_v11 = vmul.f32 %v7657_v8, %v3174_v27 }
 0x3db   : > { %3163 = vrot.lane.b32.xlu1 %v3156_v22, %s6341_s11  ;;  %3161 = vrot.lane.b32.xlu0 %v3155_v39, %s6341_s11  ;;  %v3194_v22 = vstv %s5844_s15  ;;  %s5859_s15 = sld [smem:[#allocation3 + $0x294]] }
 0x3dc   : > { %v3196_v45 = vmul.f32 %v7657_v8, %v3194_v22 }
 0x3dd   : > { %v8183_v54 = vpop.permute.xlu1 %2783  ;;  %v8185_v0 = vpop.permute.xlu0 %2781 }
 0x3de   : > { %11948 = vst [vmem:[#allocation349_spill] sm:$0xff] %v8183_v54  ;;  %11949 = vst [vmem:[#allocation350_spill] sm:$0xff] %v8185_v0  ;;  %v3214_v54 = vstv %s5845_s0  ;;  %s5860_s0 = sld [smem:[#allocation3 + $0x314]] }
 0x3df   : > { %3181 = vrot.lane.b32.xlu1 %v3175_v7, %s6341_s11  ;;  %3165 = vrot.lane.b32.xlu0 %v3157_v59, %s6341_s11  ;;  %v3195_v7 = vmul.f32 %v7668_v1, %v3194_v22  ;;  %v3215_v27 = vmul.f32 %v7668_v1, %v3214_v54 }
 0x3e1   : > { %v8191_v3 = vpop.permute.xlu1 %2801  ;;  %v8193_v39 = vpop.permute.xlu0 %2799 }
 0x3e2   : > { %11950 = vst [vmem:[#allocation351_spill] sm:$0xff] %v8191_v3  ;;  %11951 = vst [vmem:[#allocation352_spill] sm:$0xff] %v8193_v39 }
 0x3e3   : > { %3185 = vrot.lane.b32.xlu1 %v3177_v30, %s6341_s11  ;;  %3183 = vrot.lane.b32.xlu0 %v3176_v11, %s6341_s11  ;;  %v3197_v11 = vmul.f32 %v7646_v44, %v3194_v22  ;;  %v8225_v22 = vld [vmem:[%s6569_s12 + $0x8] sm:$0xff] }
 0x3e5   : > { %v8199_v59 = vpop.permute.xlu1 %2819  ;;  %v8201_v0 = vpop.permute.xlu0 %2803 }
 0x3e6   : > { %11952 = vst [vmem:[#allocation353_spill] sm:$0xff] %v8199_v59  ;;  %11953 = vst [vmem:[#allocation354_spill] sm:$0xff] %v8201_v0  ;;  %v8214_v59 = vld [vmem:[%s6576_s27] sm:$0xff]  ;;  %v3234_v0 = vstv %s5846_s6  ;;  %s5861_s6 = sld [smem:[#allocation3 + $0x394]] }
 0x3e7   : > { %3203 = vrot.lane.b32.xlu1 %v3196_v45, %s6341_s11  ;;  %3201 = vrot.lane.b32.xlu0 %v3195_v7, %s6341_s11  ;;  %v3217_v45 = vmul.f32 %v8214_v59, %v3214_v54  ;;  %v3216_v7 = vmul.f32 %v7657_v8, %v3214_v54  ;;  %v8236_v54 = vld [vmem:[%s6569_s12] sm:$0xff] }
 0x3e9   : > { %v8207_v30 = vpop.permute.xlu1 %2823  ;;  %v8209_v39 = vpop.permute.xlu0 %2821 }
 0x3ea   : > { %11954 = vst [vmem:[#allocation355_spill] sm:$0xff] %v8207_v30  ;;  %11955 = vst [vmem:[#allocation356_spill] sm:$0xff] %v8209_v39  ;;  %v3255_v30 = vstv %s5847_s7  ;;  %s5862_s7 = sld [smem:[#allocation3 + $0x15]] }
 0x3eb   : > { %3221 = vrot.lane.b32.xlu1 %v3215_v27, %s6341_s11  ;;  %3205 = vrot.lane.b32.xlu0 %v3197_v11, %s6341_s11  ;;  %v3236_v27 = vmul.f32 %v8225_v22, %v3234_v0  ;;  %v3235_v11 = vmul.f32 %v7668_v1, %v3234_v0 }
 0x3ed   : > { %v8218_v3 = vpop.permute.xlu1 %2841  ;;  %v8220_v44 = vpop.permute.xlu0 %2839 }
 0x3ee   : > { %11956 = vst [vmem:[#allocation357_spill] sm:$0xff] %v8218_v3  ;;  %11957 = vst [vmem:[#allocation358_spill] sm:$0xff] %v8220_v44 }
 0x3ef   : > { %3225 = vrot.lane.b32.xlu1 %v3217_v45, %s6341_s11  ;;  %3223 = vrot.lane.b32.xlu0 %v3216_v7, %s6341_s11  ;;  %v3256_v45 = vmul.f32 %v8236_v54, %v3255_v30  ;;  %v3237_v7 = vmul.f32 %v8214_v59, %v3234_v0  ;;  %s5856_s11 = sld [smem:[#allocation3 + $0x114]] }
 0x3f1   : > { %v8229_v39 = vpop.permute.xlu1 %2859  ;;  %v8231_v8 = vpop.permute.xlu0 %2843 }
 0x3f2   : > { %11958 = vst [vmem:[#allocation359_spill] sm:$0xff] %v8229_v39  ;;  %11959 = vst [vmem:[#allocation360_spill] sm:$0xff] %v8231_v8  ;;  %v3258_v39 = vmul.f32 %v8214_v59, %v3255_v30 }
 0x3f3   : > { %3243 = vrot.lane.b32.xlu1 %v3236_v27, %s6342_s25  ;;  %3241 = vrot.lane.b32.xlu0 %v3235_v11, %s6342_s25  ;;  %v3257_v27 = vmul.f32 %v8225_v22, %v3255_v30  ;;  %v3275_v11 = vstv %s5848_s23  ;;  %s5863_s23 = sld [smem:[#allocation3 + $0x95]] }
 0x3f4   : > { %v3277_v0 = vmul.f32 %v8225_v22, %v3275_v11 }
 0x3f5   : > { %v8240_v44 = vpop.permute.xlu1 %2863  ;;  %v8242_v1 = vpop.permute.xlu0 %2861 }
 0x3f6   : > { %11960 = vst [vmem:[#allocation361_spill] sm:$0xff] %v8240_v44  ;;  %11961 = vst [vmem:[#allocation362_spill] sm:$0xff] %v8242_v1  ;;  %v3276_v44 = vmul.f32 %v8236_v54, %v3275_v11 }
 0x3f7   : > { %3262 = vrot.lane.b32.xlu1 %v3256_v45, %s6342_s25  ;;  %3245 = vrot.lane.b32.xlu0 %v3237_v7, %s6342_s25  ;;  %v3295_v45 = vstv %s5849_s9  ;;  %s6344_s9 = smov 107  }
 0x3f8   : > { %v3296_v30 = vmul.f32 %v8236_v54, %v3295_v45 }
 0x3f9   : > { %v8248_v8 = vpop.permute.xlu1 %2881  ;;  %v8250_v3 = vpop.permute.xlu0 %2879 }
 0x3fa   : > { %11962 = vst [vmem:[#allocation363_spill] sm:$0xff] %v8248_v8  ;;  %11963 = vst [vmem:[#allocation364_spill] sm:$0xff] %v8250_v3 }
 0x3fb   : > { %3266 = vrot.lane.b32.xlu1 %v3258_v39, %s6342_s25  ;;  %3264 = vrot.lane.b32.xlu0 %v3257_v27, %s6342_s25  ;;  %v3278_v39 = vmul.f32 %v8214_v59, %v3275_v11 }
 0x3fd   : > { %v8256_v7 = vpop.permute.xlu1 %2899  ;;  %v8258_v1 = vpop.permute.xlu0 %2883 }
 0x3fe   : > { %11964 = vst [vmem:[#allocation365_spill] sm:$0xff] %v8256_v7  ;;  %11965 = vst [vmem:[#allocation366_spill] sm:$0xff] %v8258_v1  ;;  %v3298_v7 = vmul.f32 %v8214_v59, %v3295_v45  ;;  %v3297_v1 = vmul.f32 %v8225_v22, %v3295_v45 }
 0x3ff   : > { %3284 = vrot.lane.b32.xlu1 %v3277_v0, %s6342_s25  ;;  %3282 = vrot.lane.b32.xlu0 %v3276_v44, %s6342_s25  ;;  %v3315_v0 = vstv %s5850_s21  ;;  %s5865_s21 = sld [smem:[#allocation3 + $0x195]] }
 0x400   : > { %v3317_v11 = vmul.f32 %v8225_v22, %v3315_v0 }
 0x401   : > { %v8264_v27 = vpop.permute.xlu1 %2903  ;;  %v8266_v3 = vpop.permute.xlu0 %2901 }
 0x402   : > { %11966 = vst [vmem:[#allocation367_spill] sm:$0xff] %v8264_v27  ;;  %11967 = vst [vmem:[#allocation368_spill] sm:$0xff] %v8266_v3  ;;  %v3316_v27 = vmul.f32 %v8236_v54, %v3315_v0 }
 0x403   : > { %3302 = vrot.lane.b32.xlu1 %v3296_v30, %s6342_s25  ;;  %3286 = vrot.lane.b32.xlu0 %v3278_v39, %s6342_s25  ;;  %v3335_v30 = vstv %s5851_s26  ;;  %s5866_s26 = sld [smem:[#allocation3 + $0x215]] }
 0x404   : > { %v3336_v45 = vmul.f32 %v8236_v54, %v3335_v30 }
 0x405   : > { %v8272_v8 = vpop.permute.xlu1 %2921  ;;  %v8274_v44 = vpop.permute.xlu0 %2919 }
 0x406   : > { %11968 = vst [vmem:[#allocation369_spill] sm:$0xff] %v8272_v8  ;;  %11969 = vst [vmem:[#allocation370_spill] sm:$0xff] %v8274_v44 }
 0x407   : > { %3306 = vrot.lane.b32.xlu1 %v3298_v7, %s6342_s25  ;;  %3304 = vrot.lane.b32.xlu0 %v3297_v1, %s6342_s25  ;;  %v3318_v7 = vmul.f32 %v8214_v59, %v3315_v0 }
 0x409   : > { %v8280_v39 = vpop.permute.xlu1 %2940  ;;  %v8282_v3 = vpop.permute.xlu0 %2923 }
 0x40a   : > { %11970 = vst [vmem:[#allocation371_spill] sm:$0xff] %v8280_v39  ;;  %11971 = vst [vmem:[#allocation372_spill] sm:$0xff] %v8282_v3  ;;  %v3338_v39 = vmul.f32 %v8214_v59, %v3335_v30  ;;  %v3337_v3 = vmul.f32 %v8225_v22, %v3335_v30 }
 0x40b   : > { %3324 = vrot.lane.b32.xlu1 %v3317_v11, %s6342_s25  ;;  %3322 = vrot.lane.b32.xlu0 %v3316_v27, %s6342_s25  ;;  %v3355_v11 = vstv %s5852_s8  ;;  %s5867_s8 = sld [smem:[#allocation3 + $0x295]] }
 0x40c   : > { %v3357_v0 = vmul.f32 %v8225_v22, %v3355_v11 }
 0x40d   : > { %v8288_v1 = vpop.permute.xlu1 %2944  ;;  %v8290_v44 = vpop.permute.xlu0 %2942 }
 0x40e   : > { %11972 = vst [vmem:[#allocation373_spill] sm:$0xff] %v8288_v1  ;;  %11973 = vst [vmem:[#allocation374_spill] sm:$0xff] %v8290_v44  ;;  %v3356_v1 = vmul.f32 %v8236_v54, %v3355_v11 }
 0x40f   : > { %3342 = vrot.lane.b32.xlu1 %v3336_v45, %s6342_s25  ;;  %3326 = vrot.lane.b32.xlu0 %v3318_v7, %s6342_s25  ;;  %v3375_v45 = vstv %s5853_s10  ;;  %s5868_s10 = sld [smem:[#allocation3 + $0x315]] }
 0x410   : > { %v3376_v30 = vmul.f32 %v8236_v54, %v3375_v45 }
 0x411   : > { %v8296_v8 = vpop.permute.xlu1 %2962  ;;  %v8298_v27 = vpop.permute.xlu0 %2960 }
 0x412   : > { %11974 = vst [vmem:[#allocation375_spill] sm:$0xff] %v8296_v8  ;;  %11975 = vst [vmem:[#allocation376_spill] sm:$0xff] %v8298_v27 }
 0x413   : > { %3346 = vrot.lane.b32.xlu1 %v3338_v39, %s6342_s25  ;;  %3344 = vrot.lane.b32.xlu0 %v3337_v3, %s6342_s25  ;;  %v3358_v39 = vmul.f32 %v8214_v59, %v3355_v11 }
 0x415   : > { %v8304_v7 = vpop.permute.xlu1 %2980  ;;  %v8306_v44 = vpop.permute.xlu0 %2964 }
 0x416   : > { %11976 = vst [vmem:[#allocation377_spill] sm:$0xff] %v8304_v7  ;;  %11977 = vst [vmem:[#allocation378_spill] sm:$0xff] %v8306_v44  ;;  %v3378_v7 = vmul.f32 %v8214_v59, %v3375_v45  ;;  %v3377_v44 = vmul.f32 %v8225_v22, %v3375_v45 }
 0x417   : > { %3364 = vrot.lane.b32.xlu1 %v3357_v0, %s6342_s25  ;;  %3362 = vrot.lane.b32.xlu0 %v3356_v1, %s6342_s25  ;;  %v3395_v0 = vstv %s5854_s30  ;;  %s5869_s30 = sld [smem:[#allocation3 + $0x395]] }
 0x418   : > { %v3397_v11 = vmul.f32 %v8225_v22, %v3395_v0 }
 0x419   : > { %v8312_v3 = vpop.permute.xlu1 %2984  ;;  %v8314_v27 = vpop.permute.xlu0 %2982 }
 0x41a   : > { %11978 = vst [vmem:[#allocation379_spill] sm:$0xff] %v8312_v3  ;;  %11979 = vst [vmem:[#allocation380_spill] sm:$0xff] %v8314_v27  ;;  %v3396_v3 = vmul.f32 %v8236_v54, %v3395_v0 }
 0x41b   : > { %3382 = vrot.lane.b32.xlu1 %v3376_v30, %s6342_s25  ;;  %3366 = vrot.lane.b32.xlu0 %v3358_v39, %s6342_s25  ;;  %v3416_v30 = vstv %s5855_s29  ;;  %s5870_s29 = sld [smem:[#allocation3 + $0x16]] }
 0x41c   : > { %v3417_v45 = vmul.f32 %v8236_v54, %v3416_v30 }
 0x41d   : > { %v8320_v8 = vpop.permute.xlu1 %3002  ;;  %v8322_v1 = vpop.permute.xlu0 %3000 }
 0x41e   : > { %11980 = vst [vmem:[#allocation381_spill] sm:$0xff] %v8320_v8  ;;  %11981 = vst [vmem:[#allocation382_spill] sm:$0xff] %v8322_v1 }
 0x41f   : > { %3386 = vrot.lane.b32.xlu1 %v3378_v7, %s6342_s25  ;;  %3384 = vrot.lane.b32.xlu0 %v3377_v44, %s6342_s25  ;;  %v3398_v7 = vmul.f32 %v8214_v59, %v3395_v0  ;;  %s5864_s25 = sld [smem:[#allocation3 + $0x115]] }
 0x421   : > { %v8328_v39 = vpop.permute.xlu1 %3020  ;;  %v8330_v27 = vpop.permute.xlu0 %3004 }
 0x422   : > { %11982 = vst [vmem:[#allocation383_spill] sm:$0xff] %v8328_v39  ;;  %11983 = vst [vmem:[#allocation384_spill] sm:$0xff] %v8330_v27  ;;  %v3419_v39 = vmul.f32 %v8214_v59, %v3416_v30  ;;  %v3418_v27 = vmul.f32 %v8225_v22, %v3416_v30 }
 0x423   : > { %3404 = vrot.lane.b32.xlu1 %v3397_v11, %s6343_s28  ;;  %3402 = vrot.lane.b32.xlu0 %v3396_v3, %s6343_s28  ;;  %v3436_v11 = vstv %s5856_s11  ;;  %s5871_s11 = sld [smem:[#allocation3 + $0x96]] }
 0x424   : > { %v3438_v0 = vmul.f32 %v8225_v22, %v3436_v11 }
 0x425   : > { %v8336_v44 = vpop.permute.xlu1 %3024  ;;  %v8338_v1 = vpop.permute.xlu0 %3022 }
 0x426   : > { %11984 = vst [vmem:[#allocation385_spill] sm:$0xff] %v8336_v44  ;;  %11985 = vst [vmem:[#allocation386_spill] sm:$0xff] %v8338_v1  ;;  %v3437_v44 = vmul.f32 %v8236_v54, %v3436_v11 }
 0x427   : > { %3423 = vrot.lane.b32.xlu1 %v3417_v45, %s6343_s28  ;;  %3406 = vrot.lane.b32.xlu0 %v3398_v7, %s6343_s28  ;;  %v3456_v45 = vstv %s5857_s4  ;;  %s6345_s4 = smov 106  }
 0x428   : > { %v3457_v30 = vmul.f32 %v8236_v54, %v3456_v45 }
 0x429   : > { %v8344_v8 = vpop.permute.xlu1 %3042  ;;  %v8346_v3 = vpop.permute.xlu0 %3040 }
 0x42a   : > { %11986 = vst [vmem:[#allocation387_spill] sm:$0xff] %v8344_v8  ;;  %11987 = vst [vmem:[#allocation388_spill] sm:$0xff] %v8346_v3 }
 0x42b   : > { %3427 = vrot.lane.b32.xlu1 %v3419_v39, %s6343_s28  ;;  %3425 = vrot.lane.b32.xlu0 %v3418_v27, %s6343_s28  ;;  %v3439_v39 = vmul.f32 %v8214_v59, %v3436_v11 }
 0x42d   : > { %v8352_v7 = vpop.permute.xlu1 %3060  ;;  %v8354_v1 = vpop.permute.xlu0 %3044 }
 0x42e   : > { %11988 = vst [vmem:[#allocation389_spill] sm:$0xff] %v8352_v7  ;;  %11989 = vst [vmem:[#allocation390_spill] sm:$0xff] %v8354_v1  ;;  %v3459_v7 = vmul.f32 %v8214_v59, %v3456_v45  ;;  %v3458_v1 = vmul.f32 %v8225_v22, %v3456_v45 }
 0x42f   : > { %3445 = vrot.lane.b32.xlu1 %v3438_v0, %s6343_s28  ;;  %3443 = vrot.lane.b32.xlu0 %v3437_v44, %s6343_s28  ;;  %v3476_v0 = vstv %s5858_s22  ;;  %s5873_s22 = sld [smem:[#allocation3 + $0x196]] }
 0x430   : > { %v3478_v11 = vmul.f32 %v8225_v22, %v3476_v0 }
 0x431   : > { %v8360_v27 = vpop.permute.xlu1 %3064  ;;  %v8362_v3 = vpop.permute.xlu0 %3062 }
 0x432   : > { %11990 = vst [vmem:[#allocation391_spill] sm:$0xff] %v8360_v27  ;;  %11991 = vst [vmem:[#allocation392_spill] sm:$0xff] %v8362_v3  ;;  %v3477_v27 = vmul.f32 %v8236_v54, %v3476_v0 }
 0x433   : > { %3463 = vrot.lane.b32.xlu1 %v3457_v30, %s6343_s28  ;;  %3447 = vrot.lane.b32.xlu0 %v3439_v39, %s6343_s28  ;;  %v3496_v30 = vstv %s5859_s15  ;;  %s5874_s15 = sld [smem:[#allocation3 + $0x216]] }
 0x434   : > { %v3497_v45 = vmul.f32 %v8236_v54, %v3496_v30 }
 0x435   : > { %v8368_v8 = vpop.permute.xlu1 %3082  ;;  %v8370_v44 = vpop.permute.xlu0 %3080 }
 0x436   : > { %11992 = vst [vmem:[#allocation393_spill] sm:$0xff] %v8368_v8  ;;  %11993 = vst [vmem:[#allocation394_spill] sm:$0xff] %v8370_v44 }
 0x437   : > { %3467 = vrot.lane.b32.xlu1 %v3459_v7, %s6343_s28  ;;  %3465 = vrot.lane.b32.xlu0 %v3458_v1, %s6343_s28  ;;  %v3479_v7 = vmul.f32 %v8214_v59, %v3476_v0 }
 0x439   : > { %v8376_v39 = vpop.permute.xlu1 %3101  ;;  %v8378_v3 = vpop.permute.xlu0 %3084 }
 0x43a   : > { %11994 = vst [vmem:[#allocation395_spill] sm:$0xff] %v8376_v39  ;;  %11995 = vst [vmem:[#allocation396_spill] sm:$0xff] %v8378_v3  ;;  %v3499_v39 = vmul.f32 %v8214_v59, %v3496_v30  ;;  %v3498_v3 = vmul.f32 %v8225_v22, %v3496_v30 }
 0x43b   : > { %3485 = vrot.lane.b32.xlu1 %v3478_v11, %s6343_s28  ;;  %3483 = vrot.lane.b32.xlu0 %v3477_v27, %s6343_s28  ;;  %v3516_v11 = vstv %s5860_s0  ;;  %s5875_s0 = sld [smem:[#allocation3 + $0x296]] }
 0x43c   : > { %v3518_v0 = vmul.f32 %v8225_v22, %v3516_v11 }
 0x43d   : > { %v8384_v1 = vpop.permute.xlu1 %3105  ;;  %v8386_v44 = vpop.permute.xlu0 %3103 }
 0x43e   : > { %11996 = vst [vmem:[#allocation397_spill] sm:$0xff] %v8384_v1  ;;  %11997 = vst [vmem:[#allocation398_spill] sm:$0xff] %v8386_v44  ;;  %v3517_v1 = vmul.f32 %v8236_v54, %v3516_v11 }
 0x43f   : > { %3503 = vrot.lane.b32.xlu1 %v3497_v45, %s6343_s28  ;;  %3487 = vrot.lane.b32.xlu0 %v3479_v7, %s6343_s28  ;;  %v3536_v45 = vstv %s5861_s6  ;;  %s5876_s6 = sld [smem:[#allocation3 + $0x316]] }
 0x440   : > { %v3537_v30 = vmul.f32 %v8236_v54, %v3536_v45 }
 0x441   : > { %v8392_v8 = vpop.permute.xlu1 %3123  ;;  %v8394_v27 = vpop.permute.xlu0 %3121 }
 0x442   : > { %11998 = vst [vmem:[#allocation399_spill] sm:$0xff] %v8392_v8  ;;  %11999 = vst [vmem:[#allocation400_spill] sm:$0xff] %v8394_v27 }
 0x443   : > { %3507 = vrot.lane.b32.xlu1 %v3499_v39, %s6343_s28  ;;  %3505 = vrot.lane.b32.xlu0 %v3498_v3, %s6343_s28  ;;  %v3519_v39 = vmul.f32 %v8214_v59, %v3516_v11 }
 0x445   : > { %v8400_v7 = vpop.permute.xlu1 %3141  ;;  %v8402_v44 = vpop.permute.xlu0 %3125 }
 0x446   : > { %12000 = vst [vmem:[#allocation401_spill] sm:$0xff] %v8400_v7  ;;  %12001 = vst [vmem:[#allocation402_spill] sm:$0xff] %v8402_v44  ;;  %v3539_v7 = vmul.f32 %v8214_v59, %v3536_v45  ;;  %v3538_v44 = vmul.f32 %v8225_v22, %v3536_v45 }
 0x447   : > { %3525 = vrot.lane.b32.xlu1 %v3518_v0, %s6343_s28  ;;  %3523 = vrot.lane.b32.xlu0 %v3517_v1, %s6343_s28  ;;  %v3556_v0 = vstv %s5862_s7  ;;  %s5877_s7 = sld [smem:[#allocation3 + $0x396]] }
 0x448   : > { %v3558_v11 = vmul.f32 %v8225_v22, %v3556_v0 }
 0x449   : > { %v8408_v3 = vpop.permute.xlu1 %3145  ;;  %v8410_v27 = vpop.permute.xlu0 %3143 }
 0x44a   : > { %12002 = vst [vmem:[#allocation403_spill] sm:$0xff] %v8408_v3  ;;  %12003 = vst [vmem:[#allocation404_spill] sm:$0xff] %v8410_v27  ;;  %v3557_v3 = vmul.f32 %v8236_v54, %v3556_v0 }
 0x44b   : > { %3543 = vrot.lane.b32.xlu1 %v3537_v30, %s6343_s28  ;;  %3527 = vrot.lane.b32.xlu0 %v3519_v39, %s6343_s28  ;;  %v3577_v30 = vstv %s5863_s23  ;;  %s5878_s23 = sld [smem:[#allocation3 + $0x17]] }
 0x44c   : > { %v3578_v45 = vmul.f32 %v8236_v54, %v3577_v30 }
 0x44d   : > { %v8416_v8 = vpop.permute.xlu1 %3163  ;;  %v8418_v1 = vpop.permute.xlu0 %3161 }
 0x44e   : > { %12004 = vst [vmem:[#allocation405_spill] sm:$0xff] %v8416_v8  ;;  %12005 = vst [vmem:[#allocation406_spill] sm:$0xff] %v8418_v1 }
 0x44f   : > { %3547 = vrot.lane.b32.xlu1 %v3539_v7, %s6343_s28  ;;  %3545 = vrot.lane.b32.xlu0 %v3538_v44, %s6343_s28  ;;  %v3559_v7 = vmul.f32 %v8214_v59, %v3556_v0  ;;  %s5872_s28 = sld [smem:[#allocation3 + $0x116]] }
 0x451   : > { %v8424_v39 = vpop.permute.xlu1 %3181  ;;  %v8426_v27 = vpop.permute.xlu0 %3165 }
 0x452   : > { %12006 = vst [vmem:[#allocation407_spill] sm:$0xff] %v8424_v39  ;;  %12007 = vst [vmem:[#allocation408_spill] sm:$0xff] %v8426_v27  ;;  %v3580_v39 = vmul.f32 %v8214_v59, %v3577_v30  ;;  %v3579_v27 = vmul.f32 %v8225_v22, %v3577_v30 }
 0x453   : > { %3565 = vrot.lane.b32.xlu1 %v3558_v11, %s6344_s9  ;;  %3563 = vrot.lane.b32.xlu0 %v3557_v3, %s6344_s9  ;;  %v3597_v11 = vstv %s5864_s25  ;;  %s5879_s25 = sld [smem:[#allocation3 + $0x97]] }
 0x454   : > { %v3599_v0 = vmul.f32 %v8225_v22, %v3597_v11 }
 0x455   : > { %v8432_v44 = vpop.permute.xlu1 %3185  ;;  %v8434_v1 = vpop.permute.xlu0 %3183 }
 0x456   : > { %12008 = vst [vmem:[#allocation409_spill] sm:$0xff] %v8432_v44  ;;  %12009 = vst [vmem:[#allocation410_spill] sm:$0xff] %v8434_v1  ;;  %v3598_v44 = vmul.f32 %v8236_v54, %v3597_v11 }
 0x457   : > { %3584 = vrot.lane.b32.xlu1 %v3578_v45, %s6344_s9  ;;  %3567 = vrot.lane.b32.xlu0 %v3559_v7, %s6344_s9  ;;  %v3617_v45 = vstv %s5865_s21  ;;  %s6346_s21 = smov 105  }
 0x458   : > { %v3618_v30 = vmul.f32 %v8236_v54, %v3617_v45 }
 0x459   : > { %v8440_v8 = vpop.permute.xlu1 %3203  ;;  %v8442_v3 = vpop.permute.xlu0 %3201 }
 0x45a   : > { %12010 = vst [vmem:[#allocation411_spill] sm:$0xff] %v8440_v8  ;;  %12011 = vst [vmem:[#allocation412_spill] sm:$0xff] %v8442_v3 }
 0x45b   : > { %3588 = vrot.lane.b32.xlu1 %v3580_v39, %s6344_s9  ;;  %3586 = vrot.lane.b32.xlu0 %v3579_v27, %s6344_s9  ;;  %v3600_v39 = vmul.f32 %v8214_v59, %v3597_v11 }
 0x45d   : > { %v8448_v7 = vpop.permute.xlu1 %3221  ;;  %v8450_v1 = vpop.permute.xlu0 %3205 }
 0x45e   : > { %12012 = vst [vmem:[#allocation413_spill] sm:$0xff] %v8448_v7  ;;  %12013 = vst [vmem:[#allocation414_spill] sm:$0xff] %v8450_v1  ;;  %v3620_v7 = vmul.f32 %v8214_v59, %v3617_v45  ;;  %v3619_v1 = vmul.f32 %v8225_v22, %v3617_v45 }
 0x45f   : > { %3606 = vrot.lane.b32.xlu1 %v3599_v0, %s6344_s9  ;;  %3604 = vrot.lane.b32.xlu0 %v3598_v44, %s6344_s9  ;;  %v3637_v0 = vstv %s5866_s26  ;;  %s5881_s26 = sld [smem:[#allocation3 + $0x197]] }
 0x460   : > { %v3639_v11 = vmul.f32 %v8225_v22, %v3637_v0 }
 0x461   : > { %v8456_v27 = vpop.permute.xlu1 %3225  ;;  %v8458_v3 = vpop.permute.xlu0 %3223 }
 0x462   : > { %12014 = vst [vmem:[#allocation415_spill] sm:$0xff] %v8456_v27  ;;  %12015 = vst [vmem:[#allocation416_spill] sm:$0xff] %v8458_v3  ;;  %v3638_v27 = vmul.f32 %v8236_v54, %v3637_v0 }
 0x463   : > { %3624 = vrot.lane.b32.xlu1 %v3618_v30, %s6344_s9  ;;  %3608 = vrot.lane.b32.xlu0 %v3600_v39, %s6344_s9  ;;  %v3657_v30 = vstv %s5867_s8  ;;  %s5882_s8 = sld [smem:[#allocation3 + $0x217]] }
 0x464   : > { %v3658_v45 = vmul.f32 %v8236_v54, %v3657_v30 }
 0x465   : > { %v8464_v8 = vpop.permute.xlu1 %3243  ;;  %v8466_v44 = vpop.permute.xlu0 %3241 }
 0x466   : > { %12016 = vst [vmem:[#allocation417_spill] sm:$0xff] %v8464_v8  ;;  %12017 = vst [vmem:[#allocation418_spill] sm:$0xff] %v8466_v44 }
 0x467   : > { %3628 = vrot.lane.b32.xlu1 %v3620_v7, %s6344_s9  ;;  %3626 = vrot.lane.b32.xlu0 %v3619_v1, %s6344_s9  ;;  %v3640_v7 = vmul.f32 %v8214_v59, %v3637_v0 }
 0x469   : > { %v8472_v39 = vpop.permute.xlu1 %3262  ;;  %v8474_v3 = vpop.permute.xlu0 %3245 }
 0x46a   : > { %12018 = vst [vmem:[#allocation419_spill] sm:$0xff] %v8472_v39  ;;  %12019 = vst [vmem:[#allocation420_spill] sm:$0xff] %v8474_v3  ;;  %v3660_v39 = vmul.f32 %v8214_v59, %v3657_v30  ;;  %v3659_v3 = vmul.f32 %v8225_v22, %v3657_v30 }
 0x46b   : > { %3646 = vrot.lane.b32.xlu1 %v3639_v11, %s6344_s9  ;;  %3644 = vrot.lane.b32.xlu0 %v3638_v27, %s6344_s9  ;;  %v3677_v11 = vstv %s5868_s10  ;;  %s5883_s10 = sld [smem:[#allocation3 + $0x297]] }
 0x46c   : > { %v3679_v0 = vmul.f32 %v8225_v22, %v3677_v11 }
 0x46d   : > { %v8480_v1 = vpop.permute.xlu1 %3266  ;;  %v8482_v44 = vpop.permute.xlu0 %3264 }
 0x46e   : > { %12020 = vst [vmem:[#allocation421_spill] sm:$0xff] %v8480_v1  ;;  %12021 = vst [vmem:[#allocation422_spill] sm:$0xff] %v8482_v44  ;;  %v3678_v1 = vmul.f32 %v8236_v54, %v3677_v11 }
 0x46f   : > { %3664 = vrot.lane.b32.xlu1 %v3658_v45, %s6344_s9  ;;  %3648 = vrot.lane.b32.xlu0 %v3640_v7, %s6344_s9  ;;  %v3697_v45 = vstv %s5869_s30  ;;  %s5884_s30 = sld [smem:[#allocation3 + $0x317]] }
 0x470   : > { %v3698_v30 = vmul.f32 %v8236_v54, %v3697_v45 }
 0x471   : > { %v8488_v8 = vpop.permute.xlu1 %3284  ;;  %v8490_v27 = vpop.permute.xlu0 %3282 }
 0x472   : > { %12022 = vst [vmem:[#allocation423_spill] sm:$0xff] %v8488_v8  ;;  %12023 = vst [vmem:[#allocation424_spill] sm:$0xff] %v8490_v27 }
 0x473   : > { %3668 = vrot.lane.b32.xlu1 %v3660_v39, %s6344_s9  ;;  %3666 = vrot.lane.b32.xlu0 %v3659_v3, %s6344_s9  ;;  %v3680_v39 = vmul.f32 %v8214_v59, %v3677_v11 }
 0x475   : > { %v8496_v7 = vpop.permute.xlu1 %3302  ;;  %v8498_v44 = vpop.permute.xlu0 %3286 }
 0x476   : > { %12024 = vst [vmem:[#allocation425_spill] sm:$0xff] %v8496_v7  ;;  %12025 = vst [vmem:[#allocation426_spill] sm:$0xff] %v8498_v44  ;;  %v3700_v7 = vmul.f32 %v8214_v59, %v3697_v45  ;;  %v3699_v44 = vmul.f32 %v8225_v22, %v3697_v45 }
 0x477   : > { %3686 = vrot.lane.b32.xlu1 %v3679_v0, %s6344_s9  ;;  %3684 = vrot.lane.b32.xlu0 %v3678_v1, %s6344_s9  ;;  %v3717_v0 = vstv %s5870_s29  ;;  %s5885_s29 = sld [smem:[#allocation3 + $0x397]] }
 0x478   : > { %v3719_v11 = vmul.f32 %v8225_v22, %v3717_v0 }
 0x479   : > { %v8504_v3 = vpop.permute.xlu1 %3306  ;;  %v8506_v27 = vpop.permute.xlu0 %3304 }
 0x47a   : > { %12026 = vst [vmem:[#allocation427_spill] sm:$0xff] %v8504_v3  ;;  %12027 = vst [vmem:[#allocation428_spill] sm:$0xff] %v8506_v27  ;;  %v3718_v3 = vmul.f32 %v8236_v54, %v3717_v0 }
 0x47b   : > { %3704 = vrot.lane.b32.xlu1 %v3698_v30, %s6344_s9  ;;  %3688 = vrot.lane.b32.xlu0 %v3680_v39, %s6344_s9  ;;  %v3738_v30 = vstv %s5871_s11  ;;  %s5886_s11 = sld [smem:[#allocation3 + $0x18]] }
 0x47c   : > { %v3739_v45 = vmul.f32 %v8236_v54, %v3738_v30 }
 0x47d   : > { %v8512_v8 = vpop.permute.xlu1 %3324  ;;  %v8514_v1 = vpop.permute.xlu0 %3322 }
 0x47e   : > { %12028 = vst [vmem:[#allocation429_spill] sm:$0xff] %v8512_v8  ;;  %12029 = vst [vmem:[#allocation430_spill] sm:$0xff] %v8514_v1 }
 0x47f   : > { %3708 = vrot.lane.b32.xlu1 %v3700_v7, %s6344_s9  ;;  %3706 = vrot.lane.b32.xlu0 %v3699_v44, %s6344_s9  ;;  %v3720_v7 = vmul.f32 %v8214_v59, %v3717_v0  ;;  %s5880_s9 = sld [smem:[#allocation3 + $0x117]] }
 0x481   : > { %v8520_v39 = vpop.permute.xlu1 %3342  ;;  %v8522_v27 = vpop.permute.xlu0 %3326 }
 0x482   : > { %12030 = vst [vmem:[#allocation431_spill] sm:$0xff] %v8520_v39  ;;  %12031 = vst [vmem:[#allocation432_spill] sm:$0xff] %v8522_v27  ;;  %v3741_v39 = vmul.f32 %v8214_v59, %v3738_v30  ;;  %v3740_v27 = vmul.f32 %v8225_v22, %v3738_v30 }
 0x483   : > { %3726 = vrot.lane.b32.xlu1 %v3719_v11, %s6345_s4  ;;  %3724 = vrot.lane.b32.xlu0 %v3718_v3, %s6345_s4  ;;  %v3758_v11 = vstv %s5872_s28  ;;  %s5887_s28 = sld [smem:[#allocation3 + $0x98]] }
 0x484   : > { %v3760_v0 = vmul.f32 %v8225_v22, %v3758_v11 }
 0x485   : > { %v8528_v44 = vpop.permute.xlu1 %3346  ;;  %v8530_v1 = vpop.permute.xlu0 %3344 }
 0x486   : > { %12032 = vst [vmem:[#allocation433_spill] sm:$0xff] %v8528_v44  ;;  %12033 = vst [vmem:[#allocation434_spill] sm:$0xff] %v8530_v1  ;;  %v3759_v44 = vmul.f32 %v8236_v54, %v3758_v11 }
 0x487   : > { %3745 = vrot.lane.b32.xlu1 %v3739_v45, %s6345_s4  ;;  %3728 = vrot.lane.b32.xlu0 %v3720_v7, %s6345_s4  ;;  %v3778_v45 = vstv %s5873_s22  ;;  %s6347_s22 = smov 104  }
 0x488   : > { %v3779_v30 = vmul.f32 %v8236_v54, %v3778_v45 }
 0x489   : > { %v8536_v8 = vpop.permute.xlu1 %3364  ;;  %v8538_v3 = vpop.permute.xlu0 %3362 }
 0x48a   : > { %12034 = vst [vmem:[#allocation435_spill] sm:$0xff] %v8536_v8  ;;  %12035 = vst [vmem:[#allocation436_spill] sm:$0xff] %v8538_v3 }
 0x48b   : > { %3749 = vrot.lane.b32.xlu1 %v3741_v39, %s6345_s4  ;;  %3747 = vrot.lane.b32.xlu0 %v3740_v27, %s6345_s4  ;;  %v3761_v39 = vmul.f32 %v8214_v59, %v3758_v11 }
 0x48d   : > { %v8544_v7 = vpop.permute.xlu1 %3382  ;;  %v8546_v1 = vpop.permute.xlu0 %3366 }
 0x48e   : > { %12036 = vst [vmem:[#allocation437_spill] sm:$0xff] %v8544_v7  ;;  %12037 = vst [vmem:[#allocation438_spill] sm:$0xff] %v8546_v1  ;;  %v3781_v7 = vmul.f32 %v8214_v59, %v3778_v45  ;;  %v3780_v1 = vmul.f32 %v8225_v22, %v3778_v45 }
 0x48f   : > { %3767 = vrot.lane.b32.xlu1 %v3760_v0, %s6345_s4  ;;  %3765 = vrot.lane.b32.xlu0 %v3759_v44, %s6345_s4  ;;  %v3798_v0 = vstv %s5874_s15  ;;  %s5889_s15 = sld [smem:[#allocation3 + $0x198]] }
 0x490   : > { %v3800_v11 = vmul.f32 %v8225_v22, %v3798_v0 }
 0x491   : > { %v8552_v27 = vpop.permute.xlu1 %3386  ;;  %v8554_v3 = vpop.permute.xlu0 %3384 }
 0x492   : > { %12038 = vst [vmem:[#allocation439_spill] sm:$0xff] %v8552_v27  ;;  %12039 = vst [vmem:[#allocation440_spill] sm:$0xff] %v8554_v3  ;;  %v3799_v27 = vmul.f32 %v8236_v54, %v3798_v0 }
 0x493   : > { %3785 = vrot.lane.b32.xlu1 %v3779_v30, %s6345_s4  ;;  %3769 = vrot.lane.b32.xlu0 %v3761_v39, %s6345_s4  ;;  %v3818_v30 = vstv %s5875_s0  ;;  %s5890_s0 = sld [smem:[#allocation3 + $0x218]] }
 0x494   : > { %v3819_v45 = vmul.f32 %v8236_v54, %v3818_v30 }
 0x495   : > { %v8560_v8 = vpop.permute.xlu1 %3404  ;;  %v8562_v44 = vpop.permute.xlu0 %3402 }
 0x496   : > { %12040 = vst [vmem:[#allocation441_spill] sm:$0xff] %v8560_v8  ;;  %12041 = vst [vmem:[#allocation442_spill] sm:$0xff] %v8562_v44 }
 0x497   : > { %3789 = vrot.lane.b32.xlu1 %v3781_v7, %s6345_s4  ;;  %3787 = vrot.lane.b32.xlu0 %v3780_v1, %s6345_s4  ;;  %v3801_v7 = vmul.f32 %v8214_v59, %v3798_v0 }
 0x499   : > { %v8568_v39 = vpop.permute.xlu1 %3423  ;;  %v8570_v3 = vpop.permute.xlu0 %3406 }
 0x49a   : > { %12042 = vst [vmem:[#allocation443_spill] sm:$0xff] %v8568_v39  ;;  %12043 = vst [vmem:[#allocation444_spill] sm:$0xff] %v8570_v3  ;;  %v3821_v39 = vmul.f32 %v8214_v59, %v3818_v30  ;;  %v3820_v3 = vmul.f32 %v8225_v22, %v3818_v30 }
 0x49b   : > { %3807 = vrot.lane.b32.xlu1 %v3800_v11, %s6345_s4  ;;  %3805 = vrot.lane.b32.xlu0 %v3799_v27, %s6345_s4  ;;  %v3838_v11 = vstv %s5876_s6  ;;  %s5891_s6 = sld [smem:[#allocation3 + $0x298]] }
 0x49c   : > { %v3840_v0 = vmul.f32 %v8225_v22, %v3838_v11 }
 0x49d   : > { %v8576_v1 = vpop.permute.xlu1 %3427  ;;  %v8578_v44 = vpop.permute.xlu0 %3425 }
 0x49e   : > { %12044 = vst [vmem:[#allocation445_spill] sm:$0xff] %v8576_v1  ;;  %12045 = vst [vmem:[#allocation446_spill] sm:$0xff] %v8578_v44  ;;  %v3839_v1 = vmul.f32 %v8236_v54, %v3838_v11 }
 0x49f   : > { %3825 = vrot.lane.b32.xlu1 %v3819_v45, %s6345_s4  ;;  %3809 = vrot.lane.b32.xlu0 %v3801_v7, %s6345_s4  ;;  %v3858_v45 = vstv %s5877_s7  ;;  %s5892_s7 = sld [smem:[#allocation3 + $0x318]] }
 0x4a0   : > { %v3859_v30 = vmul.f32 %v8236_v54, %v3858_v45 }
 0x4a1   : > { %v8584_v8 = vpop.permute.xlu1 %3445  ;;  %v8586_v27 = vpop.permute.xlu0 %3443 }
 0x4a2   : > { %12046 = vst [vmem:[#allocation447_spill] sm:$0xff] %v8584_v8  ;;  %12047 = vst [vmem:[#allocation448_spill] sm:$0xff] %v8586_v27 }
 0x4a3   : > { %3829 = vrot.lane.b32.xlu1 %v3821_v39, %s6345_s4  ;;  %3827 = vrot.lane.b32.xlu0 %v3820_v3, %s6345_s4  ;;  %v3841_v39 = vmul.f32 %v8214_v59, %v3838_v11 }
 0x4a5   : > { %v8592_v7 = vpop.permute.xlu1 %3463  ;;  %v8594_v44 = vpop.permute.xlu0 %3447 }
 0x4a6   : > { %12048 = vst [vmem:[#allocation449_spill] sm:$0xff] %v8592_v7  ;;  %12049 = vst [vmem:[#allocation450_spill] sm:$0xff] %v8594_v44  ;;  %v3861_v7 = vmul.f32 %v8214_v59, %v3858_v45  ;;  %v3860_v44 = vmul.f32 %v8225_v22, %v3858_v45 }
 0x4a7   : > { %3847 = vrot.lane.b32.xlu1 %v3840_v0, %s6345_s4  ;;  %3845 = vrot.lane.b32.xlu0 %v3839_v1, %s6345_s4  ;;  %v3878_v0 = vstv %s5878_s23  ;;  %s5893_s23 = sld [smem:[#allocation3 + $0x398]] }
 0x4a8   : > { %v3880_v11 = vmul.f32 %v8225_v22, %v3878_v0 }
 0x4a9   : > { %v8600_v3 = vpop.permute.xlu1 %3467  ;;  %v8602_v27 = vpop.permute.xlu0 %3465 }
 0x4aa   : > { %12050 = vst [vmem:[#allocation451_spill] sm:$0xff] %v8600_v3  ;;  %12051 = vst [vmem:[#allocation452_spill] sm:$0xff] %v8602_v27  ;;  %v3879_v3 = vmul.f32 %v8236_v54, %v3878_v0 }
 0x4ab   : > { %3865 = vrot.lane.b32.xlu1 %v3859_v30, %s6345_s4  ;;  %3849 = vrot.lane.b32.xlu0 %v3841_v39, %s6345_s4  ;;  %v3899_v30 = vstv %s5879_s25  ;;  %s5894_s25 = sld [smem:[#allocation3 + $0x19]] }
 0x4ac   : > { %v3900_v45 = vmul.f32 %v8236_v54, %v3899_v30 }
 0x4ad   : > { %v8608_v8 = vpop.permute.xlu1 %3485  ;;  %v8610_v1 = vpop.permute.xlu0 %3483 }
 0x4ae   : > { %12052 = vst [vmem:[#allocation453_spill] sm:$0xff] %v8608_v8  ;;  %12053 = vst [vmem:[#allocation454_spill] sm:$0xff] %v8610_v1 }
 0x4af   : > { %3869 = vrot.lane.b32.xlu1 %v3861_v7, %s6345_s4  ;;  %3867 = vrot.lane.b32.xlu0 %v3860_v44, %s6345_s4  ;;  %v3881_v7 = vmul.f32 %v8214_v59, %v3878_v0  ;;  %s5888_s4 = sld [smem:[#allocation3 + $0x118]] }
 0x4b1   : > { %v8616_v39 = vpop.permute.xlu1 %3503  ;;  %v8618_v27 = vpop.permute.xlu0 %3487 }
 0x4b2   : > { %12054 = vst [vmem:[#allocation455_spill] sm:$0xff] %v8616_v39  ;;  %12055 = vst [vmem:[#allocation456_spill] sm:$0xff] %v8618_v27  ;;  %v3902_v39 = vmul.f32 %v8214_v59, %v3899_v30  ;;  %v3901_v27 = vmul.f32 %v8225_v22, %v3899_v30 }
 0x4b3   : > { %3887 = vrot.lane.b32.xlu1 %v3880_v11, %s6346_s21  ;;  %3885 = vrot.lane.b32.xlu0 %v3879_v3, %s6346_s21  ;;  %v3919_v11 = vstv %s5880_s9  ;;  %s5895_s9 = sld [smem:[#allocation3 + $0x99]] }
 0x4b4   : > { %v3921_v0 = vmul.f32 %v8225_v22, %v3919_v11 }
 0x4b5   : > { %v8624_v44 = vpop.permute.xlu1 %3507  ;;  %v8626_v1 = vpop.permute.xlu0 %3505 }
 0x4b6   : > { %12056 = vst [vmem:[#allocation457_spill] sm:$0xff] %v8624_v44  ;;  %12057 = vst [vmem:[#allocation458_spill] sm:$0xff] %v8626_v1  ;;  %v3920_v44 = vmul.f32 %v8236_v54, %v3919_v11 }
 0x4b7   : > { %3906 = vrot.lane.b32.xlu1 %v3900_v45, %s6346_s21  ;;  %3889 = vrot.lane.b32.xlu0 %v3881_v7, %s6346_s21  ;;  %v3939_v45 = vstv %s5881_s26  ;;  %s6348_s26 = smov 103  }
 0x4b8   : > { %v3940_v30 = vmul.f32 %v8236_v54, %v3939_v45 }
 0x4b9   : > { %v8632_v8 = vpop.permute.xlu1 %3525  ;;  %v8634_v3 = vpop.permute.xlu0 %3523 }
 0x4ba   : > { %12058 = vst [vmem:[#allocation459_spill] sm:$0xff] %v8632_v8  ;;  %12059 = vst [vmem:[#allocation460_spill] sm:$0xff] %v8634_v3 }
 0x4bb   : > { %3910 = vrot.lane.b32.xlu1 %v3902_v39, %s6346_s21  ;;  %3908 = vrot.lane.b32.xlu0 %v3901_v27, %s6346_s21  ;;  %v3922_v39 = vmul.f32 %v8214_v59, %v3919_v11 }
 0x4bd   : > { %v8640_v7 = vpop.permute.xlu1 %3543  ;;  %v8642_v1 = vpop.permute.xlu0 %3527 }
 0x4be   : > { %12060 = vst [vmem:[#allocation461_spill] sm:$0xff] %v8640_v7  ;;  %12061 = vst [vmem:[#allocation462_spill] sm:$0xff] %v8642_v1  ;;  %v3942_v7 = vmul.f32 %v8214_v59, %v3939_v45  ;;  %v3941_v1 = vmul.f32 %v8225_v22, %v3939_v45 }
 0x4bf   : > { %3928 = vrot.lane.b32.xlu1 %v3921_v0, %s6346_s21  ;;  %3926 = vrot.lane.b32.xlu0 %v3920_v44, %s6346_s21  ;;  %v3959_v0 = vstv %s5882_s8  ;;  %s5897_s8 = sld [smem:[#allocation3 + $0x199]] }
 0x4c0   : > { %v3961_v11 = vmul.f32 %v8225_v22, %v3959_v0 }
 0x4c1   : > { %v8648_v27 = vpop.permute.xlu1 %3547  ;;  %v8650_v3 = vpop.permute.xlu0 %3545 }
 0x4c2   : > { %12062 = vst [vmem:[#allocation463_spill] sm:$0xff] %v8648_v27  ;;  %12063 = vst [vmem:[#allocation464_spill] sm:$0xff] %v8650_v3  ;;  %v3960_v27 = vmul.f32 %v8236_v54, %v3959_v0 }
 0x4c3   : > { %3946 = vrot.lane.b32.xlu1 %v3940_v30, %s6346_s21  ;;  %3930 = vrot.lane.b32.xlu0 %v3922_v39, %s6346_s21  ;;  %v3979_v30 = vstv %s5883_s10  ;;  %s5898_s10 = sld [smem:[#allocation3 + $0x219]] }
 0x4c4   : > { %v3980_v45 = vmul.f32 %v8236_v54, %v3979_v30 }
 0x4c5   : > { %v8656_v8 = vpop.permute.xlu1 %3565  ;;  %v8658_v44 = vpop.permute.xlu0 %3563 }
 0x4c6   : > { %12064 = vst [vmem:[#allocation465_spill] sm:$0xff] %v8656_v8  ;;  %12065 = vst [vmem:[#allocation466_spill] sm:$0xff] %v8658_v44 }
 0x4c7   : > { %3950 = vrot.lane.b32.xlu1 %v3942_v7, %s6346_s21  ;;  %3948 = vrot.lane.b32.xlu0 %v3941_v1, %s6346_s21  ;;  %v3962_v7 = vmul.f32 %v8214_v59, %v3959_v0 }
 0x4c9   : > { %v8664_v39 = vpop.permute.xlu1 %3584  ;;  %v8666_v3 = vpop.permute.xlu0 %3567 }
 0x4ca   : > { %12066 = vst [vmem:[#allocation467_spill] sm:$0xff] %v8664_v39  ;;  %12067 = vst [vmem:[#allocation468_spill] sm:$0xff] %v8666_v3  ;;  %v3982_v39 = vmul.f32 %v8214_v59, %v3979_v30  ;;  %v3981_v3 = vmul.f32 %v8225_v22, %v3979_v30 }
 0x4cb   : > { %3968 = vrot.lane.b32.xlu1 %v3961_v11, %s6346_s21  ;;  %3966 = vrot.lane.b32.xlu0 %v3960_v27, %s6346_s21  ;;  %v3999_v11 = vstv %s5884_s30  ;;  %s5899_s30 = sld [smem:[#allocation3 + $0x299]] }
 0x4cc   : > { %v4001_v0 = vmul.f32 %v8225_v22, %v3999_v11 }
 0x4cd   : > { %v8672_v1 = vpop.permute.xlu1 %3588  ;;  %v8674_v44 = vpop.permute.xlu0 %3586 }
 0x4ce   : > { %12068 = vst [vmem:[#allocation469_spill] sm:$0xff] %v8672_v1  ;;  %12069 = vst [vmem:[#allocation470_spill] sm:$0xff] %v8674_v44  ;;  %v4000_v1 = vmul.f32 %v8236_v54, %v3999_v11 }
 0x4cf   : > { %3986 = vrot.lane.b32.xlu1 %v3980_v45, %s6346_s21  ;;  %3970 = vrot.lane.b32.xlu0 %v3962_v7, %s6346_s21  ;;  %v4019_v45 = vstv %s5885_s29  ;;  %s5900_s29 = sld [smem:[#allocation3 + $0x319]] }
 0x4d0   : > { %v4020_v30 = vmul.f32 %v8236_v54, %v4019_v45 }
 0x4d1   : > { %v8680_v8 = vpop.permute.xlu1 %3606  ;;  %v8682_v27 = vpop.permute.xlu0 %3604 }
 0x4d2   : > { %12070 = vst [vmem:[#allocation471_spill] sm:$0xff] %v8680_v8  ;;  %12071 = vst [vmem:[#allocation472_spill] sm:$0xff] %v8682_v27 }
 0x4d3   : > { %3990 = vrot.lane.b32.xlu1 %v3982_v39, %s6346_s21  ;;  %3988 = vrot.lane.b32.xlu0 %v3981_v3, %s6346_s21  ;;  %v4002_v39 = vmul.f32 %v8214_v59, %v3999_v11 }
 0x4d5   : > { %v8688_v7 = vpop.permute.xlu1 %3624  ;;  %v8690_v44 = vpop.permute.xlu0 %3608 }
 0x4d6   : > { %12072 = vst [vmem:[#allocation473_spill] sm:$0xff] %v8688_v7  ;;  %12073 = vst [vmem:[#allocation474_spill] sm:$0xff] %v8690_v44  ;;  %v4022_v7 = vmul.f32 %v8214_v59, %v4019_v45  ;;  %v4021_v44 = vmul.f32 %v8225_v22, %v4019_v45 }
 0x4d7   : > { %4008 = vrot.lane.b32.xlu1 %v4001_v0, %s6346_s21  ;;  %4006 = vrot.lane.b32.xlu0 %v4000_v1, %s6346_s21  ;;  %v4039_v0 = vstv %s5886_s11  ;;  %s5901_s11 = sld [smem:[#allocation3 + $0x399]] }
 0x4d8   : > { %v4041_v11 = vmul.f32 %v8225_v22, %v4039_v0 }
 0x4d9   : > { %v8696_v3 = vpop.permute.xlu1 %3628  ;;  %v8698_v27 = vpop.permute.xlu0 %3626 }
 0x4da   : > { %12074 = vst [vmem:[#allocation475_spill] sm:$0xff] %v8696_v3  ;;  %12075 = vst [vmem:[#allocation476_spill] sm:$0xff] %v8698_v27  ;;  %v4040_v3 = vmul.f32 %v8236_v54, %v4039_v0 }
 0x4db   : > { %4026 = vrot.lane.b32.xlu1 %v4020_v30, %s6346_s21  ;;  %4010 = vrot.lane.b32.xlu0 %v4002_v39, %s6346_s21  ;;  %v4060_v30 = vstv %s5887_s28  ;;  %s5902_s28 = sld [smem:[#allocation3 + $0x1a]] }
 0x4dc   : > { %v4061_v45 = vmul.f32 %v8236_v54, %v4060_v30 }
 0x4dd   : > { %v8704_v8 = vpop.permute.xlu1 %3646  ;;  %v8706_v1 = vpop.permute.xlu0 %3644 }
 0x4de   : > { %12076 = vst [vmem:[#allocation477_spill] sm:$0xff] %v8704_v8  ;;  %12077 = vst [vmem:[#allocation478_spill] sm:$0xff] %v8706_v1 }
 0x4df   : > { %4030 = vrot.lane.b32.xlu1 %v4022_v7, %s6346_s21  ;;  %4028 = vrot.lane.b32.xlu0 %v4021_v44, %s6346_s21  ;;  %v4042_v7 = vmul.f32 %v8214_v59, %v4039_v0  ;;  %s5896_s21 = sld [smem:[#allocation3 + $0x119]] }
 0x4e1   : > { %v8712_v39 = vpop.permute.xlu1 %3664  ;;  %v8714_v27 = vpop.permute.xlu0 %3648 }
 0x4e2   : > { %12078 = vst [vmem:[#allocation479_spill] sm:$0xff] %v8712_v39  ;;  %12079 = vst [vmem:[#allocation480_spill] sm:$0xff] %v8714_v27  ;;  %v4063_v39 = vmul.f32 %v8214_v59, %v4060_v30  ;;  %v4062_v27 = vmul.f32 %v8225_v22, %v4060_v30 }
 0x4e3   : > { %4048 = vrot.lane.b32.xlu1 %v4041_v11, %s6347_s22  ;;  %4046 = vrot.lane.b32.xlu0 %v4040_v3, %s6347_s22  ;;  %v4080_v11 = vstv %s5888_s4  ;;  %s5903_s4 = sld [smem:[#allocation3 + $0x9a]] }
 0x4e4   : > { %v4082_v0 = vmul.f32 %v8225_v22, %v4080_v11 }
 0x4e5   : > { %v8720_v44 = vpop.permute.xlu1 %3668  ;;  %v8722_v1 = vpop.permute.xlu0 %3666 }
 0x4e6   : > { %12080 = vst [vmem:[#allocation481_spill] sm:$0xff] %v8720_v44  ;;  %12081 = vst [vmem:[#allocation482_spill] sm:$0xff] %v8722_v1  ;;  %v4081_v44 = vmul.f32 %v8236_v54, %v4080_v11 }
 0x4e7   : > { %4067 = vrot.lane.b32.xlu1 %v4061_v45, %s6347_s22  ;;  %4050 = vrot.lane.b32.xlu0 %v4042_v7, %s6347_s22  ;;  %v4100_v45 = vstv %s5889_s15  ;;  %s6349_s15 = smov 102  }
 0x4e8   : > { %v4101_v30 = vmul.f32 %v8236_v54, %v4100_v45 }
 0x4e9   : > { %v8728_v8 = vpop.permute.xlu1 %3686  ;;  %v8730_v3 = vpop.permute.xlu0 %3684 }
 0x4ea   : > { %12082 = vst [vmem:[#allocation483_spill] sm:$0xff] %v8728_v8  ;;  %12083 = vst [vmem:[#allocation484_spill] sm:$0xff] %v8730_v3 }
 0x4eb   : > { %4071 = vrot.lane.b32.xlu1 %v4063_v39, %s6347_s22  ;;  %4069 = vrot.lane.b32.xlu0 %v4062_v27, %s6347_s22  ;;  %v4083_v39 = vmul.f32 %v8214_v59, %v4080_v11 }
 0x4ed   : > { %v8736_v7 = vpop.permute.xlu1 %3704  ;;  %v8738_v1 = vpop.permute.xlu0 %3688 }
 0x4ee   : > { %12084 = vst [vmem:[#allocation485_spill] sm:$0xff] %v8736_v7  ;;  %12085 = vst [vmem:[#allocation486_spill] sm:$0xff] %v8738_v1  ;;  %v4103_v7 = vmul.f32 %v8214_v59, %v4100_v45  ;;  %v4102_v1 = vmul.f32 %v8225_v22, %v4100_v45 }
 0x4ef   : > { %4089 = vrot.lane.b32.xlu1 %v4082_v0, %s6347_s22  ;;  %4087 = vrot.lane.b32.xlu0 %v4081_v44, %s6347_s22  ;;  %v4120_v0 = vstv %s5890_s0  ;;  %s5905_s0 = sld [smem:[#allocation3 + $0x19a]] }
 0x4f0   : > { %v4122_v11 = vmul.f32 %v8225_v22, %v4120_v0 }
 0x4f1   : > { %v8744_v27 = vpop.permute.xlu1 %3708  ;;  %v8746_v3 = vpop.permute.xlu0 %3706 }
 0x4f2   : > { %12086 = vst [vmem:[#allocation487_spill] sm:$0xff] %v8744_v27  ;;  %12087 = vst [vmem:[#allocation488_spill] sm:$0xff] %v8746_v3  ;;  %v4140_v27 = vstv %s5891_s6  ;;  %s5906_s6 = sld [smem:[#allocation3 + $0x21a]] }
 0x4f3   : > { %4107 = vrot.lane.b32.xlu1 %v4101_v30, %s6347_s22  ;;  %4091 = vrot.lane.b32.xlu0 %v4083_v39, %s6347_s22  ;;  %v4121_v30 = vmul.f32 %v8236_v54, %v4120_v0  ;;  %v4141_v45 = vmul.f32 %v8236_v54, %v4140_v27 }
 0x4f5   : > { %v8752_v8 = vpop.permute.xlu1 %3726  ;;  %v8754_v44 = vpop.permute.xlu0 %3724 }
 0x4f6   : > { %12088 = vst [vmem:[#allocation489_spill] sm:$0xff] %v8752_v8  ;;  %12089 = vst [vmem:[#allocation490_spill] sm:$0xff] %v8754_v44 }
 0x4f7   : > { %4111 = vrot.lane.b32.xlu1 %v4103_v7, %s6347_s22  ;;  %4109 = vrot.lane.b32.xlu0 %v4102_v1, %s6347_s22  ;;  %v4123_v1 = vmul.f32 %v8214_v59, %v4120_v0  ;;  %v8786_v59 = vld [vmem:[%s6569_s12 + $0x8] sm:$0xff] }
 0x4f9   : > { %v8760_v39 = vpop.permute.xlu1 %3745  ;;  %v8762_v3 = vpop.permute.xlu0 %3728 }
 0x4fa   : > { %12090 = vst [vmem:[#allocation491_spill] sm:$0xff] %v8760_v39  ;;  %12091 = vst [vmem:[#allocation492_spill] sm:$0xff] %v8762_v3  ;;  %v8775_v39 = vld [vmem:[%s6576_s27] sm:$0xff]  ;;  %v4160_v3 = vstv %s5892_s7  ;;  %s5907_s7 = sld [smem:[#allocation3 + $0x29a]] }
 0x4fb   : > { %4129 = vrot.lane.b32.xlu1 %v4122_v11, %s6347_s22  ;;  %4127 = vrot.lane.b32.xlu0 %v4121_v30, %s6347_s22  ;;  %v4143_v11 = vmul.f32 %v8775_v39, %v4140_v27  ;;  %v4142_v30 = vmul.f32 %v8225_v22, %v4140_v27  ;;  %v4162_v0 = vmul.f32 %v8786_v59, %v4160_v3 }
 0x4fd   : > { %v8768_v7 = vpop.permute.xlu1 %3749  ;;  %v8770_v44 = vpop.permute.xlu0 %3747 }
 0x4fe   : > { %12092 = vst [vmem:[#allocation493_spill] sm:$0xff] %v8768_v7  ;;  %12093 = vst [vmem:[#allocation494_spill] sm:$0xff] %v8770_v44 }
 0x4ff   : > { %4147 = vrot.lane.b32.xlu1 %v4141_v45, %s6347_s22  ;;  %4131 = vrot.lane.b32.xlu0 %v4123_v1, %s6347_s22  ;;  %v4161_v45 = vmul.f32 %v8236_v54, %v4160_v3  ;;  %v4180_v1 = vstv %s5893_s23  ;;  %s8957_s23 = sld [smem:[#allocation3]] }
 0x500   : > { %v4181_v27 = vmul.f32 %v8236_v54, %v4180_v1 }
 0x501   : > { %v8779_v8 = vpop.permute.xlu1 %3767  ;;  %v8781_v17 = vpop.permute.xlu0 %3765 }
 0x502   : > { %12094 = vst [vmem:[#allocation495_spill] sm:$0xff] %v8779_v8  ;;  %12095 = vst [vmem:[#allocation496_spill] sm:$0xff] %v8781_v17 }
 0x503   : > { %4151 = vrot.lane.b32.xlu1 %v4143_v11, %s6347_s22  ;;  %4149 = vrot.lane.b32.xlu0 %v4142_v30, %s6347_s22  ;;  %v4163_v11 = vmul.f32 %v8775_v39, %v4160_v3  ;;  %v8814_v3 = vld [vmem:[%s6569_s12] sm:$0xff] }
 0x505   : > { %v8790_v7 = vpop.permute.xlu1 %3785  ;;  %v8792_v22 = vpop.permute.xlu0 %3769 }
 0x506   : > { %12096 = vst [vmem:[#allocation497_spill] sm:$0xff] %v8790_v7  ;;  %12097 = vst [vmem:[#allocation498_spill] sm:$0xff] %v8792_v22  ;;  %v4183_v7 = vmul.f32 %v8775_v39, %v4180_v1  ;;  %v4200_v22 = vstv %s5894_s25  ;;  %s8959_s25 = sld [smem:[#allocation3 + $0x80]] }
 0x507   : > { %4169 = vrot.lane.b32.xlu1 %v4162_v0, %s6347_s22  ;;  %4167 = vrot.lane.b32.xlu0 %v4161_v45, %s6347_s22  ;;  %v4182_v0 = vmul.f32 %v8786_v59, %v4180_v1  ;;  %v4202_v54 = vmul.f32 %v8786_v59, %v4200_v22 }
 0x509   : > { %v8798_v30 = vpop.permute.xlu1 %3789  ;;  %v8800_v17 = vpop.permute.xlu0 %3787 }
 0x50a   : > { %12098 = vst [vmem:[#allocation499_spill] sm:$0xff] %v8798_v30  ;;  %12099 = vst [vmem:[#allocation500_spill] sm:$0xff] %v8800_v17 }
 0x50b   : > { %4187 = vrot.lane.b32.xlu1 %v4181_v27, %s6347_s22  ;;  %4171 = vrot.lane.b32.xlu0 %v4163_v11, %s6347_s22  ;;  %v4201_v27 = vmul.f32 %v8814_v3, %v4200_v22  ;;  %v4221_v11 = vstv %s5895_s9  ;;  %s8965_s9 = sld [smem:[#allocation3 + $0x100]] }
 0x50d   : > { %v8806_v45 = vpop.permute.xlu1 %3807  ;;  %v8808_v8 = vpop.permute.xlu0 %3805 }
 0x50e   : > { %12100 = vst [vmem:[#allocation501_spill] sm:$0xff] %v8806_v45  ;;  %12101 = vst [vmem:[#allocation502_spill] sm:$0xff] %v8808_v8 }
 0x50f   : > { %4191 = vrot.lane.b32.xlu1 %v4183_v7, %s6347_s22  ;;  %4189 = vrot.lane.b32.xlu0 %v4182_v0, %s6347_s22  ;;  %v4222_v7 = vmul.f32 %v8814_v3, %v4221_v11  ;;  %v4203_v0 = vmul.f32 %v8775_v39, %v4200_v22  ;;  %s5904_s22 = sld [smem:[#allocation3 + $0x11a]] }
 0x511   : > { %v8817_v30 = vpop.permute.xlu1 %3825  ;;  %v8819_v1 = vpop.permute.xlu0 %3809 }
 0x512   : > { %12102 = vst [vmem:[#allocation503_spill] sm:$0xff] %v8817_v30  ;;  %12103 = vst [vmem:[#allocation504_spill] sm:$0xff] %v8819_v1  ;;  %v4224_v30 = vmul.f32 %v8775_v39, %v4221_v11  ;;  %v4223_v1 = vmul.f32 %v8786_v59, %v4221_v11 }
 0x513   : > { %4209 = vrot.lane.b32.xlu1 %v4202_v54, %s6348_s26  ;;  %4207 = vrot.lane.b32.xlu0 %v4201_v27, %s6348_s26  ;;  %v4241_v54 = vstv %s5896_s21  ;;  %s5908_s21 = sld [smem:[#allocation3 + $0x31a]] }
 0x514   : > { %v4243_v22 = vmul.f32 %v8786_v59, %v4241_v54 }
 0x515   : > { %v8825_v8 = vpop.permute.xlu1 %3829  ;;  %v8827_v45 = vpop.permute.xlu0 %3827 }
 0x516   : > { %12104 = vst [vmem:[#allocation505_spill] sm:$0xff] %v8825_v8  ;;  %12105 = vst [vmem:[#allocation506_spill] sm:$0xff] %v8827_v45  ;;  %v4242_v8 = vmul.f32 %v8814_v3, %v4241_v54 }
 0x517   : > { %4228 = vrot.lane.b32.xlu1 %v4222_v7, %s6348_s26  ;;  %4211 = vrot.lane.b32.xlu0 %v4203_v0, %s6348_s26  ;;  %v4261_v7 = vstv %s5897_s8  ;;  %s8973_s8 = sld [smem:[#allocation3 + $0x200]] }
 0x518   : > { %v4262_v11 = vmul.f32 %v8814_v3, %v4261_v7 }
 0x519   : > { %v8833_v17 = vpop.permute.xlu1 %3847  ;;  %v8835_v27 = vpop.permute.xlu0 %3845 }
 0x51a   : > { %12106 = vst [vmem:[#allocation507_spill] sm:$0xff] %v8833_v17  ;;  %12107 = vst [vmem:[#allocation508_spill] sm:$0xff] %v8835_v27 }
 0x51b   : > { %4232 = vrot.lane.b32.xlu1 %v4224_v30, %s6348_s26  ;;  %4230 = vrot.lane.b32.xlu0 %v4223_v1, %s6348_s26  ;;  %v4244_v30 = vmul.f32 %v8775_v39, %v4241_v54 }
 0x51d   : > { %v8841_v0 = vpop.permute.xlu1 %3865  ;;  %v8843_v45 = vpop.permute.xlu0 %3849 }
 0x51e   : > { %12108 = vst [vmem:[#allocation509_spill] sm:$0xff] %v8841_v0  ;;  %12109 = vst [vmem:[#allocation510_spill] sm:$0xff] %v8843_v45  ;;  %v4264_v0 = vmul.f32 %v8775_v39, %v4261_v7  ;;  %v4263_v45 = vmul.f32 %v8786_v59, %v4261_v7 }
 0x51f   : > { %4250 = vrot.lane.b32.xlu1 %v4243_v22, %s6348_s26  ;;  %4248 = vrot.lane.b32.xlu0 %v4242_v8, %s6348_s26  ;;  %v4281_v22 = vstv %s5898_s10  ;;  %s8975_s10 = sld [smem:[#allocation3 + $0x280]] }
 0x520   : > { %v4283_v54 = vmul.f32 %v8786_v59, %v4281_v22 }
 0x521   : > { %v8849_v1 = vpop.permute.xlu1 %3869  ;;  %v8851_v27 = vpop.permute.xlu0 %3867 }
 0x522   : > { %12110 = vst [vmem:[#allocation511_spill] sm:$0xff] %v8849_v1  ;;  %12111 = vst [vmem:[#allocation512_spill] sm:$0xff] %v8851_v27  ;;  %v4282_v1 = vmul.f32 %v8814_v3, %v4281_v22 }
 0x523   : > { %4268 = vrot.lane.b32.xlu1 %v4262_v11, %s6348_s26  ;;  %4252 = vrot.lane.b32.xlu0 %v4244_v30, %s6348_s26  ;;  %v4301_v11 = vstv %s5899_s30  ;;  %s8981_s30 = sld [smem:[#allocation3 + $0x39a]] }
 0x524   : > { %v4302_v7 = vmul.f32 %v8814_v3, %v4301_v11 }
 0x525   : > { %v8857_v17 = vpop.permute.xlu1 %3887  ;;  %v8859_v8 = vpop.permute.xlu0 %3885  ;;  %v318_v63 = vstv %s8975_s10  ;;  %s9476_s10 = sld [smem:[#allocation3 + $0x19c]] }
 0x526   : > { %12112 = vst [vmem:[#allocation513_spill] sm:$0xff] %v8857_v17  ;;  %12113 = vst [vmem:[#allocation514_spill] sm:$0xff] %v8859_v8  ;;  %v320_v15 = vmul.f32 %v8786_v59, %v318_v63  ;;  %v319_v6 = vmul.f32 %v8814_v3, %v318_v63 }
 0x527   : > { %4272 = vrot.lane.b32.xlu1 %v4264_v0, %s6348_s26  ;;  %4270 = vrot.lane.b32.xlu0 %v4263_v45, %s6348_s26  ;;  %v4284_v0 = vmul.f32 %v8775_v39, %v4281_v22 }
 0x529   : > { %v8865_v30 = vpop.permute.xlu1 %3906  ;;  %v8867_v27 = vpop.permute.xlu0 %3889 }
 0x52a   : > { %12114 = vst [vmem:[#allocation515_spill] sm:$0xff] %v8865_v30  ;;  %12115 = vst [vmem:[#allocation516_spill] sm:$0xff] %v8867_v27  ;;  %v4304_v30 = vmul.f32 %v8775_v39, %v4301_v11  ;;  %v4303_v27 = vmul.f32 %v8786_v59, %v4301_v11 }
 0x52b   : > { %4290 = vrot.lane.b32.xlu1 %v4283_v54, %s6348_s26  ;;  %4288 = vrot.lane.b32.xlu0 %v4282_v1, %s6348_s26  ;;  %v4321_v54 = vstv %s5900_s29  ;;  %s8983_s29 = sld [smem:[#allocation3 + $0x300]] }
 0x52c   : > { %v4323_v22 = vmul.f32 %v8786_v59, %v4321_v54 }
 0x52d   : > { %v8873_v45 = vpop.permute.xlu1 %3910  ;;  %v8875_v8 = vpop.permute.xlu0 %3908 }
 0x52e   : > { %12116 = vst [vmem:[#allocation517_spill] sm:$0xff] %v8873_v45  ;;  %12117 = vst [vmem:[#allocation518_spill] sm:$0xff] %v8875_v8  ;;  %v4322_v45 = vmul.f32 %v8814_v3, %v4321_v54 }
 0x52f   : > { %4308 = vrot.lane.b32.xlu1 %v4302_v7, %s6348_s26  ;;  %4292 = vrot.lane.b32.xlu0 %v4284_v0, %s6348_s26  ;;  %v4341_v7 = vstv %s5901_s11  ;;  %s8985_s11 = sld [smem:[#allocation3 + $0x380]] }
 0x530   : > { %v4342_v11 = vmul.f32 %v8814_v3, %v4341_v7 }
 0x531   : > { %v8881_v17 = vpop.permute.xlu1 %3928  ;;  %v8883_v1 = vpop.permute.xlu0 %3926 }
 0x532   : > { %12118 = vst [vmem:[#allocation519_spill] sm:$0xff] %v8881_v17  ;;  %12119 = vst [vmem:[#allocation520_spill] sm:$0xff] %v8883_v1 }
 0x533   : > { %4312 = vrot.lane.b32.xlu1 %v4304_v30, %s6348_s26  ;;  %4310 = vrot.lane.b32.xlu0 %v4303_v27, %s6348_s26  ;;  %v4324_v30 = vmul.f32 %v8775_v39, %v4321_v54 }
 0x535   : > { %v8889_v0 = vpop.permute.xlu1 %3946  ;;  %v8891_v8 = vpop.permute.xlu0 %3930  ;;  %v330_v12 = vstv %s8985_s11  ;;  %s9625_s11 = sld [smem:[#allocation3 + $0x31c]] }
 0x536   : > { %12120 = vst [vmem:[#allocation521_spill] sm:$0xff] %v8889_v0  ;;  %12121 = vst [vmem:[#allocation522_spill] sm:$0xff] %v8891_v8  ;;  %v4344_v0 = vmul.f32 %v8775_v39, %v4341_v7  ;;  %v4343_v8 = vmul.f32 %v8786_v59, %v4341_v7  ;;  %v331_v63 = vmul.f32 %v8814_v3, %v330_v12 }
 0x537   : > { %4330 = vrot.lane.b32.xlu1 %v4323_v22, %s6348_s26  ;;  %4328 = vrot.lane.b32.xlu0 %v4322_v45, %s6348_s26  ;;  %v4361_v22 = vstv %s5902_s28  ;;  %s9018_s28 = sld [smem:[#allocation3 + $0x1b]] }
 0x538   : > { %v4363_v54 = vmul.f32 %v8786_v59, %v4361_v22 }
 0x539   : > { %v8897_v27 = vpop.permute.xlu1 %3950  ;;  %v8899_v1 = vpop.permute.xlu0 %3948 }
 0x53a   : > { %12122 = vst [vmem:[#allocation523_spill] sm:$0xff] %v8897_v27  ;;  %12123 = vst [vmem:[#allocation524_spill] sm:$0xff] %v8899_v1  ;;  %v4362_v27 = vmul.f32 %v8814_v3, %v4361_v22 }
 0x53b   : > { %4348 = vrot.lane.b32.xlu1 %v4342_v11, %s6348_s26  ;;  %4332 = vrot.lane.b32.xlu0 %v4324_v30, %s6348_s26  ;;  %v4382_v11 = vstv %s5903_s4  ;;  %s9047_s4 = sld [smem:[#allocation3 + $0x9b]] }
 0x53c   : > { %v4383_v7 = vmul.f32 %v8814_v3, %v4382_v11 }
 0x53d   : > { %v8905_v17 = vpop.permute.xlu1 %3968  ;;  %v8907_v45 = vpop.permute.xlu0 %3966 }
 0x53e   : > { %12124 = vst [vmem:[#allocation525_spill] sm:$0xff] %v8905_v17  ;;  %12125 = vst [vmem:[#allocation526_spill] sm:$0xff] %v8907_v45 }
 0x53f   : > { %4352 = vrot.lane.b32.xlu1 %v4344_v0, %s6348_s26  ;;  %4350 = vrot.lane.b32.xlu0 %v4343_v8, %s6348_s26  ;;  %v4364_v0 = vmul.f32 %v8775_v39, %v4361_v22  ;;  %s8967_s26 = sld [smem:[#allocation3 + $0x180]] }
 0x541   : > { %v8913_v30 = vpop.permute.xlu1 %3986  ;;  %v8915_v1 = vpop.permute.xlu0 %3970 }
 0x542   : > { %12126 = vst [vmem:[#allocation527_spill] sm:$0xff] %v8913_v30  ;;  %12127 = vst [vmem:[#allocation528_spill] sm:$0xff] %v8915_v1  ;;  %v4385_v30 = vmul.f32 %v8775_v39, %v4382_v11  ;;  %v4384_v1 = vmul.f32 %v8786_v59, %v4382_v11 }
 0x543   : > { %4370 = vrot.lane.b32.xlu1 %v4363_v54, %s6349_s15  ;;  %4368 = vrot.lane.b32.xlu0 %v4362_v27, %s6349_s15  ;;  %v4402_v54 = vstv %s5904_s22  ;;  %s9103_s22 = sld [smem:[#allocation3 + $0x11b]] }
 0x544   : > { %v4404_v22 = vmul.f32 %v8786_v59, %v4402_v54 }
 0x545   : > { %v8921_v8 = vpop.permute.xlu1 %3990  ;;  %v8923_v45 = vpop.permute.xlu0 %3988 }
 0x546   : > { %12128 = vst [vmem:[#allocation529_spill] sm:$0xff] %v8921_v8  ;;  %12129 = vst [vmem:[#allocation530_spill] sm:$0xff] %v8923_v45  ;;  %v4403_v8 = vmul.f32 %v8814_v3, %v4402_v54 }
 0x547   : > { %4389 = vrot.lane.b32.xlu1 %v4383_v7, %s6349_s15  ;;  %4372 = vrot.lane.b32.xlu0 %v4364_v0, %s6349_s15  ;;  %v4422_v7 = vstv %s5905_s0  ;;  %s9131_s0 = sld [smem:[#allocation3 + $0x19b]] }
 0x548   : > { %v4423_v11 = vmul.f32 %v8814_v3, %v4422_v7 }
 0x549   : > { %v8929_v17 = vpop.permute.xlu1 %4008  ;;  %v8931_v27 = vpop.permute.xlu0 %4006 }
 0x54a   : > { %12130 = vst [vmem:[#allocation531_spill] sm:$0xff] %v8929_v17  ;;  %12131 = vst [vmem:[#allocation532_spill] sm:$0xff] %v8931_v27 }
 0x54b   : > { %4393 = vrot.lane.b32.xlu1 %v4385_v30, %s6349_s15  ;;  %4391 = vrot.lane.b32.xlu0 %v4384_v1, %s6349_s15  ;;  %v4405_v30 = vmul.f32 %v8775_v39, %v4402_v54 }
 0x54d   : > { %v8937_v0 = vpop.permute.xlu1 %4026  ;;  %v8939_v45 = vpop.permute.xlu0 %4010 }
 0x54e   : > { %12132 = vst [vmem:[#allocation533_spill] sm:$0xff] %v8937_v0  ;;  %12133 = vst [vmem:[#allocation534_spill] sm:$0xff] %v8939_v45  ;;  %v4425_v0 = vmul.f32 %v8775_v39, %v4422_v7  ;;  %v4424_v45 = vmul.f32 %v8786_v59, %v4422_v7  ;;  %v4462_v7 = vstv %s5907_s7  ;;  %s9218_s7 = sld [smem:[#allocation3 + $0x29b]] }
 0x54f   : > { %4411 = vrot.lane.b32.xlu1 %v4404_v22, %s6349_s15  ;;  %4409 = vrot.lane.b32.xlu0 %v4403_v8, %s6349_s15  ;;  %v4442_v22 = vstv %s5906_s6  ;;  %s9187_s6 = sld [smem:[#allocation3 + $0x21b]] }
 0x550   : > { %v4444_v54 = vmul.f32 %v8786_v59, %v4442_v22 }
 0x551   : > { %v8945_v1 = vpop.permute.xlu1 %4030  ;;  %v8947_v27 = vpop.permute.xlu0 %4028 }
 0x552   : > { %12134 = vst [vmem:[#allocation535_spill] sm:$0xff] %v8945_v1  ;;  %12135 = vst [vmem:[#allocation536_spill] sm:$0xff] %v8947_v27  ;;  %v300_v1 = vstv %s8965_s9  ;;  %v4482_v27 = vstv %s5908_s21  ;;  %s9358_s9 = sld [smem:[#allocation3 + $0x1c]] }
 0x553   : > { %4429 = vrot.lane.b32.xlu1 %v4423_v11, %s6349_s15  ;;  %4413 = vrot.lane.b32.xlu0 %v4405_v30, %s6349_s15  ;;  %v4443_v11 = vmul.f32 %v8814_v3, %v4442_v22  ;;  %v301_v48 = vmul.f32 %v8814_v3, %v300_v1  ;;  %s9389_s21 = sld [smem:[#allocation3 + $0x9c]] }
 0x555   : > { %v8953_v17 = vpop.permute.xlu1 %4048  ;;  %v8955_v8 = vpop.permute.xlu0 %4046 }
 0x556   : > { %12136 = vst [vmem:[#allocation537_spill] sm:$0xff] %v8953_v17  ;;  %12137 = vst [vmem:[#allocation538_spill] sm:$0xff] %v8955_v8  ;;  %v288_v17 = vstv %s8957_s23  ;;  %s9274_s23 = sld [smem:[#allocation3 + $0x31b]] }
 0x557   : > { %4433 = vrot.lane.b32.xlu1 %v4425_v0, %s6349_s15  ;;  %4431 = vrot.lane.b32.xlu0 %v4424_v45, %s6349_s15  ;;  %v4463_v45 = vmul.f32 %v8814_v3, %v4462_v7  ;;  %v4445_v0 = vmul.f32 %v8775_v39, %v4442_v22  ;;  %v4465_v22 = vmul.f32 %v8775_v39, %v4462_v7 }
 0x558   : > { %v290_v44 = vmul.f32 %v8786_v59, %v288_v17 }
 0x559   : > { %v8969_v30 = vpop.permute.xlu1 %4067  ;;  %v8971_v8 = vpop.permute.xlu0 %4050 }
 0x55a   : > { %12138 = vst [vmem:[#allocation539_spill] sm:$0xff] %v8969_v30  ;;  %12139 = vst [vmem:[#allocation540_spill] sm:$0xff] %v8971_v8 }
 0x55b   : > { %4451 = vrot.lane.b32.xlu1 %v4444_v54, %s6349_s15  ;;  %4449 = vrot.lane.b32.xlu0 %v4443_v11, %s6349_s15  ;;  %v294_v54 = vstv %s8959_s25  ;;  %v4464_v11 = vmul.f32 %v8786_v59, %v4462_v7  ;;  %v312_v7 = vstv %s8973_s8  ;;  %s9302_s25 = sld [smem:[#allocation3 + $0x39b]]  ;;  %s6351_s8 = smov 100  }
 0x55c   : > { %v296_v62 = vmul.f32 %v8786_v59, %v294_v54  ;;  %v313_v35 = vmul.f32 %v8814_v3, %v312_v7  ;;  %v314_v20 = vmul.f32 %v8786_v59, %v312_v7  ;;  %v370_v7 = vsel %vm349_vm0, %v6717_v28, %v6727_v33 }
 0x55d   : > { %v8987_v30 = vpop.permute.xlu1 %4071  ;;  %v8989_v8 = vpop.permute.xlu0 %4069  ;;  %v371_v28 = vsel %vm349_vm0, %v6727_v33, %v6725_v32  ;;  %v411_v32 = vsel %vm349_vm0, %v6751_v47, %v6749_v46  ;;  %v430_v33 = vsel %vm349_vm0, %v6759_v52, %v6757_v51  ;;  %v431_v46 = vsel %vm349_vm0, %v6757_v51, %v6767_v57 }
 0x55e   : > { %12140 = vst [vmem:[#allocation541_spill] sm:$0xff] %v8987_v30  ;;  %12141 = vst [vmem:[#allocation542_spill] sm:$0xff] %v8989_v8  ;;  %v306_v30 = vstv %s8967_s26  ;;  %v451_v52 = vsel %vm349_vm0, %v6775_v61, %v6773_v60  ;;  %v471_v51 = vsel %vm349_vm0, %v6781_v4, %v6791_v10  ;;  %v512_v10 = vsel %vm510_vm1, %v6805_v18, %v6815_v26  ;;  %s9445_s26 = sld [smem:[#allocation3 + $0x11c]] }
 0x55f   : > { %4469 = vrot.lane.b32.xlu1 %v4463_v45, %s6349_s15  ;;  %4453 = vrot.lane.b32.xlu0 %v4445_v0, %s6349_s15  ;;  %v289_v45 = vmul.f32 %v8814_v3, %v288_v17  ;;  %v295_v0 = vmul.f32 %v8814_v3, %v294_v54  ;;  %v302_v17 = vmul.f32 %v8786_v59, %v300_v1  ;;  %v4502_v54 = vstv %s8981_s30  ;;  %s9538_s30 = sld [smem:[#allocation3 + $0x21c]] }
 0x560   : > { %v308_v53 = vmul.f32 %v8786_v59, %v306_v30  ;;  %v307_v36 = vmul.f32 %v8814_v3, %v306_v30  ;;  %v350_v1 = vsel %vm349_vm0, %v6711_v24, %v6719_v29  ;;  %v351_v30 = vsel %vm349_vm0, %v6719_v29, %v6709_v23 }
 0x561   : > { %v9000_v8 = vpop.permute.xlu1 %4089  ;;  %v9002_v16 = vpop.permute.xlu0 %4087  ;;  %v4485_v24 = vmul.f32 %v8775_v39, %v4482_v27  ;;  %v332_v29 = vmul.f32 %v8786_v59, %v330_v12  ;;  %v354_v2 = vadd.f32 %v350_v1, %v289_v45  ;;  %v355_v12 = vadd.f32 %v351_v30, %v290_v44 }
 0x562   : > { %12142 = vst [vmem:[#allocation543_spill] sm:$0xff] %v9000_v8  ;;  %12143 = vst [vmem:[#allocation544_spill] sm:$0xff] %v9002_v16  ;;  %v4484_v8 = vmul.f32 %v8786_v59, %v4482_v27  ;;  %v4483_v16 = vmul.f32 %v8814_v3, %v4482_v27  ;;  %v391_v27 = vsel %vm349_vm0, %v6733_v37, %v6743_v43 }
 0x563   : > { %4473 = vrot.lane.b32.xlu1 %v4465_v22, %s6349_s15  ;;  %4471 = vrot.lane.b32.xlu0 %v4464_v11, %s6349_s15  ;;  %v324_v22 = vstv %s8983_s29  ;;  %v374_v55 = vadd.f32 %v370_v7, %v295_v0  ;;  %v410_v45 = vsel %vm349_vm0, %v6741_v42, %v6751_v47  ;;  %v375_v43 = vadd.f32 %v371_v28, %v296_v62  ;;  %v12147_v28 = vld [vmem:[#allocation21_spill] sm:$0xff]  ;;  %s9569_s29 = sld [smem:[#allocation3 + $0x29c]] }
 0x564   : > { %v326_v23 = vmul.f32 %v8786_v59, %v324_v22  ;;  %v395_v42 = vadd.f32 %v391_v27, %v302_v17  ;;  %v4522_v0 = vstv %s9018_s28  ;;  %v414_v1 = vadd.f32 %v410_v45, %v307_v36  ;;  %s9653_s28 = sld [smem:[#allocation3 + $0x39c]] }
 0x565   : > { %v9024_v11 = vpop.permute.xlu1 %4107  ;;  %v9026_v21 = vpop.permute.xlu0 %4091  ;;  %v450_v47 = vsel %vm349_vm0, %v6765_v56, %v6775_v61  ;;  %v434_v17 = vadd.f32 %v430_v33, %v313_v35  ;;  %v470_v36 = vsel %vm349_vm0, %v6783_v5, %v6781_v4  ;;  %v490_v56 = vsel %vm349_vm0, %v6789_v9, %v6799_v14 }
 0x566   : > { %12144 = vst [vmem:[#allocation545_spill] sm:$0xff] %v9024_v11  ;;  %12145 = vst [vmem:[#allocation546_spill] sm:$0xff] %v9026_v21  ;;  %v4503_v11 = vmul.f32 %v8814_v3, %v4502_v54  ;;  %v325_v21 = vmul.f32 %v8814_v3, %v324_v22  ;;  %v4524_v57 = vmul.f32 %v8786_v59, %v4522_v0  ;;  %v4543_v5 = vstv %s9047_s4  ;;  %s9709_s4 = sld [smem:[#allocation3 + $0x1d]] }
 0x567   : > { %4491 = vrot.lane.b32.xlu1 %v4484_v8, %s6349_s15  ;;  %4489 = vrot.lane.b32.xlu0 %v4483_v16, %s6349_s15  ;;  %v390_v16 = vsel %vm349_vm0, %v6735_v38, %v6733_v37  ;;  %v4505_v37 = vmul.f32 %v8775_v39, %v4502_v54  ;;  %v4504_v38 = vmul.f32 %v8786_v59, %v4502_v54 }
 0x568   : > { %v394_v44 = vadd.f32 %v390_v16, %v301_v48  ;;  %v415_v48 = vadd.f32 %v411_v32, %v308_v53  ;;  %v4523_v60 = vmul.f32 %v8814_v3, %v4522_v0  ;;  %v435_v61 = vadd.f32 %v431_v46, %v314_v20  ;;  %v12148_v16 = vld [vmem:[#allocation22_spill] sm:$0xff]  ;;  %v12152_v32 = vld [vmem:[#allocation25_spill] sm:$0xff] }
 0x569   : > { %v9058_v8 = vpop.permute.xlu1 %4111  ;;  %v9060_v22 = vpop.permute.xlu0 %4109  ;;  %v454_v35 = vadd.f32 %v450_v47, %v319_v6  ;;  %v455_v53 = vadd.f32 %v451_v52, %v320_v15  ;;  %v491_v4 = vsel %vm349_vm0, %v6799_v14, %v6797_v13  ;;  %v511_v9 = vsel %vm510_vm1, %v6807_v19, %v6805_v18  ;;  %v12153_v47 = vld [vmem:[#allocation27_spill] sm:$0xff]  ;;  %v12154_v52 = vld [vmem:[#allocation28_spill] sm:$0xff] }
 0x56a   : > { %v531_v6 = vsel %vm510_vm1, %v6813_v25, %v6823_v34  ;;  %v474_v54 = vadd.f32 %v470_v36, %v325_v21  ;;  %v475_v30 = vadd.f32 %v471_v51, %v326_v23  ;;  %v494_v7 = vadd.f32 %v490_v56, %v331_v63  ;;  %v12146_v23 = vld [vmem:[#allocation20_spill] sm:$0xff]  ;;  %v12155_v51 = vld [vmem:[#allocation30_spill] sm:$0xff] }
 0x56b   : > { %4509 = vrot.lane.b32.xlu1 %v4503_v11, %s6349_s15  ;;  %4493 = vrot.lane.b32.xlu0 %v4485_v24, %s6349_s15  ;;  %v532_v13 = vsel %vm510_vm1, %v6823_v34, %v6821_v31  ;;  %v551_v14 = vsel %vm510_vm1, %v6831_v41, %v6829_v40  ;;  %v4544_v18 = vmul.f32 %v8814_v3, %v4543_v5  ;;  %vm2925_vm0 = vcmask 908288  }
 0x56c   : > { %v4525_v19 = vmul.f32 %v8775_v39, %v4522_v0  ;;  %v495_v25 = vadd.f32 %v491_v4, %v332_v29  ;;  %v515_v26 = vadd.f32 %v511_v9, %v354_v2  ;;  %v516_v21 = vadd.f32 %v512_v10, %v355_v12  ;;  %v12149_v12 = vld [vmem:[#allocation24_spill] sm:$0xff] }
 0x56d   : > { %v9085_v11 = vpop.permute.xlu1 %4129  ;;  %v9087_v62 = vpop.permute.xlu0 %4127  ;;  %v535_v24 = vadd.f32 %v531_v6, %v374_v55  ;;  %v536_v31 = vadd.f32 %v532_v13, %v375_v43  ;;  %v552_v34 = vsel %vm510_vm1, %v6829_v40, %v6839_v50  ;;  %v571_v41 = vsel %vm510_vm1, %v6837_v49, %v6847_v58  ;;  %v12150_v50 = vld [vmem:[#allocation26_spill] sm:$0xff]  ;;  %v12151_v49 = vld [vmem:[#allocation23_spill] sm:$0xff]  ;;  %v12159_v6 = vld [vmem:[#allocation33_spill] sm:$0xff] }
 0x56e   : > { %v572_v63 = vsel %vm510_vm1, %v6847_v58, %v12146_v23  ;;  %v555_v55 = vadd.f32 %v551_v14, %v394_v44  ;;  %v591_v27 = vsel %vm510_vm1, %v12148_v16, %v12147_v28  ;;  %v592_v40 = vsel %vm510_vm1, %v12147_v28, %v12149_v12  ;;  %v12160_v13 = vld [vmem:[#allocation34_spill] sm:$0xff]  ;;  %v12163_v28 = vld [vmem:[#allocation35_spill] sm:$0xff] }
 0x56f   : > { %4513 = vrot.lane.b32.xlu1 %v4505_v37, %s6349_s15  ;;  %4511 = vrot.lane.b32.xlu0 %v4504_v38, %s6349_s15  ;;  %s6350_s15 = smov 101   ;;  %v611_v45 = vsel %vm510_vm1, %v12151_v49, %v12150_v50  ;;  %v612_v58 = vsel %vm510_vm1, %v12150_v50, %v12152_v32  ;;  %v4546_v33 = vmul.f32 %v8775_v39, %v4543_v5  ;;  %v4563_v0 = vstv %s9103_s22  ;;  %v12166_v50 = vld [vmem:[#allocation40_spill] sm:$0xff]  ;;  %v12168_v32 = vld [vmem:[#allocation42_spill] sm:$0xff]  ;;  %s9740_s22 = sld [smem:[#allocation3 + $0x9d]] }
 0x570   : > { %v4545_v37 = vmul.f32 %v8786_v59, %v4543_v5  ;;  %v556_v38 = vadd.f32 %v552_v34, %v395_v42  ;;  %v575_v43 = vadd.f32 %v571_v41, %v414_v1  ;;  %v576_v44 = vadd.f32 %v572_v63, %v415_v48  ;;  %v12158_v5 = vld [vmem:[#allocation31_spill] sm:$0xff]  ;;  %v12161_v41 = vld [vmem:[#allocation36_spill] sm:$0xff]  ;;  %v12162_v63 = vld [vmem:[#allocation38_spill] sm:$0xff] }
 0x571   : > { %v9117_v15 = vpop.permute.xlu1 %4147  ;;  %v9119_v20 = vpop.permute.xlu0 %4131  ;;  %v595_v46 = vadd.f32 %v591_v27, %v434_v17  ;;  %v631_v36 = vsel %vm510_vm1, %v12154_v52, %v12153_v47  ;;  %v632_v56 = vsel %vm510_vm1, %v12153_v47, %v12155_v51  ;;  %v596_v1 = vadd.f32 %v592_v40, %v435_v61  ;;  %v12164_v27 = vld [vmem:[#allocation37_spill] sm:$0xff]  ;;  %v12165_v40 = vld [vmem:[#allocation39_spill] sm:$0xff] }
 0x572   : > { %v615_v48 = vadd.f32 %v611_v45, %v454_v35  ;;  %v616_v17 = vadd.f32 %v612_v58, %v455_v53  ;;  %v672_v14 = vsel %vm671_vm2, %v12160_v13, %v12159_v6  ;;  %v635_v34 = vadd.f32 %v631_v36, %v474_v54  ;;  %v12171_v52 = vld [vmem:[#allocation43_spill] sm:$0xff]  ;;  %v12174_v13 = vld [vmem:[#allocation48_spill] sm:$0xff] }
 0x573   : > { %4531 = vrot.lane.b32.xlu1 %v4524_v57, %s6350_s15  ;;  %4529 = vrot.lane.b32.xlu0 %v4523_v60, %s6350_s15  ;;  %v12156_v57 = vld [vmem:[#allocation32_spill] sm:$0xff]  ;;  %v12157_v60 = vld [vmem:[#allocation29_spill] sm:$0xff]  ;;  %v636_v61 = vadd.f32 %v632_v56, %v475_v30  ;;  %v4583_v53 = vstv %s9131_s0  ;;  %v673_v23 = vsel %vm671_vm2, %v12159_v6, %v12161_v41  ;;  %v692_v16 = vsel %vm671_vm2, %v12163_v28, %v12162_v63  ;;  %s6352_s0 = smov 99  }
 0x574   : > { %v651_v4 = vsel %vm510_vm1, %v12157_v60, %v12156_v57  ;;  %v652_v10 = vsel %vm510_vm1, %v12156_v57, %v12158_v5  ;;  %v693_v12 = vsel %vm671_vm2, %v12162_v63, %v12164_v27  ;;  %v712_v54 = vsel %vm671_vm2, %v12166_v50, %v12165_v40  ;;  %v12172_v5 = vld [vmem:[#allocation45_spill] sm:$0xff]  ;;  %v12179_v63 = vld [vmem:[#allocation52_spill] sm:$0xff] }
 0x575   : > { %v9142_v29 = vpop.permute.xlu1 %4151  ;;  %v9144_v2 = vpop.permute.xlu0 %4149  ;;  %v655_v35 = vadd.f32 %v651_v4, %v494_v7  ;;  %v656_v49 = vadd.f32 %v652_v10, %v495_v25  ;;  %v676_v45 = vadd.f32 %v672_v14, %v515_v26  ;;  %v713_v58 = vsel %vm671_vm2, %v12165_v40, %v12168_v32  ;;  %v12173_v10 = vld [vmem:[#allocation46_spill] sm:$0xff] }
 0x576   : > { %v4584_v25 = vmul.f32 %v8814_v3, %v4583_v53  ;;  %v4566_v26 = vmul.f32 %v8775_v39, %v4563_v0  ;;  %v677_v51 = vadd.f32 %v673_v23, %v516_v21  ;;  %v696_v56 = vadd.f32 %v692_v16, %v535_v24  ;;  %v12178_v23 = vld [vmem:[#allocation51_spill] sm:$0xff]  ;;  %v12180_v16 = vld [vmem:[#allocation54_spill] sm:$0xff] }
 0x577   : > { %4550 = vrot.lane.b32.xlu1 %v4544_v18, %s6350_s15  ;;  %4533 = vrot.lane.b32.xlu0 %v4525_v19, %s6350_s15  ;;  %v4565_v18 = vmul.f32 %v8786_v59, %v4563_v0  ;;  %v4564_v19 = vmul.f32 %v8814_v3, %v4563_v0  ;;  %v697_v57 = vadd.f32 %v693_v12, %v536_v31  ;;  %vm3086_vm1 = vcmask 900096  }
 0x578   : > { %v716_v60 = vadd.f32 %v712_v54, %v555_v55  ;;  %v717_v4 = vadd.f32 %v713_v58, %v556_v38  ;;  %v752_v6 = vsel %vm671_vm2, %v12173_v10, %v12172_v5  ;;  %v753_v14 = vsel %vm671_vm2, %v12172_v5, %v12174_v13  ;;  %v12177_v38 = vld [vmem:[#allocation49_spill] sm:$0xff]  ;;  %v12181_v58 = vld [vmem:[#allocation56_spill] sm:$0xff]  ;;  %v12187_v10 = vld [vmem:[#allocation62_spill] sm:$0xff] }
 0x579   : > { %v9172_v9 = vpop.permute.xlu1 %4169  ;;  %v9174_v42 = vpop.permute.xlu0 %4167  ;;  %v792_v28 = vsel %vm671_vm2, %v12179_v63, %v12178_v23  ;;  %v793_v27 = vsel %vm671_vm2, %v12178_v23, %v12180_v16  ;;  %v4586_v12 = vmul.f32 %v8775_v39, %v4583_v53  ;;  %v757_v40 = vadd.f32 %v753_v14, %v596_v1  ;;  %v12189_v14 = vld [vmem:[#allocation61_spill] sm:$0xff]  ;;  %v12190_v23 = vld [vmem:[#allocation63_spill] sm:$0xff]  ;;  %v12191_v63 = vld [vmem:[#allocation64_spill] sm:$0xff] }
 0x57a   : > { %v4603_v54 = vstv %s9187_s6  ;;  %v796_v1 = vadd.f32 %v792_v28, %v635_v34  ;;  %v873_v28 = vsel %vm832_vm3, %v12191_v63, %v12190_v23  ;;  %v12192_v16 = vld [vmem:[#allocation66_spill] sm:$0xff]  ;;  %s9824_s6 = sld [smem:[#allocation3 + $0x19d]] }
 0x57b   : > { %4554 = vrot.lane.b32.xlu1 %v4546_v33, %s6350_s15  ;;  %4552 = vrot.lane.b32.xlu0 %v4545_v37, %s6350_s15  ;;  %v12169_v33 = vld [vmem:[#allocation44_spill] sm:$0xff]  ;;  %v12170_v37 = vld [vmem:[#allocation41_spill] sm:$0xff]  ;;  %v4604_v34 = vmul.f32 %v8814_v3, %v4603_v54 }
 0x57c   : > { %v732_v47 = vsel %vm671_vm2, %v12170_v37, %v12169_v33  ;;  %v733_v36 = vsel %vm671_vm2, %v12169_v33, %v12171_v52  ;;  %v12182_v33 = vld [vmem:[#allocation53_spill] sm:$0xff] }
 0x57d   : > { %v9201_v30 = vpop.permute.xlu1 %4187  ;;  %v9203_v7 = vpop.permute.xlu0 %4171  ;;  %v736_v31 = vadd.f32 %v732_v47, %v575_v43  ;;  %v737_v55 = vadd.f32 %v733_v36, %v576_v44  ;;  %v4585_v43 = vmul.f32 %v8786_v59, %v4583_v53  ;;  %v756_v44 = vadd.f32 %v752_v6, %v595_v46  ;;  %v12183_v47 = vld [vmem:[#allocation55_spill] sm:$0xff]  ;;  %v12184_v36 = vld [vmem:[#allocation57_spill] sm:$0xff] }
 0x57e   : > { %12167 = vst [vmem:[#allocation20_spill] sm:$0xff] %v9203_v7  ;;  %v812_v37 = vsel %vm671_vm2, %v12182_v33, %v12181_v58  ;;  %v813_v52 = vsel %vm671_vm2, %v12181_v58, %v12183_v47  ;;  %v12188_v6 = vld [vmem:[#allocation59_spill] sm:$0xff] }
 0x57f   : > { %4572 = vrot.lane.b32.xlu1 %v4565_v18, %s6350_s15  ;;  %4570 = vrot.lane.b32.xlu0 %v4564_v19, %s6350_s15  ;;  %v12175_v18 = vld [vmem:[#allocation50_spill] sm:$0xff]  ;;  %v12176_v19 = vld [vmem:[#allocation47_spill] sm:$0xff]  ;;  %v853_v13 = vsel %vm832_vm3, %v12188_v6, %v12187_v10 }
 0x580   : > { %v772_v0 = vsel %vm671_vm2, %v12176_v19, %v12175_v18  ;;  %v773_v41 = vsel %vm671_vm2, %v12175_v18, %v12177_v38  ;;  %v854_v18 = vsel %vm832_vm3, %v12187_v10, %v12189_v14  ;;  %v4605_v19 = vmul.f32 %v8786_v59, %v4603_v54  ;;  %v12195_v33 = vld [vmem:[#allocation67_spill] sm:$0xff] }
 0x581   : > { %v9229_v21 = vpop.permute.xlu1 %4191  ;;  %v9231_v24 = vpop.permute.xlu0 %4189  ;;  %v776_v50 = vadd.f32 %v772_v0, %v615_v48  ;;  %v777_v32 = vadd.f32 %v773_v41, %v616_v17  ;;  %v797_v48 = vadd.f32 %v793_v27, %v636_v61  ;;  %v12186_v17 = vld [vmem:[#allocation60_spill] sm:$0xff]  ;;  %v816_v61 = vadd.f32 %v812_v37, %v655_v35 }
 0x582   : > { %v834_v53 = vsel %vm832_vm3, %v12184_v36, %v12186_v17  ;;  %v817_v0 = vadd.f32 %v813_v52, %v656_v49  ;;  %v4623_v41 = vstv %s9218_s7  ;;  %v874_v27 = vsel %vm832_vm3, %v12190_v23, %v12192_v16  ;;  %v12198_v17 = vld [vmem:[#allocation72_spill] sm:$0xff]  ;;  %v12200_v23 = vld [vmem:[#allocation71_spill] sm:$0xff]  ;;  %v12201_v16 = vld [vmem:[#allocation73_spill] sm:$0xff]  ;;  %s9880_s7 = sld [smem:[#allocation3 + $0x21d]] }
 0x583   : > { %4590 = vrot.lane.b32.xlu1 %v4584_v25, %s6350_s15  ;;  %4574 = vrot.lane.b32.xlu0 %v4566_v26, %s6350_s15  ;;  %v12185_v25 = vld [vmem:[#allocation58_spill] sm:$0xff]  ;;  %v838_v37 = vadd.f32 %v834_v53, %v677_v51  ;;  %v857_v47 = vadd.f32 %v853_v13, %v696_v56  ;;  %v858_v52 = vadd.f32 %v854_v18, %v697_v57  ;;  %vm3247_vm2 = vcmask 891904  }
 0x584   : > { %v833_v26 = vsel %vm832_vm3, %v12185_v25, %v12184_v36  ;;  %v12196_v36 = vld [vmem:[#allocation69_spill] sm:$0xff]  ;;  %v12197_v25 = vld [vmem:[#allocation70_spill] sm:$0xff]  ;;  %v4624_v6 = vmul.f32 %v8814_v3, %v4623_v41  ;;  %v4606_v14 = vmul.f32 %v8775_v39, %v4603_v54  ;;  %v877_v51 = vadd.f32 %v873_v28, %v716_v60  ;;  %v12205_v28 = vld [vmem:[#allocation80_spill] sm:$0xff] }
 0x585   : > { %v9256_v5 = vpop.permute.xlu1 %4209  ;;  %v9258_v46 = vpop.permute.xlu0 %4207  ;;  %v837_v38 = vadd.f32 %v833_v26, %v676_v45  ;;  %v913_v26 = vsel %vm832_vm3, %v12197_v25, %v12196_v36  ;;  %v914_v10 = vsel %vm832_vm3, %v12196_v36, %v12198_v17  ;;  %v878_v56 = vadd.f32 %v874_v27, %v717_v4  ;;  %v12199_v18 = vld [vmem:[#allocation74_spill] sm:$0xff]  ;;  %v12206_v27 = vld [vmem:[#allocation77_spill] sm:$0xff] }
 0x586   : > { %v917_v13 = vadd.f32 %v913_v26, %v756_v44  ;;  %v933_v63 = vsel %vm832_vm3, %v12200_v23, %v12199_v18  ;;  %v12209_v36 = vld [vmem:[#allocation82_spill] sm:$0xff]  ;;  %v4625_v26 = vmul.f32 %v8786_v59, %v4623_v41  ;;  %v4643_v23 = vstv %s9274_s23  ;;  %s9911_s23 = sld [smem:[#allocation3 + $0x29d]] }
 0x587   : > { %4594 = vrot.lane.b32.xlu1 %v4586_v12, %s6350_s15  ;;  %4592 = vrot.lane.b32.xlu0 %v4585_v43, %s6350_s15  ;;  %v12193_v12 = vld [vmem:[#allocation68_spill] sm:$0xff]  ;;  %v12194_v43 = vld [vmem:[#allocation65_spill] sm:$0xff]  ;;  %v937_v17 = vadd.f32 %v933_v63, %v776_v50 }
 0x588   : > { %v893_v58 = vsel %vm832_vm3, %v12194_v43, %v12193_v12  ;;  %v894_v35 = vsel %vm832_vm3, %v12193_v12, %v12195_v33  ;;  %v12203_v12 = vld [vmem:[#allocation76_spill] sm:$0xff]  ;;  %v973_v43 = vsel %vm832_vm3, %v12206_v27, %v12205_v28 }
 0x589   : > { %v9288_v49 = vpop.permute.xlu1 %4228  ;;  %v9290_v45 = vpop.permute.xlu0 %4211  ;;  %v897_v57 = vadd.f32 %v893_v58, %v736_v31  ;;  %v898_v53 = vadd.f32 %v894_v35, %v737_v55  ;;  %v918_v31 = vadd.f32 %v914_v10, %v757_v40  ;;  %v12204_v55 = vld [vmem:[#allocation78_spill] sm:$0xff]  ;;  %v12207_v58 = vld [vmem:[#allocation79_spill] sm:$0xff]  ;;  %v12208_v35 = vld [vmem:[#allocation81_spill] sm:$0xff]  ;;  %v4626_v40 = vmul.f32 %v8775_v39, %v4623_v41 }
 0x58a   : > { %v974_v33 = vsel %vm832_vm3, %v12205_v28, %v12207_v58  ;;  %v994_v25 = vsel %vm993_vm4, %v12209_v36, %v12208_v35  ;;  %v12212_v28 = vld [vmem:[#allocation83_spill] sm:$0xff]  ;;  %v12216_v63 = vld [vmem:[#allocation88_spill] sm:$0xff]  ;;  %v4644_v36 = vmul.f32 %v8814_v3, %v4643_v23 }
 0x58b   : > { %4612 = vrot.lane.b32.xlu1 %v4605_v19, %s6350_s15  ;;  %4610 = vrot.lane.b32.xlu0 %v4604_v34, %s6350_s15  ;;  %v934_v19 = vsel %vm832_vm3, %v12199_v18, %v12201_v16  ;;  %v12202_v34 = vld [vmem:[#allocation75_spill] sm:$0xff] }
 0x58c   : > { %v953_v54 = vsel %vm832_vm3, %v12203_v12, %v12202_v34  ;;  %v954_v44 = vsel %vm832_vm3, %v12202_v34, %v12204_v55  ;;  %v938_v10 = vadd.f32 %v934_v19, %v777_v32  ;;  %v12210_v34 = vld [vmem:[#allocation84_spill] sm:$0xff]  ;;  %v12211_v55 = vld [vmem:[#allocation86_spill] sm:$0xff]  ;;  %v977_v32 = vadd.f32 %v973_v43, %v816_v61  ;;  %v12215_v41 = vld [vmem:[#allocation87_spill] sm:$0xff] }
 0x58d   : > { %v9313_v60 = vpop.permute.xlu1 %4232  ;;  %v9315_v4 = vpop.permute.xlu0 %4230  ;;  %v957_v18 = vadd.f32 %v953_v54, %v796_v1  ;;  %v958_v16 = vadd.f32 %v954_v44, %v797_v48  ;;  %v995_v12 = vsel %vm993_vm4, %v12208_v35, %v12210_v34  ;;  %v1014_v27 = vsel %vm993_vm4, %v12212_v28, %v12211_v55  ;;  %v12217_v54 = vld [vmem:[#allocation90_spill] sm:$0xff]  ;;  %v12218_v43 = vld [vmem:[#allocation92_spill] sm:$0xff]  ;;  %v12221_v28 = vld [vmem:[#allocation93_spill] sm:$0xff] }
 0x58e   : > { %v978_v1 = vadd.f32 %v974_v33, %v817_v0  ;;  %v998_v48 = vadd.f32 %v994_v25, %v837_v38  ;;  %v1034_v19 = vsel %vm993_vm4, %v12216_v63, %v12215_v41  ;;  %v1035_v44 = vsel %vm993_vm4, %v12215_v41, %v12217_v54  ;;  %v12219_v33 = vld [vmem:[#allocation89_spill] sm:$0xff]  ;;  %v12223_v41 = vld [vmem:[#allocation96_spill] sm:$0xff]  ;;  %v12227_v63 = vld [vmem:[#allocation95_spill] sm:$0xff] }
 0x58f   : > { %4630 = vrot.lane.b32.xlu1 %v4624_v6, %s6350_s15  ;;  %4614 = vrot.lane.b32.xlu0 %v4606_v14, %s6350_s15  ;;  %v12213_v6 = vld [vmem:[#allocation85_spill] sm:$0xff]  ;;  %v4645_v35 = vmul.f32 %v8786_v59, %v4643_v23  ;;  %v999_v34 = vadd.f32 %v995_v12, %v838_v37  ;;  %v1018_v61 = vadd.f32 %v1014_v27, %v857_v47  ;;  %v4663_v38 = vstv %s9302_s25  ;;  %s9967_s25 = sld [smem:[#allocation3 + $0x31d]] }
 0x590   : > { %v1015_v14 = vsel %vm993_vm4, %v12211_v55, %v12213_v6  ;;  %v1054_v25 = vsel %vm993_vm4, %v12219_v33, %v12218_v43  ;;  %v12220_v55 = vld [vmem:[#allocation91_spill] sm:$0xff]  ;;  %v1075_v37 = vsel %vm993_vm4, %v12221_v28, %v12223_v41  ;;  %v1038_v12 = vadd.f32 %v1034_v19, %v877_v51  ;;  %v12228_v33 = vld [vmem:[#allocation97_spill] sm:$0xff] }
 0x591   : > { %v9343_v58 = vpop.permute.xlu1 %4250  ;;  %v9345_v50 = vpop.permute.xlu0 %4248  ;;  %v1019_v0 = vadd.f32 %v1015_v14, %v858_v52  ;;  %v1039_v27 = vadd.f32 %v1035_v44, %v878_v56  ;;  %v12226_v14 = vld [vmem:[#allocation98_spill] sm:$0xff]  ;;  %v4664_v51 = vmul.f32 %v8814_v3, %v4663_v38  ;;  %v4646_v56 = vmul.f32 %v8775_v39, %v4643_v23 }
 0x592   : > { %12214 = vst [vmem:[#allocation21_spill] sm:$0xff] %v9345_v50  ;;  %v1094_v54 = vsel %vm993_vm4, %v12227_v63, %v12226_v14  ;;  %v1058_v19 = vadd.f32 %v1054_v25, %v897_v57  ;;  %v1079_v41 = vadd.f32 %v1075_v37, %v918_v31  ;;  %v12231_v63 = vld [vmem:[#allocation102_spill] sm:$0xff]  ;;  %vm3408_vm3 = vcmask 883712  }
 0x593   : > { %4634 = vrot.lane.b32.xlu1 %v4626_v40, %s6350_s15  ;;  %4632 = vrot.lane.b32.xlu0 %v4625_v26, %s6350_s15  ;;  %v1055_v40 = vsel %vm993_vm4, %v12218_v43, %v12220_v55  ;;  %v12222_v26 = vld [vmem:[#allocation94_spill] sm:$0xff]  ;;  %v1095_v43 = vsel %vm993_vm4, %v12226_v14, %v12228_v33  ;;  %v12229_v55 = vld [vmem:[#allocation99_spill] sm:$0xff]  ;;  %v1098_v14 = vadd.f32 %v1094_v54, %v937_v17  ;;  %v12237_v17 = vld [vmem:[#allocation105_spill] sm:$0xff] }
 0x594   : > { %v1074_v6 = vsel %vm993_vm4, %v12222_v26, %v12221_v28  ;;  %v12230_v26 = vld [vmem:[#allocation100_spill] sm:$0xff]  ;;  %v1059_v44 = vadd.f32 %v1055_v40, %v898_v53  ;;  %v1115_v33 = vsel %vm993_vm4, %v12229_v55, %v12231_v63  ;;  %v12238_v25 = vld [vmem:[#allocation106_spill] sm:$0xff]  ;;  %v12241_v54 = vld [vmem:[#allocation107_spill] sm:$0xff]  ;;  %v4666_v63 = vmul.f32 %v8775_v39, %v4663_v38 }
 0x595   : > { %v9372_v47 = vpop.permute.xlu1 %4268  ;;  %v9374_v52 = vpop.permute.xlu0 %4252  ;;  %v1114_v7 = vsel %vm993_vm4, %v12230_v26, %v12229_v55  ;;  %v1078_v28 = vadd.f32 %v1074_v6, %v917_v13  ;;  %v12232_v26 = vld [vmem:[#allocation104_spill] sm:$0xff]  ;;  %v1099_v13 = vadd.f32 %v1095_v43, %v938_v10  ;;  %v1155_v40 = vsel %vm1154_vm5, %v12238_v25, %v12237_v17  ;;  %v12242_v25 = vld [vmem:[#allocation109_spill] sm:$0xff] }
 0x596   : > { %12224 = vst [vmem:[#allocation22_spill] sm:$0xff] %v9372_v47  ;;  %12225 = vst [vmem:[#allocation24_spill] sm:$0xff] %v9374_v52  ;;  %v12233_v47 = vld [vmem:[#allocation101_spill] sm:$0xff]  ;;  %v1118_v31 = vadd.f32 %v1114_v7, %v957_v18  ;;  %v12239_v6 = vld [vmem:[#allocation108_spill] sm:$0xff]  ;;  %v4665_v7 = vmul.f32 %v8786_v59, %v4663_v38  ;;  %v1119_v10 = vadd.f32 %v1115_v33, %v958_v16 }
 0x597   : > { %4652 = vrot.lane.b32.xlu1 %v4645_v35, %s6350_s15  ;;  %4650 = vrot.lane.b32.xlu0 %v4644_v36, %s6350_s15  ;;  %v1134_v35 = vsel %vm993_vm4, %v12233_v47, %v12232_v26  ;;  %v12234_v36 = vld [vmem:[#allocation103_spill] sm:$0xff]  ;;  %v1156_v37 = vsel %vm1154_vm5, %v12237_v17, %v12239_v6  ;;  %v12240_v47 = vld [vmem:[#allocation110_spill] sm:$0xff]  ;;  %v12249_v38 = vld [vmem:[#allocation113_spill] sm:$0xff] }
 0x598   : > { %v1135_v23 = vsel %vm993_vm4, %v12232_v26, %v12234_v36  ;;  %v1175_v55 = vsel %vm1154_vm5, %v12241_v54, %v12240_v47  ;;  %v1138_v18 = vadd.f32 %v1134_v35, %v977_v32  ;;  %v4683_v26 = vstv %s9358_s9  ;;  %v12243_v6 = vld [vmem:[#allocation111_spill] sm:$0xff]  ;;  %v12297_v52 = vld [vmem:[#allocation156_spill] sm:$0xff]  ;;  %s9995_s9 = sld [smem:[#allocation3 + $0x39d]] }
 0x599   : > { %v9400_v57 = vpop.permute.xlu1 %4272  ;;  %v9402_v53 = vpop.permute.xlu0 %4270  ;;  %v1139_v43 = vadd.f32 %v1135_v23, %v978_v1  ;;  %v1159_v36 = vadd.f32 %v1155_v40, %v998_v48  ;;  %v1176_v17 = vsel %vm1154_vm5, %v12240_v47, %v12242_v25  ;;  %v1160_v32 = vadd.f32 %v1156_v37, %v999_v34  ;;  %v12248_v48 = vld [vmem:[#allocation116_spill] sm:$0xff]  ;;  %v12250_v35 = vld [vmem:[#allocation115_spill] sm:$0xff]  ;;  %v12252_v40 = vld [vmem:[#allocation118_spill] sm:$0xff] }
 0x59a   : > { %12235 = vst [vmem:[#allocation26_spill] sm:$0xff] %v9400_v57  ;;  %12236 = vst [vmem:[#allocation23_spill] sm:$0xff] %v9402_v53  ;;  %v12244_v57 = vld [vmem:[#allocation112_spill] sm:$0xff]  ;;  %v1179_v1 = vadd.f32 %v1175_v55, %v1018_v61  ;;  %v1215_v33 = vsel %vm1154_vm5, %v12249_v38, %v12248_v48  ;;  %v1216_v23 = vsel %vm1154_vm5, %v12248_v48, %v12250_v35  ;;  %v12254_v38 = vld [vmem:[#allocation122_spill] sm:$0xff]  ;;  %vm3569_vm4 = vcmask 875520  }
 0x59b   : > { %4670 = vrot.lane.b32.xlu1 %v4664_v51, %s6350_s15  ;;  %4654 = vrot.lane.b32.xlu0 %v4646_v56, %s6350_s15  ;;  %v1195_v54 = vsel %vm1154_vm5, %v12244_v57, %v12243_v6  ;;  %v12245_v51 = vld [vmem:[#allocation114_spill] sm:$0xff]  ;;  %v12251_v57 = vld [vmem:[#allocation117_spill] sm:$0xff]  ;;  %v4685_v34 = vmul.f32 %v8786_v59, %v4683_v26  ;;  %v4684_v61 = vmul.f32 %v8814_v3, %v4683_v26  ;;  %v12255_v35 = vld [vmem:[#allocation119_spill] sm:$0xff] }
 0x59c   : > { %v1196_v56 = vsel %vm1154_vm5, %v12243_v6, %v12245_v51  ;;  %v1235_v47 = vsel %vm1154_vm5, %v12252_v40, %v12251_v57  ;;  %v1180_v37 = vadd.f32 %v1176_v17, %v1019_v0  ;;  %v1199_v55 = vadd.f32 %v1195_v54, %v1038_v12  ;;  %v12253_v51 = vld [vmem:[#allocation120_spill] sm:$0xff]  ;;  %v12257_v40 = vld [vmem:[#allocation123_spill] sm:$0xff] }
 0x59d   : > { %v9427_v39 = vpop.permute.xlu1 %4290  ;;  %v9429_v16 = vpop.permute.xlu0 %4288  ;;  %v1200_v25 = vadd.f32 %v1196_v56, %v1039_v27  ;;  %v4704_v6 = vstv %s9389_s21  ;;  %v1236_v48 = vsel %vm1154_vm5, %v12251_v57, %v12253_v51  ;;  %v12258_v0 = vld [vmem:[#allocation124_spill] sm:$0xff]  ;;  %v1219_v54 = vadd.f32 %v1215_v33, %v1058_v19  ;;  %v12261_v57 = vld [vmem:[#allocation126_spill] sm:$0xff]  ;;  %s10051_s21 = sld [smem:[#allocation3 + $0x1e]] }
 0x59e   : > { %12246 = vst [vmem:[#allocation25_spill] sm:$0xff] %v9427_v39  ;;  %12247 = vst [vmem:[#allocation27_spill] sm:$0xff] %v9429_v16  ;;  %v1275_v12 = vsel %vm1154_vm5, %v12258_v0, %v12257_v40  ;;  %v1220_v56 = vadd.f32 %v1216_v23, %v1059_v44  ;;  %v1239_v16 = vadd.f32 %v1235_v47, %v1078_v28  ;;  %v12263_v39 = vld [vmem:[#allocation125_spill] sm:$0xff]  ;;  %v12267_v0 = vld [vmem:[#allocation132_spill] sm:$0xff] }
 0x59f   : > { %4674 = vrot.lane.b32.xlu1 %v4666_v63, %s6350_s15  ;;  %4672 = vrot.lane.b32.xlu0 %v4665_v7, %s6350_s15  ;;  %v1255_v63 = vsel %vm1154_vm5, %v12255_v35, %v12254_v38  ;;  %v12256_v7 = vld [vmem:[#allocation121_spill] sm:$0xff]  ;;  %v1276_v51 = vsel %vm1154_vm5, %v12257_v40, %v12261_v57  ;;  %v12262_v35 = vld [vmem:[#allocation128_spill] sm:$0xff]  ;;  %v1240_v44 = vadd.f32 %v1236_v48, %v1079_v41  ;;  %s9796_s15 = sld [smem:[#allocation3 + $0x11d]] }
 0x5a0   : > { %v1256_v59 = vsel %vm1154_vm5, %v12254_v38, %v12256_v7  ;;  %v1295_v53 = vsel %vm1154_vm5, %v12263_v39, %v12262_v35  ;;  %v4705_v38 = vmul.f32 %v8814_v3, %v4704_v6  ;;  %v9473_v7 = vld [vmem:[%s6576_s27] sm:$0xff]  ;;  %v1259_v28 = vadd.f32 %v1255_v63, %v1098_v14  ;;  %v12265_v40 = vld [vmem:[#allocation129_spill] sm:$0xff]  ;;  %v12274_v57 = vld [vmem:[#allocation136_spill] sm:$0xff] }
 0x5a1   : > { %v9459_v27 = vpop.permute.xlu1 %4308  ;;  %v9461_v17 = vpop.permute.xlu0 %4292  ;;  %v4686_v19 = vmul.f32 %v9473_v7, %v4683_v26  ;;  %v1260_v33 = vadd.f32 %v1256_v59, %v1099_v13  ;;  %v1279_v23 = vadd.f32 %v1275_v12, %v1118_v31  ;;  %v1280_v47 = vadd.f32 %v1276_v51, %v1119_v10  ;;  %v12264_v39 = vld [vmem:[#allocation127_spill] sm:$0xff]  ;;  %v12270_v31 = vld [vmem:[#allocation134_spill] sm:$0xff]  ;;  %v12272_v63 = vld [vmem:[#allocation133_spill] sm:$0xff] }
 0x5a2   : > { %12259 = vst [vmem:[#allocation28_spill] sm:$0xff] %v9459_v27  ;;  %12260 = vst [vmem:[#allocation30_spill] sm:$0xff] %v9461_v17  ;;  %v1317_v26 = vsel %vm1315_vm6, %v12265_v40, %v12267_v0  ;;  %v1299_v13 = vadd.f32 %v1295_v53, %v1138_v18  ;;  %v12271_v10 = vld [vmem:[#allocation131_spill] sm:$0xff]  ;;  %v1337_v59 = vsel %vm1315_vm6, %v12270_v31, %v12272_v63  ;;  %v12280_v27 = vld [vmem:[#allocation142_spill] sm:$0xff] }
 0x5a3   : > { %4692 = vrot.lane.b32.xlu1 %v4685_v34, %s6351_s8  ;;  %4690 = vrot.lane.b32.xlu0 %v4684_v61, %s6351_s8  ;;  %v1296_v34 = vsel %vm1154_vm5, %v12262_v35, %v12264_v39  ;;  %v12266_v61 = vld [vmem:[#allocation130_spill] sm:$0xff]  ;;  %v1336_v48 = vsel %vm1315_vm6, %v12271_v10, %v12270_v31  ;;  %v12273_v12 = vld [vmem:[#allocation135_spill] sm:$0xff]  ;;  %v4707_v53 = vmul.f32 %v9473_v7, %v4704_v6  ;;  %v4724_v10 = vstv %s9445_s26  ;;  %s10082_s26 = sld [smem:[#allocation3 + $0x9e]] }
 0x5a4   : > { %v1316_v3 = vsel %vm1315_vm6, %v12266_v61, %v12265_v40  ;;  %v1356_v51 = vsel %vm1315_vm6, %v12274_v57, %v12273_v12  ;;  %v12275_v35 = vld [vmem:[#allocation138_spill] sm:$0xff]  ;;  %v9507_v18 = vld [vmem:[%s6569_s12 + $0x8] sm:$0xff]  ;;  %v1300_v61 = vadd.f32 %v1296_v34, %v1139_v43  ;;  %v1321_v31 = vadd.f32 %v1317_v26, %v1160_v32  ;;  %v12276_v57 = vld [vmem:[#allocation140_spill] sm:$0xff] }
 0x5a5   : > { %v9487_v41 = vpop.permute.xlu1 %4312  ;;  %v9489_v14 = vpop.permute.xlu0 %4310  ;;  %v1357_v39 = vsel %vm1315_vm6, %v12273_v12, %v12275_v35  ;;  %v4706_v40 = vmul.f32 %v9507_v18, %v4704_v6  ;;  %v1320_v0 = vadd.f32 %v1316_v3, %v1159_v36  ;;  %v1340_v63 = vadd.f32 %v1336_v48, %v1179_v1  ;;  %v12278_v35 = vld [vmem:[#allocation139_spill] sm:$0xff]  ;;  %v12283_v6 = vld [vmem:[#allocation144_spill] sm:$0xff]  ;;  %v12284_v3 = vld [vmem:[#allocation146_spill] sm:$0xff] }
 0x5a6   : > { %12268 = vst [vmem:[#allocation32_spill] sm:$0xff] %v9487_v41  ;;  %12269 = vst [vmem:[#allocation29_spill] sm:$0xff] %v9489_v14  ;;  %v12277_v41 = vld [vmem:[#allocation137_spill] sm:$0xff]  ;;  %v1341_v36 = vadd.f32 %v1337_v59, %v1180_v37  ;;  %v1360_v32 = vadd.f32 %v1356_v51, %v1199_v55  ;;  %v1361_v1 = vadd.f32 %v1357_v39, %v1200_v25  ;;  %v12285_v26 = vld [vmem:[#allocation143_spill] sm:$0xff]  ;;  %v4744_v51 = vstv %s9476_s10  ;;  %s6353_s10 = smov 98  }
 0x5a7   : > { %4711 = vrot.lane.b32.xlu1 %v4705_v38, %s6351_s8  ;;  %4694 = vrot.lane.b32.xlu0 %v4686_v19, %s6351_s8  ;;  %v1376_v12 = vsel %vm1315_vm6, %v12277_v41, %v12276_v57  ;;  %v1377_v38 = vsel %vm1315_vm6, %v12276_v57, %v12278_v35  ;;  %v12279_v19 = vld [vmem:[#allocation141_spill] sm:$0xff]  ;;  %v1416_v41 = vsel %vm1315_vm6, %v12285_v26, %v12284_v3  ;;  %v9534_v48 = vld [vmem:[%s6569_s12] sm:$0xff]  ;;  %v12287_v35 = vld [vmem:[#allocation147_spill] sm:$0xff]  ;;  %vm3730_vm5 = vcmask 867328  }
 0x5a8   : > { %v1396_v14 = vsel %vm1315_vm6, %v12280_v27, %v12279_v19  ;;  %v1397_v34 = vsel %vm1315_vm6, %v12279_v19, %v12283_v6  ;;  %v4726_v27 = vmul.f32 %v9507_v18, %v4724_v10  ;;  %v4725_v37 = vmul.f32 %v9534_v48, %v4724_v10  ;;  %v12286_v39 = vld [vmem:[#allocation145_spill] sm:$0xff]  ;;  %v12289_v19 = vld [vmem:[#allocation150_spill] sm:$0xff]  ;;  %v12290_v26 = vld [vmem:[#allocation152_spill] sm:$0xff] }
 0x5a9   : > { %v9520_v17 = vpop.permute.xlu1 %4330  ;;  %v9522_v43 = vpop.permute.xlu0 %4328  ;;  %v1380_v55 = vadd.f32 %v1376_v12, %v1219_v54  ;;  %v1381_v25 = vadd.f32 %v1377_v38, %v1220_v56  ;;  %v1400_v59 = vadd.f32 %v1396_v14, %v1239_v16  ;;  %v1417_v57 = vsel %vm1315_vm6, %v12284_v3, %v12286_v39  ;;  %v12294_v38 = vld [vmem:[#allocation151_spill] sm:$0xff]  ;;  %v12295_v39 = vld [vmem:[#allocation153_spill] sm:$0xff] }
 0x5aa   : > { %12281 = vst [vmem:[#allocation31_spill] sm:$0xff] %v9520_v17  ;;  %12282 = vst [vmem:[#allocation33_spill] sm:$0xff] %v9522_v43  ;;  %v1437_v6 = vsel %vm1315_vm6, %v12287_v35, %v12289_v19  ;;  %v12291_v43 = vld [vmem:[#allocation149_spill] sm:$0xff]  ;;  %v1401_v14 = vadd.f32 %v1397_v34, %v1240_v44  ;;  %v1420_v12 = vadd.f32 %v1416_v41, %v1259_v28 }
 0x5ab   : > { %4715 = vrot.lane.b32.xlu1 %v4707_v53, %s6351_s8  ;;  %4713 = vrot.lane.b32.xlu0 %v4706_v40, %s6351_s8  ;;  %v12288_v53 = vld [vmem:[#allocation148_spill] sm:$0xff]  ;;  %v1456_v54 = vsel %vm1315_vm6, %v12291_v43, %v12290_v26  ;;  %v1457_v3 = vsel %vm1315_vm6, %v12290_v26, %v12294_v38  ;;  %v4745_v43 = vmul.f32 %v9534_v48, %v4744_v51  ;;  %v12298_v38 = vld [vmem:[#allocation158_spill] sm:$0xff] }
 0x5ac   : > { %v1436_v40 = vsel %vm1315_vm6, %v12288_v53, %v12287_v35  ;;  %v12296_v53 = vld [vmem:[#allocation154_spill] sm:$0xff]  ;;  %v1478_v35 = vsel %vm1476_vm7, %v12295_v39, %v12297_v52  ;;  %v4727_v44 = vmul.f32 %v9473_v7, %v4724_v10  ;;  %v1421_v28 = vadd.f32 %v1417_v57, %v1260_v33  ;;  %v12300_v52 = vld [vmem:[#allocation157_spill] sm:$0xff]  ;;  %v12306_v57 = vld [vmem:[#allocation164_spill] sm:$0xff] }
 0x5ad   : > { %v9552_v16 = vpop.permute.xlu1 %4348  ;;  %v9554_v56 = vpop.permute.xlu0 %4332  ;;  %v1477_v17 = vsel %vm1476_vm7, %v12296_v53, %v12295_v39  ;;  %v1440_v34 = vadd.f32 %v1436_v40, %v1279_v23  ;;  %v1441_v41 = vadd.f32 %v1437_v6, %v1280_v47  ;;  %v1460_v19 = vadd.f32 %v1456_v54, %v1299_v13  ;;  %v12299_v53 = vld [vmem:[#allocation155_spill] sm:$0xff]  ;;  %v12302_v39 = vld [vmem:[#allocation160_spill] sm:$0xff]  ;;  %v12307_v40 = vld [vmem:[#allocation161_spill] sm:$0xff] }
 0x5ae   : > { %12292 = vst [vmem:[#allocation34_spill] sm:$0xff] %v9552_v16  ;;  %12293 = vst [vmem:[#allocation36_spill] sm:$0xff] %v9554_v56  ;;  %v1461_v26 = vadd.f32 %v1457_v3, %v1300_v61  ;;  %v1497_v56 = vsel %vm1476_vm7, %v12299_v53, %v12298_v38  ;;  %v1481_v47 = vadd.f32 %v1477_v17, %v1320_v0  ;;  %v12305_v61 = vld [vmem:[#allocation162_spill] sm:$0xff]  ;;  %v12308_v54 = vld [vmem:[#allocation163_spill] sm:$0xff]  ;;  %v4764_v53 = vstv %s9538_s30  ;;  %s10166_s30 = sld [smem:[#allocation3 + $0x19e]] }
 0x5af   : > { %4733 = vrot.lane.b32.xlu1 %v4726_v27, %s6351_s8  ;;  %4731 = vrot.lane.b32.xlu0 %v4725_v37, %s6351_s8  ;;  %v1498_v27 = vsel %vm1476_vm7, %v12298_v38, %v12300_v52  ;;  %v12301_v37 = vld [vmem:[#allocation159_spill] sm:$0xff]  ;;  %v1482_v13 = vadd.f32 %v1478_v35, %v1321_v31  ;;  %v1537_v6 = vsel %vm1476_vm7, %v12307_v40, %v12306_v57  ;;  %v12311_v40 = vld [vmem:[#allocation168_spill] sm:$0xff]  ;;  %vm4696_vm6 = vcmask 818176  }
 0x5b0   : > { %v1517_v16 = vsel %vm1476_vm7, %v12302_v39, %v12301_v37  ;;  %v1518_v10 = vsel %vm1476_vm7, %v12301_v37, %v12305_v61  ;;  %v1538_v3 = vsel %vm1476_vm7, %v12306_v57, %v12308_v54  ;;  %v4747_v17 = vmul.f32 %v9473_v7, %v4744_v51  ;;  %v12309_v37 = vld [vmem:[#allocation165_spill] sm:$0xff]  ;;  %v12310_v39 = vld [vmem:[#allocation166_spill] sm:$0xff]  ;;  %v12313_v54 = vld [vmem:[#allocation167_spill] sm:$0xff] }
 0x5b1   : > { %v9580_v33 = vpop.permute.xlu1 %4352  ;;  %v9582_v23 = vpop.permute.xlu0 %4350  ;;  %v4746_v0 = vmul.f32 %v9507_v18, %v4744_v51  ;;  %v1501_v31 = vadd.f32 %v1497_v56, %v1340_v63  ;;  %v1502_v35 = vadd.f32 %v1498_v27, %v1341_v36  ;;  %v1521_v38 = vadd.f32 %v1517_v16, %v1360_v32  ;;  %v12317_v16 = vld [vmem:[#allocation171_spill] sm:$0xff]  ;;  %v12318_v56 = vld [vmem:[#allocation172_spill] sm:$0xff] }
 0x5b2   : > { %12303 = vst [vmem:[#allocation38_spill] sm:$0xff] %v9580_v33  ;;  %12304 = vst [vmem:[#allocation35_spill] sm:$0xff] %v9582_v23  ;;  %v1522_v52 = vadd.f32 %v1518_v10, %v1361_v1  ;;  %v1557_v61 = vsel %vm1476_vm7, %v12310_v39, %v12309_v37  ;;  %v1558_v57 = vsel %vm1476_vm7, %v12309_v37, %v12311_v40  ;;  %v12316_v1 = vld [vmem:[#allocation169_spill] sm:$0xff]  ;;  %v12319_v10 = vld [vmem:[#allocation174_spill] sm:$0xff]  ;;  %v4784_v40 = vstv %s9569_s29  ;;  %s10222_s29 = sld [smem:[#allocation3 + $0x21e]] }
 0x5b3   : > { %4751 = vrot.lane.b32.xlu1 %v4745_v43, %s6351_s8  ;;  %4735 = vrot.lane.b32.xlu0 %v4727_v44, %s6351_s8  ;;  %v12312_v43 = vld [vmem:[#allocation170_spill] sm:$0xff]  ;;  %v1541_v36 = vadd.f32 %v1537_v6, %v1380_v55  ;;  %v1542_v32 = vadd.f32 %v1538_v3, %v1381_v25  ;;  %v1597_v27 = vsel %vm1476_vm7, %v12318_v56, %v12317_v16  ;;  %v12322_v56 = vld [vmem:[#allocation175_spill] sm:$0xff] }
 0x5b4   : > { %v1577_v44 = vsel %vm1476_vm7, %v12313_v54, %v12312_v43  ;;  %v1578_v51 = vsel %vm1476_vm7, %v12312_v43, %v12316_v1  ;;  %v1598_v37 = vsel %vm1476_vm7, %v12317_v16, %v12319_v10  ;;  %v4766_v39 = vmul.f32 %v9507_v18, %v4764_v53  ;;  %v12320_v43 = vld [vmem:[#allocation176_spill] sm:$0xff]  ;;  %v12321_v54 = vld [vmem:[#allocation173_spill] sm:$0xff] }
 0x5b5   : > { %v9607_v33 = vpop.permute.xlu1 %4370  ;;  %v9609_v63 = vpop.permute.xlu0 %4368  ;;  %v4765_v55 = vmul.f32 %v9534_v48, %v4764_v53  ;;  %v1561_v25 = vadd.f32 %v1557_v61, %v1400_v59  ;;  %v1562_v6 = vadd.f32 %v1558_v57, %v1401_v14  ;;  %v1581_v3 = vadd.f32 %v1577_v44, %v1420_v12  ;;  %v12323_v16 = vld [vmem:[#allocation177_spill] sm:$0xff] }
 0x5b6   : > { %12314 = vst [vmem:[#allocation37_spill] sm:$0xff] %v9607_v33  ;;  %12315 = vst [vmem:[#allocation39_spill] sm:$0xff] %v9609_v63  ;;  %v1617_v1 = vsel %vm1476_vm7, %v12321_v54, %v12320_v43  ;;  %v12325_v63 = vld [vmem:[#allocation180_spill] sm:$0xff]  ;;  %v1582_v61 = vadd.f32 %v1578_v51, %v1421_v28  ;;  %v1601_v57 = vadd.f32 %v1597_v27, %v1440_v34  ;;  %v12328_v54 = vld [vmem:[#allocation182_spill] sm:$0xff] }
 0x5b7   : > { %4755 = vrot.lane.b32.xlu1 %v4747_v17, %s6351_s8  ;;  %4753 = vrot.lane.b32.xlu0 %v4746_v0, %s6351_s8  ;;  %v1618_v17 = vsel %vm1476_vm7, %v12320_v43, %v12322_v56  ;;  %v12324_v0 = vld [vmem:[#allocation178_spill] sm:$0xff]  ;;  %v1639_v59 = vsel %vm1637_vm8, %v12323_v16, %v12325_v63  ;;  %v1602_v44 = vadd.f32 %v1598_v37, %v1441_v41  ;;  %v12329_v33 = vld [vmem:[#allocation179_spill] sm:$0xff]  ;;  %v12330_v43 = vld [vmem:[#allocation181_spill] sm:$0xff]  ;;  %vm4857_vm7 = vcmask 809984  }
 0x5b8   : > { %v1638_v10 = vsel %vm1637_vm8, %v12324_v0, %v12323_v16  ;;  %v1658_v23 = vsel %vm1637_vm8, %v12329_v33, %v12328_v54  ;;  %v1659_v56 = vsel %vm1637_vm8, %v12328_v54, %v12330_v43  ;;  %v4785_v63 = vmul.f32 %v9534_v48, %v4784_v40  ;;  %v12331_v33 = vld [vmem:[#allocation183_spill] sm:$0xff]  ;;  %v12332_v27 = vld [vmem:[#allocation184_spill] sm:$0xff]  ;;  %v12333_v54 = vld [vmem:[#allocation186_spill] sm:$0xff] }
 0x5b9   : > { %v9639_v14 = vpop.permute.xlu1 %4389  ;;  %v9641_v12 = vpop.permute.xlu0 %4372  ;;  %v4767_v16 = vmul.f32 %v9473_v7, %v4764_v53  ;;  %v1621_v0 = vadd.f32 %v1617_v1, %v1460_v19  ;;  %v1622_v28 = vadd.f32 %v1618_v17, %v1461_v26  ;;  %v1642_v34 = vadd.f32 %v1638_v10, %v1481_v47  ;;  %v12335_v43 = vld [vmem:[#allocation185_spill] sm:$0xff]  ;;  %v12340_v53 = vld [vmem:[#allocation190_spill] sm:$0xff]  ;;  %v12341_v17 = vld [vmem:[#allocation192_spill] sm:$0xff] }
 0x5ba   : > { %12326 = vst [vmem:[#allocation40_spill] sm:$0xff] %v9639_v14  ;;  %12327 = vst [vmem:[#allocation42_spill] sm:$0xff] %v9641_v12  ;;  %v1643_v41 = vadd.f32 %v1639_v59, %v1482_v13  ;;  %v1662_v51 = vadd.f32 %v1658_v23, %v1501_v31  ;;  %v1678_v37 = vsel %vm1637_vm8, %v12332_v27, %v12331_v33  ;;  %v12338_v13 = vld [vmem:[#allocation187_spill] sm:$0xff]  ;;  %v12339_v31 = vld [vmem:[#allocation189_spill] sm:$0xff] }
 0x5bb   : > { %4773 = vrot.lane.b32.xlu1 %v4766_v39, %s6351_s8  ;;  %4771 = vrot.lane.b32.xlu0 %v4765_v55, %s6351_s8  ;;  %v1679_v39 = vsel %vm1637_vm8, %v12331_v33, %v12333_v54  ;;  %v12334_v55 = vld [vmem:[#allocation188_spill] sm:$0xff]  ;;  %v1663_v47 = vadd.f32 %v1659_v56, %v1502_v35  ;;  %v1718_v1 = vsel %vm1637_vm8, %v12340_v53, %v12339_v31  ;;  %v12342_v59 = vld [vmem:[#allocation194_spill] sm:$0xff]  ;;  %v12343_v33 = vld [vmem:[#allocation191_spill] sm:$0xff] }
 0x5bc   : > { %v1698_v14 = vsel %vm1637_vm8, %v12335_v43, %v12334_v55  ;;  %v1699_v23 = vsel %vm1637_vm8, %v12334_v55, %v12338_v13  ;;  %v1719_v10 = vsel %vm1637_vm8, %v12339_v31, %v12341_v17  ;;  %v1738_v27 = vsel %vm1637_vm8, %v12343_v33, %v12342_v59  ;;  %v12345_v17 = vld [vmem:[#allocation195_spill] sm:$0xff]  ;;  %v12346_v33 = vld [vmem:[#allocation196_spill] sm:$0xff] }
 0x5bd   : > { %v9664_v19 = vpop.permute.xlu1 %4393  ;;  %v9666_v26 = vpop.permute.xlu0 %4391  ;;  %v4787_v35 = vmul.f32 %v9473_v7, %v4784_v40  ;;  %v4786_v56 = vmul.f32 %v9507_v18, %v4784_v40  ;;  %v1682_v54 = vadd.f32 %v1678_v37, %v1521_v38  ;;  %v1683_v55 = vadd.f32 %v1679_v39, %v1522_v52  ;;  %v12350_v40 = vld [vmem:[#allocation200_spill] sm:$0xff]  ;;  %v12352_v39 = vld [vmem:[#allocation199_spill] sm:$0xff] }
 0x5be   : > { %12336 = vst [vmem:[#allocation44_spill] sm:$0xff] %v9664_v19  ;;  %12337 = vst [vmem:[#allocation41_spill] sm:$0xff] %v9666_v26  ;;  %v1702_v43 = vadd.f32 %v1698_v14, %v1541_v36  ;;  %v4804_v13 = vstv %s9625_s11  ;;  %v1703_v53 = vadd.f32 %v1699_v23, %v1542_v32  ;;  %v12344_v19 = vld [vmem:[#allocation193_spill] sm:$0xff]  ;;  %v1758_v26 = vsel %vm1637_vm8, %v12346_v33, %v12345_v17  ;;  %v12355_v33 = vld [vmem:[#allocation204_spill] sm:$0xff]  ;;  %s10256_s11 = sld [smem:[#allocation3 + $0x29e]] }
 0x5bf   : > { %4791 = vrot.lane.b32.xlu1 %v4785_v63, %s6351_s8  ;;  %4775 = vrot.lane.b32.xlu0 %v4767_v16, %s6351_s8  ;;  %v1739_v31 = vsel %vm1637_vm8, %v12342_v59, %v12344_v19  ;;  %v12347_v63 = vld [vmem:[#allocation198_spill] sm:$0xff]  ;;  %v1722_v52 = vadd.f32 %v1718_v1, %v1561_v25  ;;  %v1723_v36 = vadd.f32 %v1719_v10, %v1562_v6  ;;  %v12351_v14 = vld [vmem:[#allocation197_spill] sm:$0xff] }
 0x5c0   : > { %v1759_v16 = vsel %vm1637_vm8, %v12345_v17, %v12347_v63  ;;  %v1742_v32 = vadd.f32 %v1738_v27, %v1581_v3  ;;  %v1778_v37 = vsel %vm1637_vm8, %v12351_v14, %v12350_v40  ;;  %v1779_v19 = vsel %vm1637_vm8, %v12350_v40, %v12352_v39  ;;  %v12353_v1 = vld [vmem:[#allocation201_spill] sm:$0xff]  ;;  %v12354_v10 = vld [vmem:[#allocation202_spill] sm:$0xff]  ;;  %v12362_v39 = vld [vmem:[#allocation208_spill] sm:$0xff] }
 0x5c1   : > { %v9694_v12 = vpop.permute.xlu1 %4411  ;;  %v9696_v38 = vpop.permute.xlu0 %4409  ;;  %v4806_v23 = vmul.f32 %v9507_v18, %v4804_v13  ;;  %v4805_v59 = vmul.f32 %v9534_v48, %v4804_v13  ;;  %v1743_v17 = vadd.f32 %v1739_v31, %v1582_v61  ;;  %v1762_v25 = vadd.f32 %v1758_v26, %v1601_v57  ;;  %v12356_v63 = vld [vmem:[#allocation206_spill] sm:$0xff]  ;;  %v12358_v14 = vld [vmem:[#allocation205_spill] sm:$0xff] }
 0x5c2   : > { %12348 = vst [vmem:[#allocation43_spill] sm:$0xff] %v9694_v12  ;;  %12349 = vst [vmem:[#allocation45_spill] sm:$0xff] %v9696_v38  ;;  %v1763_v6 = vadd.f32 %v1759_v16, %v1602_v44  ;;  %v4824_v3 = vstv %s9653_s28  ;;  %v1799_v27 = vsel %vm1798_vm9, %v12354_v10, %v12353_v1  ;;  %v1820_v61 = vsel %vm1798_vm9, %v12356_v63, %v12358_v14  ;;  %v12361_v16 = vld [vmem:[#allocation207_spill] sm:$0xff]  ;;  %v12363_v38 = vld [vmem:[#allocation210_spill] sm:$0xff]  ;;  %s10318_s28 = sld [smem:[#allocation3 + $0x31e]] }
 0x5c3   : > { %4795 = vrot.lane.b32.xlu1 %v4787_v35, %s6351_s8  ;;  %4793 = vrot.lane.b32.xlu0 %v4786_v56, %s6351_s8  ;;  %v1800_v35 = vsel %vm1798_vm9, %v12353_v1, %v12355_v33  ;;  %v12357_v56 = vld [vmem:[#allocation203_spill] sm:$0xff]  ;;  %v1782_v26 = vadd.f32 %v1778_v37, %v1621_v0  ;;  %v1783_v31 = vadd.f32 %v1779_v19, %v1622_v28  ;;  %v12364_v33 = vld [vmem:[#allocation212_spill] sm:$0xff]  ;;  %vm3891_vm8 = vcmask 859136  }
 0x5c4   : > { %v1819_v40 = vsel %vm1798_vm9, %v12357_v56, %v12356_v63  ;;  %v1839_v10 = vsel %vm1798_vm9, %v12362_v39, %v12361_v16  ;;  %v1840_v1 = vsel %vm1798_vm9, %v12361_v16, %v12363_v38  ;;  %v12365_v56 = vld [vmem:[#allocation209_spill] sm:$0xff]  ;;  %v4825_v63 = vmul.f32 %v9534_v48, %v4824_v3  ;;  %v12366_v38 = vld [vmem:[#allocation211_spill] sm:$0xff] }
 0x5c5   : > { %v9723_v57 = vpop.permute.xlu1 %4429  ;;  %v9725_v44 = vpop.permute.xlu0 %4413  ;;  %v1859_v12 = vsel %vm1798_vm9, %v12365_v56, %v12364_v33  ;;  %v4807_v0 = vmul.f32 %v9473_v7, %v4804_v13  ;;  %v1803_v28 = vadd.f32 %v1799_v27, %v1642_v34  ;;  %v1804_v37 = vadd.f32 %v1800_v35, %v1643_v41  ;;  %v12367_v56 = vld [vmem:[#allocation213_spill] sm:$0xff]  ;;  %v12373_v13 = vld [vmem:[#allocation215_spill] sm:$0xff] }
 0x5c6   : > { %12359 = vst [vmem:[#allocation46_spill] sm:$0xff] %v9723_v57  ;;  %12360 = vst [vmem:[#allocation48_spill] sm:$0xff] %v9725_v44  ;;  %v1823_v19 = vadd.f32 %v1819_v40, %v1662_v51  ;;  %v1824_v14 = vadd.f32 %v1820_v61, %v1663_v47  ;;  %v1843_v39 = vadd.f32 %v1839_v10, %v1682_v54  ;;  %v12368_v57 = vld [vmem:[#allocation214_spill] sm:$0xff]  ;;  %v12374_v35 = vld [vmem:[#allocation217_spill] sm:$0xff] }
 0x5c7   : > { %4813 = vrot.lane.b32.xlu1 %v4806_v23, %s6351_s8  ;;  %4811 = vrot.lane.b32.xlu0 %v4805_v59, %s6351_s8  ;;  %v1860_v16 = vsel %vm1798_vm9, %v12364_v33, %v12366_v38  ;;  %v1879_v23 = vsel %vm1798_vm9, %v12368_v57, %v12367_v56  ;;  %v12369_v59 = vld [vmem:[#allocation216_spill] sm:$0xff]  ;;  %v1844_v51 = vadd.f32 %v1840_v1, %v1683_v55  ;;  %v12372_v54 = vld [vmem:[#allocation218_spill] sm:$0xff]  ;;  %v12375_v61 = vld [vmem:[#allocation219_spill] sm:$0xff]  ;;  %v4844_v38 = vstv %s9709_s4  ;;  %s10346_s4 = sld [smem:[#allocation3 + $0x39e]] }
 0x5c8   : > { %v1880_v44 = vsel %vm1798_vm9, %v12367_v56, %v12369_v59  ;;  %v1863_v47 = vadd.f32 %v1859_v12, %v1702_v43  ;;  %v1899_v27 = vsel %vm1798_vm9, %v12373_v13, %v12372_v54  ;;  %v1900_v40 = vsel %vm1798_vm9, %v12372_v54, %v12374_v35  ;;  %v12376_v57 = vld [vmem:[#allocation220_spill] sm:$0xff]  ;;  %v12377_v59 = vld [vmem:[#allocation222_spill] sm:$0xff]  ;;  %v12379_v35 = vld [vmem:[#allocation221_spill] sm:$0xff] }
 0x5c9   : > { %v9751_v34 = vpop.permute.xlu1 %4433  ;;  %v9753_v41 = vpop.permute.xlu0 %4431  ;;  %v1919_v10 = vsel %vm1798_vm9, %v12376_v57, %v12375_v61  ;;  %v4827_v55 = vmul.f32 %v9473_v7, %v4824_v3  ;;  %v4826_v12 = vmul.f32 %v9507_v18, %v4824_v3  ;;  %v1864_v43 = vadd.f32 %v1860_v16, %v1703_v53  ;;  %v12378_v13 = vld [vmem:[#allocation224_spill] sm:$0xff]  ;;  %v12384_v3 = vld [vmem:[#allocation226_spill] sm:$0xff] }
 0x5ca   : > { %12370 = vst [vmem:[#allocation50_spill] sm:$0xff] %v9751_v34  ;;  %12371 = vst [vmem:[#allocation47_spill] sm:$0xff] %v9753_v41  ;;  %v1883_v1 = vadd.f32 %v1879_v23, %v1722_v52  ;;  %v1884_v33 = vadd.f32 %v1880_v44, %v1723_v36  ;;  %v1903_v56 = vadd.f32 %v1899_v27, %v1742_v32  ;;  %v12383_v32 = vld [vmem:[#allocation225_spill] sm:$0xff]  ;;  %v12385_v16 = vld [vmem:[#allocation228_spill] sm:$0xff] }
 0x5cb   : > { %4831 = vrot.lane.b32.xlu1 %v4825_v63, %s6351_s8  ;;  %4815 = vrot.lane.b32.xlu0 %v4807_v0, %s6351_s8  ;;  %v1920_v54 = vsel %vm1798_vm9, %v12375_v61, %v12377_v59  ;;  %v1939_v57 = vsel %vm1798_vm9, %v12379_v35, %v12378_v13  ;;  %v12380_v63 = vld [vmem:[#allocation223_spill] sm:$0xff]  ;;  %v1904_v52 = vadd.f32 %v1900_v40, %v1743_v17  ;;  %v12386_v27 = vld [vmem:[#allocation230_spill] sm:$0xff]  ;;  %v4865_v35 = vstv %s9740_s22  ;;  %s10405_s22 = sld [smem:[#allocation3 + $0x1f]] }
 0x5cc   : > { %v1940_v0 = vsel %vm1798_vm9, %v12378_v13, %v12380_v63  ;;  %v1923_v36 = vadd.f32 %v1919_v10, %v1762_v25  ;;  %v1960_v44 = vsel %vm1959_vm10, %v12384_v3, %v12383_v32  ;;  %v1961_v23 = vsel %vm1959_vm10, %v12383_v32, %v12385_v16  ;;  %v12387_v61 = vld [vmem:[#allocation227_spill] sm:$0xff]  ;;  %v12388_v63 = vld [vmem:[#allocation229_spill] sm:$0xff]  ;;  %v12390_v16 = vld [vmem:[#allocation232_spill] sm:$0xff] }
 0x5cd   : > { %v9778_v34 = vpop.permute.xlu1 %4451  ;;  %v9780_v53 = vpop.permute.xlu0 %4449  ;;  %v1980_v59 = vsel %vm1959_vm10, %v12387_v61, %v12386_v27  ;;  %v4846_v13 = vmul.f32 %v9507_v18, %v4844_v38  ;;  %v4845_v17 = vmul.f32 %v9534_v48, %v4844_v38  ;;  %v1924_v25 = vadd.f32 %v1920_v54, %v1763_v6  ;;  %v12389_v3 = vld [vmem:[#allocation231_spill] sm:$0xff]  ;;  %v12391_v61 = vld [vmem:[#allocation234_spill] sm:$0xff] }
 0x5ce   : > { %12381 = vst [vmem:[#allocation49_spill] sm:$0xff] %v9778_v34  ;;  %12382 = vst [vmem:[#allocation51_spill] sm:$0xff] %v9780_v53  ;;  %v1943_v40 = vadd.f32 %v1939_v57, %v1782_v26  ;;  %v1944_v10 = vadd.f32 %v1940_v0, %v1783_v31  ;;  %v1981_v32 = vsel %vm1959_vm10, %v12386_v27, %v12388_v63  ;;  %v12392_v53 = vld [vmem:[#allocation236_spill] sm:$0xff]  ;;  %v12393_v34 = vld [vmem:[#allocation233_spill] sm:$0xff]  ;;  %vm4052_vm9 = vcmask 850944  }
 0x5cf   : > { %4835 = vrot.lane.b32.xlu1 %v4827_v55, %s6351_s8  ;;  %4833 = vrot.lane.b32.xlu0 %v4826_v12, %s6351_s8  ;;  %v2000_v55 = vsel %vm1959_vm10, %v12390_v16, %v12389_v3  ;;  %v2001_v12 = vsel %vm1959_vm10, %v12389_v3, %v12391_v61  ;;  %v2020_v6 = vsel %vm1959_vm10, %v12393_v34, %v12392_v53  ;;  %v12396_v27 = vld [vmem:[#allocation235_spill] sm:$0xff]  ;;  %v12397_v16 = vld [vmem:[#allocation237_spill] sm:$0xff]  ;;  %v12398_v41 = vld [vmem:[#allocation238_spill] sm:$0xff]  ;;  %s10138_s8 = sld [smem:[#allocation3 + $0x11e]] }
 0x5d0   : > { %v1964_v54 = vadd.f32 %v1960_v44, %v1803_v28  ;;  %v1965_v57 = vadd.f32 %v1961_v23, %v1804_v37  ;;  %v1984_v0 = vadd.f32 %v1980_v59, %v1823_v19  ;;  %v2021_v63 = vsel %vm1959_vm10, %v12392_v53, %v12396_v27  ;;  %v12399_v59 = vld [vmem:[#allocation240_spill] sm:$0xff]  ;;  %v12400_v3 = vld [vmem:[#allocation242_spill] sm:$0xff]  ;;  %v12401_v61 = vld [vmem:[#allocation239_spill] sm:$0xff] }
 0x5d1   : > { %v9810_v26 = vpop.permute.xlu1 %4469  ;;  %v9812_v31 = vpop.permute.xlu0 %4453  ;;  %v2040_v50 = vsel %vm1959_vm10, %v12398_v41, %v12397_v16  ;;  %v4866_v34 = vmul.f32 %v9534_v48, %v4865_v35  ;;  %v4847_v28 = vmul.f32 %v9473_v7, %v4844_v38  ;;  %v1985_v37 = vadd.f32 %v1981_v32, %v1824_v14  ;;  %v12409_v27 = vld [vmem:[#allocation245_spill] sm:$0xff] }
 0x5d2   : > { %12394 = vst [vmem:[#allocation52_spill] sm:$0xff] %v9810_v26  ;;  %12395 = vst [vmem:[#allocation54_spill] sm:$0xff] %v9812_v31  ;;  %v2004_v19 = vadd.f32 %v2000_v55, %v1843_v39  ;;  %v2005_v44 = vadd.f32 %v2001_v12, %v1844_v51  ;;  %v2024_v23 = vadd.f32 %v2020_v6, %v1863_v47  ;;  %v12405_v47 = vld [vmem:[#allocation243_spill] sm:$0xff]  ;;  %v12407_v55 = vld [vmem:[#allocation246_spill] sm:$0xff] }
 0x5d3   : > { %4853 = vrot.lane.b32.xlu1 %v4846_v13, %s6352_s0  ;;  %4851 = vrot.lane.b32.xlu0 %v4845_v17, %s6352_s0  ;;  %v2025_v53 = vadd.f32 %v2021_v63, %v1864_v43  ;;  %v2041_v41 = vsel %vm1959_vm10, %v12397_v16, %v12399_v59  ;;  %v2060_v13 = vsel %vm1959_vm10, %v12401_v61, %v12400_v3  ;;  %v12402_v17 = vld [vmem:[#allocation241_spill] sm:$0xff]  ;;  %v12406_v43 = vld [vmem:[#allocation244_spill] sm:$0xff]  ;;  %v12410_v16 = vld [vmem:[#allocation247_spill] sm:$0xff] }
 0x5d4   : > { %v2061_v38 = vsel %vm1959_vm10, %v12400_v3, %v12402_v17  ;;  %v2044_v51 = vadd.f32 %v2040_v50, %v1883_v1  ;;  %v2080_v32 = vsel %vm1959_vm10, %v12406_v43, %v12405_v47  ;;  %v2081_v12 = vsel %vm1959_vm10, %v12405_v47, %v12407_v55  ;;  %v12408_v6 = vld [vmem:[#allocation248_spill] sm:$0xff]  ;;  %v12411_v55 = vld [vmem:[#allocation249_spill] sm:$0xff] }
 0x5d5   : > { %v9835_v14 = vpop.permute.xlu1 %4473  ;;  %v9837_v39 = vpop.permute.xlu0 %4471  ;;  %v2100_v63 = vsel %vm1959_vm10, %v12409_v27, %v12408_v6  ;;  %v2101_v59 = vsel %vm1959_vm10, %v12408_v6, %v12410_v16  ;;  %v4868_v50 = vmul.f32 %v9473_v7, %v4865_v35  ;;  %v4867_v1 = vmul.f32 %v9507_v18, %v4865_v35  ;;  %v12413_v26 = vld [vmem:[#allocation252_spill] sm:$0xff]  ;;  %v12415_v16 = vld [vmem:[#allocation251_spill] sm:$0xff]  ;;  %v12418_v35 = vld [vmem:[#allocation253_spill] sm:$0xff] }
 0x5d6   : > { %12403 = vst [vmem:[#allocation56_spill] sm:$0xff] %v9835_v14  ;;  %12404 = vst [vmem:[#allocation53_spill] sm:$0xff] %v9837_v39  ;;  %v2045_v3 = vadd.f32 %v2041_v41, %v1884_v33  ;;  %v2064_v61 = vadd.f32 %v2060_v13, %v1903_v56  ;;  %v2065_v17 = vadd.f32 %v2061_v38, %v1904_v52  ;;  %v4885_v47 = vstv %s9796_s15  ;;  %v12412_v14 = vld [vmem:[#allocation250_spill] sm:$0xff]  ;;  %v12419_v13 = vld [vmem:[#allocation255_spill] sm:$0xff]  ;;  %s10430_s15 = sld [smem:[#allocation3 + $0x9f]] }
 0x5d7   : > { %4872 = vrot.lane.b32.xlu1 %v4866_v34, %s6352_s0  ;;  %4855 = vrot.lane.b32.xlu0 %v4847_v28, %s6352_s0  ;;  %v2084_v43 = vadd.f32 %v2080_v32, %v1923_v36  ;;  %v2121_v27 = vsel %vm2120_vm11, %v12412_v14, %v12411_v55  ;;  %v2122_v6 = vsel %vm2120_vm11, %v12411_v55, %v12413_v26  ;;  %v12414_v34 = vld [vmem:[#allocation254_spill] sm:$0xff]  ;;  %v12420_v38 = vld [vmem:[#allocation256_spill] sm:$0xff]  ;;  %v12446_v31 = vld [vmem:[#allocation277_spill] sm:$0xff]  ;;  %vm4213_vm10 = vcmask 842752  }
 0x5d8   : > { %v2141_v28 = vsel %vm2120_vm11, %v12415_v16, %v12414_v34  ;;  %v2085_v56 = vadd.f32 %v2081_v12, %v1924_v25  ;;  %v2104_v52 = vadd.f32 %v2100_v63, %v1943_v40  ;;  %v2105_v36 = vadd.f32 %v2101_v59, %v1944_v10  ;;  %v12421_v12 = vld [vmem:[#allocation258_spill] sm:$0xff]  ;;  %v12422_v59 = vld [vmem:[#allocation260_spill] sm:$0xff]  ;;  %v12424_v16 = vld [vmem:[#allocation259_spill] sm:$0xff] }
 0x5d9   : > { %v9865_v39 = vpop.permute.xlu1 %4491  ;;  %v9867_v33 = vpop.permute.xlu0 %4489  ;;  %v2142_v41 = vsel %vm2120_vm11, %v12414_v34, %v12418_v35  ;;  %v2161_v26 = vsel %vm2120_vm11, %v12420_v38, %v12419_v13  ;;  %v4887_v14 = vmul.f32 %v9507_v18, %v4885_v47  ;;  %v4886_v32 = vmul.f32 %v9534_v48, %v4885_v47  ;;  %v12423_v34 = vld [vmem:[#allocation257_spill] sm:$0xff]  ;;  %v12426_v38 = vld [vmem:[#allocation262_spill] sm:$0xff] }
 0x5da   : > { %12416 = vst [vmem:[#allocation55_spill] sm:$0xff] %v9865_v39  ;;  %12417 = vst [vmem:[#allocation57_spill] sm:$0xff] %v9867_v33  ;;  %v2125_v55 = vadd.f32 %v2121_v27, %v1964_v54  ;;  %v2126_v25 = vadd.f32 %v2122_v6, %v1965_v57  ;;  %v2145_v40 = vadd.f32 %v2141_v28, %v1984_v0  ;;  %v4905_v10 = vstv %s9824_s6  ;;  %v12425_v35 = vld [vmem:[#allocation261_spill] sm:$0xff]  ;;  %v12429_v28 = vld [vmem:[#allocation264_spill] sm:$0xff]  ;;  %s6354_s6 = smov 97  }
 0x5db   : > { %4876 = vrot.lane.b32.xlu1 %v4868_v50, %s6352_s0  ;;  %4874 = vrot.lane.b32.xlu0 %v4867_v1, %s6352_s0  ;;  %v2162_v63 = vsel %vm2120_vm11, %v12419_v13, %v12421_v12  ;;  %v2181_v50 = vsel %vm2120_vm11, %v12423_v34, %v12422_v59  ;;  %v2182_v1 = vsel %vm2120_vm11, %v12422_v59, %v12424_v16  ;;  %v12430_v12 = vld [vmem:[#allocation266_spill] sm:$0xff]  ;;  %v12431_v34 = vld [vmem:[#allocation263_spill] sm:$0xff]  ;;  %v12432_v39 = vld [vmem:[#allocation265_spill] sm:$0xff] }
 0x5dc   : > { %v2201_v54 = vsel %vm2120_vm11, %v12426_v38, %v12425_v35  ;;  %v2146_v27 = vadd.f32 %v2142_v41, %v1985_v37  ;;  %v2165_v6 = vadd.f32 %v2161_v26, %v2004_v19  ;;  %v2202_v13 = vsel %vm2120_vm11, %v12425_v35, %v12429_v28  ;;  %v12433_v28 = vld [vmem:[#allocation267_spill] sm:$0xff] }
 0x5dd   : > { %v9894_v57 = vpop.permute.xlu1 %4509  ;;  %v9896_v0 = vpop.permute.xlu0 %4493  ;;  %v2221_v33 = vsel %vm2120_vm11, %v12431_v34, %v12430_v12  ;;  %v2222_v59 = vsel %vm2120_vm11, %v12430_v12, %v12432_v39  ;;  %v4906_v37 = vmul.f32 %v9534_v48, %v4905_v10  ;;  %v4888_v19 = vmul.f32 %v9473_v7, %v4885_v47  ;;  %v12434_v34 = vld [vmem:[#allocation268_spill] sm:$0xff]  ;;  %v12435_v12 = vld [vmem:[#allocation270_spill] sm:$0xff] }
 0x5de   : > { %12427 = vst [vmem:[#allocation58_spill] sm:$0xff] %v9894_v57  ;;  %12428 = vst [vmem:[#allocation60_spill] sm:$0xff] %v9896_v0  ;;  %v2166_v41 = vadd.f32 %v2162_v63, %v2005_v44  ;;  %v2185_v26 = vadd.f32 %v2181_v50, %v2024_v23  ;;  %v2186_v16 = vadd.f32 %v2182_v1, %v2025_v53  ;;  %v12437_v0 = vld [vmem:[#allocation269_spill] sm:$0xff]  ;;  %v12442_v1 = vld [vmem:[#allocation274_spill] sm:$0xff] }
 0x5df   : > { %4894 = vrot.lane.b32.xlu1 %v4887_v14, %s6352_s0  ;;  %4892 = vrot.lane.b32.xlu0 %v4886_v32, %s6352_s0  ;;  %v2205_v35 = vadd.f32 %v2201_v54, %v2044_v51  ;;  %v2206_v38 = vadd.f32 %v2202_v13, %v2045_v3  ;;  %v2241_v39 = vsel %vm2120_vm11, %v12434_v34, %v12433_v28  ;;  %v12436_v32 = vld [vmem:[#allocation272_spill] sm:$0xff]  ;;  %v12440_v3 = vld [vmem:[#allocation271_spill] sm:$0xff]  ;;  %v12441_v50 = vld [vmem:[#allocation273_spill] sm:$0xff]  ;;  %v4925_v34 = vstv %s9880_s7  ;;  %s10520_s7 = sld [smem:[#allocation3 + $0x19f]] }
 0x5e0   : > { %v2242_v14 = vsel %vm2120_vm11, %v12433_v28, %v12435_v12  ;;  %v2261_v47 = vsel %vm2120_vm11, %v12437_v0, %v12436_v32  ;;  %v2225_v53 = vadd.f32 %v2221_v33, %v2064_v61  ;;  %v2226_v51 = vadd.f32 %v2222_v59, %v2065_v17  ;;  %v12443_v13 = vld [vmem:[#allocation276_spill] sm:$0xff] }
 0x5e1   : > { %v9922_v44 = vpop.permute.xlu1 %4513  ;;  %v9924_v23 = vpop.permute.xlu0 %4511  ;;  %v2262_v63 = vsel %vm2120_vm11, %v12436_v32, %v12440_v3  ;;  %v2282_v54 = vsel %vm2281_vm12, %v12442_v1, %v12441_v50  ;;  %v2283_v28 = vsel %vm2281_vm12, %v12441_v50, %v12443_v13  ;;  %v4908_v0 = vmul.f32 %v9473_v7, %v4905_v10  ;;  %v12444_v32 = vld [vmem:[#allocation278_spill] sm:$0xff]  ;;  %v12445_v3 = vld [vmem:[#allocation275_spill] sm:$0xff]  ;;  %v12448_v13 = vld [vmem:[#allocation280_spill] sm:$0xff] }
 0x5e2   : > { %12438 = vst [vmem:[#allocation62_spill] sm:$0xff] %v9922_v44  ;;  %12439 = vst [vmem:[#allocation59_spill] sm:$0xff] %v9924_v23  ;;  %v4907_v61 = vmul.f32 %v9507_v18, %v4905_v10  ;;  %v2245_v17 = vadd.f32 %v2241_v39, %v2084_v43  ;;  %v2246_v33 = vadd.f32 %v2242_v14, %v2085_v56  ;;  %v12452_v39 = vld [vmem:[#allocation284_spill] sm:$0xff]  ;;  %v12453_v14 = vld [vmem:[#allocation281_spill] sm:$0xff]  ;;  %vm4374_vm11 = vcmask 834560  }
 0x5e3   : > { %4912 = vrot.lane.b32.xlu1 %v4906_v37, %s6352_s0  ;;  %4896 = vrot.lane.b32.xlu0 %v4888_v19, %s6352_s0  ;;  %v2265_v59 = vadd.f32 %v2261_v47, %v2104_v52  ;;  %v2266_v12 = vadd.f32 %v2262_v63, %v2105_v36  ;;  %v2302_v1 = vsel %vm2281_vm12, %v12445_v3, %v12444_v32  ;;  %v12447_v37 = vld [vmem:[#allocation279_spill] sm:$0xff]  ;;  %v12451_v36 = vld [vmem:[#allocation282_spill] sm:$0xff]  ;;  %v4945_v3 = vstv %s9911_s23  ;;  %s10576_s23 = sld [smem:[#allocation3 + $0x21f]] }
 0x5e4   : > { %v2303_v50 = vsel %vm2281_vm12, %v12444_v32, %v12446_v31  ;;  %v2322_v19 = vsel %vm2281_vm12, %v12448_v13, %v12447_v37  ;;  %v2286_v56 = vadd.f32 %v2282_v54, %v2125_v55  ;;  %v2287_v52 = vadd.f32 %v2283_v28, %v2126_v25  ;;  %v12454_v31 = vld [vmem:[#allocation283_spill] sm:$0xff]  ;;  %v12456_v13 = vld [vmem:[#allocation286_spill] sm:$0xff] }
 0x5e5   : > { %v9949_v44 = vpop.permute.xlu1 %4531  ;;  %v9951_v43 = vpop.permute.xlu0 %4529  ;;  %v2323_v10 = vsel %vm2281_vm12, %v12447_v37, %v12451_v36  ;;  %v2342_v47 = vsel %vm2281_vm12, %v12453_v14, %v12452_v39  ;;  %v2343_v63 = vsel %vm2281_vm12, %v12452_v39, %v12454_v31  ;;  %v4927_v55 = vmul.f32 %v9507_v18, %v4925_v34  ;;  %v12455_v37 = vld [vmem:[#allocation285_spill] sm:$0xff]  ;;  %v12457_v39 = vld [vmem:[#allocation288_spill] sm:$0xff]  ;;  %v12458_v14 = vld [vmem:[#allocation290_spill] sm:$0xff] }
 0x5e6   : > { %12449 = vst [vmem:[#allocation61_spill] sm:$0xff] %v9949_v44  ;;  %12450 = vst [vmem:[#allocation63_spill] sm:$0xff] %v9951_v43  ;;  %v4926_v25 = vmul.f32 %v9534_v48, %v4925_v34  ;;  %v2306_v54 = vadd.f32 %v2302_v1, %v2145_v40  ;;  %v2307_v28 = vadd.f32 %v2303_v50, %v2146_v27  ;;  %v12460_v43 = vld [vmem:[#allocation289_spill] sm:$0xff]  ;;  %v12464_v44 = vld [vmem:[#allocation292_spill] sm:$0xff] }
 0x5e7   : > { %4916 = vrot.lane.b32.xlu1 %v4908_v0, %s6352_s0  ;;  %4914 = vrot.lane.b32.xlu0 %v4907_v61, %s6352_s0  ;;  %v2326_v32 = vadd.f32 %v2322_v19, %v2165_v6  ;;  %v2362_v36 = vsel %vm2281_vm12, %v12456_v13, %v12455_v37  ;;  %v2363_v0 = vsel %vm2281_vm12, %v12455_v37, %v12457_v39  ;;  %v12459_v61 = vld [vmem:[#allocation287_spill] sm:$0xff]  ;;  %v12465_v37 = vld [vmem:[#allocation294_spill] sm:$0xff] }
 0x5e8   : > { %v2382_v31 = vsel %vm2281_vm12, %v12459_v61, %v12458_v14  ;;  %v2383_v40 = vsel %vm2281_vm12, %v12458_v14, %v12460_v43  ;;  %v2327_v1 = vadd.f32 %v2323_v10, %v2166_v41  ;;  %v2346_v50 = vadd.f32 %v2342_v47, %v2185_v26  ;;  %v12463_v13 = vld [vmem:[#allocation291_spill] sm:$0xff]  ;;  %v12467_v47 = vld [vmem:[#allocation293_spill] sm:$0xff] }
 0x5e9   : > { %v9981_v27 = vpop.permute.xlu1 %4550  ;;  %v9983_v6 = vpop.permute.xlu0 %4533  ;;  %v2347_v19 = vadd.f32 %v2343_v63, %v2186_v16  ;;  %v2402_v57 = vsel %vm2281_vm12, %v12464_v44, %v12463_v13  ;;  %v2403_v39 = vsel %vm2281_vm12, %v12463_v13, %v12465_v37  ;;  %v4946_v43 = vmul.f32 %v9534_v48, %v4945_v3  ;;  %v12466_v44 = vld [vmem:[#allocation296_spill] sm:$0xff]  ;;  %v12468_v13 = vld [vmem:[#allocation295_spill] sm:$0xff]  ;;  %v12470_v37 = vld [vmem:[#allocation298_spill] sm:$0xff] }
 0x5ea   : > { %12461 = vst [vmem:[#allocation64_spill] sm:$0xff] %v9981_v27  ;;  %12462 = vst [vmem:[#allocation66_spill] sm:$0xff] %v9983_v6  ;;  %v4928_v14 = vmul.f32 %v9473_v7, %v4925_v34  ;;  %v2366_v61 = vadd.f32 %v2362_v36, %v2205_v35  ;;  %v2367_v41 = vadd.f32 %v2363_v0, %v2206_v38  ;;  %v12475_v36 = vld [vmem:[#allocation299_spill] sm:$0xff]  ;;  %v12479_v27 = vld [vmem:[#allocation306_spill] sm:$0xff] }
 0x5eb   : > { %4934 = vrot.lane.b32.xlu1 %v4927_v55, %s6352_s0  ;;  %4932 = vrot.lane.b32.xlu0 %v4926_v25, %s6352_s0  ;;  %v2386_v26 = vadd.f32 %v2382_v31, %v2225_v53  ;;  %v2387_v16 = vadd.f32 %v2383_v40, %v2226_v51  ;;  %v2406_v10 = vadd.f32 %v2402_v57, %v2245_v17  ;;  %v12469_v25 = vld [vmem:[#allocation297_spill] sm:$0xff]  ;;  %v12473_v51 = vld [vmem:[#allocation300_spill] sm:$0xff]  ;;  %v12474_v17 = vld [vmem:[#allocation302_spill] sm:$0xff] }
 0x5ec   : > { %v2422_v63 = vsel %vm2281_vm12, %v12467_v47, %v12466_v44  ;;  %v2423_v55 = vsel %vm2281_vm12, %v12466_v44, %v12468_v13  ;;  %v2443_v34 = vsel %vm2442_vm13, %v12470_v37, %v12469_v25  ;;  %v2407_v53 = vadd.f32 %v2403_v39, %v2246_v33  ;;  %v12476_v31 = vld [vmem:[#allocation301_spill] sm:$0xff]  ;;  %v12477_v44 = vld [vmem:[#allocation303_spill] sm:$0xff]  ;;  %v12478_v47 = vld [vmem:[#allocation304_spill] sm:$0xff] }
 0x5ed   : > { %v10006_v35 = vpop.permute.xlu1 %4554  ;;  %v10008_v38 = vpop.permute.xlu0 %4552  ;;  %v2444_v57 = vsel %vm2442_vm13, %v12469_v25, %v12473_v51  ;;  %v2463_v0 = vsel %vm2442_vm13, %v12475_v36, %v12474_v17  ;;  %v2464_v40 = vsel %vm2442_vm13, %v12474_v17, %v12476_v31  ;;  %v2483_v13 = vsel %vm2442_vm13, %v12478_v47, %v12477_v44  ;;  %v12480_v31 = vld [vmem:[#allocation308_spill] sm:$0xff] }
 0x5ee   : > { %12471 = vst [vmem:[#allocation68_spill] sm:$0xff] %v10006_v35  ;;  %12472 = vst [vmem:[#allocation65_spill] sm:$0xff] %v10008_v38  ;;  %v4948_v33 = vmul.f32 %v9473_v7, %v4945_v3  ;;  %v4947_v39 = vmul.f32 %v9507_v18, %v4945_v3  ;;  %v2426_v25 = vadd.f32 %v2422_v63, %v2265_v59  ;;  %v4965_v36 = vstv %s9967_s25  ;;  %v12481_v38 = vld [vmem:[#allocation305_spill] sm:$0xff]  ;;  %v12486_v63 = vld [vmem:[#allocation310_spill] sm:$0xff]  ;;  %s10601_s25 = sld [smem:[#allocation3 + $0x29f]] }
 0x5ef   : > { %4952 = vrot.lane.b32.xlu1 %v4946_v43, %s6352_s0  ;;  %4936 = vrot.lane.b32.xlu0 %v4928_v14, %s6352_s0  ;;  %v2427_v37 = vadd.f32 %v2423_v55, %v2266_v12  ;;  %v2447_v51 = vadd.f32 %v2443_v34, %v2286_v56  ;;  %v2448_v35 = vadd.f32 %v2444_v57, %v2287_v52  ;;  %v12482_v43 = vld [vmem:[#allocation307_spill] sm:$0xff]  ;;  %v12485_v3 = vld [vmem:[#allocation309_spill] sm:$0xff]  ;;  %v12487_v55 = vld [vmem:[#allocation312_spill] sm:$0xff]  ;;  %vm4535_vm12 = vcmask 826368  }
 0x5f0   : > { %v2484_v17 = vsel %vm2442_vm13, %v12477_v44, %v12479_v27  ;;  %v2503_v47 = vsel %vm2442_vm13, %v12481_v38, %v12480_v31  ;;  %v2504_v14 = vsel %vm2442_vm13, %v12480_v31, %v12482_v43  ;;  %v2467_v12 = vadd.f32 %v2463_v0, %v2306_v54  ;;  %v12489_v44 = vld [vmem:[#allocation311_spill] sm:$0xff]  ;;  %v12490_v31 = vld [vmem:[#allocation313_spill] sm:$0xff] }
 0x5f1   : > { %v10036_v6 = vpop.permute.xlu1 %4572  ;;  %v10038_v59 = vpop.permute.xlu0 %4570  ;;  %v2468_v56 = vadd.f32 %v2464_v40, %v2307_v28  ;;  %v2487_v52 = vadd.f32 %v2483_v13, %v2326_v32  ;;  %v2523_v27 = vsel %vm2442_vm13, %v12486_v63, %v12485_v3  ;;  %v2524_v34 = vsel %vm2442_vm13, %v12485_v3, %v12487_v55  ;;  %v12488_v40 = vld [vmem:[#allocation314_spill] sm:$0xff]  ;;  %v12491_v43 = vld [vmem:[#allocation315_spill] sm:$0xff]  ;;  %v12497_v55 = vld [vmem:[#allocation317_spill] sm:$0xff] }
 0x5f2   : > { %12483 = vst [vmem:[#allocation67_spill] sm:$0xff] %v10036_v6  ;;  %12484 = vst [vmem:[#allocation69_spill] sm:$0xff] %v10038_v59  ;;  %v4967_v38 = vmul.f32 %v9507_v18, %v4965_v36  ;;  %v4966_v57 = vmul.f32 %v9534_v48, %v4965_v36  ;;  %v2488_v54 = vadd.f32 %v2484_v17, %v2327_v1  ;;  %v4985_v0 = vstv %s9995_s9  ;;  %v12493_v63 = vld [vmem:[#allocation318_spill] sm:$0xff]  ;;  %v12498_v59 = vld [vmem:[#allocation319_spill] sm:$0xff]  ;;  %s10658_s9 = sld [smem:[#allocation3 + $0x31f]] }
 0x5f3   : > { %4956 = vrot.lane.b32.xlu1 %v4948_v33, %s6352_s0  ;;  %4954 = vrot.lane.b32.xlu0 %v4947_v39, %s6352_s0  ;;  %v2507_v28 = vadd.f32 %v2503_v47, %v2346_v50  ;;  %v2508_v32 = vadd.f32 %v2504_v14, %v2347_v19  ;;  %v2543_v13 = vsel %vm2442_vm13, %v12489_v44, %v12488_v40  ;;  %v12492_v39 = vld [vmem:[#allocation316_spill] sm:$0xff] }
 0x5f4   : > { %v2544_v33 = vsel %vm2442_vm13, %v12488_v40, %v12490_v31  ;;  %v2563_v3 = vsel %vm2442_vm13, %v12492_v39, %v12491_v43  ;;  %v2564_v1 = vsel %vm2442_vm13, %v12491_v43, %v12493_v63  ;;  %v2527_v17 = vadd.f32 %v2523_v27, %v2366_v61  ;;  %v12496_v14 = vld [vmem:[#allocation320_spill] sm:$0xff]  ;;  %v12499_v31 = vld [vmem:[#allocation321_spill] sm:$0xff]  ;;  %v12500_v39 = vld [vmem:[#allocation322_spill] sm:$0xff] }
 0x5f5   : > { %v10065_v50 = vpop.permute.xlu1 %4590  ;;  %v10067_v19 = vpop.permute.xlu0 %4574  ;;  %v2528_v47 = vadd.f32 %v2524_v34, %v2367_v41  ;;  %v2583_v44 = vsel %vm2442_vm13, %v12497_v55, %v12496_v14  ;;  %v2584_v40 = vsel %vm2442_vm13, %v12496_v14, %v12498_v59  ;;  %v2604_v6 = vsel %vm2603_vm14, %v12500_v39, %v12499_v31  ;;  %v12501_v59 = vld [vmem:[#allocation324_spill] sm:$0xff]  ;;  %v12502_v39 = vld [vmem:[#allocation326_spill] sm:$0xff] }
 0x5f6   : > { %12494 = vst [vmem:[#allocation70_spill] sm:$0xff] %v10065_v50  ;;  %12495 = vst [vmem:[#allocation72_spill] sm:$0xff] %v10067_v19  ;;  %v4986_v43 = vmul.f32 %v9534_v48, %v4985_v0  ;;  %v4968_v61 = vmul.f32 %v9473_v7, %v4965_v36  ;;  %v2547_v41 = vadd.f32 %v2543_v13, %v2386_v26  ;;  %v12503_v50 = vld [vmem:[#allocation323_spill] sm:$0xff]  ;;  %v12508_v36 = vld [vmem:[#allocation328_spill] sm:$0xff]  ;;  %vm5018_vm13 = vcmask 801792  }
 0x5f7   : > { %4974 = vrot.lane.b32.xlu1 %v4967_v38, %s6352_s0  ;;  %4972 = vrot.lane.b32.xlu0 %v4966_v57, %s6352_s0  ;;  %v2548_v27 = vadd.f32 %v2544_v33, %v2387_v16  ;;  %v2567_v34 = vadd.f32 %v2563_v3, %v2406_v10  ;;  %v2568_v63 = vadd.f32 %v2564_v1, %v2407_v53  ;;  %v12504_v57 = vld [vmem:[#allocation325_spill] sm:$0xff]  ;;  %v12509_v33 = vld [vmem:[#allocation330_spill] sm:$0xff]  ;;  %v12510_v1 = vld [vmem:[#allocation332_spill] sm:$0xff] }
 0x5f8   : > { %v2587_v55 = vadd.f32 %v2583_v44, %v2426_v25  ;;  %v2605_v14 = vsel %vm2603_vm14, %v12499_v31, %v12501_v59  ;;  %v2624_v38 = vsel %vm2603_vm14, %v12503_v50, %v12502_v39  ;;  %v2625_v19 = vsel %vm2603_vm14, %v12502_v39, %v12504_v57  ;;  %v12507_v25 = vld [vmem:[#allocation327_spill] sm:$0xff]  ;;  %v12511_v50 = vld [vmem:[#allocation329_spill] sm:$0xff] }
 0x5f9   : > { %v10093_v26 = vpop.permute.xlu1 %4594  ;;  %v10095_v16 = vpop.permute.xlu0 %4592  ;;  %v2588_v10 = vadd.f32 %v2584_v40, %v2427_v37  ;;  %v2608_v53 = vadd.f32 %v2604_v6, %v2447_v51  ;;  %v2644_v13 = vsel %vm2603_vm14, %v12508_v36, %v12507_v25  ;;  %v2645_v3 = vsel %vm2603_vm14, %v12507_v25, %v12509_v33  ;;  %v12512_v57 = vld [vmem:[#allocation331_spill] sm:$0xff]  ;;  %v12513_v36 = vld [vmem:[#allocation333_spill] sm:$0xff]  ;;  %v12514_v33 = vld [vmem:[#allocation334_spill] sm:$0xff] }
 0x5fa   : > { %12505 = vst [vmem:[#allocation74_spill] sm:$0xff] %v10093_v26  ;;  %12506 = vst [vmem:[#allocation71_spill] sm:$0xff] %v10095_v16  ;;  %v2664_v44 = vsel %vm2603_vm14, %v12511_v50, %v12510_v1  ;;  %v4988_v37 = vmul.f32 %v9473_v7, %v4985_v0  ;;  %v4987_v6 = vmul.f32 %v9507_v18, %v4985_v0  ;;  %v5005_v59 = vstv %s10051_s21  ;;  %v12519_v0 = vld [vmem:[#allocation335_spill] sm:$0xff]  ;;  %s10684_s21 = sld [smem:[#allocation3 + $0x39f]] }
 0x5fb   : > { %4992 = vrot.lane.b32.xlu1 %v4986_v43, %s6352_s0  ;;  %4976 = vrot.lane.b32.xlu0 %v4968_v61, %s6352_s0  ;;  %v2609_v51 = vadd.f32 %v2605_v14, %v2448_v35  ;;  %v2628_v40 = vadd.f32 %v2624_v38, %v2467_v12  ;;  %v2629_v31 = vadd.f32 %v2625_v19, %v2468_v56  ;;  %v12515_v43 = vld [vmem:[#allocation336_spill] sm:$0xff]  ;;  %v12520_v14 = vld [vmem:[#allocation337_spill] sm:$0xff]  ;;  %v12533_v16 = vld [vmem:[#allocation347_spill] sm:$0xff] }
 0x5fc   : > { %v2648_v39 = vadd.f32 %v2644_v13, %v2487_v52  ;;  %v2665_v25 = vsel %vm2603_vm14, %v12510_v1, %v12512_v57  ;;  %v2684_v50 = vsel %vm2603_vm14, %v12514_v33, %v12513_v36  ;;  %v2685_v61 = vsel %vm2603_vm14, %v12513_v36, %v12515_v43  ;;  %v12518_v52 = vld [vmem:[#allocation338_spill] sm:$0xff]  ;;  %v12521_v13 = vld [vmem:[#allocation339_spill] sm:$0xff]  ;;  %v12522_v1 = vld [vmem:[#allocation340_spill] sm:$0xff] }
 0x5fd   : > { %v10120_v26 = vpop.permute.xlu1 %4612  ;;  %v10122_v35 = vpop.permute.xlu0 %4610  ;;  %v2649_v12 = vadd.f32 %v2645_v3, %v2488_v54  ;;  %v2668_v56 = vadd.f32 %v2664_v44, %v2507_v28  ;;  %v2704_v19 = vsel %vm2603_vm14, %v12519_v0, %v12518_v52  ;;  %v2705_v38 = vsel %vm2603_vm14, %v12518_v52, %v12520_v14  ;;  %v12523_v43 = vld [vmem:[#allocation342_spill] sm:$0xff]  ;;  %v12524_v0 = vld [vmem:[#allocation344_spill] sm:$0xff]  ;;  %v12525_v14 = vld [vmem:[#allocation341_spill] sm:$0xff] }
 0x5fe   : > { %12516 = vst [vmem:[#allocation73_spill] sm:$0xff] %v10120_v26  ;;  %12517 = vst [vmem:[#allocation75_spill] sm:$0xff] %v10122_v35  ;;  %v2724_v57 = vsel %vm2603_vm14, %v12522_v1, %v12521_v13  ;;  %v5007_v36 = vmul.f32 %v9507_v18, %v5005_v59  ;;  %v5006_v54 = vmul.f32 %v9534_v48, %v5005_v59  ;;  %v5026_v33 = vstv %s10082_s26  ;;  %v12526_v1 = vld [vmem:[#allocation343_spill] sm:$0xff]  ;;  %v12527_v35 = vld [vmem:[#allocation345_spill] sm:$0xff]  ;;  %s10741_s26 = sld [smem:[#allocation3 + $0x20]] }
 0x5ff   : > { %4996 = vrot.lane.b32.xlu1 %v4988_v37, %s6352_s0  ;;  %4994 = vrot.lane.b32.xlu0 %v4987_v6, %s6352_s0  ;;  %v2669_v28 = vadd.f32 %v2665_v25, %v2508_v32  ;;  %v2688_v3 = vadd.f32 %v2684_v50, %v2527_v17  ;;  %v2689_v44 = vadd.f32 %v2685_v61, %v2528_v47  ;;  %v12528_v26 = vld [vmem:[#allocation346_spill] sm:$0xff]  ;;  %s10486_s0 = sld [smem:[#allocation3 + $0x11f]] }
 0x600   : > { %v2725_v52 = vsel %vm2603_vm14, %v12521_v13, %v12523_v43  ;;  %v2744_v37 = vsel %vm2603_vm14, %v12525_v14, %v12524_v0  ;;  %v2745_v6 = vsel %vm2603_vm14, %v12524_v0, %v12526_v1  ;;  %v2765_v32 = vsel %vm2764_vm15, %v12528_v26, %v12527_v35  ;;  %v12531_v13 = vld [vmem:[#allocation348_spill] sm:$0xff]  ;;  %v12532_v14 = vld [vmem:[#allocation350_spill] sm:$0xff] }
 0x601   : > { %v10152_v17 = vpop.permute.xlu1 %4630  ;;  %v10154_v47 = vpop.permute.xlu0 %4614  ;;  %v2708_v25 = vadd.f32 %v2704_v19, %v2547_v41  ;;  %v2709_v50 = vadd.f32 %v2705_v38, %v2548_v27  ;;  %v2728_v61 = vadd.f32 %v2724_v57, %v2567_v34  ;;  %v2766_v43 = vsel %vm2764_vm15, %v12527_v35, %v12531_v13  ;;  %v12534_v38 = vld [vmem:[#allocation349_spill] sm:$0xff]  ;;  %v12535_v57 = vld [vmem:[#allocation351_spill] sm:$0xff]  ;;  %v12536_v1 = vld [vmem:[#allocation352_spill] sm:$0xff] }
 0x602   : > { %12529 = vst [vmem:[#allocation76_spill] sm:$0xff] %v10152_v17  ;;  %12530 = vst [vmem:[#allocation78_spill] sm:$0xff] %v10154_v47  ;;  %v2785_v23 = vsel %vm2764_vm15, %v12533_v16, %v12532_v14  ;;  %v5027_v26 = vmul.f32 %v9534_v48, %v5026_v33  ;;  %v5008_v0 = vmul.f32 %v9473_v7, %v5005_v59  ;;  %v12548_v17 = vld [vmem:[#allocation361_spill] sm:$0xff]  ;;  %v12594_v47 = vld [vmem:[#allocation400_spill] sm:$0xff]  ;;  %vm5179_vm14 = vcmask 793600  }
 0x603   : > { %5014 = vrot.lane.b32.xlu1 %v5007_v36, %s6353_s10  ;;  %5012 = vrot.lane.b32.xlu0 %v5006_v54, %s6353_s10  ;;  %v2729_v41 = vadd.f32 %v2725_v52, %v2568_v63  ;;  %v2748_v27 = vadd.f32 %v2744_v37, %v2587_v55  ;;  %v2749_v34 = vadd.f32 %v2745_v6, %v2588_v10  ;;  %v12537_v54 = vld [vmem:[#allocation354_spill] sm:$0xff]  ;;  %v12542_v52 = vld [vmem:[#allocation355_spill] sm:$0xff]  ;;  %v12543_v6 = vld [vmem:[#allocation357_spill] sm:$0xff] }
 0x604   : > { %v2769_v19 = vadd.f32 %v2765_v32, %v2608_v53  ;;  %v2770_v35 = vadd.f32 %v2766_v43, %v2609_v51  ;;  %v2786_v16 = vsel %vm2764_vm15, %v12532_v14, %v12534_v38  ;;  %v2805_v36 = vsel %vm2764_vm15, %v12536_v1, %v12535_v57  ;;  %v12540_v53 = vld [vmem:[#allocation356_spill] sm:$0xff]  ;;  %v12541_v51 = vld [vmem:[#allocation353_spill] sm:$0xff]  ;;  %v12544_v32 = vld [vmem:[#allocation358_spill] sm:$0xff] }
 0x605   : > { %v2806_v13 = vsel %vm2764_vm15, %v12535_v57, %v12537_v54  ;;  %v10177_v63 = vpop.permute.xlu1 %4634  ;;  %v10179_v55 = vpop.permute.xlu0 %4632  ;;  %v2789_v10 = vadd.f32 %v2785_v23, %v2628_v40  ;;  %v2825_v59 = vsel %vm2764_vm15, %v12541_v51, %v12540_v53  ;;  %v2826_v37 = vsel %vm2764_vm15, %v12540_v53, %v12542_v52  ;;  %v12545_v14 = vld [vmem:[#allocation360_spill] sm:$0xff]  ;;  %v12546_v52 = vld [vmem:[#allocation362_spill] sm:$0xff] }
 0x606   : > { %12538 = vst [vmem:[#allocation80_spill] sm:$0xff] %v10177_v63  ;;  %12539 = vst [vmem:[#allocation77_spill] sm:$0xff] %v10179_v55  ;;  %v2845_v43 = vsel %vm2764_vm15, %v12544_v32, %v12543_v6  ;;  %v2846_v38 = vsel %vm2764_vm15, %v12543_v6, %v12545_v14  ;;  %v5029_v23 = vmul.f32 %v9473_v7, %v5026_v33  ;;  %v5046_v53 = vstv %s10138_s8  ;;  %v12547_v32 = vld [vmem:[#allocation359_spill] sm:$0xff]  ;;  %v12550_v14 = vld [vmem:[#allocation364_spill] sm:$0xff]  ;;  %s10767_s8 = sld [smem:[#allocation3 + $0xa0]] }
 0x607   : > { %5033 = vrot.lane.b32.xlu1 %v5027_v26, %s6353_s10  ;;  %5016 = vrot.lane.b32.xlu0 %v5008_v0, %s6353_s10  ;;  %v5028_v40 = vmul.f32 %v9507_v18, %v5026_v33  ;;  %v2790_v57 = vadd.f32 %v2786_v16, %v2629_v31  ;;  %v2809_v1 = vadd.f32 %v2805_v36, %v2648_v39  ;;  %v12549_v26 = vld [vmem:[#allocation363_spill] sm:$0xff]  ;;  %v12553_v33 = vld [vmem:[#allocation366_spill] sm:$0xff]  ;;  %v12554_v36 = vld [vmem:[#allocation368_spill] sm:$0xff] }
 0x608   : > { %v2810_v54 = vadd.f32 %v2806_v13, %v2649_v12  ;;  %v2829_v51 = vadd.f32 %v2825_v59, %v2668_v56  ;;  %v2865_v63 = vsel %vm2764_vm15, %v12547_v32, %v12546_v52  ;;  %v2866_v6 = vsel %vm2764_vm15, %v12546_v52, %v12548_v17  ;;  %v12555_v13 = vld [vmem:[#allocation365_spill] sm:$0xff] }
 0x609   : > { %v2885_v7 = vsel %vm2764_vm15, %v12550_v14, %v12549_v26  ;;  %v10207_v0 = vpop.permute.xlu1 %4652  ;;  %v10209_v31 = vpop.permute.xlu0 %4650  ;;  %v2830_v39 = vadd.f32 %v2826_v37, %v2669_v28  ;;  %v2849_v12 = vadd.f32 %v2845_v43, %v2688_v3  ;;  %v2850_v56 = vadd.f32 %v2846_v38, %v2689_v44  ;;  %v12556_v37 = vld [vmem:[#allocation367_spill] sm:$0xff]  ;;  %v12557_v38 = vld [vmem:[#allocation369_spill] sm:$0xff]  ;;  %v12560_v14 = vld [vmem:[#allocation374_spill] sm:$0xff] }
 0x60a   : > { %12551 = vst [vmem:[#allocation79_spill] sm:$0xff] %v10207_v0  ;;  %12552 = vst [vmem:[#allocation81_spill] sm:$0xff] %v10209_v31  ;;  %v2886_v16 = vsel %vm2764_vm15, %v12549_v26, %v12553_v33  ;;  %v2905_v17 = vsel %vm2764_vm15, %v12555_v13, %v12554_v36  ;;  %v5048_v59 = vmul.f32 %v9507_v18, %v5046_v53  ;;  %v5066_v44 = vstv %s10166_s30  ;;  %v12558_v26 = vld [vmem:[#allocation370_spill] sm:$0xff]  ;;  %v12564_v33 = vld [vmem:[#allocation373_spill] sm:$0xff]  ;;  %s6355_s30 = smov 96  }
 0x60b   : > { %5037 = vrot.lane.b32.xlu1 %v5029_v23, %s6353_s10  ;;  %5035 = vrot.lane.b32.xlu0 %v5028_v40, %s6353_s10  ;;  %v5047_v52 = vmul.f32 %v9534_v48, %v5046_v53  ;;  %v2869_v32 = vadd.f32 %v2865_v63, %v2708_v25  ;;  %v2870_v28 = vadd.f32 %v2866_v6, %v2709_v50  ;;  %v12559_v40 = vld [vmem:[#allocation372_spill] sm:$0xff]  ;;  %v12561_v25 = vld [vmem:[#allocation371_spill] sm:$0xff]  ;;  %v12567_v31 = vld [vmem:[#allocation378_spill] sm:$0xff] }
 0x60c   : > { %v2889_v3 = vadd.f32 %v2885_v7, %v2728_v61  ;;  %v2906_v43 = vsel %vm2764_vm15, %v12554_v36, %v12556_v37  ;;  %v2926_v23 = vsel %vm2925_vm0, %v12558_v26, %v12557_v38  ;;  %v2927_v18 = vsel %vm2925_vm0, %v12557_v38, %v12559_v40  ;;  %v12565_v13 = vld [vmem:[#allocation375_spill] sm:$0xff]  ;;  %v12566_v37 = vld [vmem:[#allocation376_spill] sm:$0xff]  ;;  %v12583_v0 = vld [vmem:[#allocation389_spill] sm:$0xff] }
 0x60d   : > { %v2946_v50 = vsel %vm2925_vm0, %v12561_v25, %v12560_v14  ;;  %v10236_v61 = vpop.permute.xlu1 %4670  ;;  %v10238_v63 = vpop.permute.xlu0 %4654  ;;  %v2890_v6 = vadd.f32 %v2886_v16, %v2729_v41  ;;  %v2909_v7 = vadd.f32 %v2905_v17, %v2748_v27  ;;  %v2947_v36 = vsel %vm2925_vm0, %v12560_v14, %v12564_v33  ;;  %v10253_v41 = vld [vmem:[%s6576_s27] sm:$0xff] }
 0x60e   : > { %12562 = vst [vmem:[#allocation82_spill] sm:$0xff] %v10236_v61  ;;  %12563 = vst [vmem:[#allocation84_spill] sm:$0xff] %v10238_v63  ;;  %v2966_v26 = vsel %vm2925_vm0, %v12566_v37, %v12565_v13  ;;  %v2967_v38 = vsel %vm2925_vm0, %v12565_v13, %v12567_v31  ;;  %v5067_v40 = vmul.f32 %v9534_v48, %v5066_v44  ;;  %v12568_v37 = vld [vmem:[#allocation380_spill] sm:$0xff]  ;;  %v12569_v31 = vld [vmem:[#allocation377_spill] sm:$0xff]  ;;  %vm5340_vm15 = vcmask 785408  }
 0x60f   : > { %5055 = vrot.lane.b32.xlu1 %v5048_v59, %s6353_s10  ;;  %5053 = vrot.lane.b32.xlu0 %v5047_v52, %s6353_s10  ;;  %v5049_v27 = vmul.f32 %v10253_v41, %v5046_v53  ;;  %v2910_v16 = vadd.f32 %v2906_v43, %v2749_v34  ;;  %v2930_v17 = vadd.f32 %v2926_v23, %v2769_v19  ;;  %v12570_v13 = vld [vmem:[#allocation379_spill] sm:$0xff]  ;;  %v12571_v52 = vld [vmem:[#allocation381_spill] sm:$0xff]  ;;  %v12572_v63 = vld [vmem:[#allocation382_spill] sm:$0xff] }
 0x610   : > { %v2931_v14 = vadd.f32 %v2927_v18, %v2770_v35  ;;  %v2950_v25 = vadd.f32 %v2946_v50, %v2789_v10  ;;  %v2951_v33 = vadd.f32 %v2947_v36, %v2790_v57  ;;  %v2986_v59 = vsel %vm2925_vm0, %v12569_v31, %v12568_v37  ;;  %v12575_v57 = vld [vmem:[#allocation384_spill] sm:$0xff]  ;;  %v12576_v23 = vld [vmem:[#allocation386_spill] sm:$0xff]  ;;  %v12577_v18 = vld [vmem:[#allocation383_spill] sm:$0xff] }
 0x611   : > { %v2987_v48 = vsel %vm2925_vm0, %v12568_v37, %v12570_v13  ;;  %v3006_v53 = vsel %vm2925_vm0, %v12572_v63, %v12571_v52  ;;  %v10267_v34 = vpop.permute.xlu1 %4674  ;;  %v10269_v19 = vpop.permute.xlu0 %4672  ;;  %v2970_v35 = vadd.f32 %v2966_v26, %v2809_v1  ;;  %v2971_v10 = vadd.f32 %v2967_v38, %v2810_v54  ;;  %v12578_v36 = vld [vmem:[#allocation385_spill] sm:$0xff] }
 0x612   : > { %12573 = vst [vmem:[#allocation86_spill] sm:$0xff] %v10267_v34  ;;  %12574 = vst [vmem:[#allocation83_spill] sm:$0xff] %v10269_v19  ;;  %v3007_v43 = vsel %vm2925_vm0, %v12571_v52, %v12575_v57  ;;  %v3026_v50 = vsel %vm2925_vm0, %v12577_v18, %v12576_v23  ;;  %v3027_v37 = vsel %vm2925_vm0, %v12576_v23, %v12578_v36  ;;  %v10284_v54 = vld [vmem:[%s6569_s12 + $0x8] sm:$0xff]  ;;  %v5086_v13 = vstv %s10222_s29  ;;  %v12580_v18 = vld [vmem:[#allocation388_spill] sm:$0xff]  ;;  %s10856_s29 = sld [smem:[#allocation3 + $0x1a0]] }
 0x613   : > { %5073 = vrot.lane.b32.xlu1 %v5067_v40, %s6353_s10  ;;  %5057 = vrot.lane.b32.xlu0 %v5049_v27, %s6353_s10  ;;  %v5069_v1 = vmul.f32 %v10253_v41, %v5066_v44  ;;  %v5068_v63 = vmul.f32 %v10284_v54, %v5066_v44  ;;  %v2990_v26 = vadd.f32 %v2986_v59, %v2829_v51  ;;  %v12579_v57 = vld [vmem:[#allocation387_spill] sm:$0xff]  ;;  %v12581_v36 = vld [vmem:[#allocation390_spill] sm:$0xff]  ;;  %v12582_v27 = vld [vmem:[#allocation392_spill] sm:$0xff] }
 0x614   : > { %v2991_v38 = vadd.f32 %v2987_v48, %v2830_v39  ;;  %v3010_v31 = vadd.f32 %v3006_v53, %v2849_v12  ;;  %v3011_v52 = vadd.f32 %v3007_v43, %v2850_v56  ;;  %v3046_v23 = vsel %vm2925_vm0, %v12580_v18, %v12579_v57  ;;  %v12586_v56 = vld [vmem:[#allocation391_spill] sm:$0xff]  ;;  %v12587_v48 = vld [vmem:[#allocation393_spill] sm:$0xff]  ;;  %v12588_v53 = vld [vmem:[#allocation394_spill] sm:$0xff] }
 0x615   : > { %v3047_v40 = vsel %vm2925_vm0, %v12579_v57, %v12581_v36  ;;  %v3066_v55 = vsel %vm2925_vm0, %v12583_v0, %v12582_v27  ;;  %v10297_v44 = vpop.permute.xlu1 %4692  ;;  %v10299_v51 = vpop.permute.xlu0 %4690  ;;  %v3030_v39 = vadd.f32 %v3026_v50, %v2869_v32  ;;  %v3031_v12 = vadd.f32 %v3027_v37, %v2870_v28  ;;  %v12589_v57 = vld [vmem:[#allocation396_spill] sm:$0xff]  ;;  %v12599_v34 = vld [vmem:[#allocation401_spill] sm:$0xff] }
 0x616   : > { %12584 = vst [vmem:[#allocation85_spill] sm:$0xff] %v10297_v44  ;;  %12585 = vst [vmem:[#allocation87_spill] sm:$0xff] %v10299_v51  ;;  %v3067_v59 = vsel %vm2925_vm0, %v12582_v27, %v12586_v56  ;;  %v3087_v43 = vsel %vm3086_vm1, %v12588_v53, %v12587_v48  ;;  %v3088_v18 = vsel %vm3086_vm1, %v12587_v48, %v12589_v57  ;;  %v10314_v32 = vld [vmem:[%s6569_s12] sm:$0xff]  ;;  %v5106_v27 = vstv %s10256_s11  ;;  %v12591_v53 = vld [vmem:[#allocation395_spill] sm:$0xff]  ;;  %s10921_s11 = sld [smem:[#allocation3 + $0x220]] }
 0x617   : > { %5077 = vrot.lane.b32.xlu1 %v5069_v1, %s6353_s10  ;;  %5075 = vrot.lane.b32.xlu0 %v5068_v63, %s6353_s10  ;;  %v5088_v0 = vmul.f32 %v10284_v54, %v5086_v13  ;;  %v5087_v28 = vmul.f32 %v10314_v32, %v5086_v13  ;;  %v3050_v50 = vadd.f32 %v3046_v23, %v2889_v3  ;;  %v12590_v56 = vld [vmem:[#allocation398_spill] sm:$0xff]  ;;  %v12592_v57 = vld [vmem:[#allocation397_spill] sm:$0xff]  ;;  %v12593_v63 = vld [vmem:[#allocation399_spill] sm:$0xff] }
 0x618   : > { %v3051_v37 = vadd.f32 %v3047_v40, %v2890_v6  ;;  %v3070_v36 = vadd.f32 %v3066_v55, %v2909_v7  ;;  %v3107_v48 = vsel %vm3086_vm1, %v12591_v53, %v12590_v56  ;;  %v3108_v1 = vsel %vm3086_vm1, %v12590_v56, %v12592_v57  ;;  %v12595_v44 = vld [vmem:[#allocation402_spill] sm:$0xff]  ;;  %v12598_v53 = vld [vmem:[#allocation404_spill] sm:$0xff]  ;;  %v12600_v56 = vld [vmem:[#allocation403_spill] sm:$0xff] }
 0x619   : > { %v3127_v51 = vsel %vm3086_vm1, %v12594_v47, %v12593_v63  ;;  %v3128_v3 = vsel %vm3086_vm1, %v12593_v63, %v12595_v44  ;;  %v10332_v55 = vpop.permute.xlu1 %4711  ;;  %v10334_v6 = vpop.permute.xlu0 %4694  ;;  %v3071_v7 = vadd.f32 %v3067_v59, %v2910_v16  ;;  %v3091_v23 = vadd.f32 %v3087_v43, %v2930_v17  ;;  %v12601_v43 = vld [vmem:[#allocation405_spill] sm:$0xff] }
 0x61a   : > { %12596 = vst [vmem:[#allocation88_spill] sm:$0xff] %v10332_v55  ;;  %12597 = vst [vmem:[#allocation90_spill] sm:$0xff] %v10334_v6  ;;  %v3092_v40 = vadd.f32 %v3088_v18, %v2931_v14  ;;  %v3147_v61 = vsel %vm3086_vm1, %v12599_v34, %v12598_v53  ;;  %v3148_v57 = vsel %vm3086_vm1, %v12598_v53, %v12600_v56  ;;  %v12602_v18 = vld [vmem:[#allocation406_spill] sm:$0xff]  ;;  %v12603_v53 = vld [vmem:[#allocation408_spill] sm:$0xff] }
 0x61b   : > { %5095 = vrot.lane.b32.xlu1 %v5088_v0, %s6353_s10  ;;  %5093 = vrot.lane.b32.xlu0 %v5087_v28, %s6353_s10  ;;  %v5107_v47 = vmul.f32 %v10314_v32, %v5106_v27  ;;  %v5089_v44 = vmul.f32 %v10253_v41, %v5086_v13  ;;  %v3111_v16 = vadd.f32 %v3107_v48, %v2950_v25  ;;  %v12604_v28 = vld [vmem:[#allocation410_spill] sm:$0xff]  ;;  %v12605_v56 = vld [vmem:[#allocation407_spill] sm:$0xff] }
 0x61c   : > { %v3112_v17 = vadd.f32 %v3108_v1, %v2951_v33  ;;  %v3131_v14 = vadd.f32 %v3127_v51, %v2970_v35  ;;  %v3132_v59 = vadd.f32 %v3128_v3, %v2971_v10  ;;  %v3151_v34 = vadd.f32 %v3147_v61, %v2990_v26  ;;  %v12608_v10 = vld [vmem:[#allocation409_spill] sm:$0xff]  ;;  %v12609_v26 = vld [vmem:[#allocation411_spill] sm:$0xff]  ;;  %v12610_v51 = vld [vmem:[#allocation412_spill] sm:$0xff] }
 0x61d   : > { %v3167_v63 = vsel %vm3086_vm1, %v12602_v18, %v12601_v43  ;;  %v3168_v0 = vsel %vm3086_vm1, %v12601_v43, %v12603_v53  ;;  %v3187_v13 = vsel %vm3086_vm1, %v12605_v56, %v12604_v28  ;;  %v10357_v25 = vpop.permute.xlu1 %4715  ;;  %v10359_v33 = vpop.permute.xlu0 %4713  ;;  %v3152_v35 = vadd.f32 %v3148_v57, %v2991_v38  ;;  %v12611_v1 = vld [vmem:[#allocation414_spill] sm:$0xff]  ;;  %v12612_v43 = vld [vmem:[#allocation416_spill] sm:$0xff]  ;;  %v12613_v18 = vld [vmem:[#allocation413_spill] sm:$0xff] }
 0x61e   : > { %12606 = vst [vmem:[#allocation92_spill] sm:$0xff] %v10357_v25  ;;  %12607 = vst [vmem:[#allocation89_spill] sm:$0xff] %v10359_v33  ;;  %v3188_v61 = vsel %vm3086_vm1, %v12604_v28, %v12608_v10  ;;  %v3207_v48 = vsel %vm3086_vm1, %v12610_v51, %v12609_v26  ;;  %v3208_v3 = vsel %vm3086_vm1, %v12609_v26, %v12611_v1  ;;  %v5126_v51 = vstv %s10318_s28  ;;  %v12614_v33 = vld [vmem:[#allocation415_spill] sm:$0xff]  ;;  %v12615_v1 = vld [vmem:[#allocation417_spill] sm:$0xff]  ;;  %s10948_s28 = sld [smem:[#allocation3 + $0x2a0]] }
 0x61f   : > { %v3227_v53 = vsel %vm3086_vm1, %v12613_v18, %v12612_v43  ;;  %5113 = vrot.lane.b32.xlu1 %v5107_v47, %s6353_s10  ;;  %5097 = vrot.lane.b32.xlu0 %v5089_v44, %s6353_s10  ;;  %v5109_v38 = vmul.f32 %v10253_v41, %v5106_v27  ;;  %v5108_v57 = vmul.f32 %v10284_v54, %v5106_v27  ;;  %v12616_v18 = vld [vmem:[#allocation418_spill] sm:$0xff] }
 0x620   : > { %v3171_v28 = vadd.f32 %v3167_v63, %v3010_v31  ;;  %v3172_v56 = vadd.f32 %v3168_v0, %v3011_v52  ;;  %v3191_v10 = vadd.f32 %v3187_v13, %v3030_v39  ;;  %v3192_v25 = vadd.f32 %v3188_v61, %v3031_v12  ;;  %v12619_v52 = vld [vmem:[#allocation420_spill] sm:$0xff]  ;;  %v12620_v12 = vld [vmem:[#allocation422_spill] sm:$0xff]  ;;  %v12622_v0 = vld [vmem:[#allocation421_spill] sm:$0xff] }
 0x621   : > { %v3211_v55 = vadd.f32 %v3207_v48, %v3050_v50  ;;  %v3228_v26 = vsel %vm3086_vm1, %v12612_v43, %v12614_v33  ;;  %v3248_v47 = vsel %vm3247_vm2, %v12616_v18, %v12615_v1  ;;  %v10384_v44 = vpop.permute.xlu1 %4733  ;;  %v10386_v6 = vpop.permute.xlu0 %4731  ;;  %v3212_v27 = vadd.f32 %v3208_v3, %v3051_v37  ;;  %v12621_v50 = vld [vmem:[#allocation419_spill] sm:$0xff]  ;;  %v12624_v3 = vld [vmem:[#allocation424_spill] sm:$0xff] }
 0x622   : > { %12617 = vst [vmem:[#allocation91_spill] sm:$0xff] %v10384_v44  ;;  %12618 = vst [vmem:[#allocation93_spill] sm:$0xff] %v10386_v6  ;;  %v3231_v31 = vadd.f32 %v3227_v53, %v3070_v36  ;;  %v3249_v39 = vsel %vm3247_vm2, %v12615_v1, %v12619_v52  ;;  %v3268_v63 = vsel %vm3247_vm2, %v12621_v50, %v12620_v12  ;;  %v12623_v48 = vld [vmem:[#allocation423_spill] sm:$0xff]  ;;  %v5146_v53 = vstv %s10346_s4  ;;  %v12625_v1 = vld [vmem:[#allocation426_spill] sm:$0xff]  ;;  %s11003_s4 = sld [smem:[#allocation3 + $0x320]] }
 0x623   : > { %v3269_v13 = vsel %vm3247_vm2, %v12620_v12, %v12622_v0  ;;  %5117 = vrot.lane.b32.xlu1 %v5109_v38, %s6353_s10  ;;  %5115 = vrot.lane.b32.xlu0 %v5108_v57, %s6353_s10  ;;  %v5128_v33 = vmul.f32 %v10284_v54, %v5126_v51  ;;  %v5127_v37 = vmul.f32 %v10314_v32, %v5126_v51  ;;  %v12626_v38 = vld [vmem:[#allocation428_spill] sm:$0xff]  ;;  %v12627_v52 = vld [vmem:[#allocation425_spill] sm:$0xff]  ;;  %v12628_v12 = vld [vmem:[#allocation427_spill] sm:$0xff] }
 0x624   : > { %v3232_v36 = vadd.f32 %v3228_v26, %v3071_v7  ;;  %v3252_v61 = vadd.f32 %v3248_v47, %v3091_v23  ;;  %v3288_v43 = vsel %vm3247_vm2, %v12624_v3, %v12623_v48  ;;  %v3289_v18 = vsel %vm3247_vm2, %v12623_v48, %v12625_v1  ;;  %v12629_v23 = vld [vmem:[#allocation429_spill] sm:$0xff]  ;;  %v12630_v26 = vld [vmem:[#allocation430_spill] sm:$0xff]  ;;  %v12633_v48 = vld [vmem:[#allocation432_spill] sm:$0xff] }
 0x625   : > { %v3308_v57 = vsel %vm3247_vm2, %v12627_v52, %v12626_v38  ;;  %v3309_v7 = vsel %vm3247_vm2, %v12626_v38, %v12628_v12  ;;  %v3328_v47 = vsel %vm3247_vm2, %v12630_v26, %v12629_v23  ;;  %v10419_v50 = vpop.permute.xlu1 %4751  ;;  %v10421_v0 = vpop.permute.xlu0 %4735  ;;  %v3253_v3 = vadd.f32 %v3249_v39, %v3092_v40  ;;  %v12635_v39 = vld [vmem:[#allocation431_spill] sm:$0xff] }
 0x626   : > { %12631 = vst [vmem:[#allocation94_spill] sm:$0xff] %v10419_v50  ;;  %12632 = vst [vmem:[#allocation96_spill] sm:$0xff] %v10421_v0  ;;  %v3272_v6 = vadd.f32 %v3268_v63, %v3111_v16  ;;  %v3273_v44 = vadd.f32 %v3269_v13, %v3112_v17  ;;  %v3329_v1 = vsel %vm3247_vm2, %v12629_v23, %v12633_v48  ;;  %v12634_v17 = vld [vmem:[#allocation434_spill] sm:$0xff]  ;;  %v12636_v63 = vld [vmem:[#allocation433_spill] sm:$0xff] }
 0x627   : > { %v3292_v52 = vadd.f32 %v3288_v43, %v3131_v14  ;;  %5135 = vrot.lane.b32.xlu1 %v5128_v33, %s6353_s10  ;;  %5133 = vrot.lane.b32.xlu0 %v5127_v37, %s6353_s10  ;;  %v5147_v38 = vmul.f32 %v10314_v32, %v5146_v53  ;;  %v5129_v12 = vmul.f32 %v10253_v41, %v5126_v51  ;;  %v12637_v33 = vld [vmem:[#allocation435_spill] sm:$0xff]  ;;  %v12638_v37 = vld [vmem:[#allocation436_spill] sm:$0xff]  ;;  %v12643_v43 = vld [vmem:[#allocation437_spill] sm:$0xff] }
 0x628   : > { %v3293_v26 = vadd.f32 %v3289_v18, %v3132_v59  ;;  %v3312_v50 = vadd.f32 %v3308_v57, %v3151_v34  ;;  %v3313_v0 = vadd.f32 %v3309_v7, %v3152_v35  ;;  %v3332_v40 = vadd.f32 %v3328_v47, %v3171_v28  ;;  %v12641_v35 = vld [vmem:[#allocation438_spill] sm:$0xff]  ;;  %v12644_v57 = vld [vmem:[#allocation439_spill] sm:$0xff]  ;;  %v12645_v23 = vld [vmem:[#allocation441_spill] sm:$0xff] }
 0x629   : > { %v3333_v16 = vadd.f32 %v3329_v1, %v3172_v56  ;;  %v3348_v14 = vsel %vm3247_vm2, %v12635_v39, %v12634_v17  ;;  %v3349_v13 = vsel %vm3247_vm2, %v12634_v17, %v12636_v63  ;;  %v3368_v51 = vsel %vm3247_vm2, %v12638_v37, %v12637_v33  ;;  %v10441_v59 = vpop.permute.xlu1 %4755  ;;  %v10443_v34 = vpop.permute.xlu0 %4753  ;;  %v12642_v56 = vld [vmem:[#allocation440_spill] sm:$0xff]  ;;  %v12646_v47 = vld [vmem:[#allocation442_spill] sm:$0xff] }
 0x62a   : > { %12639 = vst [vmem:[#allocation98_spill] sm:$0xff] %v10441_v59  ;;  %12640 = vst [vmem:[#allocation95_spill] sm:$0xff] %v10443_v34  ;;  %v3369_v28 = vsel %vm3247_vm2, %v12637_v33, %v12641_v35  ;;  %v3388_v18 = vsel %vm3247_vm2, %v12643_v43, %v12642_v56  ;;  %v3389_v7 = vsel %vm3247_vm2, %v12642_v56, %v12644_v57  ;;  %v12647_v1 = vld [vmem:[#allocation444_spill] sm:$0xff]  ;;  %v5166_v56 = vstv %s10405_s22  ;;  %v12648_v57 = vld [vmem:[#allocation446_spill] sm:$0xff]  ;;  %s11032_s22 = sld [smem:[#allocation3 + $0x3a0]] }
 0x62b   : > { %v3409_v48 = vsel %vm3408_vm3, %v12646_v47, %v12645_v23  ;;  %v3410_v17 = vsel %vm3408_vm3, %v12645_v23, %v12647_v1  ;;  %5153 = vrot.lane.b32.xlu1 %v5147_v38, %s6353_s10  ;;  %5137 = vrot.lane.b32.xlu0 %v5129_v12, %s6353_s10  ;;  %v5149_v39 = vmul.f32 %v10253_v41, %v5146_v53  ;;  %v12649_v59 = vld [vmem:[#allocation443_spill] sm:$0xff]  ;;  %v12650_v34 = vld [vmem:[#allocation445_spill] sm:$0xff]  ;;  %v12652_v1 = vld [vmem:[#allocation448_spill] sm:$0xff] }
 0x62c   : > { %v5148_v63 = vmul.f32 %v10284_v54, %v5146_v53  ;;  %v3352_v33 = vadd.f32 %v3348_v14, %v3191_v10  ;;  %v3353_v37 = vadd.f32 %v3349_v13, %v3192_v25  ;;  %v3372_v35 = vadd.f32 %v3368_v51, %v3211_v55  ;;  %v12651_v38 = vld [vmem:[#allocation447_spill] sm:$0xff]  ;;  %v12655_v14 = vld [vmem:[#allocation450_spill] sm:$0xff] }
 0x62d   : > { %v3373_v43 = vadd.f32 %v3369_v28, %v3212_v27  ;;  %v3429_v47 = vsel %vm3408_vm3, %v12649_v59, %v12648_v57  ;;  %v3430_v23 = vsel %vm3408_vm3, %v12648_v57, %v12650_v34  ;;  %v3449_v12 = vsel %vm3408_vm3, %v12652_v1, %v12651_v38  ;;  %v10474_v19 = vpop.permute.xlu1 %4773  ;;  %v10476_v10 = vpop.permute.xlu0 %4771 }
 0x62e   : > { %12653 = vst [vmem:[#allocation97_spill] sm:$0xff] %v10474_v19  ;;  %12654 = vst [vmem:[#allocation99_spill] sm:$0xff] %v10476_v10  ;;  %v3392_v55 = vadd.f32 %v3388_v18, %v3231_v31  ;;  %v3393_v25 = vadd.f32 %v3389_v7, %v3232_v36  ;;  %v3413_v27 = vadd.f32 %v3409_v48, %v3252_v61  ;;  %v5187_v31 = vstv %s10430_s15  ;;  %v12656_v36 = vld [vmem:[#allocation452_spill] sm:$0xff]  ;;  %v12657_v61 = vld [vmem:[#allocation449_spill] sm:$0xff]  ;;  %s5983_s15 = sshll.u32 %s6311_s18, 8  ;;  %s5525_s18 = scalar_lea.sflag [#allocation5], %s6565_s5 }
 0x62f   : > { %v3414_v53 = vadd.f32 %v3410_v17, %v3253_v3  ;;  %v3450_v13 = vsel %vm3408_vm3, %v12651_v38, %v12655_v14  ;;  %5157 = vrot.lane.b32.xlu1 %v5149_v39, %s6353_s10  ;;  %5155 = vrot.lane.b32.xlu0 %v5148_v63, %s6353_s10  ;;  %v5168_v51 = vmul.f32 %v10284_v54, %v5166_v56  ;;  %v12658_v18 = vld [vmem:[#allocation451_spill] sm:$0xff]  ;;  %v12659_v48 = vld [vmem:[#allocation453_spill] sm:$0xff]  ;;  %v12660_v17 = vld [vmem:[#allocation454_spill] sm:$0xff]  ;;  %s10828_s10 = sld [smem:[#allocation3 + $0x120]] }
 0x630   : > { %v5167_v59 = vmul.f32 %v10314_v32, %v5166_v56  ;;  %v3433_v34 = vadd.f32 %v3429_v47, %v3272_v6  ;;  %v3434_v28 = vadd.f32 %v3430_v23, %v3273_v44  ;;  %v3453_v57 = vadd.f32 %v3449_v12, %v3292_v52  ;;  %v12661_v63 = vld [vmem:[#allocation456_spill] sm:$0xff]  ;;  %v12664_v23 = vld [vmem:[#allocation458_spill] sm:$0xff]  ;;  %v12665_v38 = vld [vmem:[#allocation455_spill] sm:$0xff] }
 0x631   : > { %v3469_v3 = vsel %vm3408_vm3, %v12657_v61, %v12656_v36  ;;  %v3470_v7 = vsel %vm3408_vm3, %v12656_v36, %v12658_v18  ;;  %v3489_v39 = vsel %vm3408_vm3, %v12660_v17, %v12659_v48  ;;  %v3490_v6 = vsel %vm3408_vm3, %v12659_v48, %v12661_v63  ;;  %v10500_v44 = vpop.permute.xlu1 %4791  ;;  %v10502_v52 = vpop.permute.xlu0 %4775  ;;  %v12666_v12 = vld [vmem:[#allocation457_spill] sm:$0xff]  ;;  %v12667_v36 = vld [vmem:[#allocation459_spill] sm:$0xff]  ;;  %v12668_v61 = vld [vmem:[#allocation460_spill] sm:$0xff] }
 0x632   : > { %12662 = vst [vmem:[#allocation100_spill] sm:$0xff] %v10500_v44  ;;  %12663 = vst [vmem:[#allocation102_spill] sm:$0xff] %v10502_v52  ;;  %v3454_v47 = vadd.f32 %v3450_v13, %v3293_v26  ;;  %v3509_v1 = vsel %vm3408_vm3, %v12665_v38, %v12664_v23  ;;  %v3510_v14 = vsel %vm3408_vm3, %v12664_v23, %v12666_v12  ;;  %v12669_v17 = vld [vmem:[#allocation462_spill] sm:$0xff]  ;;  %v12670_v44 = vld [vmem:[#allocation464_spill] sm:$0xff] }
 0x633   : > { %v3529_v18 = vsel %vm3408_vm3, %v12668_v61, %v12667_v36  ;;  %v3530_v48 = vsel %vm3408_vm3, %v12667_v36, %v12669_v17  ;;  %5175 = vrot.lane.b32.xlu1 %v5168_v51, %s6354_s6  ;;  %5173 = vrot.lane.b32.xlu0 %v5167_v59, %s6354_s6  ;;  %v5188_v26 = vmul.f32 %v10314_v32, %v5187_v31  ;;  %v12671_v52 = vld [vmem:[#allocation461_spill] sm:$0xff]  ;;  %v12672_v17 = vld [vmem:[#allocation463_spill] sm:$0xff]  ;;  %v12674_v10 = vld [vmem:[#allocation466_spill] sm:$0xff] }
 0x634   : > { %v5169_v13 = vmul.f32 %v10253_v41, %v5166_v56  ;;  %v3473_v63 = vadd.f32 %v3469_v3, %v3312_v50  ;;  %v3474_v38 = vadd.f32 %v3470_v7, %v3313_v0  ;;  %v3493_v23 = vadd.f32 %v3489_v39, %v3332_v40  ;;  %v12673_v59 = vld [vmem:[#allocation465_spill] sm:$0xff]  ;;  %v12677_v3 = vld [vmem:[#allocation468_spill] sm:$0xff]  ;;  %v12678_v39 = vld [vmem:[#allocation470_spill] sm:$0xff] }
 0x635   : > { %v3494_v12 = vadd.f32 %v3490_v6, %v3333_v16  ;;  %v3513_v61 = vadd.f32 %v3509_v1, %v3352_v33  ;;  %v3549_v36 = vsel %vm3408_vm3, %v12671_v52, %v12670_v44  ;;  %v3550_v51 = vsel %vm3408_vm3, %v12670_v44, %v12672_v17  ;;  %v10531_v50 = vpop.permute.xlu1 %4795  ;;  %v10533_v0 = vpop.permute.xlu0 %4793  ;;  %v12679_v6 = vld [vmem:[#allocation467_spill] sm:$0xff]  ;;  %v12701_v19 = vld [vmem:[#allocation485_spill] sm:$0xff] }
 0x636   : > { %v3570_v56 = vsel %vm3569_vm4, %v12674_v10, %v12673_v59  ;;  %12675 = vst [vmem:[#allocation104_spill] sm:$0xff] %v10531_v50  ;;  %12676 = vst [vmem:[#allocation101_spill] sm:$0xff] %v10533_v0  ;;  %v3514_v40 = vadd.f32 %v3510_v14, %v3353_v37  ;;  %v3533_v16 = vadd.f32 %v3529_v18, %v3372_v35  ;;  %v12680_v18 = vld [vmem:[#allocation469_spill] sm:$0xff]  ;;  %v12681_v17 = vld [vmem:[#allocation471_spill] sm:$0xff] }
 0x637   : > { %v3534_v33 = vadd.f32 %v3530_v48, %v3373_v43  ;;  %v3571_v7 = vsel %vm3569_vm4, %v12673_v59, %v12677_v3  ;;  %v3590_v44 = vsel %vm3569_vm4, %v12679_v6, %v12678_v39  ;;  %5194 = vrot.lane.b32.xlu1 %v5188_v26, %s6354_s6  ;;  %5177 = vrot.lane.b32.xlu0 %v5169_v13, %s6354_s6  ;;  %v5207_v43 = vstv %s10486_s0  ;;  %v12682_v59 = vld [vmem:[#allocation472_spill] sm:$0xff]  ;;  %v12683_v26 = vld [vmem:[#allocation474_spill] sm:$0xff] }
 0x638   : > { %v5190_v10 = vmul.f32 %v10253_v41, %v5187_v31  ;;  %v5189_v52 = vmul.f32 %v10284_v54, %v5187_v31  ;;  %v3553_v1 = vadd.f32 %v3549_v36, %v3392_v55  ;;  %v3554_v37 = vadd.f32 %v3550_v51, %v3393_v25  ;;  %v12688_v36 = vld [vmem:[#allocation475_spill] sm:$0xff]  ;;  %v12697_v50 = vld [vmem:[#allocation486_spill] sm:$0xff]  ;;  %v12700_v0 = vld [vmem:[#allocation488_spill] sm:$0xff] }
 0x639   : > { %v3574_v35 = vadd.f32 %v3570_v56, %v3413_v27  ;;  %v3575_v14 = vadd.f32 %v3571_v7, %v3414_v53  ;;  %v3591_v48 = vsel %vm3569_vm4, %v12678_v39, %v12680_v18  ;;  %v3610_v3 = vsel %vm3569_vm4, %v12682_v59, %v12681_v17  ;;  %v10555_v6 = vpop.permute.xlu1 %4813  ;;  %v10557_v55 = vpop.permute.xlu0 %4811  ;;  %v12686_v27 = vld [vmem:[#allocation476_spill] sm:$0xff]  ;;  %v12687_v53 = vld [vmem:[#allocation473_spill] sm:$0xff]  ;;  %v12690_v7 = vld [vmem:[#allocation478_spill] sm:$0xff] }
 0x63a   : > { %v3611_v13 = vsel %vm3569_vm4, %v12681_v17, %v12683_v26  ;;  %12684 = vst [vmem:[#allocation103_spill] sm:$0xff] %v10555_v6  ;;  %12685 = vst [vmem:[#allocation105_spill] sm:$0xff] %v10557_v55  ;;  %v3594_v25 = vadd.f32 %v3590_v44, %v3433_v34  ;;  %v3630_v31 = vsel %vm3569_vm4, %v12687_v53, %v12686_v27  ;;  %v12689_v56 = vld [vmem:[#allocation477_spill] sm:$0xff]  ;;  %v12691_v18 = vld [vmem:[#allocation480_spill] sm:$0xff]  ;;  %v5227_v53 = vstv %s10520_s7 }
 0x63b   : > { %v3631_v51 = vsel %vm3569_vm4, %v12686_v27, %v12688_v36  ;;  %v3650_v39 = vsel %vm3569_vm4, %v12690_v7, %v12689_v56  ;;  %v3651_v17 = vsel %vm3569_vm4, %v12689_v56, %v12691_v18  ;;  %5198 = vrot.lane.b32.xlu1 %v5190_v10, %s6354_s6  ;;  %5196 = vrot.lane.b32.xlu0 %v5189_v52, %s6354_s6  ;;  %v12692_v36 = vld [vmem:[#allocation482_spill] sm:$0xff]  ;;  %v12693_v7 = vld [vmem:[#allocation479_spill] sm:$0xff]  ;;  %v12694_v56 = vld [vmem:[#allocation481_spill] sm:$0xff] }
 0x63c   : > { %v5209_v34 = vmul.f32 %v10284_v54, %v5207_v43  ;;  %v5208_v44 = vmul.f32 %v10314_v32, %v5207_v43  ;;  %v3595_v59 = vadd.f32 %v3591_v48, %v3434_v28  ;;  %v3614_v26 = vadd.f32 %v3610_v3, %v3453_v57  ;;  %v12695_v18 = vld [vmem:[#allocation483_spill] sm:$0xff]  ;;  %v12696_v52 = vld [vmem:[#allocation484_spill] sm:$0xff] }
 0x63d   : > { %v3615_v27 = vadd.f32 %v3611_v13, %v3454_v47  ;;  %v3670_v55 = vsel %vm3569_vm4, %v12693_v7, %v12692_v36  ;;  %v3671_v10 = vsel %vm3569_vm4, %v12692_v36, %v12694_v56  ;;  %v3690_v6 = vsel %vm3569_vm4, %v12696_v52, %v12695_v18  ;;  %v10590_v57 = vpop.permute.xlu1 %4831  ;;  %v10592_v47 = vpop.permute.xlu0 %4815 }
 0x63e   : > { %v3691_v28 = vsel %vm3569_vm4, %v12695_v18, %v12697_v50  ;;  %12698 = vst [vmem:[#allocation106_spill] sm:$0xff] %v10590_v57  ;;  %12699 = vst [vmem:[#allocation108_spill] sm:$0xff] %v10592_v47  ;;  %v3634_v48 = vadd.f32 %v3630_v31, %v3473_v63  ;;  %v3635_v3 = vadd.f32 %v3631_v51, %v3474_v38  ;;  %v12702_v63 = vld [vmem:[#allocation487_spill] sm:$0xff]  ;;  %v12705_v31 = vld [vmem:[#allocation492_spill] sm:$0xff] }
 0x63f   : > { %v3654_v13 = vadd.f32 %v3650_v39, %v3493_v23  ;;  %v3655_v7 = vadd.f32 %v3651_v17, %v3494_v12  ;;  %v3710_v36 = vsel %vm3569_vm4, %v12701_v19, %v12700_v0  ;;  %5216 = vrot.lane.b32.xlu1 %v5209_v34, %s6354_s6  ;;  %5214 = vrot.lane.b32.xlu0 %v5208_v44, %s6354_s6  ;;  %v12703_v23 = vld [vmem:[#allocation489_spill] sm:$0xff]  ;;  %v12704_v19 = vld [vmem:[#allocation490_spill] sm:$0xff]  ;;  %v12711_v17 = vld [vmem:[#allocation495_spill] sm:$0xff] }
 0x640   : > { %v5228_v56 = vmul.f32 %v10314_v32, %v5227_v53  ;;  %v5210_v50 = vmul.f32 %v10253_v41, %v5207_v43  ;;  %v3674_v18 = vadd.f32 %v3670_v55, %v3513_v61  ;;  %v3675_v52 = vadd.f32 %v3671_v10, %v3514_v40  ;;  %v12708_v43 = vld [vmem:[#allocation491_spill] sm:$0xff]  ;;  %v12709_v55 = vld [vmem:[#allocation493_spill] sm:$0xff]  ;;  %v12712_v34 = vld [vmem:[#allocation496_spill] sm:$0xff] }
 0x641   : > { %v3694_v57 = vadd.f32 %v3690_v6, %v3533_v16  ;;  %v3695_v47 = vadd.f32 %v3691_v28, %v3534_v33  ;;  %v3711_v38 = vsel %vm3569_vm4, %v12700_v0, %v12702_v63  ;;  %v3731_v12 = vsel %vm3730_vm5, %v12704_v19, %v12703_v23  ;;  %v4836_v61 = vpop.permute.xlu1 %4835  ;;  %v10612_v40 = vpop.permute.xlu0 %4833  ;;  %v12707_v33 = vld [vmem:[#allocation494_spill] sm:$0xff] }
 0x642   : > { %v3732_v51 = vsel %vm3730_vm5, %v12703_v23, %v12705_v31  ;;  %12706 = vst [vmem:[#allocation110_spill] sm:$0xff] %v10612_v40  ;;  %v3714_v16 = vadd.f32 %v3710_v36, %v3553_v1  ;;  %v3751_v6 = vsel %vm3730_vm5, %v12708_v43, %v12707_v33  ;;  %v3752_v0 = vsel %vm3730_vm5, %v12707_v33, %v12709_v55  ;;  %v12714_v43 = vld [vmem:[#allocation500_spill] sm:$0xff]  ;;  %v12715_v55 = vld [vmem:[#allocation497_spill] sm:$0xff] }
 0x643   : > { %v10622_v39 = vsel %vm4696_vm6, %v10612_v40, %v4836_v61  ;;  %v3771_v44 = vsel %vm3730_vm5, %v12712_v34, %v12711_v17  ;;  %5234 = vrot.lane.b32.xlu1 %v5228_v56, %s6354_s6  ;;  %5218 = vrot.lane.b32.xlu0 %v5210_v50, %s6354_s6  ;;  %v5230_v1 = vmul.f32 %v10253_v41, %v5227_v53  ;;  %v5247_v23 = vstv %s10576_s23  ;;  %v12713_v61 = vld [vmem:[#allocation498_spill] sm:$0xff]  ;;  %v12716_v40 = vld [vmem:[#allocation499_spill] sm:$0xff]  ;;  %s11318_s23 = scalar_lea.hbm %s11384_s3, %s5983_s15 }
 0x644   : > { %12710 = vst [vmem:[#allocation107_spill] sm:$0xff] %v10622_v39  ;;  %v5229_v10 = vmul.f32 %v10284_v54, %v5227_v53  ;;  %v3715_v28 = vadd.f32 %v3711_v38, %v3554_v37  ;;  %v3735_v36 = vadd.f32 %v3731_v12, %v3574_v35  ;;  %v3736_v63 = vadd.f32 %v3732_v51, %v3575_v14  ;;  %v12717_v35 = vld [vmem:[#allocation501_spill] sm:$0xff]  ;;  %v12718_v14 = vld [vmem:[#allocation502_spill] sm:$0xff]  ;;  %v12719_v53 = vld [vmem:[#allocation504_spill] sm:$0xff] }
 0x645   : > { %v3755_v19 = vadd.f32 %v3751_v6, %v3594_v25  ;;  %v3756_v31 = vadd.f32 %v3752_v0, %v3595_v59  ;;  %v3772_v33 = vsel %vm3730_vm5, %v12711_v17, %v12713_v61  ;;  %v3791_v56 = vsel %vm3730_vm5, %v12715_v55, %v12714_v43  ;;  %v4854_v50 = vpop.permute.xlu1 %4853  ;;  %v4852_v34 = vpop.permute.xlu0 %4851  ;;  %v12720_v6 = vld [vmem:[#allocation506_spill] sm:$0xff]  ;;  %v12721_v0 = vld [vmem:[#allocation503_spill] sm:$0xff] }
 0x646   : > { %v3775_v39 = vadd.f32 %v3771_v44, %v3614_v26  ;;  %v3792_v37 = vsel %vm3730_vm5, %v12714_v43, %v12716_v40  ;;  %v3811_v25 = vsel %vm3730_vm5, %v12718_v14, %v12717_v35  ;;  %v10645_v59 = vsel %vm4857_vm7, %v4852_v34, %v4854_v50  ;;  %v12722_v43 = vld [vmem:[#allocation505_spill] sm:$0xff]  ;;  %v12723_v55 = vld [vmem:[#allocation507_spill] sm:$0xff] }
 0x647   : > { %v3812_v38 = vsel %vm3730_vm5, %v12717_v35, %v12719_v53  ;;  %5238 = vrot.lane.b32.xlu1 %v5230_v1, %s6354_s6  ;;  %5236 = vrot.lane.b32.xlu0 %v5229_v10, %s6354_s6  ;;  %v5249_v26 = vmul.f32 %v10284_v54, %v5247_v23  ;;  %v5248_v12 = vmul.f32 %v10314_v32, %v5247_v23  ;;  %v5267_v44 = vstv %s10601_s25  ;;  %v12724_v10 = vld [vmem:[#allocation508_spill] sm:$0xff]  ;;  %v12725_v35 = vld [vmem:[#allocation510_spill] sm:$0xff] }
 0x648   : > { %v3776_v51 = vadd.f32 %v3772_v33, %v3615_v27  ;;  %v3795_v40 = vadd.f32 %v3791_v56, %v3634_v48  ;;  %v3831_v17 = vsel %vm3730_vm5, %v12721_v0, %v12720_v6  ;;  %v3796_v61 = vadd.f32 %v3792_v37, %v3635_v3  ;;  %v12726_v53 = vld [vmem:[#allocation512_spill] sm:$0xff]  ;;  %v12727_v0 = vld [vmem:[#allocation509_spill] sm:$0xff] }
 0x649   : > { %v3832_v1 = vsel %vm3730_vm5, %v12720_v6, %v12722_v43  ;;  %v3851_v34 = vsel %vm3730_vm5, %v12724_v10, %v12723_v55  ;;  %v3852_v27 = vsel %vm3730_vm5, %v12723_v55, %v12725_v35  ;;  %v4873_v48 = vpop.permute.xlu1 %4872  ;;  %v4856_v33 = vpop.permute.xlu0 %4855  ;;  %v3815_v56 = vadd.f32 %v3811_v25, %v3654_v13 }
 0x64a   : > { %v3816_v14 = vadd.f32 %v3812_v38, %v3655_v7  ;;  %v3871_v3 = vsel %vm3730_vm5, %v12727_v0, %v12726_v53  ;;  %v10673_v37 = vsel %vm4857_vm7, %v4854_v50, %v4856_v33  ;;  %v3835_v6 = vadd.f32 %v3831_v17, %v3674_v18  ;;  %v12730_v7 = vld [vmem:[#allocation511_spill] sm:$0xff]  ;;  %v12731_v18 = vld [vmem:[#allocation513_spill] sm:$0xff]  ;;  %v12732_v38 = vld [vmem:[#allocation514_spill] sm:$0xff] }
 0x64b   : > { %12728 = vst [vmem:[#allocation109_spill] sm:$0xff] %v10673_v37  ;;  %5256 = vrot.lane.b32.xlu1 %v5249_v26, %s6354_s6  ;;  %5254 = vrot.lane.b32.xlu0 %v5248_v12, %s6354_s6  ;;  %v5268_v43 = vmul.f32 %v10314_v32, %v5267_v44  ;;  %v5250_v55 = vmul.f32 %v10253_v41, %v5247_v23  ;;  %v12733_v12 = vld [vmem:[#allocation516_spill] sm:$0xff]  ;;  %v12734_v23 = vld [vmem:[#allocation518_spill] sm:$0xff] }
 0x64c   : > { %v3836_v10 = vadd.f32 %v3832_v1, %v3675_v52  ;;  %v3855_v35 = vadd.f32 %v3851_v34, %v3694_v57  ;;  %v10679_v13 = vadd.f32 %v3852_v27, %v3695_v47  ;;  %v3872_v25 = vsel %vm3730_vm5, %v12726_v53, %v12730_v7  ;;  %v12735_v52 = vld [vmem:[#allocation515_spill] sm:$0xff]  ;;  %v12736_v34 = vld [vmem:[#allocation517_spill] sm:$0xff]  ;;  %v12738_v33 = vld [vmem:[#allocation520_spill] sm:$0xff] }
 0x64d   : > { %v3875_v50 = vadd.f32 %v3871_v3, %v3714_v16  ;;  %v3892_v26 = vsel %vm3891_vm8, %v12732_v38, %v12731_v18  ;;  %v3893_v17 = vsel %vm3891_vm8, %v12731_v18, %v12733_v12  ;;  %v3912_v57 = vsel %vm3891_vm8, %v12735_v52, %v12734_v23  ;;  %v4877_v47 = vpop.permute.xlu1 %4876  ;;  %v4875_v1 = vpop.permute.xlu0 %4874  ;;  %v12737_v16 = vld [vmem:[#allocation519_spill] sm:$0xff] }
 0x64e   : > { %12729 = vst [vmem:[#allocation111_spill] sm:$0xff] %v10679_v13  ;;  %v3913_v27 = vsel %vm3891_vm8, %v12734_v23, %v12736_v34  ;;  %v3932_v53 = vsel %vm3891_vm8, %v12738_v33, %v12737_v16  ;;  %v10702_v0 = vsel %vm4857_vm7, %v4873_v48, %v4875_v1  ;;  %v10705_v3 = vsel %vm4857_vm7, %v4875_v1, %v4877_v47  ;;  %v12741_v48 = vld [vmem:[#allocation522_spill] sm:$0xff]  ;;  %v12742_v1 = vld [vmem:[#allocation524_spill] sm:$0xff] }
 0x64f   : > { %12739 = vst [vmem:[#allocation112_spill] sm:$0xff] %v10702_v0  ;;  %12740 = vst [vmem:[#allocation114_spill] sm:$0xff] %v10705_v3  ;;  %v3876_v7 = vadd.f32 %v3872_v25, %v3715_v28  ;;  %5274 = vrot.lane.b32.xlu1 %v5268_v43, %s6354_s6  ;;  %5258 = vrot.lane.b32.xlu0 %v5250_v55, %s6354_s6  ;;  %v5270_v18 = vmul.f32 %v10253_v41, %v5267_v44  ;;  %v5287_v34 = vstv %s10658_s9  ;;  %v12743_v28 = vld [vmem:[#allocation521_spill] sm:$0xff]  ;;  %v12744_v3 = vld [vmem:[#allocation523_spill] sm:$0xff]  ;;  %s6356_s9 = smov [#allocation10]  }
 0x650   : > { %v5269_v38 = vmul.f32 %v10284_v54, %v5267_v44  ;;  %v3896_v12 = vadd.f32 %v3892_v26, %v3735_v36  ;;  %v3897_v23 = vadd.f32 %v3893_v17, %v3736_v63  ;;  %v3916_v52 = vadd.f32 %v3912_v57, %v3755_v19  ;;  %v12745_v63 = vld [vmem:[#allocation525_spill] sm:$0xff]  ;;  %v12746_v19 = vld [vmem:[#allocation526_spill] sm:$0xff]  ;;  %v12750_v57 = vld [vmem:[#allocation527_spill] sm:$0xff] }
 0x651   : > { %v3917_v33 = vadd.f32 %v3913_v27, %v3756_v31  ;;  %v3936_v13 = vadd.f32 %v3932_v53, %v3775_v39  ;;  %v3933_v47 = vsel %vm3891_vm8, %v12737_v16, %v12741_v48  ;;  %v3952_v43 = vsel %vm3891_vm8, %v12743_v28, %v12742_v1  ;;  %v4895_v55 = vpop.permute.xlu1 %4894  ;;  %v4893_v25 = vpop.permute.xlu0 %4892  ;;  %v12747_v39 = vld [vmem:[#allocation528_spill] sm:$0xff]  ;;  %v12749_v17 = vld [vmem:[#allocation530_spill] sm:$0xff] }
 0x652   : > { %v3953_v36 = vsel %vm3891_vm8, %v12742_v1, %v12744_v3  ;;  %v3972_v31 = vsel %vm3891_vm8, %v12746_v19, %v12745_v63  ;;  %v3973_v44 = vsel %vm3891_vm8, %v12745_v63, %v12747_v39  ;;  %v10728_v26 = vsel %vm4857_vm7, %v4893_v25, %v4895_v55  ;;  %v12751_v1 = vld [vmem:[#allocation529_spill] sm:$0xff]  ;;  %v12752_v39 = vld [vmem:[#allocation531_spill] sm:$0xff] }
 0x653   : > { %12748 = vst [vmem:[#allocation116_spill] sm:$0xff] %v10728_v26  ;;  %v3992_v27 = vsel %vm3891_vm8, %v12750_v57, %v12749_v17  ;;  %5278 = vrot.lane.b32.xlu1 %v5270_v18, %s6354_s6  ;;  %5276 = vrot.lane.b32.xlu0 %v5269_v38, %s6354_s6  ;;  %v5289_v16 = vmul.f32 %v10284_v54, %v5287_v34  ;;  %v5307_v25 = vstv %s10684_s21  ;;  %v12753_v57 = vld [vmem:[#allocation532_spill] sm:$0xff]  ;;  %v12755_v26 = vld [vmem:[#allocation533_spill] sm:$0xff]  ;;  %s6207_s21 = sshll.u32 %s6356_s9, 4  ;;  %s6208_s21 = int_to_ptr.vmem [resolvable:$false] %s6207_s21 }
 0x654   : > { %v5288_v53 = vmul.f32 %v10314_v32, %v5287_v34  ;;  %v3937_v3 = vadd.f32 %v3933_v47, %v3776_v51  ;;  %v3956_v48 = vadd.f32 %v3952_v43, %v3795_v40  ;;  %v3993_v28 = vsel %vm3891_vm8, %v12749_v17, %v12751_v1  ;;  %v12754_v38 = vld [vmem:[#allocation536_spill] sm:$0xff]  ;;  %v12756_v43 = vld [vmem:[#allocation535_spill] sm:$0xff] }
 0x655   : > { %v3957_v63 = vadd.f32 %v3953_v36, %v3796_v61  ;;  %v3976_v19 = vadd.f32 %v3972_v31, %v3815_v56  ;;  %v4012_v18 = vsel %vm3891_vm8, %v12753_v57, %v12752_v39  ;;  %v4032_v0 = vsel %vm3891_vm8, %v12755_v26, %v12754_v38  ;;  %v4913_v37 = vpop.permute.xlu1 %4912  ;;  %v4897_v51 = vpop.permute.xlu0 %4896  ;;  %v12757_v26 = vld [vmem:[#allocation534_spill] sm:$0xff]  ;;  %v12763_v57 = vld [vmem:[#allocation541_spill] sm:$0xff] }
 0x656   : > { %v3977_v40 = vadd.f32 %v3973_v44, %v3816_v14  ;;  %v3996_v47 = vadd.f32 %v3992_v27, %v3835_v6  ;;  %v4033_v17 = vsel %vm3891_vm8, %v12754_v38, %v12756_v43  ;;  %v10753_v1 = vsel %vm4857_vm7, %v4895_v55, %v4897_v51  ;;  %v12758_v44 = vld [vmem:[#allocation537_spill] sm:$0xff]  ;;  %v12759_v27 = vld [vmem:[#allocation538_spill] sm:$0xff]  ;;  %v12765_v38 = vld [vmem:[#allocation544_spill] sm:$0xff] }
 0x657   : > { %v3997_v61 = vadd.f32 %v3993_v28, %v3836_v10  ;;  %5296 = vrot.lane.b32.xlu1 %v5289_v16, %s6354_s6  ;;  %5294 = vrot.lane.b32.xlu0 %v5288_v53, %s6354_s6  ;;  %v5308_v56 = vmul.f32 %v10314_v32, %v5307_v25  ;;  %v5290_v36 = vmul.f32 %v10253_v41, %v5287_v34  ;;  %v12760_v16 = vld [vmem:[#allocation540_spill] sm:$0xff]  ;;  %v12761_v28 = vld [vmem:[#allocation542_spill] sm:$0xff]  ;;  %v12762_v34 = vld [vmem:[#allocation539_spill] sm:$0xff] }
 0x658   : > { %v4016_v31 = vadd.f32 %v4012_v18, %v3855_v35  ;;  %v10762_v14 = vsel %vm3891_vm8, %v12752_v39, %v12757_v26  ;;  %v4036_v6 = vadd.f32 %v4032_v0, %v3875_v50  ;;  %v4053_v55 = vsel %vm4052_vm9, %v12759_v27, %v12758_v44  ;;  %v12764_v18 = vld [vmem:[#allocation543_spill] sm:$0xff] }
 0x659   : > { %v4037_v10 = vadd.f32 %v4033_v17, %v3876_v7  ;;  %v4054_v53 = vsel %vm4052_vm9, %v12758_v44, %v12760_v16  ;;  %v4073_v35 = vsel %vm4052_vm9, %v12762_v34, %v12761_v28  ;;  %v4074_v39 = vsel %vm4052_vm9, %v12761_v28, %v12763_v57  ;;  %v4917_v50 = vpop.permute.xlu1 %4916  ;;  %v4915_v0 = vpop.permute.xlu0 %4914  ;;  %v12766_v7 = vld [vmem:[#allocation546_spill] sm:$0xff] }
 0x65a   : > { %v4093_v51 = vsel %vm4052_vm9, %v12765_v38, %v12764_v18  ;;  %v4094_v43 = vsel %vm4052_vm9, %v12764_v18, %v12766_v7  ;;  %v10785_v17 = vsel %vm4857_vm7, %v4913_v37, %v4915_v0  ;;  %v10788_v26 = vsel %vm4857_vm7, %v4915_v0, %v4917_v50  ;;  %v12767_v7 = vld [vmem:[#allocation545_spill] sm:$0xff] }
 0x65b   : > { %v4057_v44 = vadd.f32 %v4053_v55, %v3896_v12  ;;  %5314 = vrot.lane.b32.xlu1 %v5308_v56, %s6354_s6  ;;  %5298 = vrot.lane.b32.xlu0 %v5290_v36, %s6354_s6  ;;  %v5310_v27 = vmul.f32 %v10253_v41, %v5307_v25  ;;  %v5309_v16 = vmul.f32 %v10284_v54, %v5307_v25  ;;  %v5327_v18 = vstv %s10741_s26  ;;  %v12768_v0 = vld [vmem:[#allocation21_spill] sm:$0xff]  ;;  %s6209_s26 = scalar_lea.vmem %s6208_s21, 4096 }
 0x65c   : > { %v4058_v28 = vadd.f32 %v4054_v53, %v3897_v23  ;;  %v4077_v34 = vadd.f32 %v4073_v35, %v3916_v52  ;;  %v4078_v57 = vadd.f32 %v4074_v39, %v3917_v33  ;;  %v4097_v38 = vadd.f32 %v4093_v51, %v3936_v13 }
 0x65d   : > { %v4098_v37 = vadd.f32 %v4094_v43, %v3937_v3  ;;  %v4113_v50 = vsel %vm4052_vm9, %v12767_v7, %v9060_v22  ;;  %v4114_v12 = vsel %vm4052_vm9, %v9060_v22, %v9058_v8  ;;  %v4935_v56 = vpop.permute.xlu1 %4934  ;;  %v4933_v36 = vpop.permute.xlu0 %4932  ;;  %v4133_v23 = vsel %vm4052_vm9, %v9087_v62, %v9085_v11  ;;  %v12769_v43 = vld [vmem:[#allocation24_spill] sm:$0xff] }
 0x65e   : > { %v4134_v13 = vsel %vm4052_vm9, %v9085_v11, %v9119_v20  ;;  %v4153_v52 = vsel %vm4052_vm9, %v9117_v15, %v9144_v2  ;;  %v10811_v33 = vsel %vm4857_vm7, %v4933_v36, %v4935_v56  ;;  %v4154_v8 = vsel %vm4052_vm9, %v9144_v2, %v9142_v29 }
 0x65f   : > { %5318 = vrot.lane.b32.xlu1 %v5310_v27, %s6354_s6  ;;  %5316 = vrot.lane.b32.xlu0 %v5309_v16, %s6354_s6  ;;  %v5329_v22 = vmul.f32 %v10284_v54, %v5327_v18  ;;  %v5328_v62 = vmul.f32 %v10314_v32, %v5327_v18  ;;  %v10820_v11 = vadd.f32 %v4113_v50, %v3956_v48  ;;  %v5348_v3 = vstv %s10767_s8 }
 0x660   : > { %v10822_v20 = vadd.f32 %v4114_v12, %v3957_v63  ;;  %v4173_v15 = vsel %vm4052_vm9, %v9174_v42, %v9172_v9  ;;  %v10830_v29 = vadd.f32 %v4133_v23, %v3976_v19  ;;  %v4193_v2 = vsel %vm4052_vm9, %v9201_v30, %v9231_v24 }
 0x661   : > { %v4194_v48 = vsel %vm4052_vm9, %v9231_v24, %v9229_v21  ;;  %v4214_v25 = vsel %vm4213_vm10, %v9258_v46, %v9256_v5  ;;  %v4953_v63 = vpop.permute.xlu1 %4952  ;;  %v4937_v55 = vpop.permute.xlu0 %4936  ;;  %v10841_v42 = vadd.f32 %v4134_v13, %v3977_v40  ;;  %v10843_v53 = vadd.f32 %v4153_v52, %v3996_v47  ;;  %v12774_v13 = vld [vmem:[#allocation22_spill] sm:$0xff] }
 0x662   : > { %v10845_v19 = vadd.f32 %v4154_v8, %v3997_v61  ;;  %v10848_v35 = vsel %vm4857_vm7, %v4935_v56, %v4937_v55  ;;  %v10850_v30 = vadd.f32 %v4173_v15, %v4016_v31  ;;  %v5349_v21 = vmul.f32 %v10314_v32, %v5348_v3  ;;  %v12780_v55 = vld [vmem:[#allocation42_spill] sm:$0xff] }
 0x663   : > { %5336 = vrot.lane.b32.xlu1 %v5329_v22, %s6355_s30  ;;  %5334 = vrot.lane.b32.xlu0 %v5328_v62, %s6355_s30  ;;  %v5330_v24 = vmul.f32 %v10253_v41, %v5327_v18  ;;  %v4197_v46 = vadd.f32 %v4193_v2, %v4036_v6  ;;  %v4198_v40 = vadd.f32 %v4194_v48, %v4037_v10  ;;  %v5368_v36 = vstv %s10828_s10  ;;  %v12775_v2 = vld [vmem:[#allocation37_spill] sm:$0xff]  ;;  %v12778_v48 = vld [vmem:[#allocation58_spill] sm:$0xff] }
 0x664   : > { %v4218_v47 = vadd.f32 %v4214_v25, %v4057_v44  ;;  %v4215_v61 = vsel %vm4213_vm10, %v9256_v5, %v9290_v45  ;;  %v4234_v31 = vsel %vm4213_vm10, %v9288_v49, %v9315_v4  ;;  %v4235_v39 = vsel %vm4213_vm10, %v9315_v4, %v9313_v60  ;;  %v12770_v5 = vld [vmem:[#allocation35_spill] sm:$0xff]  ;;  %v12771_v45 = vld [vmem:[#allocation34_spill] sm:$0xff] }
 0x665   : > { %v4254_v51 = vsel %vm4213_vm10, %v12768_v0, %v9343_v58  ;;  %v4255_v6 = vsel %vm4213_vm10, %v9343_v58, %v12769_v43  ;;  %v4957_v10 = vpop.permute.xlu1 %4956  ;;  %v4955_v44 = vpop.permute.xlu0 %4954  ;;  %v4354_v27 = vsel %vm4213_vm10, %v12771_v45, %v12770_v5  ;;  %v12772_v49 = vld [vmem:[#allocation38_spill] sm:$0xff]  ;;  %v4219_v18 = vadd.f32 %v4215_v61, %v4058_v28  ;;  %v12773_v28 = vld [vmem:[#allocation23_spill] sm:$0xff] }
 0x666   : > { %v4355_v16 = vsel %vm4213_vm10, %v12770_v5, %v12772_v49  ;;  %v10880_v60 = vsel %vm4857_vm7, %v4953_v63, %v4955_v44  ;;  %v10883_v4 = vsel %vm4857_vm7, %v4955_v44, %v4957_v10  ;;  %v5351_v58 = vmul.f32 %v10253_v41, %v5348_v3  ;;  %v12779_v25 = vld [vmem:[#allocation62_spill] sm:$0xff]  ;;  %v12782_v0 = vld [vmem:[#allocation83_spill] sm:$0xff] }
 0x667   : > { %5355 = vrot.lane.b32.xlu1 %v5349_v21, %s6355_s30  ;;  %5338 = vrot.lane.b32.xlu0 %v5330_v24, %s6355_s30  ;;  %v5350_v7 = vmul.f32 %v10284_v54, %v5348_v3  ;;  %v10889_v50 = vadd.f32 %v4234_v31, %v4077_v34  ;;  %v10891_v12 = vadd.f32 %v4235_v39, %v4078_v57  ;;  %v12776_v3 = vld [vmem:[#allocation39_spill] sm:$0xff]  ;;  %v12781_v61 = vld [vmem:[#allocation26_spill] sm:$0xff] }
 0x668   : > { %v10893_v56 = vadd.f32 %v4254_v51, %v4097_v38  ;;  %v10896_v23 = vadd.f32 %v4255_v6, %v4098_v37  ;;  %v4274_v52 = vsel %vm4213_vm10, %v12774_v13, %v12773_v28  ;;  %v4358_v8 = vadd.f32 %v4354_v27, %v4197_v46  ;;  %v12777_v57 = vld [vmem:[#allocation59_spill] sm:$0xff]  ;;  %v12783_v51 = vld [vmem:[#allocation82_spill] sm:$0xff]  ;;  %v12785_v27 = vld [vmem:[#allocation61_spill] sm:$0xff] }
 0x669   : > { %v4359_v22 = vadd.f32 %v4355_v16, %v4198_v40  ;;  %v4975_v62 = vpop.permute.xlu1 %4974  ;;  %v4973_v15 = vpop.permute.xlu0 %4972  ;;  %v4375_v34 = vsel %vm4374_vm11, %v12776_v3, %v12775_v2  ;;  %v4515_v38 = vsel %vm4374_vm11, %v12778_v48, %v12777_v57  ;;  %v4516_v37 = vsel %vm4374_vm11, %v12777_v57, %v12779_v25  ;;  %v12784_v6 = vld [vmem:[#allocation86_spill] sm:$0xff]  ;;  %v12786_v49 = vld [vmem:[#allocation63_spill] sm:$0xff]  ;;  %v12791_v57 = vld [vmem:[#allocation44_spill] sm:$0xff] }
 0x66a   : > { %v10911_v63 = vsel %vm4857_vm7, %v4973_v15, %v4975_v62  ;;  %v4376_v21 = vsel %vm4374_vm11, %v12775_v2, %v12780_v55  ;;  %v5370_v24 = vmul.f32 %v10284_v54, %v5368_v36  ;;  %v5369_v46 = vmul.f32 %v10314_v32, %v5368_v36  ;;  %v12788_v13 = vld [vmem:[#allocation106_spill] sm:$0xff]  ;;  %v12793_v25 = vld [vmem:[#allocation87_spill] sm:$0xff] }
 0x66b   : > { %5359 = vrot.lane.b32.xlu1 %v5351_v58, %s6355_s30  ;;  %5357 = vrot.lane.b32.xlu0 %v5350_v7, %s6355_s30  ;;  %v5388_v40 = vstv %s10856_s29  ;;  %v4275_v31 = vsel %vm4213_vm10, %v12773_v28, %v12781_v61  ;;  %v10927_v39 = vadd.f32 %v4274_v52, %v10820_v11  ;;  %v4676_v43 = vsel %vm4535_vm12, %v12783_v51, %v12782_v0  ;;  %v12787_v11 = vld [vmem:[#allocation110_spill] sm:$0xff] }
 0x66c   : > { %v4677_v10 = vsel %vm4535_vm12, %v12782_v0, %v12784_v6  ;;  %v4379_v44 = vadd.f32 %v4375_v34, %v4218_v47  ;;  %v4519_v5 = vadd.f32 %v4515_v38, %v4358_v8  ;;  %v4520_v45 = vadd.f32 %v4516_v37, %v4359_v22  ;;  %v12790_v22 = vld [vmem:[#allocation40_spill] sm:$0xff]  ;;  %v12792_v38 = vld [vmem:[#allocation85_spill] sm:$0xff]  ;;  %v12794_v55 = vld [vmem:[#allocation66_spill] sm:$0xff] }
 0x66d   : > { %v4536_v16 = vsel %vm4535_vm12, %v12786_v49, %v12785_v27  ;;  %v4993_v58 = vpop.permute.xlu1 %4992  ;;  %v4977_v7 = vpop.permute.xlu0 %4976  ;;  %v4380_v28 = vadd.f32 %v4376_v21, %v4219_v18  ;;  %v4837_v52 = vsel %vm4696_vm6, %v12788_v13, %v12787_v11  ;;  %v5389_v2 = vmul.f32 %v10314_v32, %v5388_v40  ;;  %v12789_v18 = vld [vmem:[#allocation41_spill] sm:$0xff] }
 0x66e   : > { %v10942_v15 = vsel %vm4857_vm7, %v4975_v62, %v4977_v7  ;;  %v4680_v3 = vadd.f32 %v4676_v43, %v4519_v5  ;;  %v4681_v47 = vadd.f32 %v4677_v10, %v4520_v45  ;;  %v5371_v8 = vmul.f32 %v10253_v41, %v5368_v36 }
 0x66f   : > { %5377 = vrot.lane.b32.xlu1 %v5370_v24, %s6355_s30  ;;  %5375 = vrot.lane.b32.xlu0 %v5369_v46, %s6355_s30  ;;  %v4395_v34 = vsel %vm4374_vm11, %v12790_v22, %v12789_v18  ;;  %v4396_v62 = vsel %vm4374_vm11, %v12789_v18, %v12791_v57  ;;  %v4540_v48 = vadd.f32 %v4536_v16, %v4379_v44  ;;  %v12795_v24 = vld [vmem:[#allocation107_spill] sm:$0xff]  ;;  %v12796_v16 = vld [vmem:[#allocation25_spill] sm:$0xff]  ;;  %v12802_v22 = vld [vmem:[#allocation64_spill] sm:$0xff] }
 0x670   : > { %v4697_v37 = vsel %vm4696_vm6, %v12793_v25, %v12792_v38  ;;  %v4537_v36 = vsel %vm4535_vm12, %v12785_v27, %v12794_v55  ;;  %v4841_v21 = vadd.f32 %v4837_v52, %v4680_v3  ;;  %v4842_v46 = vadd.f32 %v12795_v24, %v4681_v47  ;;  %v12799_v52 = vld [vmem:[#allocation43_spill] sm:$0xff]  ;;  %v12801_v18 = vld [vmem:[#allocation65_spill] sm:$0xff]  ;;  %v12804_v25 = vld [vmem:[#allocation30_spill] sm:$0xff] }
 0x671   : > { %v4997_v61 = vpop.permute.xlu1 %4996  ;;  %v4995_v0 = vpop.permute.xlu0 %4994  ;;  %v5391_v6 = vmul.f32 %v10253_v41, %v5388_v40  ;;  %v5390_v10 = vmul.f32 %v10284_v54, %v5388_v40  ;;  %v4701_v44 = vadd.f32 %v4697_v37, %v4540_v48  ;;  %v5408_v27 = vstv %s10921_s11  ;;  %v12798_v40 = vld [vmem:[#allocation90_spill] sm:$0xff]  ;;  %v12807_v24 = vld [vmem:[#allocation92_spill] sm:$0xff] }
 0x672   : > { %v4998_v51 = vsel %vm4857_vm7, %v4993_v58, %v4995_v0  ;;  %v4999_v43 = vsel %vm4857_vm7, %v4995_v0, %v4997_v61  ;;  %v10975_v49 = vadd.f32 %v4275_v31, %v10822_v20  ;;  %v12797_v58 = vld [vmem:[#allocation27_spill] sm:$0xff]  ;;  %v4399_v41 = vadd.f32 %v4395_v34, %v10889_v50  ;;  %v12803_v34 = vld [vmem:[#allocation68_spill] sm:$0xff] }
 0x673   : > { %v10967_v5 = vadd.f32 %v4998_v51, %v4841_v21  ;;  %v10969_v45 = vadd.f32 %v4999_v43, %v4842_v46  ;;  %5395 = vrot.lane.b32.xlu1 %v5389_v2, %s6355_s30  ;;  %5379 = vrot.lane.b32.xlu0 %v5371_v8, %s6355_s30  ;;  %v4294_v7 = vsel %vm4213_vm10, %v12797_v58, %v12796_v16  ;;  %v12800_v2 = vld [vmem:[#allocation45_spill] sm:$0xff]  ;;  %v12808_v61 = vld [vmem:[#allocation48_spill] sm:$0xff]  ;;  %v12810_v58 = vld [vmem:[#allocation67_spill] sm:$0xff] }
 0x674   : > { %v4698_v11 = vsel %vm4696_vm6, %v12792_v38, %v12798_v40  ;;  %v4400_v13 = vadd.f32 %v4396_v62, %v10891_v12  ;;  %v4415_v3 = vsel %vm4374_vm11, %v12800_v2, %v12799_v52  ;;  %v4541_v47 = vadd.f32 %v4537_v36, %v4380_v28  ;;  %v12806_v36 = vld [vmem:[#allocation88_spill] sm:$0xff] }
 0x675   : > { %v4862_v20 = vadd.f32 %v10645_v59, %v4701_v44  ;;  %v5015_v31 = vpop.permute.xlu1 %5014  ;;  %v5013_v8 = vpop.permute.xlu0 %5012  ;;  %v4556_v50 = vsel %vm4535_vm12, %v12802_v22, %v12801_v18  ;;  %v4557_v57 = vsel %vm4535_vm12, %v12801_v18, %v12803_v34  ;;  %v5410_v12 = vmul.f32 %v10284_v54, %v5408_v27  ;;  %v12805_v54 = vld [vmem:[#allocation89_spill] sm:$0xff]  ;;  %v12814_v18 = vld [vmem:[#allocation50_spill] sm:$0xff]  ;;  %v12815_v22 = vld [vmem:[#allocation91_spill] sm:$0xff] }
 0x676   : > { %v5019_v48 = vsel %vm5018_vm13, %v5013_v8, %v5015_v31  ;;  %v4702_v62 = vadd.f32 %v4698_v11, %v4541_v47  ;;  %v5409_v59 = vmul.f32 %v10314_v32, %v5408_v27  ;;  %v5428_v28 = vstv %s10948_s28  ;;  %v12813_v8 = vld [vmem:[#allocation46_spill] sm:$0xff] }
 0x677   : > { %v10997_v38 = vadd.f32 %v5019_v48, %v4862_v20  ;;  %5399 = vrot.lane.b32.xlu1 %v5391_v6, %s6355_s30  ;;  %5397 = vrot.lane.b32.xlu0 %v5390_v10, %s6355_s30  ;;  %v4295_v37 = vsel %vm4213_vm10, %v12796_v16, %v12804_v25  ;;  %v4419_v55 = vadd.f32 %v4415_v3, %v10893_v56  ;;  %v12809_v6 = vld [vmem:[#allocation109_spill] sm:$0xff]  ;;  %v11025_v3 = vld [vmem:[%s6576_s27] sm:$0xff]  ;;  %v12817_v48 = vld [vmem:[#allocation72_spill] sm:$0xff] }
 0x678   : > { %v4717_v21 = vsel %vm4696_vm6, %v12806_v36, %v12805_v54  ;;  %v4718_v46 = vsel %vm4696_vm6, %v12805_v54, %v12807_v24  ;;  %v4416_v0 = vsel %vm4374_vm11, %v12799_v52, %v12808_v61  ;;  %v4560_v51 = vadd.f32 %v4556_v50, %v4399_v41  ;;  %v12811_v56 = vld [vmem:[#allocation69_spill] sm:$0xff] }
 0x679   : > { %v4561_v43 = vadd.f32 %v4557_v57, %v4400_v13  ;;  %v4863_v10 = vadd.f32 %v12809_v6, %v4702_v62  ;;  %v5034_v44 = vpop.permute.xlu1 %5033  ;;  %v5017_v16 = vpop.permute.xlu0 %5016  ;;  %v4576_v40 = vsel %vm4535_vm12, %v12811_v56, %v12810_v58  ;;  %v5429_v2 = vmul.f32 %v10314_v32, %v5428_v28  ;;  %v12816_v50 = vld [vmem:[#allocation93_spill] sm:$0xff]  ;;  %v12818_v62 = vld [vmem:[#allocation112_spill] sm:$0xff] }
 0x67a   : > { %v5020_v11 = vsel %vm5018_vm13, %v5015_v31, %v5017_v16  ;;  %v5411_v47 = vmul.f32 %v11025_v3, %v5408_v27  ;;  %v4721_v20 = vadd.f32 %v4717_v21, %v4560_v51  ;;  %v4420_v13 = vadd.f32 %v4416_v0, %v10896_v23  ;;  %v12812_v31 = vld [vmem:[#allocation47_spill] sm:$0xff] }
 0x67b   : > { %v4722_v52 = vadd.f32 %v4718_v46, %v4561_v43  ;;  %v11028_v41 = vadd.f32 %v5020_v11, %v4863_v10  ;;  %5417 = vrot.lane.b32.xlu1 %v5410_v12, %s6355_s30  ;;  %5415 = vrot.lane.b32.xlu0 %v5409_v59, %s6355_s30  ;;  %v4435_v32 = vsel %vm4374_vm11, %v12813_v8, %v12812_v31  ;;  %v12819_v59 = vld [vmem:[#allocation114_spill] sm:$0xff]  ;;  %v6131_v61 = vld [vmem:[%s6569_s12 + $0x8] sm:$0xff]  ;;  %v5448_v6 = vstv %s11003_s4 }
 0x67c   : > { %v4436_v27 = vsel %vm4374_vm11, %v12812_v31, %v12814_v18  ;;  %v4737_v34 = vsel %vm4696_vm6, %v12816_v50, %v12815_v22  ;;  %v4580_v57 = vadd.f32 %v4576_v40, %v4419_v55  ;;  %v4577_v12 = vsel %vm4535_vm12, %v12810_v58, %v12817_v48  ;;  %v12820_v58 = vld [vmem:[#allocation96_spill] sm:$0xff]  ;;  %v12821_v40 = vld [vmem:[#allocation49_spill] sm:$0xff]  ;;  %v12822_v11 = vld [vmem:[#allocation51_spill] sm:$0xff] }
 0x67d   : > { %v4882_v23 = vadd.f32 %v12818_v62, %v4721_v20  ;;  %v4883_v25 = vadd.f32 %v12819_v59, %v4722_v52  ;;  %v5038_v54 = vpop.permute.xlu1 %5037  ;;  %v5036_v36 = vpop.permute.xlu0 %5035  ;;  %v5431_v46 = vmul.f32 %v11025_v3, %v5428_v28  ;;  %v5430_v0 = vmul.f32 %v6131_v61, %v5428_v28  ;;  %v12823_v20 = vld [vmem:[#allocation116_spill] sm:$0xff]  ;;  %v12826_v31 = vld [vmem:[#allocation74_spill] sm:$0xff]  ;;  %v12829_v62 = vld [vmem:[#allocation95_spill] sm:$0xff] }
 0x67e   : > { %v5039_v21 = vsel %vm5018_vm13, %v5034_v44, %v5036_v36  ;;  %v5040_v24 = vsel %vm5018_vm13, %v5036_v36, %v5038_v54  ;;  %v4741_v55 = vadd.f32 %v4737_v34, %v4580_v57  ;;  %v4298_v10 = vadd.f32 %v4294_v7, %v10830_v29  ;;  %v12827_v34 = vld [vmem:[#allocation29_spill] sm:$0xff]  ;;  %v12828_v57 = vld [vmem:[#allocation28_spill] sm:$0xff]  ;;  %v12832_v36 = vld [vmem:[#allocation54_spill] sm:$0xff] }
 0x67f   : > { %v11053_v51 = vadd.f32 %v5039_v21, %v4882_v23  ;;  %v11055_v43 = vadd.f32 %v5040_v24, %v4883_v25  ;;  %5435 = vrot.lane.b32.xlu1 %v5429_v2, %s6355_s30  ;;  %5419 = vrot.lane.b32.xlu0 %v5411_v47, %s6355_s30  ;;  %v4299_v44 = vadd.f32 %v4295_v37, %v10841_v42  ;;  %v12824_v42 = vld [vmem:[#allocation71_spill] sm:$0xff]  ;;  %v12825_v37 = vld [vmem:[#allocation70_spill] sm:$0xff]  ;;  %v5468_v50 = vstv %s11032_s22 }
 0x680   : > { %v4439_v16 = vadd.f32 %v4435_v32, %v10927_v39  ;;  %v4738_v28 = vsel %vm4696_vm6, %v12815_v22, %v12820_v58  ;;  %v4440_v56 = vadd.f32 %v4436_v27, %v10975_v49  ;;  %v4455_v2 = vsel %vm4374_vm11, %v12822_v11, %v12821_v40  ;;  %v12830_v23 = vld [vmem:[#allocation94_spill] sm:$0xff] }
 0x681   : > { %v4581_v47 = vadd.f32 %v4577_v12, %v4420_v13  ;;  %v4902_v52 = vadd.f32 %v12823_v20, %v4741_v55  ;;  %v5056_v29 = vpop.permute.xlu1 %5055  ;;  %v5054_v7 = vpop.permute.xlu0 %5053  ;;  %v4596_v39 = vsel %vm4535_vm12, %v12825_v37, %v12824_v42  ;;  %v4597_v8 = vsel %vm4535_vm12, %v12824_v42, %v12826_v31  ;;  %v6132_v13 = vld [vmem:[%s6569_s12] sm:$0xff]  ;;  %v12839_v31 = vld [vmem:[#allocation99_spill] sm:$0xff]  ;;  %s5694_s12 = sshll.u32 %s6565_s5, 7 }
 0x682   : > { %v5059_v49 = vsel %vm5018_vm13, %v5054_v7, %v5056_v29  ;;  %v5450_v32 = vmul.f32 %v6131_v61, %v5448_v6  ;;  %v5449_v22 = vmul.f32 %v6132_v13, %v5448_v6  ;;  %v4314_v48 = vsel %vm4213_vm10, %v12828_v57, %v12827_v34  ;;  %v12831_v25 = vld [vmem:[#allocation98_spill] sm:$0xff]  ;;  %v12837_v37 = vld [vmem:[#allocation52_spill] sm:$0xff]  ;;  %s11241_s27 = scalar_lea.vmem [#allocation10], %s5694_s12 }
 0x683   : > { %v4742_v18 = vadd.f32 %v4738_v28, %v4581_v47  ;;  %v11078_v27 = vadd.f32 %v5059_v49, %v4902_v52  ;;  %5439 = vrot.lane.b32.xlu1 %v5431_v46, %s6355_s30  ;;  %5437 = vrot.lane.b32.xlu0 %v5430_v0, %s6355_s30  ;;  %v4459_v12 = vadd.f32 %v4455_v2, %v4298_v10  ;;  %v12833_v28 = vld [vmem:[#allocation73_spill] sm:$0xff]  ;;  %v12834_v10 = vld [vmem:[#allocation75_spill] sm:$0xff]  ;;  %v12840_v49 = vld [vmem:[#allocation78_spill] sm:$0xff]  ;;  %s5540_s0 = sshll.u32 %s11241_s27, 4  ;;  %s11322_s0 = int_to_ptr.vmem [resolvable:$true] %s5540_s0 }
 0x684   : > { %v4757_v59 = vsel %vm4696_vm6, %v12830_v23, %v12829_v62  ;;  %v4758_v54 = vsel %vm4696_vm6, %v12829_v62, %v12831_v25  ;;  %v4456_v21 = vsel %vm4374_vm11, %v12821_v40, %v12832_v36  ;;  %v4600_v24 = vadd.f32 %v4596_v39, %v4439_v16  ;;  %v12836_v40 = vld [vmem:[#allocation53_spill] sm:$0xff]  ;;  %v12842_v36 = vld [vmem:[#allocation56_spill] sm:$0xff]  ;;  %s6203_s25 = scalar_lea.vmem %s11322_s0, 2048  ;;  %p6210_p3 = scmp.lt.s32.totalorder %s11322_s0, %s6208_s21 }
 0x685   : > { %v4601_v46 = vadd.f32 %v4597_v8, %v4440_v56  ;;  %v4903_v0 = vadd.f32 %v10753_v1, %v4742_v18  ;;  %v5074_v55 = vpop.permute.xlu1 %5073  ;;  %v5058_v58 = vpop.permute.xlu0 %5057  ;;  %v4616_v11 = vsel %vm4535_vm12, %v12834_v10, %v12833_v28  ;;  %v5469_v47 = vmul.f32 %v6132_v13, %v5468_v50  ;;  %v12835_v1 = vld [vmem:[#allocation32_spill] sm:$0xff]  ;;  %v12838_v39 = vld [vmem:[#allocation97_spill] sm:$0xff]  ;;  %p6204_p1 = scmp.ne.s32.totalorder %s11322_s0, %s6203_s25  ;;  %p6211_p7 = scmp.lt.s32.totalorder %s6209_s26, %s6203_s25 }
 0x686   : > { %v5060_v2 = vsel %vm5018_vm13, %v5056_v29, %v5058_v58  ;;  %v5451_v20 = vmul.f32 %v11025_v3, %v5448_v6  ;;  %v4761_v52 = vadd.f32 %v4757_v59, %v4600_v24  ;;  %v4315_v16 = vsel %vm4213_vm10, %v12827_v34, %v12835_v1  ;;  %v12844_v24 = vld [vmem:[#allocation31_spill] sm:$0xff]  ;;  %v12847_v10 = vld [vmem:[#allocation76_spill] sm:$0xff] }
 0x687   : > { %v4762_v7 = vadd.f32 %v4758_v54, %v4601_v46  ;;  %v11102_v42 = vadd.f32 %v5060_v2, %v4903_v0  ;;  %5457 = vrot.lane.b32.xlu1 %v5450_v32, %s6355_s30  ;;  %5455 = vrot.lane.b32.xlu0 %v5449_v22, %s6355_s30  ;;  %v4460_v56 = vadd.f32 %v4456_v21, %v4299_v44  ;;  %v12845_v46 = vld [vmem:[#allocation33_spill] sm:$0xff]  ;;  %v12848_v2 = vld [vmem:[#allocation80_spill] sm:$0xff]  ;;  %p6205_p6 = pnand %p6204_p1, %p12863_p12  ;;  %p6212_p10 = por %p6211_p7, %p6210_p3 }
 0x688   : > { %v4475_v29 = vsel %vm4374_vm11, %v12837_v37, %v12836_v40  ;;  %v4777_v6 = vsel %vm4696_vm6, %v12839_v31, %v12838_v39  ;;  %v4620_v8 = vadd.f32 %v4616_v11, %v4459_v12  ;;  %v4617_v32 = vsel %vm4535_vm12, %v12833_v28, %v12840_v49  ;;  %v12852_v37 = vld [vmem:[#allocation101_spill] sm:$0xff]  ;;  %v12854_v31 = vld [vmem:[#allocation104_spill] sm:$0xff] }
 0x689   : > { %v4922_v18 = vadd.f32 %v10785_v17, %v4761_v52  ;;  %v4923_v13 = vadd.f32 %v10788_v26, %v4762_v7  ;;  %v5078_v22 = vpop.permute.xlu1 %5077  ;;  %v5076_v34 = vpop.permute.xlu0 %5075  ;;  %v5471_v62 = vmul.f32 %v11025_v3, %v5468_v50  ;;  %v5470_v23 = vmul.f32 %v6131_v61, %v5468_v50  ;;  %v12841_v17 = vld [vmem:[#allocation20_spill] sm:$0xff]  ;;  %v12843_v61 = vld [vmem:[#allocation102_spill] sm:$0xff]  ;;  %p6206_p2 = pneg %p6205_p6 }
 0x68a   : > { %v5079_v44 = vsel %vm5018_vm13, %v5074_v55, %v5076_v34  ;;  %v5080_v57 = vsel %vm5018_vm13, %v5076_v34, %v5078_v22  ;;  %v4781_v59 = vadd.f32 %v4777_v6, %v4620_v8  ;;  %v4174_v26 = vsel %vm4052_vm9, %v9172_v9, %v12841_v17  ;;  %v12855_v34 = vld [vmem:[#allocation36_spill] sm:$0xff] }
 0x68b   : > { %v11123_v25 = vadd.f32 %v5079_v44, %v4922_v18  ;;  %v11125_v12 = vadd.f32 %v5080_v57, %v4923_v13  ;;  %5475 = vrot.lane.b32.xlu1 %v5469_v47, %s6355_s30  ;;  %5459 = vrot.lane.b32.xlu0 %v5451_v20, %s6355_s30  ;;  %v4318_v54 = vadd.f32 %v4314_v48, %v10843_v53  ;;  %v12846_v48 = vld [vmem:[#allocation77_spill] sm:$0xff]  ;;  %v12856_v57 = vld [vmem:[#allocation79_spill] sm:$0xff]  ;;  %p6213_p5 = pnand %p6212_p10, %p6206_p2 }
 0x68c   : > { %v4476_v3 = vsel %vm4374_vm11, %v12836_v40, %v12842_v36  ;;  %v4778_v50 = vsel %vm4696_vm6, %v12838_v39, %v12843_v61  ;;  %v4319_v21 = vadd.f32 %v4315_v16, %v10845_v19  ;;  %v4334_v0 = vsel %vm4213_vm10, %v12845_v46, %v12844_v24  ;;  %v12850_v16 = vld [vmem:[#allocation55_spill] sm:$0xff]  ;;  %v12860_v61 = vld [vmem:[#allocation105_spill] sm:$0xff] }
 0x68d   : > { %v4621_v55 = vadd.f32 %v4617_v32, %v4460_v56  ;;  %v4942_v58 = vadd.f32 %v10811_v33, %v4781_v59  ;;  %v5096_v9 = vpop.permute.xlu1 %5095  ;;  %v5094_v28 = vpop.permute.xlu0 %5093  ;;  %v4479_v53 = vadd.f32 %v4475_v29, %v4318_v54  ;;  %v4636_v11 = vsel %vm4535_vm12, %v12847_v10, %v12846_v48  ;;  %v12849_v33 = vld [vmem:[#allocation111_spill] sm:$0xff]  ;;  %v12851_v56 = vld [vmem:[#allocation57_spill] sm:$0xff]  ;;  %v12853_v29 = vld [vmem:[#allocation100_spill] sm:$0xff] }
 0x68e   : > { %v4637_v47 = vsel %vm4535_vm12, %v12846_v48, %v12848_v2  ;;  %v5099_v19 = vsel %vm5018_vm13, %v5094_v28, %v5096_v9  ;;  %v4480_v20 = vadd.f32 %v4476_v3, %v4319_v21  ;;  %v4017_v1 = vadd.f32 %v10762_v14, %v12849_v33  ;;  %v12858_v3 = vld [vmem:[#allocation60_spill] sm:$0xff] }
 0x68f   : > { %v4782_v52 = vadd.f32 %v4778_v50, %v4621_v55  ;;  %v11151_v7 = vadd.f32 %v5099_v19, %v4942_v58  ;;  %5479 = vrot.lane.b32.xlu1 %v5471_v62, %s6355_s30  ;;  %5477 = vrot.lane.b32.xlu0 %v5470_v23, %s6355_s30  ;;  %v4495_v40 = vsel %vm4374_vm11, %v12851_v56, %v12850_v16  ;;  %v12857_v62 = vld [vmem:[#allocation81_spill] sm:$0xff]  ;;  %v12862_v19 = vld [vmem:[#allocation108_spill] sm:$0xff] }
 0x690   : > { %v4797_v39 = vsel %vm4696_vm6, %v12853_v29, %v12852_v37  ;;  %v4798_v6 = vsel %vm4696_vm6, %v12852_v37, %v12854_v31  ;;  %v4338_v8 = vadd.f32 %v4334_v0, %v10850_v30  ;;  %v4640_v49 = vadd.f32 %v4636_v11, %v4479_v53 }
 0x691   : > { %v4641_v32 = vadd.f32 %v4637_v47, %v4480_v20  ;;  %v4943_v18 = vadd.f32 %v10848_v35, %v4782_v52  ;;  %v5114_v13 = vpop.permute.xlu1 %5113  ;;  %v5098_v14 = vpop.permute.xlu0 %5097  ;;  %v4178_v22 = vadd.f32 %v4174_v26, %v4017_v1  ;;  %v4335_v44 = vsel %vm4213_vm10, %v12844_v24, %v12855_v34  ;;  %v12859_v26 = vld [vmem:[#allocation103_spill] sm:$0xff] }
 0x692   : > { %v4656_v23 = vsel %vm4535_vm12, %v12857_v62, %v12856_v57  ;;  %v5100_v59 = vsel %vm5018_vm13, %v5096_v9, %v5098_v14  ;;  %v4499_v17 = vadd.f32 %v4495_v40, %v4338_v8  ;;  %v4801_v54 = vadd.f32 %v4797_v39, %v4640_v49  ;;  %v12861_v9 = vld [vmem:[#allocation84_spill] sm:$0xff] }
 0x693   : > { %v4802_v30 = vadd.f32 %v4798_v6, %v4641_v32  ;;  %v11175_v36 = vadd.f32 %v5100_v59, %v4943_v18  ;;  %v4496_v35 = vsel %vm4374_vm11, %v12850_v16, %v12858_v3  ;;  %v4817_v50 = vsel %vm4696_vm6, %v12860_v61, %v12859_v26 }
 0x694   : > { %v4339_v21 = vadd.f32 %v4335_v44, %v4178_v22  ;;  %v4660_v24 = vadd.f32 %v4656_v23, %v4499_v17  ;;  %v4962_v46 = vadd.f32 %v10880_v60, %v4801_v54  ;;  %v4657_v28 = vsel %vm4535_vm12, %v12856_v57, %v12861_v9 }
 0x695   : > { %v4963_v0 = vadd.f32 %v10883_v4, %v4802_v30  ;;  %v5118_v55 = vpop.permute.xlu1 %5117  ;;  %v5116_v58 = vpop.permute.xlu0 %5115  ;;  %v4818_v60 = vsel %vm4696_vm6, %v12859_v26, %v12862_v19 }
 0x696   : > { %v5119_v53 = vsel %vm5018_vm13, %v5114_v13, %v5116_v58  ;;  %v5120_v48 = vsel %vm5018_vm13, %v5116_v58, %v5118_v55  ;;  %v4500_v10 = vadd.f32 %v4496_v35, %v4339_v21  ;;  %v4821_v11 = vadd.f32 %v4817_v50, %v4660_v24 }
 0x697   : > { %v11190_v2 = vadd.f32 %v5119_v53, %v4962_v46  ;;  %v11192_v47 = vadd.f32 %v5120_v48, %v4963_v0 }
 0x698   : > { %v4661_v4 = vadd.f32 %v4657_v28, %v4500_v10  ;;  %v4982_v20 = vadd.f32 %v10911_v63, %v4821_v11 }
 0x699   : > { %v5136_v52 = vpop.permute.xlu1 %5135  ;;  %v5134_v33 = vpop.permute.xlu0 %5133 }
 0x69a   : > { %v5139_v1 = vsel %vm5018_vm13, %v5134_v33, %v5136_v52  ;;  %v4822_v16 = vadd.f32 %v4818_v60, %v4661_v4 }
 0x69b   : > { %v11199_v56 = vadd.f32 %v5139_v1, %v4982_v20 }
 0x69c   : > { %v4983_v40 = vadd.f32 %v10942_v15, %v4822_v16 }
 0x69d   : > { %v5154_v37 = vpop.permute.xlu1 %5153  ;;  %v5138_v29 = vpop.permute.xlu0 %5137 }
 0x69e   : > { %v5140_v39 = vsel %vm5018_vm13, %v5136_v52, %v5138_v29 }
 0x69f   : > { %v11203_v31 = vadd.f32 %v5140_v39, %v4983_v40 }
 0x6a1   : > { %v5158_v6 = vpop.permute.xlu1 %5157  ;;  %v5156_v8 = vpop.permute.xlu0 %5155 }
 0x6a2   : > { %v5159_v49 = vsel %vm5018_vm13, %v5154_v37, %v5156_v8  ;;  %v5160_v63 = vsel %vm5018_vm13, %v5156_v8, %v5158_v6 }
 0x6a3   : > { %v11208_v32 = vadd.f32 %v5159_v49, %v10967_v5  ;;  %v11211_v18 = vadd.f32 %v5160_v63, %v10969_v45 }
 0x6a5   : > { %v5176_v13 = vpop.permute.xlu1 %5175  ;;  %v5174_v15 = vpop.permute.xlu0 %5173 }
 0x6a6   : > { %v5180_v55 = vsel %vm5179_vm14, %v5174_v15, %v5176_v13 }
 0x6a7   : > { %v5184_v58 = vadd.f32 %v5180_v55, %v10997_v38 }
 0x6a9   : > { %v5195_v14 = vpop.permute.xlu1 %5194  ;;  %v5178_v22 = vpop.permute.xlu0 %5177 }
 0x6aa   : > { %v5181_v53 = vsel %vm5179_vm14, %v5176_v13, %v5178_v22 }
 0x6ab   : > { %v5185_v11 = vadd.f32 %v5181_v53, %v11028_v41 }
 0x6ad   : > { %v5199_v34 = vpop.permute.xlu1 %5198  ;;  %v5197_v44 = vpop.permute.xlu0 %5196 }
 0x6ae   : > { %v5200_v4 = vsel %vm5179_vm14, %v5195_v14, %v5197_v44  ;;  %v5201_v38 = vsel %vm5179_vm14, %v5197_v44, %v5199_v34 }
 0x6af   : > { %v5204_v33 = vadd.f32 %v5200_v4, %v11053_v51  ;;  %v5205_v41 = vadd.f32 %v5201_v38, %v11055_v43 }
 0x6b1   : > { %v5217_v57 = vpop.permute.xlu1 %5216  ;;  %v5215_v62 = vpop.permute.xlu0 %5214 }
 0x6b2   : > { %v5220_v40 = vsel %vm5179_vm14, %v5215_v62, %v5217_v57 }
 0x6b3   : > { %v5224_v8 = vadd.f32 %v5220_v40, %v11078_v27 }
 0x6b5   : > { %v5235_v23 = vpop.permute.xlu1 %5234  ;;  %v5219_v59 = vpop.permute.xlu0 %5218 }
 0x6b6   : > { %v5221_v43 = vsel %vm5179_vm14, %v5217_v57, %v5219_v59 }
 0x6b7   : > { %v5225_v15 = vadd.f32 %v5221_v43, %v11102_v42 }
 0x6b9   : > { %v5239_v17 = vpop.permute.xlu1 %5238  ;;  %v5237_v54 = vpop.permute.xlu0 %5236 }
 0x6ba   : > { %v5240_v34 = vsel %vm5179_vm14, %v5235_v23, %v5237_v54  ;;  %v5241_v27 = vsel %vm5179_vm14, %v5237_v54, %v5239_v17 }
 0x6bb   : > { %v5244_v55 = vadd.f32 %v5240_v34, %v11123_v25  ;;  %v5245_v57 = vadd.f32 %v5241_v27, %v11125_v12 }
 0x6bd   : > { %v11213_v30 = vpop.permute.xlu1 %5256  ;;  %v5255_v5 = vpop.permute.xlu0 %5254 }
 0x6c1   : > { %v11215_v3 = vpop.permute.xlu1 %5274  ;;  %v11217_v45 = vpop.permute.xlu0 %5258 }
 0x6c2   : > { %v5261_v53 = vsel %vm5179_vm14, %v11213_v30, %v11217_v45 }
 0x6c5   : > { %v11219_v35 = vpop.permute.xlu1 %5278  ;;  %v11221_v26 = vpop.permute.xlu0 %5276 }
 0x6c9   : > { %v11223_v61 = vpop.permute.xlu1 %5296  ;;  %v11225_v50 = vpop.permute.xlu0 %5294 }
 0x6cd   : > { %v11227_v21 = vpop.permute.xlu1 %5314  ;;  %v11229_v24 = vpop.permute.xlu0 %5298 }
 0x6d1   : > { %v11231_v46 = vpop.permute.xlu1 %5318  ;;  %v11233_v0 = vpop.permute.xlu0 %5316 }
 0x6d5   : > { %v5337_v9 = vpop.permute.xlu1 %5336  ;;  %v5335_v28 = vpop.permute.xlu0 %5334 }
 0x6d6   : > { %v5341_v48 = vsel %vm5340_vm15, %v5335_v28, %v5337_v9 }
 0x6d7   : > { %v5345_v10 = vadd.f32 %v5341_v48, %v5184_v58  ;;  %v5260_v58 = vsel %vm5179_vm14, %v5255_v5, %v11213_v30 }
 0x6d8   : > { %v5264_v54 = vadd.f32 %v5260_v58, %v11151_v7  ;;  %v5280_v7 = vsel %vm5179_vm14, %v11215_v3, %v11221_v26  ;;  %v5300_v3 = vsel %vm5179_vm14, %v11225_v50, %v11223_v61 }
 0x6d9   : > { %5487 = vst [vmem:[%s11241_s27] sm:$0xff] %v5345_v10  ;;  %v5356_v19 = vpop.permute.xlu1 %5355  ;;  %v5339_v60 = vpop.permute.xlu0 %5338  ;;  %v5265_v10 = vadd.f32 %v5261_v53, %v11175_v36  ;;  %v5284_v4 = vadd.f32 %v5280_v7, %v11190_v2 }
 0x6da   : > { %v5342_v20 = vsel %vm5340_vm15, %v5337_v9, %v5339_v60  ;;  %v5281_v60 = vsel %vm5179_vm14, %v11221_v26, %v11219_v35 }
 0x6db   : > { %v5346_v52 = vadd.f32 %v5342_v20, %v5185_v11  ;;  %v5285_v36 = vadd.f32 %v5281_v60, %v11192_v47 }
 0x6dd   : > { %5488 = vst [vmem:[%s11241_s27 + $0x8] sm:$0xff] %v5346_v52  ;;  %v5360_v1 = vpop.permute.xlu1 %5359  ;;  %v5358_v16 = vpop.permute.xlu0 %5357 }
 0x6de   : > { %v5361_v37 = vsel %vm5340_vm15, %v5356_v19, %v5358_v16  ;;  %v5362_v29 = vsel %vm5340_vm15, %v5358_v16, %v5360_v1  ;;  %v5301_v1 = vsel %vm5179_vm14, %v11223_v61, %v11229_v24 }
 0x6df   : > { %v5365_v39 = vadd.f32 %v5361_v37, %v5204_v33  ;;  %v5366_v6 = vadd.f32 %v5362_v29, %v5205_v41  ;;  %v5304_v41 = vadd.f32 %v5300_v3, %v11199_v56  ;;  %v5305_v40 = vadd.f32 %v5301_v1, %v11203_v31 }
 0x6e0   : > { %v5320_v56 = vsel %vm5179_vm14, %v11227_v21, %v11233_v0 }
 0x6e1   : > { %5958 = vst [vmem:[%s11241_s27 + $0x10] sm:$0xff] %v5365_v39  ;;  %5959 = vst [vmem:[%s11241_s27 + $0x18] sm:$0xff] %v5366_v6  ;;  %v5378_v51 = vpop.permute.xlu1 %5377  ;;  %v5376_v49 = vpop.permute.xlu0 %5375  ;;  %v5321_v39 = vsel %vm5179_vm14, %v11233_v0, %v11231_v46  ;;  %v5324_v31 = vadd.f32 %v5320_v56, %v11208_v32 }
 0x6e2   : > { %v5381_v63 = vsel %vm5340_vm15, %v5376_v49, %v5378_v51  ;;  %v5325_v24 = vadd.f32 %v5321_v39, %v11211_v18 }
 0x6e3   : > { %v5385_v13 = vadd.f32 %v5381_v63, %v5224_v8 }
 0x6e5   : > { %5960 = vst [vmem:[%s11241_s27 + $0x20] sm:$0xff] %v5385_v13  ;;  %v5396_v14 = vpop.permute.xlu1 %5395  ;;  %v5380_v22 = vpop.permute.xlu0 %5379 }
 0x6e6   : > { %v5382_v44 = vsel %vm5340_vm15, %v5378_v51, %v5380_v22 }
 0x6e7   : > { %v5386_v62 = vadd.f32 %v5382_v44, %v5225_v15 }
 0x6e9   : > { %5961 = vst [vmem:[%s11241_s27 + $0x28] sm:$0xff] %v5386_v62  ;;  %v5400_v59 = vpop.permute.xlu1 %5399  ;;  %v5398_v42 = vpop.permute.xlu0 %5397 }
 0x6ea   : > { %v5401_v9 = vsel %vm5340_vm15, %v5396_v14, %v5398_v42  ;;  %v5402_v23 = vsel %vm5340_vm15, %v5398_v42, %v5400_v59 }
 0x6eb   : > { %v5405_v28 = vadd.f32 %v5401_v9, %v5244_v55  ;;  %v5406_v17 = vadd.f32 %v5402_v23, %v5245_v57 }
 0x6ed   : > { %5962 = vst [vmem:[%s11241_s27 + $0x30] sm:$0xff] %v5405_v28  ;;  %5963 = vst [vmem:[%s11241_s27 + $0x38] sm:$0xff] %v5406_v17  ;;  %v5418_v25 = vpop.permute.xlu1 %5417  ;;  %v5416_v12 = vpop.permute.xlu0 %5415 }
 0x6ee   : > { %v5421_v48 = vsel %vm5340_vm15, %v5416_v12, %v5418_v25 }
 0x6ef   : > { %v5425_v5 = vadd.f32 %v5421_v48, %v5264_v54 }
 0x6f1   : > { %5964 = vst [vmem:[%s11241_s27 + $0x40] sm:$0xff] %v5425_v5  ;;  %v5436_v11 = vpop.permute.xlu1 %5435  ;;  %v5420_v19 = vpop.permute.xlu0 %5419 }
 0x6f2   : > { %v5422_v30 = vsel %vm5340_vm15, %v5418_v25, %v5420_v19 }
 0x6f3   : > { %v5426_v45 = vadd.f32 %v5422_v30, %v5265_v10 }
 0x6f5   : > { %5965 = vst [vmem:[%s11241_s27 + $0x48] sm:$0xff] %v5426_v45  ;;  %v5440_v38 = vpop.permute.xlu1 %5439  ;;  %v5438_v20 = vpop.permute.xlu0 %5437 }
 0x6f6   : > { %v5441_v52 = vsel %vm5340_vm15, %v5436_v11, %v5438_v20  ;;  %v5442_v33 = vsel %vm5340_vm15, %v5438_v20, %v5440_v38 }
 0x6f7   : > { %v5445_v35 = vadd.f32 %v5441_v52, %v5284_v4  ;;  %v5446_v26 = vadd.f32 %v5442_v33, %v5285_v36 }
 0x6f9   : > { %5966 = vst [vmem:[%s11241_s27 + $0x50] sm:$0xff] %v5445_v35  ;;  %5967 = vst [vmem:[%s11241_s27 + $0x58] sm:$0xff] %v5446_v26  ;;  %v5458_v2 = vpop.permute.xlu1 %5457  ;;  %v5456_v47 = vpop.permute.xlu0 %5455 }
 0x6fa   : > { %v5461_v50 = vsel %vm5340_vm15, %v5456_v47, %v5458_v2 }
 0x6fb   : > { %v5465_v16 = vadd.f32 %v5461_v50, %v5304_v41 }
 0x6fd   : > { %5968 = vst [vmem:[%s11241_s27 + $0x60] sm:$0xff] %v5465_v16  ;;  %v5476_v37 = vpop.permute.xlu1 %5475  ;;  %v5460_v29 = vpop.permute.xlu0 %5459 }
 0x6fe   : > { %v5462_v6 = vsel %vm5340_vm15, %v5458_v2, %v5460_v29 }
 0x6ff   : > { %v5466_v61 = vadd.f32 %v5462_v6, %v5305_v40 }
 0x701   : > { %5969 = vst [vmem:[%s11241_s27 + $0x68] sm:$0xff] %v5466_v61  ;;  %v5480_v8 = vpop.permute.xlu1 %5479  ;;  %v5478_v21 = vpop.permute.xlu0 %5477 }
 0x702   : > { %v5481_v46 = vsel %vm5340_vm15, %v5476_v37, %v5478_v21  ;;  %v5482_v0 = vsel %vm5340_vm15, %v5478_v21, %v5480_v8 }
 0x703   : > { %v5485_v32 = vadd.f32 %v5481_v46, %v5324_v31  ;;  %v5486_v51 = vadd.f32 %v5482_v0, %v5325_v24 }
 0x705   : > { %5970 = vst [vmem:[%s11241_s27 + $0x70] sm:$0xff] %v5485_v32  ;;  %5971 = vst [vmem:[%s11241_s27 + $0x78] sm:$0xff] %v5486_v51 }
 0x706   : > { %6216 = shalt.err (!%p6213_p5)
}
 0x707   : > { %s6217_s8 = scalar_lea.hbm %s11318_s23, 2048  ;;  %s6221_s29 = scalar_lea.hbm %s11384_s3, 6144 }
 0x708   : > { %p6218_p13 = scmp.ne.s32.totalorder %s11318_s23, %s6217_s8  ;;  %p6222_p8 = scmp.lt.u32.totalorder %s11318_s23, %s11384_s3 }
 0x709   : > { %p6223_p11 = scmp.lt.u32.totalorder %s6221_s29, %s6217_s8  ;;  %p6225_p1 = scmp.lt.u32.totalorder %s6217_s8, %s11318_s23 }
 0x70a   : > { %p6219_p4 = pnand %p6218_p13, %p12863_p12 }
 0x70b   : > { %p6224_p9 = por %p6223_p11, %p6222_p8 }
 0x70c   : > { %p6220_p0 = pneg %p6219_p4 }
 0x70d   : > { %p6226_p6 = por %p6225_p1, %p6224_p9 }
 0x70f   : > { %p6227_p2 = pnand %p6226_p6, %p6220_p0 }
 0x711   : > { %6230 = shalt.err (!%p6227_p2)
}
 0x712   : > { %s6357_s4 = smov 256   ;;  %s6358_s22 = smov 768  }
 0x713   : > { %s6359_s12 = smov 16  }
 0x714   : > { %5991 = dma.vmem_to_hbm [thread:$0]  (%p12863_p12), %s11322_s0, 2048, %s11318_s23, %s5525_s18, %s6357_s4, %s6358_s22, %s6359_s12  }
 0x715 PF: > { %s12864_s27 = sld [smem:[#allocation15_spill]]  ;;  %s12865_s15 = sld [smem:[#allocation19_spill]] }
 0x716   : > { %p6003_p3 = scmp.ge.s32.totalorder %s6319_s20, 2 }
 0x71b   : > { %s5555_s6 = sand.u32 1, %s12864_s27   ;;  %p12866_p7 = scmp.ne.s32.totalorder %s12865_s15, 0 }
 0x71c   : > { %s5556_s7 = scalar_lea.sflag [#allocation5], %s5555_s6 }
 0x71d   : > { %p5998_p10 = pnand %p6003_p3, %p12866_p7 }
 0x71f   : > { %6280 = dma.done.wait (!%p5998_p10), %s5556_s7, 2048  }
 0x720   : > { %6282 = vsyncadd (!%p5998_p10), %s5556_s7, 4294965248  ;;  %s23_s20 = sadd.s32 1, %s6319_s20   ;;  %s12867_s25 = sld [smem:[#allocation18_spill]] }
 0x721   : > { %p20_p5 = scmp.ge.s32.totalorder %s23_s20, 5   ;;  %s12868_s24 = sld [smem:[#allocation17_spill]] }
 0x722   : > { %s12869_s5 = sld [smem:[#allocation16_spill]]  ;;  %s12870_s12 = smov %s6291_s13 }
 0x723   : > { %s12871_s13 = smov %s6295_s14  ;;  %s12873_s15 = smov %s6303_s16 }
 0x724   : > { %s12874_s16 = smov %s6307_s17  ;;  %s12876_s18 = smov %s6315_s19 }
 0x725   :  { %22 = sbr.rel (!%p20_p5) target bundleno = 13 (0xd), region = 102 }
 0x726   : > { %s12872_s14 = smov %s12867_s25 }
 0x727   : > { %s12875_s17 = smov %s12868_s24 }
 0x728   : > { %s12877_s19 = smov %s12869_s5 }
 0x72c   :  { %5561 = vsyncpa [#allocation4], 1 }
 0x72d   :  { %5563 = vsyncpa [#allocation4 + $0x1], 1 }
 0x72e   :  { %5564 = vsyncpa [#allocation9], 1 }
 0x72f   :  { %5566 = vsyncpa [#allocation9 + $0x1], 1 }
 0x730   :  { %5567 = vsyncpa [#allocation5], 1 }
 0x731   :  { %5569 = vsyncpa [#allocation5 + $0x1], 1 }
 0x732   :  { %5570 = vsyncpa [#allocation6], 1 }
 0x733   :  { %5572 = vsyncpa [#allocation6 + $0x1], 1 }

</bundles_post_ra>
